<compile_context>
chip_gen: v6e
topology: v6e:2x2x1
jax: 0.10.0
libtpu: 0.0.40
codegen_flags: <defaults>
</compile_context>

<pallas_src>
import functools

import jax
import jax.numpy as jnp
from jax.experimental import pallas as pl
from jax.experimental.pallas import tpu as pltpu


_VMEM_LIMIT = 48 * 1024 * 1024  # fits v7x's 64 MiB physical VMEM with headroom
_LRELU_SLOPE = 0.2
_IN_EPS = 1e-5


# ---------------------------------------------------------------------------
# Pallas kernels
# ---------------------------------------------------------------------------
def _conv_bias_act_kernel(p_ref, w_ref, b_ref, o_ref, *, apply_lrelu, slope):
    """One (TM, K) x (K, TN) tile of the im2col conv: matmul + bias (+ LReLU)."""
    acc = jnp.dot(p_ref[...], w_ref[...], preferred_element_type=jnp.float32)
    acc = acc + b_ref[...]                         # (TM, TN) + (1, TN), f32
    if apply_lrelu:
        acc = jnp.where(acc >= 0, acc, slope * acc)
    o_ref[...] = acc


def _conv_inorm_lrelu_kernel(p_ref, w_ref, b_ref, o_ref, *, tm, ohw, eps, slope):
    """Fused conv + InstanceNorm + LeakyReLU for one sample.

    Grid = (N, M_tiles); the per-sample output block (1, OHW_pad, OC) stays
    resident in VMEM across the M axis.  Each M step writes its conv rows; the
    last step computes masked per-channel statistics and normalizes in place.
    """
    m = pl.program_id(1)

    acc = jnp.dot(p_ref[0], w_ref[...], preferred_element_type=jnp.float32)
    acc = acc + b_ref[...]                          # (TM, OC) f32
    start = pl.multiple_of(m * tm, tm)
    o_ref[0, pl.ds(start, tm), :] = acc

    @pl.when(m == pl.num_programs(1) - 1)
    def _():
        x = o_ref[0]                                # (OHW_pad, OC) f32
        row = jax.lax.broadcasted_iota(jnp.int32, x.shape, 0)
        valid = row < ohw
        inv_n = 1.0 / float(ohw)
        xs = jnp.where(valid, x, 0.0)
        mean = jnp.sum(xs, axis=0, keepdims=True) * inv_n
        d = jnp.where(valid, x - mean, 0.0)
        var = jnp.sum(d * d, axis=0, keepdims=True) * inv_n
        y = (x - mean) * jax.lax.rsqrt(var + eps)
        o_ref[0] = jnp.where(y >= 0, y, slope * y)


# ---------------------------------------------------------------------------
# Host-side glue
# ---------------------------------------------------------------------------
def _round_up(x, m):
    return (x + m - 1) // m * m


def _extract_patches(x_nhwc, kh, kw, stride, pad):
    """im2col: returns (N, OH, OW, KH*KW*C) patch tensor, plus OH, OW."""
    n, h, w, c = x_nhwc.shape
    xp = jnp.pad(x_nhwc, ((0, 0), (pad, pad), (pad, pad), (0, 0)))
    oh = (h + 2 * pad - kh) // stride + 1
    ow = (w + 2 * pad - kw) // stride + 1
    cols = []
    for i in range(kh):
        for j in range(kw):
            cols.append(
                xp[:, i:i + stride * oh:stride, j:j + stride * ow:stride, :]
            )
    return jnp.concatenate(cols, axis=-1), oh, ow


def _pad_wb(w, b, k, oc, k_pad, oc_pad):
    w2 = jnp.pad(w.reshape(k, oc), ((0, k_pad - k), (0, oc_pad - oc)))
    b2 = jnp.pad(b, (0, oc_pad - oc)).reshape(1, oc_pad).astype(jnp.float32)
    return w2.astype(jnp.bfloat16), b2


def conv2d_pallas(x_nhwc, w, b, *, stride, pad, apply_lrelu):
    """Tiled im2col conv (+ optional fused LeakyReLU).  Layers 1 and 5."""
    kh, kw, ic, oc = w.shape
    n = x_nhwc.shape[0]
    patches, oh, ow = _extract_patches(x_nhwc, kh, kw, stride, pad)

    k = kh * kw * ic
    m = n * oh * ow
    k_pad = _round_up(k, 128)
    oc_pad = _round_up(oc, 128)
    tm = min(512, _round_up(m, 8))
    m_pad = _round_up(m, tm)
    tn = min(128, oc_pad)

    p = patches.reshape(m, k)
    p = jnp.pad(p, ((0, m_pad - m), (0, k_pad - k))).astype(jnp.bfloat16)
    w2, b2 = _pad_wb(w, b, k, oc, k_pad, oc_pad)

    grid = (oc_pad // tn, m_pad // tm)   # M innermost -> weights resident over M
    cost = pl.CostEstimate(
        flops=2 * m_pad * k_pad * oc_pad,
        transcendentals=0,
        bytes_accessed=p.size * 2 + w2.size * 2 + b2.size * 4
        + m_pad * oc_pad * 4,
    )

    out = pl.pallas_call(
        functools.partial(_conv_bias_act_kernel,
                          apply_lrelu=apply_lrelu, slope=_LRELU_SLOPE),
        out_shape=jax.ShapeDtypeStruct((m_pad, oc_pad), jnp.float32),
        grid=grid,
        in_specs=[
            pl.BlockSpec((tm, k_pad), lambda j, i: (i, 0)),
            pl.BlockSpec((k_pad, tn), lambda j, i: (0, j)),   # resident over i
            pl.BlockSpec((1, tn), lambda j, i: (0, j)),       # resident over i
        ],
        out_specs=pl.BlockSpec((tm, tn), lambda j, i: (i, j)),
        compiler_params=pltpu.CompilerParams(
            dimension_semantics=("parallel", "parallel"),
            vmem_limit_bytes=_VMEM_LIMIT),
        cost_estimate=cost,
    )(p, w2, b2)

    return out[:m, :oc].reshape(n, oh, ow, oc)


def conv2d_inorm_lrelu_pallas(x_nhwc, w, b, *, stride, pad):
    """Fused tiled conv + InstanceNorm(affine=False) + LeakyReLU.  Layers 2-4."""
    kh, kw, ic, oc = w.shape
    n = x_nhwc.shape[0]
    patches, oh, ow = _extract_patches(x_nhwc, kh, kw, stride, pad)

    k = kh * kw * ic
    ms = oh * ow                                   # rows per sample
    k_pad = _round_up(k, 128)
    oc_pad = _round_up(oc, 128)                    # 128/256/512 already aligned
    tm = min(256, _round_up(ms, 8))
    ms_pad = _round_up(ms, tm)

    p = patches.reshape(n, ms, k)
    p = jnp.pad(p, ((0, 0), (0, ms_pad - ms), (0, k_pad - k))).astype(jnp.bfloat16)
    w2, b2 = _pad_wb(w, b, k, oc, k_pad, oc_pad)

    grid = (n, ms_pad // tm)
    cost = pl.CostEstimate(
        flops=2 * n * ms_pad * k_pad * oc_pad,
        transcendentals=0,
        bytes_accessed=p.size * 2 + w2.size * 2 + b2.size * 4
        + n * ms_pad * oc_pad * 4,
    )

    out = pl.pallas_call(
        functools.partial(_conv_inorm_lrelu_kernel,
                          tm=tm, ohw=ms, eps=_IN_EPS, slope=_LRELU_SLOPE),
        out_shape=jax.ShapeDtypeStruct((n, ms_pad, oc_pad), jnp.float32),
        grid=grid,
        in_specs=[
            pl.BlockSpec((1, tm, k_pad), lambda b_, m_: (b_, m_, 0)),
            pl.BlockSpec((k_pad, oc_pad), lambda b_, m_: (0, 0)),   # resident
            pl.BlockSpec((1, oc_pad), lambda b_, m_: (0, 0)),       # resident
        ],
        out_specs=pl.BlockSpec((1, ms_pad, oc_pad), lambda b_, m_: (b_, 0, 0)),
        compiler_params=pltpu.CompilerParams(
            dimension_semantics=("parallel", "arbitrary"),
            vmem_limit_bytes=_VMEM_LIMIT),
        cost_estimate=cost,
    )(p, w2, b2)

    return out[:, :ms, :oc].reshape(n, oh, ow, oc)


# ---------------------------------------------------------------------------
# Discriminator parameters + forward
# ---------------------------------------------------------------------------
def init_discriminator_params(key, input_channels):
    """Deterministic synthetic weights.  Weight layout: (KH, KW, IC, OC)."""
    layer_defs = [
        (input_channels, 64),
        (64, 128),
        (128, 256),
        (256, 512),
        (512, 1),
    ]
    params = []
    for idx, (ic, oc) in enumerate(layer_defs):
        kw_key, kb_key = jax.random.split(jax.random.fold_in(key, idx))
        w = jax.random.normal(kw_key, (4, 4, ic, oc), jnp.float32) * 0.02
        b = jax.random.normal(kb_key, (oc,), jnp.float32) * 0.01
        params.append((w, b))
    return params


def discriminator_forward(params, x_nchw):
    """x_nchw: (N, C, H, W) float32 -> (N, 1, H', W') float32."""
    x = jnp.transpose(x_nchw, (0, 2, 3, 1))  # NCHW -> NHWC

    # layer 1: conv s2 + leaky relu (fused in the matmul epilogue)
    x = conv2d_pallas(x, *params[0], stride=2, pad=1, apply_lrelu=True)
    # layers 2-4: conv + instance norm + leaky relu fused in one kernel
    x = conv2d_inorm_lrelu_pallas(x, *params[1], stride=2, pad=1)
    x = conv2d_inorm_lrelu_pallas(x, *params[2], stride=2, pad=1)
    x = conv2d_inorm_lrelu_pallas(x, *params[3], stride=1, pad=1)
    # layer 5: conv s1, no activation (OC=1 padded to a 128-lane store)
    x = conv2d_pallas(x, *params[4], stride=1, pad=1, apply_lrelu=False)

    return jnp.transpose(x, (0, 3, 1, 2))    # NHWC -> NCHW


if __name__ == "__main__":
    key = jax.random.PRNGKey(0)
    k_params, k_input = jax.random.split(key)

    input_channels = 3
    # Small but deep enough that all 5 conv layers produce valid (>0) spatial dims:
    # 32 -> 16 -> 8 -> 4 -> 3 -> 2
    x = jax.random.normal(k_input, (2, input_channels, 32, 32), jnp.float32)

    params = init_discriminator_params(k_params, input_channels)
    fwd = jax.jit(discriminator_forward)
    out = jax.block_until_ready(fwd(params, x))

    assert out.shape == (2, 1, 2, 2), out.shape
    assert out.dtype == jnp.float32
    print("KERNEL_OK")
</pallas_src>

<mosaic_0001>
module attributes {stable_mosaic.version = 11 : i64} {
  func.func @_conv_bias_act_kernel(%arg0: i32, %arg1: i32, %arg2: memref<512x128xbf16, #tpu.memory_space<vmem>>, %arg3: memref<128x128xbf16, #tpu.memory_space<vmem>>, %arg4: memref<1x128xf32, #tpu.memory_space<vmem>>, %arg5: memref<512x128xf32, #tpu.memory_space<vmem>>) attributes {dimension_semantics = [#tpu.dimension_semantics<parallel>, #tpu.dimension_semantics<parallel>], iteration_bounds = array<i64: 1, 1>, scalar_prefetch = 0 : i64, scratch_operands = 0 : i64, tpu.core_type = #tpu.core_type<tc>, window_params = [{transform_indices = @transform_0, window_bounds = array<i64: 512, 128>}, {transform_indices = @transform_1, window_bounds = array<i64: 128, 128>}, {transform_indices = @transform_2, window_bounds = array<i64: 1, 128>}, {transform_indices = @transform_3, window_bounds = array<i64: 512, 128>}]} {
    %c0 = arith.constant 0 : index
    %c0_0 = arith.constant 0 : index
    %0 = vector.load %arg2[%c0, %c0_0] : memref<512x128xbf16, #tpu.memory_space<vmem>>, vector<512x128xbf16>
    %c0_1 = arith.constant 0 : index
    %c0_2 = arith.constant 0 : index
    %1 = vector.load %arg3[%c0_1, %c0_2] : memref<128x128xbf16, #tpu.memory_space<vmem>>, vector<128x128xbf16>
    %cst = arith.constant dense<0.000000e+00> : vector<512x128xf32>
    %2 = tpu.matmul %0, %1, %cst {dimension_numbers = #tpu.dot_dimension_numbers<[1], [0], [0], [1], [0, 0, 1, 1], [], []>} : vector<512x128xbf16>, vector<128x128xbf16>, vector<512x128xf32> -> vector<512x128xf32>
    %c0_3 = arith.constant 0 : index
    %c0_4 = arith.constant 0 : index
    %3 = vector.load %arg4[%c0_3, %c0_4] : memref<1x128xf32, #tpu.memory_space<vmem>>, vector<1x128xf32>
    %4 = vector.broadcast %3 : vector<1x128xf32> to vector<512x128xf32>
    %5 = arith.addf %2, %4 : vector<512x128xf32>
    %cst_5 = arith.constant 0.000000e+00 : f32
    %6 = vector.broadcast %cst_5 : f32 to vector<512x128xf32>
    %7 = arith.cmpf oge, %5, %6 : vector<512x128xf32>
    %cst_6 = arith.constant 2.000000e-01 : f32
    %8 = vector.broadcast %cst_6 : f32 to vector<512x128xf32>
    %9 = arith.mulf %8, %5 : vector<512x128xf32>
    %10 = arith.select %7, %5, %9 : vector<512x128xi1>, vector<512x128xf32>
    %c0_7 = arith.constant 0 : index
    %c0_8 = arith.constant 0 : index
    %11 = vector.load %arg5[%c0_7, %c0_8] : memref<512x128xf32, #tpu.memory_space<vmem>>, vector<512x128xf32>
    tpu.vector_store %arg5[%c0_7, %c0_8], %10 {strides = array<i32>} : memref<512x128xf32, #tpu.memory_space<vmem>>, vector<512x128xf32>,
    return
  }
  func.func @transform_0(%arg0: i32, %arg1: i32) -> (i32, i32) {
    %c0_i32 = arith.constant 0 : i32
    %c0_i32_0 = arith.constant 0 : i32
    return %arg1, %c0_i32 : i32, i32
  }
  func.func @transform_1(%arg0: i32, %arg1: i32) -> (i32, i32) {
    %c0_i32 = arith.constant 0 : i32
    %c0_i32_0 = arith.constant 0 : i32
    return %c0_i32, %arg0 : i32, i32
  }
  func.func @transform_2(%arg0: i32, %arg1: i32) -> (i32, i32) {
    %c0_i32 = arith.constant 0 : i32
    %c0_i32_0 = arith.constant 0 : i32
    return %c0_i32, %arg0 : i32, i32
  }
  func.func @transform_3(%arg0: i32, %arg1: i32) -> (i32, i32) {
    %c0_i32 = arith.constant 0 : i32
    return %arg1, %arg0 : i32, i32
  }
}

module attributes {stable_mosaic.version = 11 : i64} {
  func.func @_conv_inorm_lrelu_kernel(%arg0: i32, %arg1: i32, %arg2: memref<1x64x1024xbf16, #tpu.memory_space<vmem>>, %arg3: memref<1024x128xbf16, #tpu.memory_space<vmem>>, %arg4: memref<1x128xf32, #tpu.memory_space<vmem>>, %arg5: memref<1x64x128xf32, #tpu.memory_space<vmem>>) attributes {dimension_semantics = [#tpu.dimension_semantics<parallel>, #tpu.dimension_semantics<arbitrary>], iteration_bounds = array<i64: 2, 1>, scalar_prefetch = 0 : i64, scratch_operands = 0 : i64, tpu.core_type = #tpu.core_type<tc>, window_params = [{transform_indices = @transform_0, window_bounds = array<i64: 1, 64, 1024>}, {pipeline_mode = #tpu.pipeline_mode<synchronous>, transform_indices = @transform_1, window_bounds = array<i64: 1024, 128>}, {pipeline_mode = #tpu.pipeline_mode<synchronous>, transform_indices = @transform_2, window_bounds = array<i64: 1, 128>}, {transform_indices = @transform_3, window_bounds = array<i64: 1, 64, 128>}]} {
    %c0 = arith.constant 0 : index
    %c0_0 = arith.constant 0 : index
    %c0_1 = arith.constant 0 : index
    %0 = vector.load %arg2[%c0, %c0_0, %c0_1] : memref<1x64x1024xbf16, #tpu.memory_space<vmem>>, vector<1x64x1024xbf16>
    %1 = vector.shape_cast %0 : vector<1x64x1024xbf16> to vector<64x1024xbf16>
    %c0_2 = arith.constant 0 : index
    %c0_3 = arith.constant 0 : index
    %2 = vector.load %arg3[%c0_2, %c0_3] : memref<1024x128xbf16, #tpu.memory_space<vmem>>, vector<1024x128xbf16>
    %cst = arith.constant dense<0.000000e+00> : vector<64x128xf32>
    %3 = tpu.matmul %1, %2, %cst {dimension_numbers = #tpu.dot_dimension_numbers<[1], [0], [0], [1], [0, 0, 1, 1], [], []>} : vector<64x1024xbf16>, vector<1024x128xbf16>, vector<64x128xf32> -> vector<64x128xf32>
    %c0_4 = arith.constant 0 : index
    %c0_5 = arith.constant 0 : index
    %4 = vector.load %arg4[%c0_4, %c0_5] : memref<1x128xf32, #tpu.memory_space<vmem>>, vector<1x128xf32>
    %5 = vector.broadcast %4 : vector<1x128xf32> to vector<64x128xf32>
    %6 = arith.addf %3, %5 : vector<64x128xf32>
    %c64_i32 = arith.constant 64 : i32
    %7 = arith.muli %arg1, %c64_i32 : i32
    %8 = tpu.assume_multiple %7, 64 : i32
    %c0_6 = arith.constant 0 : index
    %9 = arith.index_cast %8 : i32 to index
    %c0_7 = arith.constant 0 : index
    %10 = vector.load %arg5[%c0_6, %9, %c0_7] : memref<1x64x128xf32, #tpu.memory_space<vmem>>, vector<1x64x128xf32>
    %11 = vector.shape_cast %10 : vector<1x64x128xf32> to vector<64x128xf32>
    %12 = vector.shape_cast %6 : vector<64x128xf32> to vector<1x64x128xf32>
    tpu.vector_store %arg5[%c0_6, %9, %c0_7], %12 {strides = array<i32>} : memref<1x64x128xf32, #tpu.memory_space<vmem>>, vector<1x64x128xf32>,
    %c0_i32 = arith.constant 0 : i32
    %13 = arith.cmpi eq, %arg1, %c0_i32 : i32
    %14 = arith.extui %13 : i1 to i32
    %c0_i32_8 = arith.constant 0 : i32
    %15 = arith.cmpi ne, %14, %c0_i32_8 : i32
    scf.if %15 {
      %c0_9 = arith.constant 0 : index
      %c0_10 = arith.constant 0 : index
      %c0_11 = arith.constant 0 : index
      %16 = vector.load %arg5[%c0_9, %c0_10, %c0_11] : memref<1x64x128xf32, #tpu.memory_space<vmem>>, vector<1x64x128xf32>
      %17 = vector.shape_cast %16 : vector<1x64x128xf32> to vector<64x128xf32>
      %18 = tpu.iota {dimensions = array<i32: 0>} : vector<64x128xi32>
      %c64_i32_12 = arith.constant 64 : i32
      %19 = vector.broadcast %c64_i32_12 : i32 to vector<64x128xi32>
      %20 = arith.cmpi slt, %18, %19 : vector<64x128xi32>
      %cst_13 = arith.constant 0.000000e+00 : f32
      %21 = vector.broadcast %cst_13 : f32 to vector<64x128xf32>
      %22 = arith.select %20, %17, %21 : vector<64x128xi1>, vector<64x128xf32>
      %cst_14 = arith.constant dense<0.000000e+00> : vector<128xf32>
      %23 = vector.multi_reduction <add>, %22, %cst_14 [0] : vector<64x128xf32> to vector<128xf32>
      %24 = vector.shape_cast %23 : vector<128xf32> to vector<1x128xf32>
      %cst_15 = arith.constant 1.562500e-02 : f32
      %25 = vector.broadcast %cst_15 : f32 to vector<1x128xf32>
      %26 = arith.mulf %24, %25 : vector<1x128xf32>
      %27 = vector.broadcast %26 : vector<1x128xf32> to vector<64x128xf32>
      %28 = arith.subf %17, %27 : vector<64x128xf32>
      %cst_16 = arith.constant 0.000000e+00 : f32
      %29 = vector.broadcast %cst_16 : f32 to vector<64x128xf32>
      %30 = arith.select %20, %28, %29 : vector<64x128xi1>, vector<64x128xf32>
      %31 = arith.mulf %30, %30 : vector<64x128xf32>
      %cst_17 = arith.constant dense<0.000000e+00> : vector<128xf32>
      %32 = vector.multi_reduction <add>, %31, %cst_17 [0] : vector<64x128xf32> to vector<128xf32>
      %33 = vector.shape_cast %32 : vector<128xf32> to vector<1x128xf32>
      %cst_18 = arith.constant 1.562500e-02 : f32
      %34 = vector.broadcast %cst_18 : f32 to vector<1x128xf32>
      %35 = arith.mulf %33, %34 : vector<1x128xf32>
      %36 = vector.broadcast %26 : vector<1x128xf32> to vector<64x128xf32>
      %37 = arith.subf %17, %36 : vector<64x128xf32>
      %cst_19 = arith.constant 9.99999974E-6 : f32
      %38 = vector.broadcast %cst_19 : f32 to vector<1x128xf32>
      %39 = arith.addf %35, %38 : vector<1x128xf32>
      %40 = math.rsqrt %39 : vector<1x128xf32>
      %41 = vector.broadcast %40 : vector<1x128xf32> to vector<64x128xf32>
      %42 = arith.mulf %37, %41 : vector<64x128xf32>
      %cst_20 = arith.constant 0.000000e+00 : f32
      %43 = vector.broadcast %cst_20 : f32 to vector<64x128xf32>
      %44 = arith.cmpf oge, %42, %43 : vector<64x128xf32>
      %cst_21 = arith.constant 2.000000e-01 : f32
      %45 = vector.broadcast %cst_21 : f32 to vector<64x128xf32>
      %46 = arith.mulf %45, %42 : vector<64x128xf32>
      %47 = arith.select %44, %42, %46 : vector<64x128xi1>, vector<64x128xf32>
      %c0_22 = arith.constant 0 : index
      %c0_23 = arith.constant 0 : index
      %c0_24 = arith.constant 0 : index
      %48 = vector.load %arg5[%c0_22, %c0_23, %c0_24] : memref<1x64x128xf32, #tpu.memory_space<vmem>>, vector<1x64x128xf32>
      %49 = vector.shape_cast %48 : vector<1x64x128xf32> to vector<64x128xf32>
      %50 = vector.shape_cast %47 : vector<64x128xf32> to vector<1x64x128xf32>
      tpu.vector_store %arg5[%c0_22, %c0_23, %c0_24], %50 {strides = array<i32>} : memref<1x64x128xf32, #tpu.memory_space<vmem>>, vector<1x64x128xf32>,
    } else {
    }
    return
  }
  func.func @transform_0(%arg0: i32, %arg1: i32) -> (i32, i32, i32) {
    %c0_i32 = arith.constant 0 : i32
    %c0_i32_0 = arith.constant 0 : i32
    return %arg0, %arg1, %c0_i32 : i32, i32, i32
  }
  func.func @transform_1(%arg0: i32, %arg1: i32) -> (i32, i32) {
    %c0_i32 = arith.constant 0 : i32
    %c0_i32_0 = arith.constant 0 : i32
    %c0_i32_1 = arith.constant 0 : i32
    return %c0_i32, %c0_i32_0 : i32, i32
  }
  func.func @transform_2(%arg0: i32, %arg1: i32) -> (i32, i32) {
    %c0_i32 = arith.constant 0 : i32
    %c0_i32_0 = arith.constant 0 : i32
    %c0_i32_1 = arith.constant 0 : i32
    return %c0_i32, %c0_i32_0 : i32, i32
  }
  func.func @transform_3(%arg0: i32, %arg1: i32) -> (i32, i32, i32) {
    %c0_i32 = arith.constant 0 : i32
    %c0_i32_0 = arith.constant 0 : i32
    %c0_i32_1 = arith.constant 0 : i32
    return %arg0, %c0_i32, %c0_i32_0 : i32, i32, i32
  }
}

module attributes {stable_mosaic.version = 11 : i64} {
  func.func @_conv_inorm_lrelu_kernel(%arg0: i32, %arg1: i32, %arg2: memref<1x16x2048xbf16, #tpu.memory_space<vmem>>, %arg3: memref<2048x256xbf16, #tpu.memory_space<vmem>>, %arg4: memref<1x256xf32, #tpu.memory_space<vmem>>, %arg5: memref<1x16x256xf32, #tpu.memory_space<vmem>>) attributes {dimension_semantics = [#tpu.dimension_semantics<parallel>, #tpu.dimension_semantics<arbitrary>], iteration_bounds = array<i64: 2, 1>, scalar_prefetch = 0 : i64, scratch_operands = 0 : i64, tpu.core_type = #tpu.core_type<tc>, window_params = [{transform_indices = @transform_0, window_bounds = array<i64: 1, 16, 2048>}, {pipeline_mode = #tpu.pipeline_mode<synchronous>, transform_indices = @transform_1, window_bounds = array<i64: 2048, 256>}, {pipeline_mode = #tpu.pipeline_mode<synchronous>, transform_indices = @transform_2, window_bounds = array<i64: 1, 256>}, {transform_indices = @transform_3, window_bounds = array<i64: 1, 16, 256>}]} {
    %c0 = arith.constant 0 : index
    %c0_0 = arith.constant 0 : index
    %c0_1 = arith.constant 0 : index
    %0 = vector.load %arg2[%c0, %c0_0, %c0_1] : memref<1x16x2048xbf16, #tpu.memory_space<vmem>>, vector<1x16x2048xbf16>
    %1 = vector.shape_cast %0 : vector<1x16x2048xbf16> to vector<16x2048xbf16>
    %c0_2 = arith.constant 0 : index
    %c0_3 = arith.constant 0 : index
    %2 = vector.load %arg3[%c0_2, %c0_3] : memref<2048x256xbf16, #tpu.memory_space<vmem>>, vector<2048x256xbf16>
    %cst = arith.constant dense<0.000000e+00> : vector<16x256xf32>
    %3 = tpu.matmul %1, %2, %cst {dimension_numbers = #tpu.dot_dimension_numbers<[1], [0], [0], [1], [0, 0, 1, 1], [], []>} : vector<16x2048xbf16>, vector<2048x256xbf16>, vector<16x256xf32> -> vector<16x256xf32>
    %c0_4 = arith.constant 0 : index
    %c0_5 = arith.constant 0 : index
    %4 = vector.load %arg4[%c0_4, %c0_5] : memref<1x256xf32, #tpu.memory_space<vmem>>, vector<1x256xf32>
    %5 = vector.broadcast %4 : vector<1x256xf32> to vector<16x256xf32>
    %6 = arith.addf %3, %5 : vector<16x256xf32>
    %c16_i32 = arith.constant 16 : i32
    %7 = arith.muli %arg1, %c16_i32 : i32
    %8 = tpu.assume_multiple %7, 16 : i32
    %c0_6 = arith.constant 0 : index
    %9 = arith.index_cast %8 : i32 to index
    %c0_7 = arith.constant 0 : index
    %10 = vector.load %arg5[%c0_6, %9, %c0_7] : memref<1x16x256xf32, #tpu.memory_space<vmem>>, vector<1x16x256xf32>
    %11 = vector.shape_cast %10 : vector<1x16x256xf32> to vector<16x256xf32>
    %12 = vector.shape_cast %6 : vector<16x256xf32> to vector<1x16x256xf32>
    tpu.vector_store %arg5[%c0_6, %9, %c0_7], %12 {strides = array<i32>} : memref<1x16x256xf32, #tpu.memory_space<vmem>>, vector<1x16x256xf32>,
    %c0_i32 = arith.constant 0 : i32
    %13 = arith.cmpi eq, %arg1, %c0_i32 : i32
    %14 = arith.extui %13 : i1 to i32
    %c0_i32_8 = arith.constant 0 : i32
    %15 = arith.cmpi ne, %14, %c0_i32_8 : i32
    scf.if %15 {
      %c0_9 = arith.constant 0 : index
      %c0_10 = arith.constant 0 : index
      %c0_11 = arith.constant 0 : index
      %16 = vector.load %arg5[%c0_9, %c0_10, %c0_11] : memref<1x16x256xf32, #tpu.memory_space<vmem>>, vector<1x16x256xf32>
      %17 = vector.shape_cast %16 : vector<1x16x256xf32> to vector<16x256xf32>
      %18 = tpu.iota {dimensions = array<i32: 0>} : vector<16x256xi32>
      %c16_i32_12 = arith.constant 16 : i32
      %19 = vector.broadcast %c16_i32_12 : i32 to vector<16x256xi32>
      %20 = arith.cmpi slt, %18, %19 : vector<16x256xi32>
      %cst_13 = arith.constant 0.000000e+00 : f32
      %21 = vector.broadcast %cst_13 : f32 to vector<16x256xf32>
      %22 = arith.select %20, %17, %21 : vector<16x256xi1>, vector<16x256xf32>
      %cst_14 = arith.constant dense<0.000000e+00> : vector<256xf32>
      %23 = vector.multi_reduction <add>, %22, %cst_14 [0] : vector<16x256xf32> to vector<256xf32>
      %24 = vector.shape_cast %23 : vector<256xf32> to vector<1x256xf32>
      %cst_15 = arith.constant 6.250000e-02 : f32
      %25 = vector.broadcast %cst_15 : f32 to vector<1x256xf32>
      %26 = arith.mulf %24, %25 : vector<1x256xf32>
      %27 = vector.broadcast %26 : vector<1x256xf32> to vector<16x256xf32>
      %28 = arith.subf %17, %27 : vector<16x256xf32>
      %cst_16 = arith.constant 0.000000e+00 : f32
      %29 = vector.broadcast %cst_16 : f32 to vector<16x256xf32>
      %30 = arith.select %20, %28, %29 : vector<16x256xi1>, vector<16x256xf32>
      %31 = arith.mulf %30, %30 : vector<16x256xf32>
      %cst_17 = arith.constant dense<0.000000e+00> : vector<256xf32>
      %32 = vector.multi_reduction <add>, %31, %cst_17 [0] : vector<16x256xf32> to vector<256xf32>
      %33 = vector.shape_cast %32 : vector<256xf32> to vector<1x256xf32>
      %cst_18 = arith.constant 6.250000e-02 : f32
      %34 = vector.broadcast %cst_18 : f32 to vector<1x256xf32>
      %35 = arith.mulf %33, %34 : vector<1x256xf32>
      %36 = vector.broadcast %26 : vector<1x256xf32> to vector<16x256xf32>
      %37 = arith.subf %17, %36 : vector<16x256xf32>
      %cst_19 = arith.constant 9.99999974E-6 : f32
      %38 = vector.broadcast %cst_19 : f32 to vector<1x256xf32>
      %39 = arith.addf %35, %38 : vector<1x256xf32>
      %40 = math.rsqrt %39 : vector<1x256xf32>
      %41 = vector.broadcast %40 : vector<1x256xf32> to vector<16x256xf32>
      %42 = arith.mulf %37, %41 : vector<16x256xf32>
      %cst_20 = arith.constant 0.000000e+00 : f32
      %43 = vector.broadcast %cst_20 : f32 to vector<16x256xf32>
      %44 = arith.cmpf oge, %42, %43 : vector<16x256xf32>
      %cst_21 = arith.constant 2.000000e-01 : f32
      %45 = vector.broadcast %cst_21 : f32 to vector<16x256xf32>
      %46 = arith.mulf %45, %42 : vector<16x256xf32>
      %47 = arith.select %44, %42, %46 : vector<16x256xi1>, vector<16x256xf32>
      %c0_22 = arith.constant 0 : index
      %c0_23 = arith.constant 0 : index
      %c0_24 = arith.constant 0 : index
      %48 = vector.load %arg5[%c0_22, %c0_23, %c0_24] : memref<1x16x256xf32, #tpu.memory_space<vmem>>, vector<1x16x256xf32>
      %49 = vector.shape_cast %48 : vector<1x16x256xf32> to vector<16x256xf32>
      %50 = vector.shape_cast %47 : vector<16x256xf32> to vector<1x16x256xf32>
      tpu.vector_store %arg5[%c0_22, %c0_23, %c0_24], %50 {strides = array<i32>} : memref<1x16x256xf32, #tpu.memory_space<vmem>>, vector<1x16x256xf32>,
    } else {
    }
    return
  }
  func.func @transform_0(%arg0: i32, %arg1: i32) -> (i32, i32, i32) {
    %c0_i32 = arith.constant 0 : i32
    %c0_i32_0 = arith.constant 0 : i32
    return %arg0, %arg1, %c0_i32 : i32, i32, i32
  }
  func.func @transform_1(%arg0: i32, %arg1: i32) -> (i32, i32) {
    %c0_i32 = arith.constant 0 : i32
    %c0_i32_0 = arith.constant 0 : i32
    %c0_i32_1 = arith.constant 0 : i32
    return %c0_i32, %c0_i32_0 : i32, i32
  }
  func.func @transform_2(%arg0: i32, %arg1: i32) -> (i32, i32) {
    %c0_i32 = arith.constant 0 : i32
    %c0_i32_0 = arith.constant 0 : i32
    %c0_i32_1 = arith.constant 0 : i32
    return %c0_i32, %c0_i32_0 : i32, i32
  }
  func.func @transform_3(%arg0: i32, %arg1: i32) -> (i32, i32, i32) {
    %c0_i32 = arith.constant 0 : i32
    %c0_i32_0 = arith.constant 0 : i32
    %c0_i32_1 = arith.constant 0 : i32
    return %arg0, %c0_i32, %c0_i32_0 : i32, i32, i32
  }
}

module attributes {stable_mosaic.version = 11 : i64} {
  func.func @_conv_inorm_lrelu_kernel(%arg0: i32, %arg1: i32, %arg2: memref<1x16x4096xbf16, #tpu.memory_space<vmem>>, %arg3: memref<4096x512xbf16, #tpu.memory_space<vmem>>, %arg4: memref<1x512xf32, #tpu.memory_space<vmem>>, %arg5: memref<1x16x512xf32, #tpu.memory_space<vmem>>) attributes {dimension_semantics = [#tpu.dimension_semantics<parallel>, #tpu.dimension_semantics<arbitrary>], iteration_bounds = array<i64: 2, 1>, scalar_prefetch = 0 : i64, scratch_operands = 0 : i64, tpu.core_type = #tpu.core_type<tc>, window_params = [{transform_indices = @transform_0, window_bounds = array<i64: 1, 16, 4096>}, {pipeline_mode = #tpu.pipeline_mode<synchronous>, transform_indices = @transform_1, window_bounds = array<i64: 4096, 512>}, {pipeline_mode = #tpu.pipeline_mode<synchronous>, transform_indices = @transform_2, window_bounds = array<i64: 1, 512>}, {transform_indices = @transform_3, window_bounds = array<i64: 1, 16, 512>}]} {
    %c0 = arith.constant 0 : index
    %c0_0 = arith.constant 0 : index
    %c0_1 = arith.constant 0 : index
    %0 = vector.load %arg2[%c0, %c0_0, %c0_1] : memref<1x16x4096xbf16, #tpu.memory_space<vmem>>, vector<1x16x4096xbf16>
    %1 = vector.shape_cast %0 : vector<1x16x4096xbf16> to vector<16x4096xbf16>
    %c0_2 = arith.constant 0 : index
    %c0_3 = arith.constant 0 : index
    %2 = vector.load %arg3[%c0_2, %c0_3] : memref<4096x512xbf16, #tpu.memory_space<vmem>>, vector<4096x512xbf16>
    %cst = arith.constant dense<0.000000e+00> : vector<16x512xf32>
    %3 = tpu.matmul %1, %2, %cst {dimension_numbers = #tpu.dot_dimension_numbers<[1], [0], [0], [1], [0, 0, 1, 1], [], []>} : vector<16x4096xbf16>, vector<4096x512xbf16>, vector<16x512xf32> -> vector<16x512xf32>
    %c0_4 = arith.constant 0 : index
    %c0_5 = arith.constant 0 : index
    %4 = vector.load %arg4[%c0_4, %c0_5] : memref<1x512xf32, #tpu.memory_space<vmem>>, vector<1x512xf32>
    %5 = vector.broadcast %4 : vector<1x512xf32> to vector<16x512xf32>
    %6 = arith.addf %3, %5 : vector<16x512xf32>
    %c16_i32 = arith.constant 16 : i32
    %7 = arith.muli %arg1, %c16_i32 : i32
    %8 = tpu.assume_multiple %7, 16 : i32
    %c0_6 = arith.constant 0 : index
    %9 = arith.index_cast %8 : i32 to index
    %c0_7 = arith.constant 0 : index
    %10 = vector.load %arg5[%c0_6, %9, %c0_7] : memref<1x16x512xf32, #tpu.memory_space<vmem>>, vector<1x16x512xf32>
    %11 = vector.shape_cast %10 : vector<1x16x512xf32> to vector<16x512xf32>
    %12 = vector.shape_cast %6 : vector<16x512xf32> to vector<1x16x512xf32>
    tpu.vector_store %arg5[%c0_6, %9, %c0_7], %12 {strides = array<i32>} : memref<1x16x512xf32, #tpu.memory_space<vmem>>, vector<1x16x512xf32>,
    %c0_i32 = arith.constant 0 : i32
    %13 = arith.cmpi eq, %arg1, %c0_i32 : i32
    %14 = arith.extui %13 : i1 to i32
    %c0_i32_8 = arith.constant 0 : i32
    %15 = arith.cmpi ne, %14, %c0_i32_8 : i32
    scf.if %15 {
      %c0_9 = arith.constant 0 : index
      %c0_10 = arith.constant 0 : index
      %c0_11 = arith.constant 0 : index
      %16 = vector.load %arg5[%c0_9, %c0_10, %c0_11] : memref<1x16x512xf32, #tpu.memory_space<vmem>>, vector<1x16x512xf32>
      %17 = vector.shape_cast %16 : vector<1x16x512xf32> to vector<16x512xf32>
      %18 = tpu.iota {dimensions = array<i32: 0>} : vector<16x512xi32>
      %c9_i32 = arith.constant 9 : i32
      %19 = vector.broadcast %c9_i32 : i32 to vector<16x512xi32>
      %20 = arith.cmpi slt, %18, %19 : vector<16x512xi32>
      %cst_12 = arith.constant 0.000000e+00 : f32
      %21 = vector.broadcast %cst_12 : f32 to vector<16x512xf32>
      %22 = arith.select %20, %17, %21 : vector<16x512xi1>, vector<16x512xf32>
      %cst_13 = arith.constant dense<0.000000e+00> : vector<512xf32>
      %23 = vector.multi_reduction <add>, %22, %cst_13 [0] : vector<16x512xf32> to vector<512xf32>
      %24 = vector.shape_cast %23 : vector<512xf32> to vector<1x512xf32>
      %cst_14 = arith.constant 0.111111112 : f32
      %25 = vector.broadcast %cst_14 : f32 to vector<1x512xf32>
      %26 = arith.mulf %24, %25 : vector<1x512xf32>
      %27 = vector.broadcast %26 : vector<1x512xf32> to vector<16x512xf32>
      %28 = arith.subf %17, %27 : vector<16x512xf32>
      %cst_15 = arith.constant 0.000000e+00 : f32
      %29 = vector.broadcast %cst_15 : f32 to vector<16x512xf32>
      %30 = arith.select %20, %28, %29 : vector<16x512xi1>, vector<16x512xf32>
      %31 = arith.mulf %30, %30 : vector<16x512xf32>
      %cst_16 = arith.constant dense<0.000000e+00> : vector<512xf32>
      %32 = vector.multi_reduction <add>, %31, %cst_16 [0] : vector<16x512xf32> to vector<512xf32>
      %33 = vector.shape_cast %32 : vector<512xf32> to vector<1x512xf32>
      %cst_17 = arith.constant 0.111111112 : f32
      %34 = vector.broadcast %cst_17 : f32 to vector<1x512xf32>
      %35 = arith.mulf %33, %34 : vector<1x512xf32>
      %36 = vector.broadcast %26 : vector<1x512xf32> to vector<16x512xf32>
      %37 = arith.subf %17, %36 : vector<16x512xf32>
      %cst_18 = arith.constant 9.99999974E-6 : f32
      %38 = vector.broadcast %cst_18 : f32 to vector<1x512xf32>
      %39 = arith.addf %35, %38 : vector<1x512xf32>
      %40 = math.rsqrt %39 : vector<1x512xf32>
      %41 = vector.broadcast %40 : vector<1x512xf32> to vector<16x512xf32>
      %42 = arith.mulf %37, %41 : vector<16x512xf32>
      %cst_19 = arith.constant 0.000000e+00 : f32
      %43 = vector.broadcast %cst_19 : f32 to vector<16x512xf32>
      %44 = arith.cmpf oge, %42, %43 : vector<16x512xf32>
      %cst_20 = arith.constant 2.000000e-01 : f32
      %45 = vector.broadcast %cst_20 : f32 to vector<16x512xf32>
      %46 = arith.mulf %45, %42 : vector<16x512xf32>
      %47 = arith.select %44, %42, %46 : vector<16x512xi1>, vector<16x512xf32>
      %c0_21 = arith.constant 0 : index
      %c0_22 = arith.constant 0 : index
      %c0_23 = arith.constant 0 : index
      %48 = vector.load %arg5[%c0_21, %c0_22, %c0_23] : memref<1x16x512xf32, #tpu.memory_space<vmem>>, vector<1x16x512xf32>
      %49 = vector.shape_cast %48 : vector<1x16x512xf32> to vector<16x512xf32>
      %50 = vector.shape_cast %47 : vector<16x512xf32> to vector<1x16x512xf32>
      tpu.vector_store %arg5[%c0_21, %c0_22, %c0_23], %50 {strides = array<i32>} : memref<1x16x512xf32, #tpu.memory_space<vmem>>, vector<1x16x512xf32>,
    } else {
    }
    return
  }
  func.func @transform_0(%arg0: i32, %arg1: i32) -> (i32, i32, i32) {
    %c0_i32 = arith.constant 0 : i32
    %c0_i32_0 = arith.constant 0 : i32
    return %arg0, %arg1, %c0_i32 : i32, i32, i32
  }
  func.func @transform_1(%arg0: i32, %arg1: i32) -> (i32, i32) {
    %c0_i32 = arith.constant 0 : i32
    %c0_i32_0 = arith.constant 0 : i32
    %c0_i32_1 = arith.constant 0 : i32
    return %c0_i32, %c0_i32_0 : i32, i32
  }
  func.func @transform_2(%arg0: i32, %arg1: i32) -> (i32, i32) {
    %c0_i32 = arith.constant 0 : i32
    %c0_i32_0 = arith.constant 0 : i32
    %c0_i32_1 = arith.constant 0 : i32
    return %c0_i32, %c0_i32_0 : i32, i32
  }
  func.func @transform_3(%arg0: i32, %arg1: i32) -> (i32, i32, i32) {
    %c0_i32 = arith.constant 0 : i32
    %c0_i32_0 = arith.constant 0 : i32
    %c0_i32_1 = arith.constant 0 : i32
    return %arg0, %c0_i32, %c0_i32_0 : i32, i32, i32
  }
}

module attributes {stable_mosaic.version = 11 : i64} {
  func.func @_conv_bias_act_kernel(%arg0: i32, %arg1: i32, %arg2: memref<8x8192xbf16, #tpu.memory_space<vmem>>, %arg3: memref<8192x128xbf16, #tpu.memory_space<vmem>>, %arg4: memref<1x128xf32, #tpu.memory_space<vmem>>, %arg5: memref<8x128xf32, #tpu.memory_space<vmem>>) attributes {dimension_semantics = [#tpu.dimension_semantics<parallel>, #tpu.dimension_semantics<parallel>], iteration_bounds = array<i64: 1, 1>, scalar_prefetch = 0 : i64, scratch_operands = 0 : i64, tpu.core_type = #tpu.core_type<tc>, window_params = [{transform_indices = @transform_0, window_bounds = array<i64: 8, 8192>}, {transform_indices = @transform_1, window_bounds = array<i64: 8192, 128>}, {transform_indices = @transform_2, window_bounds = array<i64: 1, 128>}, {transform_indices = @transform_3, window_bounds = array<i64: 8, 128>}]} {
    %c0 = arith.constant 0 : index
    %c0_0 = arith.constant 0 : index
    %0 = vector.load %arg2[%c0, %c0_0] : memref<8x8192xbf16, #tpu.memory_space<vmem>>, vector<8x8192xbf16>
    %c0_1 = arith.constant 0 : index
    %c0_2 = arith.constant 0 : index
    %1 = vector.load %arg3[%c0_1, %c0_2] : memref<8192x128xbf16, #tpu.memory_space<vmem>>, vector<8192x128xbf16>
    %cst = arith.constant dense<0.000000e+00> : vector<8x128xf32>
    %2 = tpu.matmul %0, %1, %cst {dimension_numbers = #tpu.dot_dimension_numbers<[1], [0], [0], [1], [0, 0, 1, 1], [], []>} : vector<8x8192xbf16>, vector<8192x128xbf16>, vector<8x128xf32> -> vector<8x128xf32>
    %c0_3 = arith.constant 0 : index
    %c0_4 = arith.constant 0 : index
    %3 = vector.load %arg4[%c0_3, %c0_4] : memref<1x128xf32, #tpu.memory_space<vmem>>, vector<1x128xf32>
    %4 = vector.broadcast %3 : vector<1x128xf32> to vector<8x128xf32>
    %5 = arith.addf %2, %4 : vector<8x128xf32>
    %c0_5 = arith.constant 0 : index
    %c0_6 = arith.constant 0 : index
    %6 = vector.load %arg5[%c0_5, %c0_6] : memref<8x128xf32, #tpu.memory_space<vmem>>, vector<8x128xf32>
    tpu.vector_store %arg5[%c0_5, %c0_6], %5 {strides = array<i32>} : memref<8x128xf32, #tpu.memory_space<vmem>>, vector<8x128xf32>,
    return
  }
  func.func @transform_0(%arg0: i32, %arg1: i32) -> (i32, i32) {
    %c0_i32 = arith.constant 0 : i32
    %c0_i32_0 = arith.constant 0 : i32
    return %arg1, %c0_i32 : i32, i32
  }
  func.func @transform_1(%arg0: i32, %arg1: i32) -> (i32, i32) {
    %c0_i32 = arith.constant 0 : i32
    %c0_i32_0 = arith.constant 0 : i32
    return %c0_i32, %arg0 : i32, i32
  }
  func.func @transform_2(%arg0: i32, %arg1: i32) -> (i32, i32) {
    %c0_i32 = arith.constant 0 : i32
    %c0_i32_0 = arith.constant 0 : i32
    return %c0_i32, %arg0 : i32, i32
  }
  func.func @transform_3(%arg0: i32, %arg1: i32) -> (i32, i32) {
    %c0_i32 = arith.constant 0 : i32
    return %arg1, %arg0 : i32, i32
  }
}

</mosaic_0001>

<bundles_post_ra>
// kernel: discriminator_forward.5
= control target key start
LH: loop header
LB: loop body
LE: loop exit
PB: predicated region body
PF: predicated region fallthrough
CT: control target
= control target key end

     0   :  { %s1509_s1 = inlined_call_operand.vmem [shape: bf16[128,128], index: 1, kind: input, shape index: {}]   ;;  %s1510_s0 = inlined_call_operand.vmem [shape: bf16[512,128], index: 0, kind: input, shape index: {}]   ;;  %s1511_s2 = inlined_call_operand.vmem [shape: f32[1,128], index: 2, kind: input, shape index: {}]   ;;  %s1512_s3 = inlined_call_operand.vmem [shape: f32[512,128], index: 3, kind: output, shape index: {}]  }
   0x1   :  { %v1068_v0 = vld [vmem:[%s1509_s1 + $0x38] sm:$0xff]   ;;  %v1069_v1 = vld [vmem:[%s1509_s1 + $0x30] sm:$0xff]   ;;  %v1070_v2 = vld [vmem:[%s1509_s1 + $0x28] sm:$0xff]  }
   0x2   :  { %972 = vmatprep.subr.bf16.mxu0 %v1068_v0  ;;  %1052 = vmatprep.subr.bf16.mxu1 %v1068_v0  ;;  %v1071_v3 = vld [vmem:[%s1509_s1 + $0x20] sm:$0xff]   ;;  %v1072_v6 = vld [vmem:[%s1509_s1 + $0x18] sm:$0xff]   ;;  %v1073_v7 = vld [vmem:[%s1509_s1 + $0x10] sm:$0xff]  }
   0x3   :  { %973 = vmatpush3.bf16.msra.mxu0 %v1068_v0  ;;  %1060 = vmatpush3.bf16.msra.mxu1 %v1068_v0  ;;  %v1076_v4 = vld [vmem:[%s1510_s0] sm:$0xff]   ;;  %v1074_v8 = vld [vmem:[%s1509_s1 + $0x8] sm:$0xff]   ;;  %v1080_v12 = vld [vmem:[%s1510_s0 + $0x10] sm:$0xff]  }
   0x4   :  { %974 = vmatprep.subr.bf16.mxu0 %v1069_v1  ;;  %1053 = vmatprep.subr.bf16.mxu1 %v1069_v1  ;;  %v1077_v5 = vld [vmem:[%s1510_s0 + $0x80] sm:$0xff]   ;;  %v1078_v10 = vld [vmem:[%s1510_s0 + $0x8] sm:$0xff]   ;;  %v1081_v13 = vld [vmem:[%s1510_s0 + $0x90] sm:$0xff]  }
   0x5   :  { %988 = vmatprep.mubr.bf16.mxu0 %v1076_v4  ;;  %1020 = vmatprep.mubr.bf16.mxu1 %v1077_v5  ;;  %v1075_v9 = vld [vmem:[%s1509_s1] sm:$0xff]   ;;  %v1079_v11 = vld [vmem:[%s1510_s0 + $0x88] sm:$0xff]   ;;  %v1082_v14 = vld [vmem:[%s1510_s0 + $0x18] sm:$0xff]  }
   0x6   :  { %v1083_v15 = vld [vmem:[%s1510_s0 + $0x98] sm:$0xff]   ;;  %v1084_v16 = vld [vmem:[%s1510_s0 + $0x20] sm:$0xff]   ;;  %v1086_v18 = vld [vmem:[%s1510_s0 + $0x28] sm:$0xff]  }
   0x7   :  { %975 = vmatpush3.bf16.msra.mxu0 %v1069_v1  ;;  %1061 = vmatpush3.bf16.msra.mxu1 %v1069_v1  ;;  %v1085_v17 = vld [vmem:[%s1510_s0 + $0xa0] sm:$0xff]   ;;  %v1087_v19 = vld [vmem:[%s1510_s0 + $0xa8] sm:$0xff]   ;;  %v1088_v20 = vld [vmem:[%s1510_s0 + $0x30] sm:$0xff]  }
   0x8   :  { %976 = vmatprep.subr.bf16.mxu0 %v1070_v2  ;;  %1054 = vmatprep.subr.bf16.mxu1 %v1070_v2  ;;  %v1089_v21 = vld [vmem:[%s1510_s0 + $0xb0] sm:$0xff]   ;;  %v1090_v22 = vld [vmem:[%s1510_s0 + $0x38] sm:$0xff]   ;;  %v1092_v24 = vld [vmem:[%s1510_s0 + $0x40] sm:$0xff]  }
   0x9   :  { %v1091_v23 = vld [vmem:[%s1510_s0 + $0xb8] sm:$0xff]   ;;  %v1093_v25 = vld [vmem:[%s1510_s0 + $0xc0] sm:$0xff]   ;;  %v1094_v26 = vld [vmem:[%s1510_s0 + $0x48] sm:$0xff]  }
   0xa   :  { %v1095_v27 = vld [vmem:[%s1510_s0 + $0xc8] sm:$0xff]   ;;  %v1096_v28 = vld [vmem:[%s1510_s0 + $0x50] sm:$0xff]   ;;  %v1098_v30 = vld [vmem:[%s1510_s0 + $0x58] sm:$0xff]  }
   0xb   :  { %977 = vmatpush3.bf16.msra.mxu0 %v1070_v2  ;;  %1062 = vmatpush3.bf16.msra.mxu1 %v1070_v2  ;;  %v1097_v29 = vld [vmem:[%s1510_s0 + $0xd0] sm:$0xff]   ;;  %v1099_v31 = vld [vmem:[%s1510_s0 + $0xd8] sm:$0xff]   ;;  %v1100_v32 = vld [vmem:[%s1510_s0 + $0x60] sm:$0xff]  }
   0xc   :  { %978 = vmatprep.subr.bf16.mxu0 %v1071_v3  ;;  %1055 = vmatprep.subr.bf16.mxu1 %v1071_v3  ;;  %v1101_v33 = vld [vmem:[%s1510_s0 + $0xe0] sm:$0xff]   ;;  %v1102_v34 = vld [vmem:[%s1510_s0 + $0x68] sm:$0xff]   ;;  %v1104_v36 = vld [vmem:[%s1510_s0 + $0x70] sm:$0xff]  }
   0xd   :  { %v1103_v35 = vld [vmem:[%s1510_s0 + $0xe8] sm:$0xff]   ;;  %v1105_v37 = vld [vmem:[%s1510_s0 + $0xf0] sm:$0xff]   ;;  %v1106_v38 = vld [vmem:[%s1510_s0 + $0x78] sm:$0xff]  }
   0xe   :  { %v1107_v39 = vld [vmem:[%s1510_s0 + $0xf8] sm:$0xff]   ;;  %v1251_v40 = vld [vmem:[%s1511_s2] ss:$0 sm:$0xff] }
   0xf   :  { %979 = vmatpush3.bf16.msra.mxu0 %v1071_v3  ;;  %1063 = vmatpush3.bf16.msra.mxu1 %v1071_v3 }
  0x10   :  { %980 = vmatprep.subr.bf16.mxu0 %v1072_v6  ;;  %1056 = vmatprep.subr.bf16.mxu1 %v1072_v6 }
  0x13   :  { %981 = vmatpush3.bf16.msra.mxu0 %v1072_v6  ;;  %1064 = vmatpush3.bf16.msra.mxu1 %v1072_v6 }
  0x14   :  { %982 = vmatprep.subr.bf16.mxu0 %v1073_v7  ;;  %1057 = vmatprep.subr.bf16.mxu1 %v1073_v7 }
  0x17   :  { %983 = vmatpush3.bf16.msra.mxu0 %v1073_v7  ;;  %1065 = vmatpush3.bf16.msra.mxu1 %v1073_v7 }
  0x18   :  { %984 = vmatprep.subr.bf16.mxu0 %v1074_v8  ;;  %1058 = vmatprep.subr.bf16.mxu1 %v1074_v8 }
  0x1b   :  { %985 = vmatpush3.bf16.msra.mxu0 %v1074_v8  ;;  %1066 = vmatpush3.bf16.msra.mxu1 %v1074_v8 }
  0x1c   :  { %986 = vmatprep.subr.bf16.mxu0 %v1075_v9  ;;  %1059 = vmatprep.subr.bf16.mxu1 %v1075_v9 }
  0x1f   :  { %987 = vmatpush3.bf16.msra.mxu0 %v1075_v9  ;;  %1067 = vmatpush3.bf16.msra.mxu1 %v1075_v9 }
  0x22   :  { %989 = vmatmul.mubr.bf16.vlgmr.msra.gmra.mxu0 %v1078_v10  ;;  %1021 = vmatmul.mubr.bf16.vlgmr.msra.gmra.mxu1 %v1079_v11 }
  0x23   :  { %992 = vmatprep.mubr.bf16.mxu0 %v1080_v12  ;;  %1024 = vmatprep.mubr.bf16.mxu1 %v1081_v13 }
  0x2a   :  { %993 = vmatmul.mubr.bf16.gmra.mxu0 %v1082_v14  ;;  %1025 = vmatmul.mubr.bf16.gmra.mxu1 %v1083_v15 }
  0x2b   :  { %996 = vmatprep.mubr.bf16.mxu0 %v1084_v16  ;;  %1028 = vmatprep.mubr.bf16.mxu1 %v1085_v17 }
  0x32   :  { %997 = vmatmul.mubr.bf16.gmra.mxu0 %v1086_v18  ;;  %1029 = vmatmul.mubr.bf16.gmra.mxu1 %v1087_v19 }
  0x33   :  { %1000 = vmatprep.mubr.bf16.mxu0 %v1088_v20  ;;  %1032 = vmatprep.mubr.bf16.mxu1 %v1089_v21 }
  0x3a   :  { %1001 = vmatmul.mubr.bf16.gmra.mxu0 %v1090_v22  ;;  %1033 = vmatmul.mubr.bf16.gmra.mxu1 %v1091_v23 }
  0x3b   :  { %1004 = vmatprep.mubr.bf16.mxu0 %v1092_v24  ;;  %1036 = vmatprep.mubr.bf16.mxu1 %v1093_v25 }
  0x42   :  { %1005 = vmatmul.mubr.bf16.gmra.mxu0 %v1094_v26  ;;  %1037 = vmatmul.mubr.bf16.gmra.mxu1 %v1095_v27 }
  0x43   :  { %1008 = vmatprep.mubr.bf16.mxu0 %v1096_v28  ;;  %1040 = vmatprep.mubr.bf16.mxu1 %v1097_v29 }
  0x4a   :  { %1009 = vmatmul.mubr.bf16.gmra.mxu0 %v1098_v30  ;;  %1041 = vmatmul.mubr.bf16.gmra.mxu1 %v1099_v31 }
  0x4b   :  { %1012 = vmatprep.mubr.bf16.mxu0 %v1100_v32  ;;  %1044 = vmatprep.mubr.bf16.mxu1 %v1101_v33 }
  0x52   :  { %1013 = vmatmul.mubr.bf16.gmra.mxu0 %v1102_v34  ;;  %1045 = vmatmul.mubr.bf16.gmra.mxu1 %v1103_v35 }
  0x53   :  { %1016 = vmatprep.mubr.bf16.mxu0 %v1104_v36  ;;  %1048 = vmatprep.mubr.bf16.mxu1 %v1105_v37 }
  0x5a   :  { %1017 = vmatmul.mubr.bf16.gmra.mxu0 %v1106_v38  ;;  %1049 = vmatmul.mubr.bf16.gmra.mxu1 %v1107_v39 }
  0xe2   :  { %v990_v41 = vpop.f32.mrf.mxu0  ;;  %v1022_v42 = vpop.f32.mrf.mxu1 }
  0xe3   :  { %v385_v43 = vadd.f32 %v990_v41, %v1251_v40  ;;  %v513_v44 = vadd.f32 %v1022_v42, %v1251_v40 }
  0xe4   :  { %v376_v45 = vpop.f32.mrf.mxu0  ;;  %v504_v46 = vpop.f32.mrf.mxu1 }
  0xe5   :  { %vm633_vm0 = vcmp.ge.f32.partialorder %v385_v43, 0.0  ;;  %v697_v47 = vmul.f32 0.2, %v385_v43  ;;  %vm665_vm1 = vcmp.ge.f32.partialorder %v513_v44, 0.0  ;;  %v729_v48 = vmul.f32 0.2, %v513_v44 }
  0xe6   :  { %v377_v49 = vadd.f32 %v1251_v40, %v376_v45  ;;  %v505_v50 = vadd.f32 %v1251_v40, %v504_v46  ;;  %v991_v51 = vpop.f32.mrf.mxu0  ;;  %v1023_v52 = vpop.f32.mrf.mxu1 }
  0xe7   :  { %v761_v53 = vsel %vm633_vm0, %v385_v43, %v697_v47  ;;  %v793_v54 = vsel %vm665_vm1, %v513_v44, %v729_v48  ;;  %v388_v55 = vadd.f32 %v991_v51, %v1251_v40  ;;  %v516_v56 = vadd.f32 %v1023_v52, %v1251_v40 }
  0xe8   :  { %825 = vst [vmem:[%s1512_s3 + $0x10] sm:$0xff] %v761_v53  ;;  %857 = vst [vmem:[%s1512_s3 + $0x110] sm:$0xff] %v793_v54  ;;  %vm631_vm2 = vcmp.ge.f32.partialorder %v377_v49, 0.0  ;;  %v695_v57 = vmul.f32 0.2, %v377_v49  ;;  %vm663_vm3 = vcmp.ge.f32.partialorder %v505_v50, 0.0  ;;  %v379_v59 = vpop.f32.mrf.mxu0  ;;  %v507_v60 = vpop.f32.mrf.mxu1 }
  0xe9   :  { %v727_v58 = vmul.f32 0.2, %v505_v50  ;;  %vm634_vm4 = vcmp.ge.f32.partialorder %v388_v55, 0.0  ;;  %v698_v61 = vmul.f32 0.2, %v388_v55  ;;  %vm666_vm5 = vcmp.ge.f32.partialorder %v516_v56, 0.0 }
  0xea   :  { %v730_v62 = vmul.f32 0.2, %v516_v56  ;;  %v759_v63 = vsel %vm631_vm2, %v377_v49, %v695_v57  ;;  %v380_v1 = vadd.f32 %v1251_v40, %v379_v59  ;;  %v508_v2 = vadd.f32 %v1251_v40, %v507_v60  ;;  %v994_v3 = vpop.f32.mrf.mxu0  ;;  %v1026_v4 = vpop.f32.mrf.mxu1 }
  0xeb   :  { %v791_v0 = vsel %vm663_vm3, %v505_v50, %v727_v58  ;;  %823 = vst [vmem:[%s1512_s3] sm:$0xff] %v759_v63  ;;  %v762_v5 = vsel %vm634_vm4, %v388_v55, %v698_v61  ;;  %v401_v7 = vadd.f32 %v994_v3, %v1251_v40  ;;  %v529_v8 = vadd.f32 %v1026_v4, %v1251_v40 }
  0xec   :  { %855 = vst [vmem:[%s1512_s3 + $0x100] sm:$0xff] %v791_v0  ;;  %v794_v6 = vsel %vm666_vm5, %v516_v56, %v730_v62  ;;  %826 = vst [vmem:[%s1512_s3 + $0x18] sm:$0xff] %v762_v5  ;;  %vm632_vm6 = vcmp.ge.f32.partialorder %v380_v1, 0.0  ;;  %v696_v9 = vmul.f32 0.2, %v380_v1  ;;  %vm664_vm7 = vcmp.ge.f32.partialorder %v508_v2, 0.0  ;;  %v392_v11 = vpop.f32.mrf.mxu0  ;;  %v520_v12 = vpop.f32.mrf.mxu1 }
  0xed   :  { %858 = vst [vmem:[%s1512_s3 + $0x118] sm:$0xff] %v794_v6  ;;  %v728_v10 = vmul.f32 0.2, %v508_v2  ;;  %vm637_vm8 = vcmp.ge.f32.partialorder %v401_v7, 0.0  ;;  %v701_v13 = vmul.f32 0.2, %v401_v7  ;;  %v393_v17 = vadd.f32 %v1251_v40, %v392_v11 }
  0xee   :  { %vm669_vm9 = vcmp.ge.f32.partialorder %v529_v8, 0.0  ;;  %v733_v14 = vmul.f32 0.2, %v529_v8  ;;  %v760_v15 = vsel %vm632_vm6, %v380_v1, %v696_v9  ;;  %v521_v18 = vadd.f32 %v1251_v40, %v520_v12  ;;  %v995_v19 = vpop.f32.mrf.mxu0  ;;  %v1027_v20 = vpop.f32.mrf.mxu1 }
  0xef   :  { %v792_v16 = vsel %vm664_vm7, %v508_v2, %v728_v10  ;;  %824 = vst [vmem:[%s1512_s3 + $0x8] sm:$0xff] %v760_v15  ;;  %v765_v21 = vsel %vm637_vm8, %v401_v7, %v701_v13  ;;  %v404_v23 = vadd.f32 %v995_v19, %v1251_v40  ;;  %v532_v24 = vadd.f32 %v1027_v20, %v1251_v40 }
  0xf0   :  { %856 = vst [vmem:[%s1512_s3 + $0x108] sm:$0xff] %v792_v16  ;;  %v797_v22 = vsel %vm669_vm9, %v529_v8, %v733_v14  ;;  %829 = vst [vmem:[%s1512_s3 + $0x30] sm:$0xff] %v765_v21  ;;  %vm635_vm10 = vcmp.ge.f32.partialorder %v393_v17, 0.0  ;;  %v699_v25 = vmul.f32 0.2, %v393_v17  ;;  %vm667_vm11 = vcmp.ge.f32.partialorder %v521_v18, 0.0  ;;  %v395_v27 = vpop.f32.mrf.mxu0  ;;  %v523_v28 = vpop.f32.mrf.mxu1 }
  0xf1   :  { %861 = vst [vmem:[%s1512_s3 + $0x130] sm:$0xff] %v797_v22  ;;  %v731_v26 = vmul.f32 0.2, %v521_v18  ;;  %vm638_vm12 = vcmp.ge.f32.partialorder %v404_v23, 0.0  ;;  %v702_v29 = vmul.f32 0.2, %v404_v23  ;;  %v396_v33 = vadd.f32 %v1251_v40, %v395_v27 }
  0xf2   :  { %vm670_vm13 = vcmp.ge.f32.partialorder %v532_v24, 0.0  ;;  %v734_v30 = vmul.f32 0.2, %v532_v24  ;;  %v763_v31 = vsel %vm635_vm10, %v393_v17, %v699_v25  ;;  %v524_v34 = vadd.f32 %v1251_v40, %v523_v28  ;;  %v998_v35 = vpop.f32.mrf.mxu0  ;;  %v1030_v36 = vpop.f32.mrf.mxu1 }
  0xf3   :  { %v795_v32 = vsel %vm667_vm11, %v521_v18, %v731_v26  ;;  %827 = vst [vmem:[%s1512_s3 + $0x20] sm:$0xff] %v763_v31  ;;  %v766_v37 = vsel %vm638_vm12, %v404_v23, %v702_v29  ;;  %v417_v39 = vadd.f32 %v998_v35, %v1251_v40  ;;  %v545_v41 = vadd.f32 %v1030_v36, %v1251_v40 }
  0xf4   :  { %859 = vst [vmem:[%s1512_s3 + $0x120] sm:$0xff] %v795_v32  ;;  %v798_v38 = vsel %vm670_vm13, %v532_v24, %v734_v30  ;;  %830 = vst [vmem:[%s1512_s3 + $0x38] sm:$0xff] %v766_v37  ;;  %vm636_vm14 = vcmp.ge.f32.partialorder %v396_v33, 0.0  ;;  %v700_v42 = vmul.f32 0.2, %v396_v33  ;;  %vm668_vm15 = vcmp.ge.f32.partialorder %v524_v34, 0.0  ;;  %v408_v44 = vpop.f32.mrf.mxu0  ;;  %v536_v45 = vpop.f32.mrf.mxu1 }
  0xf5   :  { %862 = vst [vmem:[%s1512_s3 + $0x138] sm:$0xff] %v798_v38  ;;  %v732_v43 = vmul.f32 0.2, %v524_v34  ;;  %vm641_vm0 = vcmp.ge.f32.partialorder %v417_v39, 0.0  ;;  %v705_v46 = vmul.f32 0.2, %v417_v39  ;;  %v409_v50 = vadd.f32 %v1251_v40, %v408_v44 }
  0xf6   :  { %vm673_vm1 = vcmp.ge.f32.partialorder %v545_v41, 0.0  ;;  %v737_v47 = vmul.f32 0.2, %v545_v41  ;;  %v764_v48 = vsel %vm636_vm14, %v396_v33, %v700_v42  ;;  %v537_v51 = vadd.f32 %v1251_v40, %v536_v45  ;;  %v999_v52 = vpop.f32.mrf.mxu0  ;;  %v1031_v53 = vpop.f32.mrf.mxu1 }
  0xf7   :  { %v796_v49 = vsel %vm668_vm15, %v524_v34, %v732_v43  ;;  %828 = vst [vmem:[%s1512_s3 + $0x28] sm:$0xff] %v764_v48  ;;  %v769_v54 = vsel %vm641_vm0, %v417_v39, %v705_v46  ;;  %v420_v56 = vadd.f32 %v999_v52, %v1251_v40  ;;  %v548_v57 = vadd.f32 %v1031_v53, %v1251_v40 }
  0xf8   :  { %860 = vst [vmem:[%s1512_s3 + $0x128] sm:$0xff] %v796_v49  ;;  %v801_v55 = vsel %vm673_vm1, %v545_v41, %v737_v47  ;;  %833 = vst [vmem:[%s1512_s3 + $0x50] sm:$0xff] %v769_v54  ;;  %vm639_vm2 = vcmp.ge.f32.partialorder %v409_v50, 0.0  ;;  %v703_v58 = vmul.f32 0.2, %v409_v50  ;;  %vm671_vm3 = vcmp.ge.f32.partialorder %v537_v51, 0.0  ;;  %v411_v60 = vpop.f32.mrf.mxu0  ;;  %v539_v61 = vpop.f32.mrf.mxu1 }
  0xf9   :  { %865 = vst [vmem:[%s1512_s3 + $0x150] sm:$0xff] %v801_v55  ;;  %v735_v59 = vmul.f32 0.2, %v537_v51  ;;  %vm642_vm4 = vcmp.ge.f32.partialorder %v420_v56, 0.0  ;;  %v706_v62 = vmul.f32 0.2, %v420_v56  ;;  %v412_v2 = vadd.f32 %v1251_v40, %v411_v60 }
  0xfa   :  { %vm674_vm5 = vcmp.ge.f32.partialorder %v548_v57, 0.0  ;;  %v738_v63 = vmul.f32 0.2, %v548_v57  ;;  %v767_v0 = vsel %vm639_vm2, %v409_v50, %v703_v58  ;;  %v540_v3 = vadd.f32 %v1251_v40, %v539_v61  ;;  %v1002_v4 = vpop.f32.mrf.mxu0  ;;  %v1034_v5 = vpop.f32.mrf.mxu1 }
  0xfb   :  { %v799_v1 = vsel %vm671_vm3, %v537_v51, %v735_v59  ;;  %831 = vst [vmem:[%s1512_s3 + $0x40] sm:$0xff] %v767_v0  ;;  %v770_v6 = vsel %vm642_vm4, %v420_v56, %v706_v62  ;;  %v433_v8 = vadd.f32 %v1002_v4, %v1251_v40  ;;  %v561_v9 = vadd.f32 %v1034_v5, %v1251_v40 }
  0xfc   :  { %863 = vst [vmem:[%s1512_s3 + $0x140] sm:$0xff] %v799_v1  ;;  %v802_v7 = vsel %vm674_vm5, %v548_v57, %v738_v63  ;;  %834 = vst [vmem:[%s1512_s3 + $0x58] sm:$0xff] %v770_v6  ;;  %vm640_vm6 = vcmp.ge.f32.partialorder %v412_v2, 0.0  ;;  %v704_v10 = vmul.f32 0.2, %v412_v2  ;;  %vm672_vm7 = vcmp.ge.f32.partialorder %v540_v3, 0.0  ;;  %v424_v12 = vpop.f32.mrf.mxu0  ;;  %v552_v13 = vpop.f32.mrf.mxu1 }
  0xfd   :  { %866 = vst [vmem:[%s1512_s3 + $0x158] sm:$0xff] %v802_v7  ;;  %v736_v11 = vmul.f32 0.2, %v540_v3  ;;  %vm645_vm8 = vcmp.ge.f32.partialorder %v433_v8, 0.0  ;;  %v709_v14 = vmul.f32 0.2, %v433_v8  ;;  %v425_v18 = vadd.f32 %v1251_v40, %v424_v12 }
  0xfe   :  { %vm677_vm9 = vcmp.ge.f32.partialorder %v561_v9, 0.0  ;;  %v741_v15 = vmul.f32 0.2, %v561_v9  ;;  %v768_v16 = vsel %vm640_vm6, %v412_v2, %v704_v10  ;;  %v553_v19 = vadd.f32 %v1251_v40, %v552_v13  ;;  %v1003_v20 = vpop.f32.mrf.mxu0  ;;  %v1035_v21 = vpop.f32.mrf.mxu1 }
  0xff   :  { %v800_v17 = vsel %vm672_vm7, %v540_v3, %v736_v11  ;;  %832 = vst [vmem:[%s1512_s3 + $0x48] sm:$0xff] %v768_v16  ;;  %v773_v22 = vsel %vm645_vm8, %v433_v8, %v709_v14  ;;  %v436_v24 = vadd.f32 %v1003_v20, %v1251_v40  ;;  %v564_v25 = vadd.f32 %v1035_v21, %v1251_v40 }
 0x100   :  { %864 = vst [vmem:[%s1512_s3 + $0x148] sm:$0xff] %v800_v17  ;;  %v805_v23 = vsel %vm677_vm9, %v561_v9, %v741_v15  ;;  %837 = vst [vmem:[%s1512_s3 + $0x70] sm:$0xff] %v773_v22  ;;  %vm643_vm10 = vcmp.ge.f32.partialorder %v425_v18, 0.0  ;;  %v707_v26 = vmul.f32 0.2, %v425_v18  ;;  %vm675_vm11 = vcmp.ge.f32.partialorder %v553_v19, 0.0  ;;  %v427_v28 = vpop.f32.mrf.mxu0  ;;  %v555_v29 = vpop.f32.mrf.mxu1 }
 0x101   :  { %869 = vst [vmem:[%s1512_s3 + $0x170] sm:$0xff] %v805_v23  ;;  %v739_v27 = vmul.f32 0.2, %v553_v19  ;;  %vm646_vm12 = vcmp.ge.f32.partialorder %v436_v24, 0.0  ;;  %v710_v30 = vmul.f32 0.2, %v436_v24  ;;  %v428_v34 = vadd.f32 %v1251_v40, %v427_v28 }
 0x102   :  { %vm678_vm13 = vcmp.ge.f32.partialorder %v564_v25, 0.0  ;;  %v742_v31 = vmul.f32 0.2, %v564_v25  ;;  %v771_v32 = vsel %vm643_vm10, %v425_v18, %v707_v26  ;;  %v556_v35 = vadd.f32 %v1251_v40, %v555_v29  ;;  %v1006_v36 = vpop.f32.mrf.mxu0  ;;  %v1038_v37 = vpop.f32.mrf.mxu1 }
 0x103   :  { %v803_v33 = vsel %vm675_vm11, %v553_v19, %v739_v27  ;;  %835 = vst [vmem:[%s1512_s3 + $0x60] sm:$0xff] %v771_v32  ;;  %v774_v38 = vsel %vm646_vm12, %v436_v24, %v710_v30  ;;  %v449_v41 = vadd.f32 %v1006_v36, %v1251_v40  ;;  %v577_v42 = vadd.f32 %v1038_v37, %v1251_v40 }
 0x104   :  { %867 = vst [vmem:[%s1512_s3 + $0x160] sm:$0xff] %v803_v33  ;;  %v806_v39 = vsel %vm678_vm13, %v564_v25, %v742_v31  ;;  %838 = vst [vmem:[%s1512_s3 + $0x78] sm:$0xff] %v774_v38  ;;  %vm644_vm14 = vcmp.ge.f32.partialorder %v428_v34, 0.0  ;;  %v708_v43 = vmul.f32 0.2, %v428_v34  ;;  %vm676_vm15 = vcmp.ge.f32.partialorder %v556_v35, 0.0  ;;  %v440_v45 = vpop.f32.mrf.mxu0  ;;  %v568_v46 = vpop.f32.mrf.mxu1 }
 0x105   :  { %870 = vst [vmem:[%s1512_s3 + $0x178] sm:$0xff] %v806_v39  ;;  %v740_v44 = vmul.f32 0.2, %v556_v35  ;;  %vm649_vm0 = vcmp.ge.f32.partialorder %v449_v41, 0.0  ;;  %v713_v47 = vmul.f32 0.2, %v449_v41  ;;  %v441_v51 = vadd.f32 %v1251_v40, %v440_v45 }
 0x106   :  { %vm681_vm1 = vcmp.ge.f32.partialorder %v577_v42, 0.0  ;;  %v745_v48 = vmul.f32 0.2, %v577_v42  ;;  %v772_v49 = vsel %vm644_vm14, %v428_v34, %v708_v43  ;;  %v569_v52 = vadd.f32 %v1251_v40, %v568_v46  ;;  %v1007_v53 = vpop.f32.mrf.mxu0  ;;  %v1039_v54 = vpop.f32.mrf.mxu1 }
 0x107   :  { %v804_v50 = vsel %vm676_vm15, %v556_v35, %v740_v44  ;;  %836 = vst [vmem:[%s1512_s3 + $0x68] sm:$0xff] %v772_v49  ;;  %v777_v55 = vsel %vm649_vm0, %v449_v41, %v713_v47  ;;  %v452_v57 = vadd.f32 %v1007_v53, %v1251_v40  ;;  %v580_v58 = vadd.f32 %v1039_v54, %v1251_v40 }
 0x108   :  { %868 = vst [vmem:[%s1512_s3 + $0x168] sm:$0xff] %v804_v50  ;;  %v809_v56 = vsel %vm681_vm1, %v577_v42, %v745_v48  ;;  %841 = vst [vmem:[%s1512_s3 + $0x90] sm:$0xff] %v777_v55  ;;  %vm647_vm2 = vcmp.ge.f32.partialorder %v441_v51, 0.0  ;;  %v711_v59 = vmul.f32 0.2, %v441_v51  ;;  %vm679_vm3 = vcmp.ge.f32.partialorder %v569_v52, 0.0  ;;  %v443_v61 = vpop.f32.mrf.mxu0  ;;  %v571_v62 = vpop.f32.mrf.mxu1 }
 0x109   :  { %873 = vst [vmem:[%s1512_s3 + $0x190] sm:$0xff] %v809_v56  ;;  %v743_v60 = vmul.f32 0.2, %v569_v52  ;;  %vm650_vm4 = vcmp.ge.f32.partialorder %v452_v57, 0.0  ;;  %v714_v63 = vmul.f32 0.2, %v452_v57  ;;  %v444_v3 = vadd.f32 %v1251_v40, %v443_v61 }
 0x10a   :  { %vm682_vm5 = vcmp.ge.f32.partialorder %v580_v58, 0.0  ;;  %v746_v0 = vmul.f32 0.2, %v580_v58  ;;  %v775_v1 = vsel %vm647_vm2, %v441_v51, %v711_v59  ;;  %v572_v4 = vadd.f32 %v1251_v40, %v571_v62  ;;  %v1010_v5 = vpop.f32.mrf.mxu0  ;;  %v1042_v6 = vpop.f32.mrf.mxu1 }
 0x10b   :  { %v807_v2 = vsel %vm679_vm3, %v569_v52, %v743_v60  ;;  %839 = vst [vmem:[%s1512_s3 + $0x80] sm:$0xff] %v775_v1  ;;  %v778_v7 = vsel %vm650_vm4, %v452_v57, %v714_v63  ;;  %v465_v9 = vadd.f32 %v1010_v5, %v1251_v40  ;;  %v593_v10 = vadd.f32 %v1042_v6, %v1251_v40 }
 0x10c   :  { %871 = vst [vmem:[%s1512_s3 + $0x180] sm:$0xff] %v807_v2  ;;  %v810_v8 = vsel %vm682_vm5, %v580_v58, %v746_v0  ;;  %842 = vst [vmem:[%s1512_s3 + $0x98] sm:$0xff] %v778_v7  ;;  %vm648_vm6 = vcmp.ge.f32.partialorder %v444_v3, 0.0  ;;  %v712_v11 = vmul.f32 0.2, %v444_v3  ;;  %vm680_vm7 = vcmp.ge.f32.partialorder %v572_v4, 0.0  ;;  %v456_v13 = vpop.f32.mrf.mxu0  ;;  %v584_v14 = vpop.f32.mrf.mxu1 }
 0x10d   :  { %874 = vst [vmem:[%s1512_s3 + $0x198] sm:$0xff] %v810_v8  ;;  %v744_v12 = vmul.f32 0.2, %v572_v4  ;;  %vm653_vm8 = vcmp.ge.f32.partialorder %v465_v9, 0.0  ;;  %v717_v15 = vmul.f32 0.2, %v465_v9  ;;  %v457_v19 = vadd.f32 %v1251_v40, %v456_v13 }
 0x10e   :  { %vm685_vm9 = vcmp.ge.f32.partialorder %v593_v10, 0.0  ;;  %v749_v16 = vmul.f32 0.2, %v593_v10  ;;  %v776_v17 = vsel %vm648_vm6, %v444_v3, %v712_v11  ;;  %v585_v20 = vadd.f32 %v1251_v40, %v584_v14  ;;  %v1011_v21 = vpop.f32.mrf.mxu0  ;;  %v1043_v22 = vpop.f32.mrf.mxu1 }
 0x10f   :  { %v808_v18 = vsel %vm680_vm7, %v572_v4, %v744_v12  ;;  %840 = vst [vmem:[%s1512_s3 + $0x88] sm:$0xff] %v776_v17  ;;  %v781_v23 = vsel %vm653_vm8, %v465_v9, %v717_v15  ;;  %v468_v25 = vadd.f32 %v1011_v21, %v1251_v40  ;;  %v596_v26 = vadd.f32 %v1043_v22, %v1251_v40 }
 0x110   :  { %872 = vst [vmem:[%s1512_s3 + $0x188] sm:$0xff] %v808_v18  ;;  %v813_v24 = vsel %vm685_vm9, %v593_v10, %v749_v16  ;;  %845 = vst [vmem:[%s1512_s3 + $0xb0] sm:$0xff] %v781_v23  ;;  %vm651_vm10 = vcmp.ge.f32.partialorder %v457_v19, 0.0  ;;  %v715_v27 = vmul.f32 0.2, %v457_v19  ;;  %vm683_vm11 = vcmp.ge.f32.partialorder %v585_v20, 0.0  ;;  %v459_v29 = vpop.f32.mrf.mxu0  ;;  %v587_v30 = vpop.f32.mrf.mxu1 }
 0x111   :  { %877 = vst [vmem:[%s1512_s3 + $0x1b0] sm:$0xff] %v813_v24  ;;  %v747_v28 = vmul.f32 0.2, %v585_v20  ;;  %vm654_vm12 = vcmp.ge.f32.partialorder %v468_v25, 0.0  ;;  %v718_v31 = vmul.f32 0.2, %v468_v25  ;;  %v460_v35 = vadd.f32 %v1251_v40, %v459_v29 }
 0x112   :  { %vm686_vm13 = vcmp.ge.f32.partialorder %v596_v26, 0.0  ;;  %v750_v32 = vmul.f32 0.2, %v596_v26  ;;  %v779_v33 = vsel %vm651_vm10, %v457_v19, %v715_v27  ;;  %v588_v36 = vadd.f32 %v1251_v40, %v587_v30  ;;  %v1014_v37 = vpop.f32.mrf.mxu0  ;;  %v1046_v38 = vpop.f32.mrf.mxu1 }
 0x113   :  { %v811_v34 = vsel %vm683_vm11, %v585_v20, %v747_v28  ;;  %843 = vst [vmem:[%s1512_s3 + $0xa0] sm:$0xff] %v779_v33  ;;  %v782_v39 = vsel %vm654_vm12, %v468_v25, %v718_v31  ;;  %v481_v42 = vadd.f32 %v1014_v37, %v1251_v40  ;;  %v609_v43 = vadd.f32 %v1046_v38, %v1251_v40 }
 0x114   :  { %875 = vst [vmem:[%s1512_s3 + $0x1a0] sm:$0xff] %v811_v34  ;;  %v814_v41 = vsel %vm686_vm13, %v596_v26, %v750_v32  ;;  %846 = vst [vmem:[%s1512_s3 + $0xb8] sm:$0xff] %v782_v39  ;;  %vm652_vm14 = vcmp.ge.f32.partialorder %v460_v35, 0.0  ;;  %v716_v44 = vmul.f32 0.2, %v460_v35  ;;  %vm684_vm15 = vcmp.ge.f32.partialorder %v588_v36, 0.0  ;;  %v472_v46 = vpop.f32.mrf.mxu0  ;;  %v600_v47 = vpop.f32.mrf.mxu1 }
 0x115   :  { %878 = vst [vmem:[%s1512_s3 + $0x1b8] sm:$0xff] %v814_v41  ;;  %v748_v45 = vmul.f32 0.2, %v588_v36  ;;  %vm657_vm0 = vcmp.ge.f32.partialorder %v481_v42, 0.0  ;;  %v721_v48 = vmul.f32 0.2, %v481_v42  ;;  %v473_v52 = vadd.f32 %v1251_v40, %v472_v46 }
 0x116   :  { %vm689_vm1 = vcmp.ge.f32.partialorder %v609_v43, 0.0  ;;  %v753_v49 = vmul.f32 0.2, %v609_v43  ;;  %v780_v50 = vsel %vm652_vm14, %v460_v35, %v716_v44  ;;  %v601_v53 = vadd.f32 %v1251_v40, %v600_v47  ;;  %v1015_v54 = vpop.f32.mrf.mxu0  ;;  %v1047_v55 = vpop.f32.mrf.mxu1 }
 0x117   :  { %v812_v51 = vsel %vm684_vm15, %v588_v36, %v748_v45  ;;  %844 = vst [vmem:[%s1512_s3 + $0xa8] sm:$0xff] %v780_v50  ;;  %v785_v56 = vsel %vm657_vm0, %v481_v42, %v721_v48  ;;  %v484_v58 = vadd.f32 %v1015_v54, %v1251_v40  ;;  %v612_v59 = vadd.f32 %v1047_v55, %v1251_v40 }
 0x118   :  { %876 = vst [vmem:[%s1512_s3 + $0x1a8] sm:$0xff] %v812_v51  ;;  %v817_v57 = vsel %vm689_vm1, %v609_v43, %v753_v49  ;;  %849 = vst [vmem:[%s1512_s3 + $0xd0] sm:$0xff] %v785_v56  ;;  %vm655_vm2 = vcmp.ge.f32.partialorder %v473_v52, 0.0  ;;  %v719_v60 = vmul.f32 0.2, %v473_v52  ;;  %vm687_vm3 = vcmp.ge.f32.partialorder %v601_v53, 0.0  ;;  %v475_v62 = vpop.f32.mrf.mxu0  ;;  %v603_v63 = vpop.f32.mrf.mxu1 }
 0x119   :  { %881 = vst [vmem:[%s1512_s3 + $0x1d0] sm:$0xff] %v817_v57  ;;  %v751_v61 = vmul.f32 0.2, %v601_v53  ;;  %vm658_vm4 = vcmp.ge.f32.partialorder %v484_v58, 0.0  ;;  %v722_v0 = vmul.f32 0.2, %v484_v58  ;;  %v476_v4 = vadd.f32 %v1251_v40, %v475_v62 }
 0x11a   :  { %vm690_vm5 = vcmp.ge.f32.partialorder %v612_v59, 0.0  ;;  %v754_v1 = vmul.f32 0.2, %v612_v59  ;;  %v783_v2 = vsel %vm655_vm2, %v473_v52, %v719_v60  ;;  %v604_v5 = vadd.f32 %v1251_v40, %v603_v63  ;;  %v1018_v6 = vpop.f32.mrf.mxu0  ;;  %v1050_v7 = vpop.f32.mrf.mxu1 }
 0x11b   :  { %v815_v3 = vsel %vm687_vm3, %v601_v53, %v751_v61  ;;  %847 = vst [vmem:[%s1512_s3 + $0xc0] sm:$0xff] %v783_v2  ;;  %v786_v8 = vsel %vm658_vm4, %v484_v58, %v722_v0  ;;  %v497_v10 = vadd.f32 %v1018_v6, %v1251_v40  ;;  %v625_v11 = vadd.f32 %v1050_v7, %v1251_v40 }
 0x11c   :  { %879 = vst [vmem:[%s1512_s3 + $0x1c0] sm:$0xff] %v815_v3  ;;  %v818_v9 = vsel %vm690_vm5, %v612_v59, %v754_v1  ;;  %850 = vst [vmem:[%s1512_s3 + $0xd8] sm:$0xff] %v786_v8  ;;  %vm656_vm6 = vcmp.ge.f32.partialorder %v476_v4, 0.0  ;;  %v720_v12 = vmul.f32 0.2, %v476_v4  ;;  %vm688_vm7 = vcmp.ge.f32.partialorder %v604_v5, 0.0  ;;  %v488_v14 = vpop.f32.mrf.mxu0  ;;  %v616_v15 = vpop.f32.mrf.mxu1 }
 0x11d   :  { %882 = vst [vmem:[%s1512_s3 + $0x1d8] sm:$0xff] %v818_v9  ;;  %v752_v13 = vmul.f32 0.2, %v604_v5  ;;  %vm661_vm8 = vcmp.ge.f32.partialorder %v497_v10, 0.0  ;;  %v725_v16 = vmul.f32 0.2, %v497_v10  ;;  %v489_v20 = vadd.f32 %v1251_v40, %v488_v14 }
 0x11e   :  { %vm693_vm9 = vcmp.ge.f32.partialorder %v625_v11, 0.0  ;;  %v757_v17 = vmul.f32 0.2, %v625_v11  ;;  %v784_v18 = vsel %vm656_vm6, %v476_v4, %v720_v12  ;;  %v617_v21 = vadd.f32 %v1251_v40, %v616_v15  ;;  %v1019_v22 = vpop.f32.mrf.mxu0  ;;  %v1051_v23 = vpop.f32.mrf.mxu1 }
 0x11f   :  { %v816_v19 = vsel %vm688_vm7, %v604_v5, %v752_v13  ;;  %848 = vst [vmem:[%s1512_s3 + $0xc8] sm:$0xff] %v784_v18  ;;  %v789_v24 = vsel %vm661_vm8, %v497_v10, %v725_v16  ;;  %v500_v26 = vadd.f32 %v1019_v22, %v1251_v40  ;;  %v628_v27 = vadd.f32 %v1051_v23, %v1251_v40 }
 0x120   :  { %880 = vst [vmem:[%s1512_s3 + $0x1c8] sm:$0xff] %v816_v19  ;;  %v821_v25 = vsel %vm693_vm9, %v625_v11, %v757_v17  ;;  %853 = vst [vmem:[%s1512_s3 + $0xf0] sm:$0xff] %v789_v24  ;;  %vm659_vm10 = vcmp.ge.f32.partialorder %v489_v20, 0.0  ;;  %v723_v28 = vmul.f32 0.2, %v489_v20  ;;  %vm691_vm11 = vcmp.ge.f32.partialorder %v617_v21, 0.0  ;;  %v491_v30 = vpop.f32.mrf.mxu0  ;;  %v619_v31 = vpop.f32.mrf.mxu1 }
 0x121   :  { %885 = vst [vmem:[%s1512_s3 + $0x1f0] sm:$0xff] %v821_v25  ;;  %v755_v29 = vmul.f32 0.2, %v617_v21  ;;  %vm662_vm12 = vcmp.ge.f32.partialorder %v500_v26, 0.0  ;;  %v726_v32 = vmul.f32 0.2, %v500_v26  ;;  %v492_v36 = vadd.f32 %v1251_v40, %v491_v30 }
 0x122   :  { %vm694_vm13 = vcmp.ge.f32.partialorder %v628_v27, 0.0  ;;  %v758_v33 = vmul.f32 0.2, %v628_v27  ;;  %v787_v34 = vsel %vm659_vm10, %v489_v20, %v723_v28  ;;  %v620_v37 = vadd.f32 %v1251_v40, %v619_v31 }
 0x123   :  { %v819_v35 = vsel %vm691_vm11, %v617_v21, %v755_v29  ;;  %851 = vst [vmem:[%s1512_s3 + $0xe0] sm:$0xff] %v787_v34  ;;  %v790_v38 = vsel %vm662_vm12, %v500_v26, %v726_v32  ;;  %vm660_vm14 = vcmp.ge.f32.partialorder %v492_v36, 0.0  ;;  %v724_v40 = vmul.f32 0.2, %v492_v36 }
 0x124   :  { %883 = vst [vmem:[%s1512_s3 + $0x1e0] sm:$0xff] %v819_v35  ;;  %v822_v39 = vsel %vm694_vm13, %v628_v27, %v758_v33  ;;  %854 = vst [vmem:[%s1512_s3 + $0xf8] sm:$0xff] %v790_v38  ;;  %vm692_vm15 = vcmp.ge.f32.partialorder %v620_v37, 0.0  ;;  %v756_v41 = vmul.f32 0.2, %v620_v37 }
 0x125   :  { %886 = vst [vmem:[%s1512_s3 + $0x1f8] sm:$0xff] %v822_v39  ;;  %v788_v42 = vsel %vm660_vm14, %v492_v36, %v724_v40 }
 0x126   :  { %v820_v43 = vsel %vm692_vm15, %v620_v37, %v756_v41  ;;  %852 = vst [vmem:[%s1512_s3 + $0xe8] sm:$0xff] %v788_v42 }
 0x127   :  { %884 = vst [vmem:[%s1512_s3 + $0x1e8] sm:$0xff] %v820_v43 }

// kernel: discriminator_forward.6
= control target key start
LH: loop header
LB: loop body
LE: loop exit
PB: predicated region body
PF: predicated region fallthrough
CT: control target
= control target key end

     0   :  { %s1793_s12 = smov 0   ;;  %s1795_s13 = smov 0   ;;  %s2102_s0 = inlined_call_operand.vmem [shape: bf16[2,64,1024], index: 0, kind: input, shape index: {}]   ;;  %s2103_s1 = inlined_call_operand.vmem [shape: bf16[1024,128], index: 1, kind: input, shape index: {}]   ;;  %s2104_s2 = inlined_call_operand.vmem [shape: f32[1,128], index: 2, kind: input, shape index: {}]   ;;  %s2105_s3 = inlined_call_operand.vmem [shape: f32[2,64,128], index: 3, kind: output, shape index: {}]  }
   0x1   :  { %s1797_s14 = smov 0  }
   0x2 LB: > { %s25_s15 = sadd.s32 1, %s1767_s13  ;;  %p1393_p0 = scmp.ge.s32.totalorder %s1771_s14, 1  ;;  %s1771_s14 = sphi %s1797_s14, %s13_s14   ;;  %s1767_s13 = sphi %s1795_s13, %s2107_s13   ;;  %s1763_s12 = sphi %s1793_s12, %s2106_s12  }
   0x3   : > { %p27_p1 = scmp.ge.s32.totalorder %s25_s15, 2  ;;  %p157_p2 = scmp.lt.s32.totalorder %s1771_s14, 3 }
   0x5   : > { %s2109_s15 = smov (%p27_p1, %s25_s15), 0  ;;  %p158_p3 = pnand %p1393_p0, %p157_p2 }
   0x6   : > { %p187_p4 = scmp.lt.s32.totalorder (!%p158_p3), %s1763_s12, 1 }
   0x7   : > { %161 = sbr.rel (%p158_p3) target bundleno = 383 (0x17f), region = 32 }
   0xc   : > { %v1683_v0 = vld [vmem:[%s2103_s1 + $0x78] sm:$0xff]   ;;  %v1687_v4 = vld [vmem:[%s2103_s1 + $0x70] sm:$0xff]   ;;  %v1691_v8 = vld [vmem:[%s2103_s1 + $0x68] sm:$0xff]   ;;  %s2111_s12 = smov (!%p187_p4, %s1763_s12), 1 }
   0xd   : > { %v1684_v1 = vld [vmem:[%s2103_s1 + $0xf8] sm:$0xff]   ;;  %1499 = vmatprep.subr.bf16.mxu0 %v1683_v0  ;;  %v1688_v5 = vld [vmem:[%s2103_s1 + $0xf0] sm:$0xff]   ;;  %v1692_v9 = vld [vmem:[%s2103_s1 + $0xe8] sm:$0xff]   ;;  %s1497_s24 = sshll.u32 %s2111_s12, 8  ;;  %s1498_s10 = sshll.u32 %s2111_s12, 6 }
   0xe   : > { %v1685_v2 = vld [vmem:[%s2103_s1 + $0x38] sm:$0xff]   ;;  %1539 = vmatprep.subr.bf16.mxu1 %v1684_v1  ;;  %v1689_v6 = vld [vmem:[%s2103_s1 + $0x30] sm:$0xff]   ;;  %v1693_v10 = vld [vmem:[%s2103_s1 + $0x28] sm:$0xff]   ;;  %s1911_s6 = scalar_lea.vmem %s2102_s0, %s1497_s24  ;;  %s201_s17 = scalar_lea.vmem %s2105_s3, %s1498_s10 }
   0xf   : > { %v1686_v3 = vld [vmem:[%s2103_s1 + $0xb8] sm:$0xff]   ;;  %1500 = vmatpush3.bf16.msra.mxu0 %v1685_v2  ;;  %v1690_v7 = vld [vmem:[%s2103_s1 + $0xb0] sm:$0xff]   ;;  %v1694_v11 = vld [vmem:[%s2103_s1 + $0xa8] sm:$0xff]  }
  0x10   : > { %1540 = vmatpush3.bf16.msra.mxu1 %v1686_v3  ;;  %1501 = vmatprep.subr.bf16.mxu0 %v1687_v4  ;;  %v1695_v12 = vld [vmem:[%s2103_s1 + $0x60] sm:$0xff]   ;;  %v1699_v16 = vld [vmem:[%s2103_s1 + $0x58] sm:$0xff]   ;;  %v1703_v20 = vld [vmem:[%s2103_s1 + $0x50] sm:$0xff]  }
  0x11   : > { %1541 = vmatprep.subr.bf16.mxu1 %v1688_v5  ;;  %v1696_v13 = vld [vmem:[%s2103_s1 + $0xe0] sm:$0xff]   ;;  %v1700_v17 = vld [vmem:[%s2103_s1 + $0xd8] sm:$0xff]   ;;  %v1704_v21 = vld [vmem:[%s2103_s1 + $0xd0] sm:$0xff]  }
  0x12   : > { %v1697_v14 = vld [vmem:[%s2103_s1 + $0x20] sm:$0xff]   ;;  %v1701_v18 = vld [vmem:[%s2103_s1 + $0x18] sm:$0xff]   ;;  %v1705_v22 = vld [vmem:[%s2103_s1 + $0x10] sm:$0xff]  }
  0x13   : > { %1502 = vmatpush3.bf16.msra.mxu0 %v1689_v6  ;;  %v1698_v15 = vld [vmem:[%s2103_s1 + $0xa0] sm:$0xff]   ;;  %v1702_v19 = vld [vmem:[%s2103_s1 + $0x98] sm:$0xff]   ;;  %v1706_v23 = vld [vmem:[%s2103_s1 + $0x90] sm:$0xff]  }
  0x14   : > { %1542 = vmatpush3.bf16.msra.mxu1 %v1690_v7  ;;  %1503 = vmatprep.subr.bf16.mxu0 %v1691_v8  ;;  %v1707_v24 = vld [vmem:[%s2103_s1 + $0x48] sm:$0xff]   ;;  %v1711_v28 = vld [vmem:[%s2103_s1 + $0x40] sm:$0xff]   ;;  %v1715_v40 = vld [vmem:[%s2103_s1 + $0x178] sm:$0xff]  }
  0x15   : > { %1543 = vmatprep.subr.bf16.mxu1 %v1692_v9  ;;  %v1708_v25 = vld [vmem:[%s2103_s1 + $0xc8] sm:$0xff]   ;;  %v1712_v29 = vld [vmem:[%s2103_s1 + $0xc0] sm:$0xff]   ;;  %v1716_v41 = vld [vmem:[%s2103_s1 + $0x1f8] sm:$0xff]  }
  0x16   : > { %v1709_v26 = vld [vmem:[%s2103_s1 + $0x8] sm:$0xff]   ;;  %v1713_v30 = vld [vmem:[%s2103_s1] sm:$0xff]   ;;  %v1717_v42 = vld [vmem:[%s2103_s1 + $0x138] sm:$0xff]  }
  0x17   : > { %1504 = vmatpush3.bf16.msra.mxu0 %v1693_v10  ;;  %v1710_v27 = vld [vmem:[%s2103_s1 + $0x88] sm:$0xff]   ;;  %v1714_v31 = vld [vmem:[%s2103_s1 + $0x80] sm:$0xff]   ;;  %v1718_v43 = vld [vmem:[%s2103_s1 + $0x1b8] sm:$0xff]  }
  0x18   : > { %1544 = vmatpush3.bf16.msra.mxu1 %v1694_v11  ;;  %1505 = vmatprep.subr.bf16.mxu0 %v1695_v12  ;;  %v203_v32 = vld [vmem:[%s1911_s6] sm:$0xff]  ;;  %v204_v34 = vld [vmem:[%s1911_s6 + $0x8] sm:$0xff]  ;;  %v1719_v44 = vld [vmem:[%s2103_s1 + $0x170] sm:$0xff]  }
  0x19   : > { %1545 = vmatprep.subr.bf16.mxu1 %v1696_v13  ;;  %v207_v33 = vld [vmem:[%s1911_s6 + $0x20] sm:$0xff]  ;;  %v208_v37 = vld [vmem:[%s1911_s6 + $0x28] sm:$0xff]  ;;  %v1720_v45 = vld [vmem:[%s2103_s1 + $0x1f0] sm:$0xff]  }
  0x1a   : > { %v1399_v35 = vcombine.low %v203_v32, %v207_v33  ;;  %v1400_v36 = vcombine.high %v203_v32, %v207_v33  ;;  %v1401_v38 = vcombine.low %v204_v34, %v208_v37  ;;  %v1402_v39 = vcombine.high %v204_v34, %v208_v37  ;;  %v1721_v46 = vld [vmem:[%s2103_s1 + $0x130] sm:$0xff]   ;;  %v211_v48 = vld [vmem:[%s1911_s6 + $0x40] sm:$0xff]  ;;  %v212_v51 = vld [vmem:[%s1911_s6 + $0x48] sm:$0xff] }
  0x1b   : > { %1506 = vmatpush3.bf16.msra.mxu0 %v1697_v14  ;;  %v1722_v47 = vld [vmem:[%s2103_s1 + $0x1b0] sm:$0xff]   ;;  %v215_v49 = vld [vmem:[%s1911_s6 + $0x60] sm:$0xff]  ;;  %v216_v52 = vld [vmem:[%s1911_s6 + $0x68] sm:$0xff] }
  0x1c   : > { %1546 = vmatpush3.bf16.msra.mxu1 %v1698_v15  ;;  %1507 = vmatprep.subr.bf16.mxu0 %v1699_v16  ;;  %v1408_v50 = vcombine.high %v211_v48, %v215_v49  ;;  %v1407_v53 = vcombine.low %v211_v48, %v215_v49  ;;  %v1410_v54 = vcombine.high %v212_v51, %v216_v52  ;;  %v1723_v56 = vld [vmem:[%s2103_s1 + $0x168] sm:$0xff]   ;;  %v1727_v60 = vld [vmem:[%s2103_s1 + $0x160] sm:$0xff]   ;;  %v1731_v8 = vld [vmem:[%s2103_s1 + $0x158] sm:$0xff]  }
  0x1d   : > { %1547 = vmatprep.subr.bf16.mxu1 %v1700_v17  ;;  %946 = vmatprep.mubr.bf16.mxu0 %v1400_v36  ;;  %v1409_v55 = vcombine.low %v212_v51, %v216_v52  ;;  %v1724_v57 = vld [vmem:[%s2103_s1 + $0x1e8] sm:$0xff]   ;;  %v1728_v61 = vld [vmem:[%s2103_s1 + $0x1e0] sm:$0xff]   ;;  %v1732_v9 = vld [vmem:[%s2103_s1 + $0x1d8] sm:$0xff]  }
  0x1e   : > { %1011 = vmatprep.mubr.bf16.mxu1 %v1402_v39  ;;  %v1725_v58 = vld [vmem:[%s2103_s1 + $0x128] sm:$0xff]   ;;  %v1729_v62 = vld [vmem:[%s2103_s1 + $0x120] sm:$0xff]   ;;  %v1733_v10 = vld [vmem:[%s2103_s1 + $0x118] sm:$0xff]  }
  0x1f   : > { %1508 = vmatpush3.bf16.msra.mxu0 %v1701_v18  ;;  %v1726_v59 = vld [vmem:[%s2103_s1 + $0x1a8] sm:$0xff]   ;;  %v1730_v63 = vld [vmem:[%s2103_s1 + $0x1a0] sm:$0xff]   ;;  %v1734_v11 = vld [vmem:[%s2103_s1 + $0x198] sm:$0xff]  }
  0x20   : > { %1548 = vmatpush3.bf16.msra.mxu1 %v1702_v19  ;;  %1509 = vmatprep.subr.bf16.mxu0 %v1703_v20  ;;  %v219_v0 = vld [vmem:[%s1911_s6 + $0x80] sm:$0xff]  ;;  %v220_v2 = vld [vmem:[%s1911_s6 + $0x88] sm:$0xff]  ;;  %v1735_v12 = vld [vmem:[%s2103_s1 + $0x150] sm:$0xff]  }
  0x21   : > { %1549 = vmatprep.subr.bf16.mxu1 %v1704_v21  ;;  %v223_v1 = vld [vmem:[%s1911_s6 + $0xa0] sm:$0xff]  ;;  %v224_v3 = vld [vmem:[%s1911_s6 + $0xa8] sm:$0xff]  ;;  %v1736_v13 = vld [vmem:[%s2103_s1 + $0x1d0] sm:$0xff]  }
  0x22   : > { %v1416_v4 = vcombine.high %v219_v0, %v223_v1  ;;  %v1418_v5 = vcombine.high %v220_v2, %v224_v3  ;;  %v1415_v6 = vcombine.low %v219_v0, %v223_v1  ;;  %v1417_v7 = vcombine.low %v220_v2, %v224_v3  ;;  %v1737_v14 = vld [vmem:[%s2103_s1 + $0x110] sm:$0xff]   ;;  %v227_v16 = vld [vmem:[%s1911_s6 + $0xc0] sm:$0xff]  ;;  %v228_v18 = vld [vmem:[%s1911_s6 + $0xc8] sm:$0xff] }
  0x23   : > { %1510 = vmatpush3.bf16.msra.mxu0 %v1705_v22  ;;  %v1738_v15 = vld [vmem:[%s2103_s1 + $0x190] sm:$0xff]   ;;  %v231_v17 = vld [vmem:[%s1911_s6 + $0xe0] sm:$0xff]  ;;  %v232_v20 = vld [vmem:[%s1911_s6 + $0xe8] sm:$0xff] }
  0x24   : > { %1550 = vmatpush3.bf16.msra.mxu1 %v1706_v23  ;;  %1511 = vmatprep.subr.bf16.mxu0 %v1707_v24  ;;  %v1424_v19 = vcombine.high %v227_v16, %v231_v17  ;;  %v1423_v21 = vcombine.low %v227_v16, %v231_v17  ;;  %v1426_v22 = vcombine.high %v228_v18, %v232_v20  ;;  %v1739_v24 = vld [vmem:[%s2103_s1 + $0x148] sm:$0xff]   ;;  %v205_v32 = vld [vmem:[%s1911_s6 + $0x10] sm:$0xff]  ;;  %v206_v36 = vld [vmem:[%s1911_s6 + $0x18] sm:$0xff] }
  0x25   : > { %1551 = vmatprep.subr.bf16.mxu1 %v1708_v25  ;;  %v1425_v23 = vcombine.low %v228_v18, %v232_v20  ;;  %v1740_v25 = vld [vmem:[%s2103_s1 + $0x1c8] sm:$0xff]   ;;  %v209_v33 = vld [vmem:[%s1911_s6 + $0x30] sm:$0xff]  ;;  %v210_v37 = vld [vmem:[%s1911_s6 + $0x38] sm:$0xff] }
  0x26   : > { %v1403_v34 = vcombine.low %v205_v32, %v209_v33  ;;  %v1405_v39 = vcombine.low %v206_v36, %v210_v37  ;;  %v222_v48 = vld [vmem:[%s1911_s6 + $0x98] sm:$0xff] }
  0x27   : > { %1512 = vmatpush3.bf16.msra.mxu0 %v1709_v26  ;;  %v1741_v26 = vld [vmem:[%s2103_s1 + $0x108] sm:$0xff]   ;;  %v226_v49 = vld [vmem:[%s1911_s6 + $0xb8] sm:$0xff] }
  0x28   : > { %1552 = vmatpush3.bf16.msra.mxu1 %v1710_v27  ;;  %1513 = vmatprep.subr.bf16.mxu0 %v1711_v28  ;;  %v1742_v27 = vld [vmem:[%s2103_s1 + $0x188] sm:$0xff]   ;;  %v1743_v28 = vld [vmem:[%s2103_s1 + $0x140] sm:$0xff]  }
  0x29   : > { %1553 = vmatprep.subr.bf16.mxu1 %v1712_v29  ;;  %v1744_v29 = vld [vmem:[%s2103_s1 + $0x1c0] sm:$0xff]  }
  0x2b   : > { %1514 = vmatpush3.bf16.msra.mxu0 %v1713_v30  ;;  %v1745_v30 = vld [vmem:[%s2103_s1 + $0x100] sm:$0xff]  }
  0x2c   : > { %1554 = vmatpush3.bf16.msra.mxu1 %v1714_v31  ;;  %1579 = vmatprep.subr.bf16.mxu0 %v1715_v40  ;;  %v1746_v31 = vld [vmem:[%s2103_s1 + $0x180] sm:$0xff]   ;;  %v1406_v40 = vcombine.high %v206_v36, %v210_v37 }
  0x2d   : > { %1619 = vmatprep.subr.bf16.mxu1 %v1716_v41  ;;  %v217_v41 = vld [vmem:[%s1911_s6 + $0x70] sm:$0xff] }
  0x2e   : > { %947 = vmatmul.mubr.bf16.vlgmr.msra.gmra.mxu0 %v1399_v35  ;;  %v1404_v35 = vcombine.high %v205_v32, %v209_v33 }
  0x2f   : > { %1012 = vmatmul.mubr.bf16.vlgmr.msra.gmra.mxu1 %v1401_v38  ;;  %1580 = vmatpush3.bf16.msra.mxu0 %v1717_v42  ;;  %v213_v38 = vld [vmem:[%s1911_s6 + $0x50] sm:$0xff]  ;;  %v214_v42 = vld [vmem:[%s1911_s6 + $0x58] sm:$0xff] }
  0x30   : > { %1620 = vmatpush3.bf16.msra.mxu1 %v1718_v43  ;;  %1581 = vmatprep.subr.bf16.mxu0 %v1719_v44  ;;  %v218_v43 = vld [vmem:[%s1911_s6 + $0x78] sm:$0xff]  ;;  %v1412_v44 = vcombine.high %v213_v38, %v217_v41 }
  0x31   : > { %1621 = vmatprep.subr.bf16.mxu1 %v1720_v45  ;;  %954 = vmatprep.mubr.bf16.mxu0 %v1408_v50  ;;  %v1414_v45 = vcombine.high %v214_v42, %v218_v43  ;;  %v1411_v50 = vcombine.low %v213_v38, %v217_v41  ;;  %v1413_v51 = vcombine.low %v214_v42, %v218_v43  ;;  %v2064_v43 = vld [vmem:[%s2104_s2] ss:$0 sm:$0xff] }
  0x32   : > { %1019 = vmatprep.mubr.bf16.mxu1 %v1410_v54  ;;  %v229_v54 = vld [vmem:[%s1911_s6 + $0xd0] sm:$0xff] }
  0x33   : > { %1582 = vmatpush3.bf16.msra.mxu0 %v1721_v46  ;;  %v221_v46 = vld [vmem:[%s1911_s6 + $0x90] sm:$0xff] }
  0x34   : > { %1622 = vmatpush3.bf16.msra.mxu1 %v1722_v47  ;;  %1583 = vmatprep.subr.bf16.mxu0 %v1723_v56  ;;  %v225_v47 = vld [vmem:[%s1911_s6 + $0xb0] sm:$0xff]  ;;  %v230_v56 = vld [vmem:[%s1911_s6 + $0xd8] sm:$0xff] }
  0x35   : > { %1623 = vmatprep.subr.bf16.mxu1 %v1724_v57  ;;  %v1420_v52 = vcombine.high %v221_v46, %v225_v47  ;;  %v234_v57 = vld [vmem:[%s1911_s6 + $0xf8] sm:$0xff] }
  0x36   : > { %955 = vmatmul.mubr.bf16.gmra.mxu0 %v1407_v53  ;;  %v1422_v53 = vcombine.high %v222_v48, %v226_v49 }
  0x37   : > { %1020 = vmatmul.mubr.bf16.gmra.mxu1 %v1409_v55  ;;  %1584 = vmatpush3.bf16.msra.mxu0 %v1725_v58  ;;  %v233_v55 = vld [vmem:[%s1911_s6 + $0xf0] sm:$0xff]  ;;  %v1419_v58 = vcombine.low %v221_v46, %v225_v47 }
  0x38   : > { %1624 = vmatpush3.bf16.msra.mxu1 %v1726_v59  ;;  %1585 = vmatprep.subr.bf16.mxu0 %v1727_v60  ;;  %v1421_v59 = vcombine.low %v222_v48, %v226_v49  ;;  %v1428_v60 = vcombine.high %v229_v54, %v233_v55 }
  0x39   : > { %1625 = vmatprep.subr.bf16.mxu1 %v1728_v61  ;;  %962 = vmatprep.mubr.bf16.mxu0 %v1416_v4  ;;  %v1430_v61 = vcombine.high %v230_v56, %v234_v57 }
  0x3a   : > { %1027 = vmatprep.mubr.bf16.mxu1 %v1418_v5 }
  0x3b   : > { %1586 = vmatpush3.bf16.msra.mxu0 %v1729_v62  ;;  %v1427_v62 = vcombine.low %v229_v54, %v233_v55 }
  0x3c   : > { %1626 = vmatpush3.bf16.msra.mxu1 %v1730_v63  ;;  %1587 = vmatprep.subr.bf16.mxu0 %v1731_v8  ;;  %v1429_v63 = vcombine.low %v230_v56, %v234_v57 }
  0x3d   : > { %1627 = vmatprep.subr.bf16.mxu1 %v1732_v9 }
  0x3e   : > { %963 = vmatmul.mubr.bf16.gmra.mxu0 %v1415_v6 }
  0x3f   : > { %1028 = vmatmul.mubr.bf16.gmra.mxu1 %v1417_v7  ;;  %1588 = vmatpush3.bf16.msra.mxu0 %v1733_v10 }
  0x40   : > { %1628 = vmatpush3.bf16.msra.mxu1 %v1734_v11  ;;  %1589 = vmatprep.subr.bf16.mxu0 %v1735_v12 }
  0x41   : > { %1629 = vmatprep.subr.bf16.mxu1 %v1736_v13  ;;  %970 = vmatprep.mubr.bf16.mxu0 %v1424_v19 }
  0x42   : > { %1035 = vmatprep.mubr.bf16.mxu1 %v1426_v22 }
  0x43   : > { %1590 = vmatpush3.bf16.msra.mxu0 %v1737_v14 }
  0x44   : > { %1630 = vmatpush3.bf16.msra.mxu1 %v1738_v15  ;;  %1591 = vmatprep.subr.bf16.mxu0 %v1739_v24 }
  0x45   : > { %1631 = vmatprep.subr.bf16.mxu1 %v1740_v25 }
  0x46   : > { %971 = vmatmul.mubr.bf16.gmra.mxu0 %v1423_v21 }
  0x47   : > { %1036 = vmatmul.mubr.bf16.gmra.mxu1 %v1425_v23  ;;  %1592 = vmatpush3.bf16.msra.mxu0 %v1741_v26 }
  0x48   : > { %1632 = vmatpush3.bf16.msra.mxu1 %v1742_v27  ;;  %1593 = vmatprep.subr.bf16.mxu0 %v1743_v28 }
  0x49   : > { %1633 = vmatprep.subr.bf16.mxu1 %v1744_v29  ;;  %1076 = vmatprep.mubr.bf16.mxu0 %v1404_v35 }
  0x4a   : > { %1141 = vmatprep.mubr.bf16.mxu1 %v1406_v40 }
  0x4b   : > { %1594 = vmatpush3.bf16.msra.mxu0 %v1745_v30 }
  0x4c   : > { %1634 = vmatpush3.bf16.msra.mxu1 %v1746_v31 }
  0x4e   : > { %1077 = vmatmul.mubr.bf16.vlgmr.msra.gmra.mxu0 %v1403_v34 }
  0x4f   : > { %1142 = vmatmul.mubr.bf16.vlgmr.msra.gmra.mxu1 %v1405_v39  ;;  %1084 = vmatprep.mubr.bf16.mxu0 %v1412_v44 }
  0x50   : > { %1149 = vmatprep.mubr.bf16.mxu1 %v1414_v45 }
  0x56   : > { %1085 = vmatmul.mubr.bf16.gmra.mxu0 %v1411_v50 }
  0x57   : > { %1150 = vmatmul.mubr.bf16.gmra.mxu1 %v1413_v51  ;;  %1092 = vmatprep.mubr.bf16.mxu0 %v1420_v52 }
  0x58   : > { %1157 = vmatprep.mubr.bf16.mxu1 %v1422_v53 }
  0x5e   : > { %1093 = vmatmul.mubr.bf16.gmra.mxu0 %v1419_v58 }
  0x5f   : > { %1158 = vmatmul.mubr.bf16.gmra.mxu1 %v1421_v59  ;;  %1100 = vmatprep.mubr.bf16.mxu0 %v1428_v60 }
  0x60   : > { %1165 = vmatprep.mubr.bf16.mxu1 %v1430_v61 }
  0x66   : > { %1101 = vmatmul.mubr.bf16.gmra.mxu0 %v1427_v62 }
  0x67   : > { %1166 = vmatmul.mubr.bf16.gmra.mxu1 %v1429_v63 }
  0xee   : > { %v1515_v0 = vpop.f32.mrf.mxu0 }
  0xef   : > { %v1555_v1 = vpop.f32.mrf.mxu1 }
  0xf0   : > { %v1516_v2 = vpop.f32.mrf.mxu0 }
  0xf1   : > { %v1556_v3 = vpop.f32.mrf.mxu1  ;;  %v1517_v41 = vadd.f32 %v1516_v2, %v1515_v0 }
  0xf2   : > { %v1518_v4 = vpop.f32.mrf.mxu0  ;;  %v1557_v57 = vadd.f32 %v1556_v3, %v1555_v1 }
  0xf3   : > { %v1558_v5 = vpop.f32.mrf.mxu1  ;;  %v949_v50 = vadd.f32 %v1517_v41, %v2064_v43 }
  0xf4   : > { %v1519_v6 = vpop.f32.mrf.mxu0 }
  0xf5   : > { %v1559_v7 = vpop.f32.mrf.mxu1  ;;  %v1520_v39 = vadd.f32 %v1519_v6, %v1518_v4  ;;  %v1014_v4 = vadd.f32 %v1557_v57, %v949_v50 }
  0xf6   : > { %v1521_v8 = vpop.f32.mrf.mxu0  ;;  %v1560_v52 = vadd.f32 %v1559_v7, %v1558_v5 }
  0xf7   : > { %v1561_v9 = vpop.f32.mrf.mxu1  ;;  %v952_v48 = vadd.f32 %v1520_v39, %v2064_v43 }
  0xf8   : > { %v1522_v10 = vpop.f32.mrf.mxu0 }
  0xf9   : > { %v1562_v11 = vpop.f32.mrf.mxu1  ;;  %v1523_v44 = vadd.f32 %v1522_v10, %v1521_v8  ;;  %v1017_v62 = vadd.f32 %v1560_v52, %v952_v48 }
  0xfa   : > { %v1524_v12 = vpop.f32.mrf.mxu0  ;;  %v1563_v63 = vadd.f32 %v1562_v11, %v1561_v9 }
  0xfb   : > { %v1564_v13 = vpop.f32.mrf.mxu1  ;;  %v957_v53 = vadd.f32 %v1523_v44, %v2064_v43 }
  0xfc   : > { %v1525_v14 = vpop.f32.mrf.mxu0 }
  0xfd   : > { %v1565_v15 = vpop.f32.mrf.mxu1  ;;  %v1526_v46 = vadd.f32 %v1525_v14, %v1524_v12  ;;  %v1022_v10 = vadd.f32 %v1563_v63, %v957_v53 }
  0xfe   : > { %v1527_v16 = vpop.f32.mrf.mxu0  ;;  %v1566_v6 = vadd.f32 %v1565_v15, %v1564_v13 }
  0xff   : > { %v1567_v17 = vpop.f32.mrf.mxu1  ;;  %v960_v58 = vadd.f32 %v1526_v46, %v2064_v43 }
 0x100   : > { %v1528_v18 = vpop.f32.mrf.mxu0 }
 0x101   : > { %v1568_v19 = vpop.f32.mrf.mxu1  ;;  %v1529_v54 = vadd.f32 %v1528_v18, %v1527_v16  ;;  %v1025_v16 = vadd.f32 %v1566_v6, %v960_v58 }
 0x102   : > { %v1530_v20 = vpop.f32.mrf.mxu0 }
 0x103   : > { %v2047_v21 = vpop.f32.mrf.mxu1  ;;  %v965_v5 = vadd.f32 %v1529_v54, %v2064_v43 }
 0x104   : > { %v1531_v22 = vpop.f32.mrf.mxu0 }
 0x105   : > { %v1571_v23 = vpop.f32.mrf.mxu1  ;;  %v1532_v59 = vadd.f32 %v1531_v22, %v1530_v20  ;;  %v1569_v22 = vadd.f32 %v1568_v19, %v1567_v17 }
 0x106   : > { %v1533_v24 = vpop.f32.mrf.mxu0  ;;  %v1572_v13 = vadd.f32 %v1571_v23, %v2047_v21 }
 0x107   : > { %v2049_v25 = vpop.f32.mrf.mxu1  ;;  %v968_v1 = vadd.f32 %v1532_v59, %v2064_v43 }
 0x108   : > { %v1534_v26 = vpop.f32.mrf.mxu0 }
 0x109   : > { %v2051_v27 = vpop.f32.mrf.mxu1  ;;  %v1535_v3 = vadd.f32 %v1534_v26, %v1533_v24  ;;  %v1033_v46 = vadd.f32 %v1572_v13, %v968_v1 }
 0x10a   : > { %v2053_v28 = vpop.f32.mrf.mxu0  ;;  %v1575_v23 = vadd.f32 %v2051_v27, %v2049_v25 }
 0x10b   : > { %v2055_v29 = vpop.f32.mrf.mxu1 }
 0x10c   : > { %v2057_v30 = vpop.f32.mrf.mxu0 }
 0x10d   : > { %v2059_v31 = vpop.f32.mrf.mxu1  ;;  %v1538_v24 = vadd.f32 %v2057_v30, %v2053_v28 }
 0x10e   : > { %v1595_v32 = vpop.f32.mrf.mxu0  ;;  %v1578_v58 = vadd.f32 %v2059_v31, %v2055_v29 }
 0x10f   : > { %v1635_v33 = vpop.f32.mrf.mxu1  ;;  %v976_v53 = vadd.f32 %v1538_v24, %v2064_v43 }
 0x110   : > { %v1596_v34 = vpop.f32.mrf.mxu0 }
 0x111   : > { %v1636_v35 = vpop.f32.mrf.mxu1  ;;  %v1597_v60 = vadd.f32 %v1596_v34, %v1595_v32 }
 0x112   : > { %v1598_v36 = vpop.f32.mrf.mxu0  ;;  %v1637_v15 = vadd.f32 %v1636_v35, %v1635_v33 }
 0x113   : > { %v1638_v37 = vpop.f32.mrf.mxu1  ;;  %v1079_v18 = vadd.f32 %v1597_v60, %v1014_v4 }
 0x114   : > { %v1599_v38 = vpop.f32.mrf.mxu0 }
 0x115   : > { %v1639_v40 = vpop.f32.mrf.mxu1  ;;  %v1600_v55 = vadd.f32 %v1599_v38, %v1598_v36  ;;  %v1030_v38 = vadd.f32 %v1569_v22, %v965_v5  ;;  %v1144_v17 = vadd.f32 %v1637_v15, %v1079_v18 }
 0x116   : > { %v1601_v42 = vpop.f32.mrf.mxu0  ;;  %v1640_v32 = vadd.f32 %v1639_v40, %v1638_v37 }
 0x117   : > { %v1641_v45 = vpop.f32.mrf.mxu1  ;;  %v1082_v7 = vadd.f32 %v1600_v55, %v1017_v62 }
 0x118   : > { %v1602_v47 = vpop.f32.mrf.mxu0 }
 0x119   : > { %v1642_v49 = vpop.f32.mrf.mxu1  ;;  %v1603_v0 = vadd.f32 %v1602_v47, %v1601_v42  ;;  %v1147_v39 = vadd.f32 %v1640_v32, %v1082_v7  ;;  %v973_v47 = vadd.f32 %v1535_v3, %v2064_v43 }
 0x11a   : > { %v1604_v51 = vpop.f32.mrf.mxu0  ;;  %v1643_v41 = vadd.f32 %v1642_v49, %v1641_v45 }
 0x11b   : > { %v1644_v56 = vpop.f32.mrf.mxu1  ;;  %v1087_v9 = vadd.f32 %v1603_v0, %v1022_v10  ;;  %v1038_v52 = vadd.f32 %v1575_v23, %v973_v47  ;;  %v1041_v0 = vadd.f32 %v1578_v58, %v976_v53 }
 0x11c   : > { %v1605_v61 = vpop.f32.mrf.mxu0 }
 0x11d   : > { %v1645_v2 = vpop.f32.mrf.mxu1  ;;  %v1606_v12 = vadd.f32 %v1605_v61, %v1604_v51  ;;  %v1152_v26 = vadd.f32 %v1643_v41, %v1087_v9  ;;  %v1221_v51 = vadd.f32 %v1147_v39, %v1144_v17 }
 0x11e   : > { %v1607_v8 = vpop.f32.mrf.mxu0  ;;  %v1646_v37 = vadd.f32 %v1645_v2, %v1644_v56 }
 0x11f   : > { %v1647_v14 = vpop.f32.mrf.mxu1  ;;  %v1090_v42 = vadd.f32 %v1606_v12, %v1025_v16  ;;  %v1222_v57 = vadd.f32 %v1221_v51, %v1152_v26 }
 0x120   : > { %v1608_v20 = vpop.f32.mrf.mxu0 }
 0x121   : > { %v1609_v11 = vadd.f32 %v1608_v20, %v1607_v8  ;;  %v1648_v34 = vpop.f32.mrf.mxu1  ;;  %v1155_v35 = vadd.f32 %v1646_v37, %v1090_v42 }
 0x122   : > { %v1610_v36 = vpop.f32.mrf.mxu0  ;;  %v1649_v45 = vadd.f32 %v1648_v34, %v1647_v14 }
 0x123   : > { %v1650_v44 = vpop.f32.mrf.mxu1  ;;  %v1095_v40 = vadd.f32 %v1609_v11, %v1030_v38  ;;  %v1223_v62 = vadd.f32 %v1222_v57, %v1155_v35 }
 0x124   : > { %v1611_v19 = vpop.f32.mrf.mxu0 }
 0x125   : > { %v1612_v48 = vadd.f32 %v1611_v19, %v1610_v36  ;;  %v1651_v21 = vpop.f32.mrf.mxu1  ;;  %v1160_v30 = vadd.f32 %v1649_v45, %v1095_v40 }
 0x126   : > { %v1613_v33 = vpop.f32.mrf.mxu0  ;;  %v1652_v54 = vadd.f32 %v1651_v21, %v1650_v44 }
 0x127   : > { %v1098_v49 = vadd.f32 %v1612_v48, %v1033_v46  ;;  %v1653_v50 = vpop.f32.mrf.mxu1  ;;  %v1224_v6 = vadd.f32 %v1223_v62, %v1160_v30 }
 0x128   : > { %v1614_v28 = vpop.f32.mrf.mxu0 }
 0x129   : > { %v1615_v55 = vadd.f32 %v1614_v28, %v1613_v33  ;;  %v1654_v56 = vpop.f32.mrf.mxu1  ;;  %v1163_v25 = vadd.f32 %v1652_v54, %v1098_v49 }
 0x12a   : > { %v1616_v59 = vpop.f32.mrf.mxu0  ;;  %v1655_v60 = vadd.f32 %v1654_v56, %v1653_v50 }
 0x12b   : > { %v1103_v27 = vadd.f32 %v1615_v55, %v1038_v52  ;;  %v1656_v61 = vpop.f32.mrf.mxu1  ;;  %v1225_v5 = vadd.f32 %v1224_v6, %v1163_v25 }
 0x12c   : > { %v1617_v63 = vpop.f32.mrf.mxu0 }
 0x12d   : > { %v1168_v2 = vadd.f32 %v1655_v60, %v1103_v27  ;;  %v1618_v4 = vadd.f32 %v1617_v63, %v1616_v59  ;;  %v1657_v43 = vpop.f32.mrf.mxu1 }
 0x12e   : > { %v1658_v10 = vadd.f32 %v1657_v43, %v1656_v61 }
 0x12f   : > { %v1106_v8 = vadd.f32 %v1618_v4, %v1041_v0  ;;  %v1226_v12 = vadd.f32 %v1225_v5, %v1168_v2 }
 0x131   : > { %v1171_v7 = vadd.f32 %v1658_v10, %v1106_v8 }
 0x133   : > { %v1227_v14 = vadd.f32 %v1226_v12, %v1171_v7 }
 0x135   : > { %v1228_v16 = vrot.slane %v1227_v14, 4 }
 0x137   : > { %v1229_v29 = vadd.f32 %v1228_v16, %v1227_v14 }
 0x139   : > { %v1230_v31 = vrot.slane %v1229_v29, 2 }
 0x13b   : > { %v1231_v1 = vadd.f32 %v1230_v31, %v1229_v29 }
 0x13d   : > { %v1232_v3 = vrot.slane %v1231_v1, 1 }
 0x13f   : > { %v1233_v18 = vadd.f32 %v1232_v3, %v1231_v1 }
 0x141   : > { %v1234_v20 = vmul.f32 0.015625, %v1233_v18 }
 0x143   : > { %v1235_v22 = vsub.f32 %v1144_v17, %v1234_v20  ;;  %v1236_v32 = vsub.f32 %v1147_v39, %v1234_v20  ;;  %v1237_v9 = vsub.f32 %v1152_v26, %v1234_v20  ;;  %v1238_v11 = vsub.f32 %v1155_v35, %v1234_v20 }
 0x144   : > { %v1239_v15 = vsub.f32 %v1160_v30, %v1234_v20  ;;  %v1240_v41 = vsub.f32 %v1163_v25, %v1234_v20  ;;  %v1241_v46 = vsub.f32 %v1168_v2, %v1234_v20  ;;  %v1242_v19 = vsub.f32 %v1171_v7, %v1234_v20 }
 0x145   : > { %v1251_v34 = vmul.f32 %v1235_v22, %v1235_v22  ;;  %v1252_v13 = vmul.f32 %v1236_v32, %v1236_v32  ;;  %v1253_v36 = vmul.f32 %v1237_v9, %v1237_v9  ;;  %v1254_v42 = vmul.f32 %v1238_v11, %v1238_v11 }
 0x146   : > { %v1255_v47 = vmul.f32 %v1239_v15, %v1239_v15  ;;  %v1256_v37 = vmul.f32 %v1240_v41, %v1240_v41  ;;  %v1257_v48 = vmul.f32 %v1241_v46, %v1241_v46  ;;  %v1258_v17 = vmul.f32 %v1242_v19, %v1242_v19 }
 0x147   : > { %v1259_v38 = vadd.f32 %v1252_v13, %v1251_v34 }
 0x149   : > { %v1260_v44 = vadd.f32 %v1259_v38, %v1253_v36 }
 0x14b   : > { %v1261_v24 = vadd.f32 %v1260_v44, %v1254_v42 }
 0x14d   : > { %v1262_v40 = vadd.f32 %v1261_v24, %v1255_v47 }
 0x14f   : > { %v1263_v21 = vadd.f32 %v1262_v40, %v1256_v37 }
 0x151   : > { %v1264_v39 = vadd.f32 %v1263_v21, %v1257_v48 }
 0x153   : > { %v1265_v26 = vadd.f32 %v1264_v39, %v1258_v17 }
 0x155   : > { %v1266_v23 = vrot.slane %v1265_v26, 4 }
 0x157   : > { %v1267_v33 = vadd.f32 %v1266_v23, %v1265_v26 }
 0x159   : > { %v1268_v35 = vrot.slane %v1267_v33, 2 }
 0x15b   : > { %v1269_v45 = vadd.f32 %v1268_v35, %v1267_v33 }
 0x15d   : > { %v1270_v49 = vrot.slane %v1269_v45, 1 }
 0x15f   : > { %v1271_v50 = vadd.f32 %v1270_v49, %v1269_v45 }
 0x161   : > { %v1272_v51 = vmul.f32 0.015625, %v1271_v50 }
 0x163   : > { %v1273_v52 = vadd.f32 1e-05, %v1272_v51 }
 0x165   : > { %1747 = vrsqrt.f32 %v1273_v52 }
 0x172   : > { %v1748_v53 = vpop.eup %1747 }
 0x173   : > { %v1275_v28 = vmul.f32 %v1748_v53, %v1235_v22  ;;  %v1276_v30 = vmul.f32 %v1748_v53, %v1236_v32  ;;  %v1277_v54 = vmul.f32 %v1748_v53, %v1237_v9  ;;  %v1278_v55 = vmul.f32 %v1748_v53, %v1238_v11 }
 0x174   : > { %v1279_v56 = vmul.f32 %v1748_v53, %v1239_v15  ;;  %v1280_v57 = vmul.f32 %v1748_v53, %v1240_v41  ;;  %v1281_v58 = vmul.f32 %v1748_v53, %v1241_v46  ;;  %v1282_v59 = vmul.f32 %v1748_v53, %v1242_v19 }
 0x175   : > { %vm1283_vm0 = vcmp.ge.f32.partialorder %v1275_v28, 0.0  ;;  %vm1284_vm1 = vcmp.ge.f32.partialorder %v1276_v30, 0.0  ;;  %vm1285_vm2 = vcmp.ge.f32.partialorder %v1277_v54, 0.0  ;;  %vm1286_vm3 = vcmp.ge.f32.partialorder %v1278_v55, 0.0 }
 0x176   : > { %vm1287_vm4 = vcmp.ge.f32.partialorder %v1279_v56, 0.0  ;;  %vm1288_vm5 = vcmp.ge.f32.partialorder %v1280_v57, 0.0  ;;  %vm1289_vm6 = vcmp.ge.f32.partialorder %v1281_v58, 0.0  ;;  %vm1290_vm7 = vcmp.ge.f32.partialorder %v1282_v59, 0.0 }
 0x177   : > { %v1291_v25 = vmul.f32 0.2, %v1275_v28  ;;  %v1292_v27 = vmul.f32 0.2, %v1276_v30  ;;  %v1293_v60 = vmul.f32 0.2, %v1277_v54 }
 0x178   : > { %v1294_v61 = vmul.f32 0.2, %v1278_v55  ;;  %v1295_v62 = vmul.f32 0.2, %v1279_v56  ;;  %v1296_v63 = vmul.f32 0.2, %v1280_v57 }
 0x179   : > { %v1297_v0 = vmul.f32 0.2, %v1281_v58  ;;  %v1298_v2 = vmul.f32 0.2, %v1282_v59  ;;  %v1299_v4 = vsel %vm1283_vm0, %v1275_v28, %v1291_v25  ;;  %v1300_v43 = vsel %vm1284_vm1, %v1276_v30, %v1292_v27 }
 0x17a   : > { %v1301_v6 = vsel %vm1285_vm2, %v1277_v54, %v1293_v60  ;;  %v1302_v8 = vsel %vm1286_vm3, %v1278_v55, %v1294_v61  ;;  %v1303_v10 = vsel %vm1287_vm4, %v1279_v56, %v1295_v62  ;;  %v1304_v5 = vsel %vm1288_vm5, %v1280_v57, %v1296_v63  ;;  %1307 = vst [vmem:[%s201_s17] sm:$0xff] %v1299_v4 }
 0x17b   : > { %1308 = vst [vmem:[%s201_s17 + $0x8] sm:$0xff] %v1300_v43  ;;  %v1305_v7 = vsel %vm1289_vm6, %v1281_v58, %v1297_v0  ;;  %v1306_v12 = vsel %vm1290_vm7, %v1282_v59, %v1298_v2  ;;  %1309 = vst [vmem:[%s201_s17 + $0x10] sm:$0xff] %v1301_v6 }
 0x17c   : > { %1310 = vst [vmem:[%s201_s17 + $0x18] sm:$0xff] %v1302_v8  ;;  %1311 = vst [vmem:[%s201_s17 + $0x20] sm:$0xff] %v1303_v10 }
 0x17d   : > { %1312 = vst [vmem:[%s201_s17 + $0x28] sm:$0xff] %v1304_v5  ;;  %1313 = vst [vmem:[%s201_s17 + $0x30] sm:$0xff] %v1305_v7 }
 0x17e   : > { %1314 = vst [vmem:[%s201_s17 + $0x38] sm:$0xff] %v1306_v12 }
 0x17f PF: > { %s13_s14 = sadd.s32 1, %s1771_s14   ;;  %s2106_s12 = smov %s1767_s13 }
 0x180   : > { %p10_p5 = scmp.ge.s32.totalorder %s13_s14, 4   ;;  %s2107_s13 = smov %s2109_s15 }
 0x182   :  { %12 = sbr.rel (!%p10_p5) target bundleno = 2 (0x2), region = 67 }

// kernel: discriminator_forward.7
= control target key start
LH: loop header
LB: loop body
LE: loop exit
PB: predicated region body
PF: predicated region fallthrough
CT: control target
= control target key end

     0   :  { %s3100_s12 = smov 0   ;;  %s3102_s13 = smov 0   ;;  %s3978_s0 = inlined_call_operand.vmem [shape: bf16[2,16,2048], index: 0, kind: input, shape index: {}]   ;;  %s3979_s1 = inlined_call_operand.vmem [shape: bf16[2048,256], index: 1, kind: input, shape index: {}]   ;;  %s3980_s2 = inlined_call_operand.vmem [shape: f32[1,256], index: 2, kind: input, shape index: {}]   ;;  %s3981_s3 = inlined_call_operand.vmem [shape: f32[2,16,256], index: 3, kind: output, shape index: {}]  }
   0x1   :  { %s3104_s14 = smov 0  }
   0x2 LB: > { %s25_s15 = sadd.s32 1, %s3074_s13  ;;  %p2363_p0 = scmp.ge.s32.totalorder %s3078_s14, 1  ;;  %s3078_s14 = sphi %s3104_s14, %s13_s14   ;;  %s3074_s13 = sphi %s3102_s13, %s3983_s13   ;;  %s3070_s12 = sphi %s3100_s12, %s3982_s12  }
   0x3   : > { %p27_p1 = scmp.ge.s32.totalorder %s25_s15, 2  ;;  %p157_p2 = scmp.lt.s32.totalorder %s3078_s14, 3 }
   0x5   : > { %s3985_s15 = smov (%p27_p1, %s25_s15), 0  ;;  %p158_p3 = pnand %p2363_p0, %p157_p2 }
   0x6   : > { %p187_p4 = scmp.lt.s32.totalorder (!%p158_p3), %s3070_s12, 1 }
   0x7   : > { %161 = sbr.rel (%p158_p3) target bundleno = 532 (0x214), region = 32 }
   0xc   : > { %v2668_v0 = vld [vmem:[%s3979_s1 + $0x74] ss:$8 sps:$4 sm:$0xff]   ;;  %v2672_v2 = vld [vmem:[%s3979_s1 + $0x70] ss:$8 sps:$4 sm:$0xff]   ;;  %v2674_v4 = vld [vmem:[%s3979_s1 + $0x64] ss:$8 sps:$4 sm:$0xff]  }
   0xd   : > { %v2670_v1 = vld [vmem:[%s3979_s1 + $0x174] ss:$8 sps:$4 sm:$0xff]   ;;  %1846 = vmatprep.subr.bf16.mxu0 %v2668_v0  ;;  %v2673_v3 = vld [vmem:[%s3979_s1 + $0x170] ss:$8 sps:$4 sm:$0xff]   ;;  %v2676_v5 = vld [vmem:[%s3979_s1 + $0x164] ss:$8 sps:$4 sm:$0xff]  }
   0xe   : > { %1889 = vmatprep.subr.bf16.mxu1 %v2670_v1  ;;  %1847 = vmatpush1.bf16.msra.mxu0 %v2672_v2  ;;  %v2678_v6 = vld [vmem:[%s3979_s1 + $0x60] ss:$8 sps:$4 sm:$0xff]   ;;  %v2680_v8 = vld [vmem:[%s3979_s1 + $0x54] ss:$8 sps:$4 sm:$0xff]   ;;  %v2684_v10 = vld [vmem:[%s3979_s1 + $0x50] ss:$8 sps:$4 sm:$0xff]  }
   0xf   : > { %1890 = vmatpush1.bf16.msra.mxu1 %v2673_v3  ;;  %1848 = vmatprep.subr.bf16.mxu0 %v2674_v4  ;;  %v2679_v7 = vld [vmem:[%s3979_s1 + $0x160] ss:$8 sps:$4 sm:$0xff]   ;;  %v2682_v9 = vld [vmem:[%s3979_s1 + $0x154] ss:$8 sps:$4 sm:$0xff]   ;;  %v2685_v11 = vld [vmem:[%s3979_s1 + $0x150] ss:$8 sps:$4 sm:$0xff]  }
  0x10   : > { %1891 = vmatprep.subr.bf16.mxu1 %v2676_v5  ;;  %v2686_v12 = vld [vmem:[%s3979_s1 + $0x44] ss:$8 sps:$4 sm:$0xff]   ;;  %v2690_v14 = vld [vmem:[%s3979_s1 + $0x40] ss:$8 sps:$4 sm:$0xff]   ;;  %v2692_v16 = vld [vmem:[%s3979_s1 + $0x34] ss:$8 sps:$4 sm:$0xff]  }
  0x11   : > { %v2688_v13 = vld [vmem:[%s3979_s1 + $0x144] ss:$8 sps:$4 sm:$0xff]   ;;  %v2691_v15 = vld [vmem:[%s3979_s1 + $0x140] ss:$8 sps:$4 sm:$0xff]   ;;  %v2694_v17 = vld [vmem:[%s3979_s1 + $0x134] ss:$8 sps:$4 sm:$0xff]  }
  0x12   : > { %1849 = vmatpush1.bf16.msra.mxu0 %v2678_v6  ;;  %v2696_v18 = vld [vmem:[%s3979_s1 + $0x30] ss:$8 sps:$4 sm:$0xff]   ;;  %v2698_v20 = vld [vmem:[%s3979_s1 + $0x24] ss:$8 sps:$4 sm:$0xff]   ;;  %v2702_v22 = vld [vmem:[%s3979_s1 + $0x20] ss:$8 sps:$4 sm:$0xff]  }
  0x13   : > { %1892 = vmatpush1.bf16.msra.mxu1 %v2679_v7  ;;  %1850 = vmatprep.subr.bf16.mxu0 %v2680_v8  ;;  %v2697_v19 = vld [vmem:[%s3979_s1 + $0x130] ss:$8 sps:$4 sm:$0xff]   ;;  %v2700_v21 = vld [vmem:[%s3979_s1 + $0x124] ss:$8 sps:$4 sm:$0xff]   ;;  %v2703_v23 = vld [vmem:[%s3979_s1 + $0x120] ss:$8 sps:$4 sm:$0xff]  }
  0x14   : > { %1893 = vmatprep.subr.bf16.mxu1 %v2682_v9  ;;  %v2704_v24 = vld [vmem:[%s3979_s1 + $0x14] ss:$8 sps:$4 sm:$0xff]   ;;  %v2708_v26 = vld [vmem:[%s3979_s1 + $0x10] ss:$8 sps:$4 sm:$0xff]   ;;  %v2710_v28 = vld [vmem:[%s3979_s1 + $0x4] ss:$8 sps:$4 sm:$0xff]  }
  0x15   : > { %v2706_v25 = vld [vmem:[%s3979_s1 + $0x114] ss:$8 sps:$4 sm:$0xff]   ;;  %v2709_v27 = vld [vmem:[%s3979_s1 + $0x110] ss:$8 sps:$4 sm:$0xff]   ;;  %v2712_v29 = vld [vmem:[%s3979_s1 + $0x104] ss:$8 sps:$4 sm:$0xff]  }
  0x16   : > { %1851 = vmatpush1.bf16.msra.mxu0 %v2684_v10  ;;  %v2714_v30 = vld [vmem:[%s3979_s1] ss:$8 sps:$4 sm:$0xff]   ;;  %v2716_v32 = vld [vmem:[%s3979_s1 + $0xf4] ss:$8 sps:$4 sm:$0xff]   ;;  %v2720_v34 = vld [vmem:[%s3979_s1 + $0xf0] ss:$8 sps:$4 sm:$0xff]  }
  0x17   : > { %1894 = vmatpush1.bf16.msra.mxu1 %v2685_v11  ;;  %1852 = vmatprep.subr.bf16.mxu0 %v2686_v12  ;;  %v2715_v31 = vld [vmem:[%s3979_s1 + $0x100] ss:$8 sps:$4 sm:$0xff]   ;;  %v2718_v33 = vld [vmem:[%s3979_s1 + $0x1f4] ss:$8 sps:$4 sm:$0xff]   ;;  %v2721_v35 = vld [vmem:[%s3979_s1 + $0x1f0] ss:$8 sps:$4 sm:$0xff]  }
  0x18   : > { %1895 = vmatprep.subr.bf16.mxu1 %v2688_v13  ;;  %v2722_v36 = vld [vmem:[%s3979_s1 + $0xe4] ss:$8 sps:$4 sm:$0xff]   ;;  %s3987_s12 = smov (!%p187_p4, %s3070_s12), 1  ;;  %v2726_v38 = vld [vmem:[%s3979_s1 + $0xe0] ss:$8 sps:$4 sm:$0xff]  }
  0x19   : > { %v2724_v37 = vld [vmem:[%s3979_s1 + $0x1e4] ss:$8 sps:$4 sm:$0xff]   ;;  %v2727_v39 = vld [vmem:[%s3979_s1 + $0x1e0] ss:$8 sps:$4 sm:$0xff]   ;;  %v2728_v40 = vld [vmem:[%s3979_s1 + $0xd4] ss:$8 sps:$4 sm:$0xff]  }
  0x1a   : > { %1853 = vmatpush1.bf16.msra.mxu0 %v2690_v14  ;;  %s2642_s29 = sshll.u32 %s3987_s12, 7  ;;  %v2730_v41 = vld [vmem:[%s3979_s1 + $0x1d4] ss:$8 sps:$4 sm:$0xff]   ;;  %v2732_v42 = vld [vmem:[%s3979_s1 + $0xd0] ss:$8 sps:$4 sm:$0xff]   ;;  %s2643_s18 = sshll.u32 %s3987_s12, 5 }
  0x1b   : > { %1896 = vmatpush1.bf16.msra.mxu1 %v2691_v15  ;;  %1854 = vmatprep.subr.bf16.mxu0 %v2692_v16  ;;  %v2733_v43 = vld [vmem:[%s3979_s1 + $0x1d0] ss:$8 sps:$4 sm:$0xff]   ;;  %s3260_s11 = scalar_lea.vmem %s3978_s0, %s2642_s29  ;;  %v2734_v44 = vld [vmem:[%s3979_s1 + $0xc4] ss:$8 sps:$4 sm:$0xff]   ;;  %v2738_v46 = vld [vmem:[%s3979_s1 + $0xc0] ss:$8 sps:$4 sm:$0xff]   ;;  %s201_s21 = scalar_lea.vmem %s3981_s3, %s2643_s18 }
  0x1c   : > { %1897 = vmatprep.subr.bf16.mxu1 %v2694_v17  ;;  %v2736_v45 = vld [vmem:[%s3979_s1 + $0x1c4] ss:$8 sps:$4 sm:$0xff]   ;;  %v2739_v47 = vld [vmem:[%s3979_s1 + $0x1c0] ss:$8 sps:$4 sm:$0xff]   ;;  %v2740_v52 = vld [vmem:[%s3979_s1 + $0xb4] ss:$8 sps:$4 sm:$0xff]  }
  0x1d   : > { %v202_v48 = vld [vmem:[%s3260_s11] sm:$0xff]  ;;  %v203_v50 = vld [vmem:[%s3260_s11 + $0x8] sm:$0xff]  ;;  %v2742_v54 = vld [vmem:[%s3979_s1 + $0x1b4] ss:$8 sps:$4 sm:$0xff]  }
  0x1e   : > { %1855 = vmatpush1.bf16.msra.mxu0 %v2696_v18  ;;  %v210_v49 = vld [vmem:[%s3260_s11 + $0x40] sm:$0xff]  ;;  %v211_v51 = vld [vmem:[%s3260_s11 + $0x48] sm:$0xff]  ;;  %v2744_v56 = vld [vmem:[%s3979_s1 + $0xb0] ss:$8 sps:$4 sm:$0xff]  }
  0x1f   : > { %1898 = vmatpush1.bf16.msra.mxu1 %v2697_v19  ;;  %1856 = vmatprep.subr.bf16.mxu0 %v2698_v20  ;;  %v2369_v53 = vcombine.high %v202_v48, %v210_v49  ;;  %v2371_v55 = vcombine.high %v203_v50, %v211_v51  ;;  %v2745_v57 = vld [vmem:[%s3979_s1 + $0x1b0] ss:$8 sps:$4 sm:$0xff]   ;;  %v2746_v58 = vld [vmem:[%s3979_s1 + $0xa4] ss:$8 sps:$4 sm:$0xff]   ;;  %v2750_v60 = vld [vmem:[%s3979_s1 + $0xa0] ss:$8 sps:$4 sm:$0xff]   ;;  %v2368_v8 = vcombine.low %v202_v48, %v210_v49 }
  0x20   : > { %1899 = vmatprep.subr.bf16.mxu1 %v2700_v21  ;;  %v2748_v59 = vld [vmem:[%s3979_s1 + $0x1a4] ss:$8 sps:$4 sm:$0xff]   ;;  %v2751_v61 = vld [vmem:[%s3979_s1 + $0x1a0] ss:$8 sps:$4 sm:$0xff]   ;;  %v2752_v62 = vld [vmem:[%s3979_s1 + $0x94] ss:$8 sps:$4 sm:$0xff]   ;;  %v2370_v9 = vcombine.low %v203_v50, %v211_v51 }
  0x21   : > { %1878 = vmatprep.mubr.bf16.mxu0 %v2369_v53  ;;  %1921 = vmatprep.mubr.bf16.mxu1 %v2371_v55  ;;  %v2754_v63 = vld [vmem:[%s3979_s1 + $0x194] ss:$8 sps:$4 sm:$0xff]   ;;  %v2756_v0 = vld [vmem:[%s3979_s1 + $0x90] ss:$8 sps:$4 sm:$0xff]   ;;  %v2758_v2 = vld [vmem:[%s3979_s1 + $0x84] ss:$8 sps:$4 sm:$0xff]  }
  0x22   : > { %1857 = vmatpush1.bf16.msra.mxu0 %v2702_v22  ;;  %v2757_v1 = vld [vmem:[%s3979_s1 + $0x190] ss:$8 sps:$4 sm:$0xff]   ;;  %v2760_v3 = vld [vmem:[%s3979_s1 + $0x184] ss:$8 sps:$4 sm:$0xff]   ;;  %v2762_v4 = vld [vmem:[%s3979_s1 + $0x80] ss:$8 sps:$4 sm:$0xff]  }
  0x23   : > { %1900 = vmatpush1.bf16.msra.mxu1 %v2703_v23  ;;  %1858 = vmatprep.subr.bf16.mxu0 %v2704_v24  ;;  %v2763_v5 = vld [vmem:[%s3979_s1 + $0x180] ss:$8 sps:$4 sm:$0xff]   ;;  %v2766_v6 = vld [vmem:[%s3979_s1 + $0x274] ss:$8 sps:$4 sm:$0xff]   ;;  %v2764_v10 = vld [vmem:[%s3979_s1 + $0x270] ss:$8 sps:$4 sm:$0xff]  }
  0x24   : > { %1901 = vmatprep.subr.bf16.mxu1 %v2706_v25  ;;  %v2769_v7 = vld [vmem:[%s3979_s1 + $0x374] ss:$8 sps:$4 sm:$0xff]   ;;  %v2767_v11 = vld [vmem:[%s3979_s1 + $0x370] ss:$8 sps:$4 sm:$0xff]   ;;  %v2772_v12 = vld [vmem:[%s3979_s1 + $0x264] ss:$8 sps:$4 sm:$0xff]  }
  0x25   : > { %v2775_v13 = vld [vmem:[%s3979_s1 + $0x364] ss:$8 sps:$4 sm:$0xff]   ;;  %v2770_v14 = vld [vmem:[%s3979_s1 + $0x260] ss:$8 sps:$4 sm:$0xff]   ;;  %v2778_v16 = vld [vmem:[%s3979_s1 + $0x254] ss:$8 sps:$4 sm:$0xff]  }
  0x26   : > { %1859 = vmatpush1.bf16.msra.mxu0 %v2708_v26  ;;  %v2773_v15 = vld [vmem:[%s3979_s1 + $0x360] ss:$8 sps:$4 sm:$0xff]   ;;  %v2781_v17 = vld [vmem:[%s3979_s1 + $0x354] ss:$8 sps:$4 sm:$0xff]   ;;  %v2776_v18 = vld [vmem:[%s3979_s1 + $0x250] ss:$8 sps:$4 sm:$0xff]  }
  0x27   : > { %1902 = vmatpush1.bf16.msra.mxu1 %v2709_v27  ;;  %1860 = vmatprep.subr.bf16.mxu0 %v2710_v28  ;;  %v2779_v19 = vld [vmem:[%s3979_s1 + $0x350] ss:$8 sps:$4 sm:$0xff]   ;;  %v2784_v20 = vld [vmem:[%s3979_s1 + $0x244] ss:$8 sps:$4 sm:$0xff]   ;;  %v2782_v22 = vld [vmem:[%s3979_s1 + $0x240] ss:$8 sps:$4 sm:$0xff]  }
  0x28   : > { %1903 = vmatprep.subr.bf16.mxu1 %v2712_v29  ;;  %v2787_v21 = vld [vmem:[%s3979_s1 + $0x344] ss:$8 sps:$4 sm:$0xff]   ;;  %v2785_v23 = vld [vmem:[%s3979_s1 + $0x340] ss:$8 sps:$4 sm:$0xff]   ;;  %v2790_v24 = vld [vmem:[%s3979_s1 + $0x234] ss:$8 sps:$4 sm:$0xff]  }
  0x29   : > { %v2793_v25 = vld [vmem:[%s3979_s1 + $0x334] ss:$8 sps:$4 sm:$0xff]   ;;  %v2788_v26 = vld [vmem:[%s3979_s1 + $0x230] ss:$8 sps:$4 sm:$0xff]   ;;  %v2796_v28 = vld [vmem:[%s3979_s1 + $0x224] ss:$8 sps:$4 sm:$0xff]  }
  0x2a   : > { %1861 = vmatpush1.bf16.msra.mxu0 %v2714_v30  ;;  %v2791_v27 = vld [vmem:[%s3979_s1 + $0x330] ss:$8 sps:$4 sm:$0xff]   ;;  %v2799_v29 = vld [vmem:[%s3979_s1 + $0x324] ss:$8 sps:$4 sm:$0xff]   ;;  %v2794_v30 = vld [vmem:[%s3979_s1 + $0x220] ss:$8 sps:$4 sm:$0xff]  }
  0x2b   : > { %1904 = vmatpush1.bf16.msra.mxu1 %v2715_v31  ;;  %1862 = vmatprep.subr.bf16.mxu0 %v2716_v32  ;;  %v2797_v31 = vld [vmem:[%s3979_s1 + $0x320] ss:$8 sps:$4 sm:$0xff]   ;;  %v2802_v32 = vld [vmem:[%s3979_s1 + $0x214] ss:$8 sps:$4 sm:$0xff]   ;;  %v2812_v48 = vld [vmem:[%s3979_s1 + $0x2f0] ss:$8 sps:$4 sm:$0xff]  }
  0x2c   : > { %1905 = vmatprep.subr.bf16.mxu1 %v2718_v33  ;;  %v2805_v33 = vld [vmem:[%s3979_s1 + $0x314] ss:$8 sps:$4 sm:$0xff]   ;;  %v2815_v49 = vld [vmem:[%s3979_s1 + $0x3f0] ss:$8 sps:$4 sm:$0xff]   ;;  %v2820_v50 = vld [vmem:[%s3979_s1 + $0x2e4] ss:$8 sps:$4 sm:$0xff]  }
  0x2d   : > { %v2823_v51 = vld [vmem:[%s3979_s1 + $0x3e4] ss:$8 sps:$4 sm:$0xff]   ;;  %v2821_v53 = vld [vmem:[%s3979_s1 + $0x3e0] ss:$8 sps:$4 sm:$0xff]   ;;  %v2829_v55 = vld [vmem:[%s3979_s1 + $0x3d4] ss:$8 sps:$4 sm:$0xff]  }
  0x2e   : > { %1863 = vmatpush2.bf16.msra.mxu0 %v2720_v34  ;;  %v2800_v34 = vld [vmem:[%s3979_s1 + $0x210] ss:$8 sps:$4 sm:$0xff]  }
  0x2f   : > { %1906 = vmatpush2.bf16.msra.mxu1 %v2721_v35  ;;  %1864 = vmatprep.subr.bf16.mxu0 %v2722_v36  ;;  %v2803_v35 = vld [vmem:[%s3979_s1 + $0x310] ss:$8 sps:$4 sm:$0xff]  }
  0x30   : > { %1907 = vmatprep.subr.bf16.mxu1 %v2724_v37  ;;  %v3411_v36 = vld [vmem:[%s3260_s11 + $0x10] sm:$0xff] }
  0x31   : > { %v3414_v37 = vld [vmem:[%s3260_s11 + $0x50] sm:$0xff] }
  0x32   : > { %1865 = vmatpush2.bf16.msra.mxu0 %v2726_v38  ;;  %v3417_v38 = vld [vmem:[%s3260_s11 + $0x18] sm:$0xff] }
  0x33   : > { %1908 = vmatpush2.bf16.msra.mxu1 %v2727_v39  ;;  %1866 = vmatprep.subr.bf16.mxu0 %v2728_v40  ;;  %v3420_v39 = vld [vmem:[%s3260_s11 + $0x58] sm:$0xff]  ;;  %v2808_v40 = vld [vmem:[%s3979_s1 + $0x204] ss:$8 sps:$4 sm:$0xff]  }
  0x34   : > { %1909 = vmatprep.subr.bf16.mxu1 %v2730_v41  ;;  %v2373_v41 = vcombine.high %v3411_v36, %v3414_v37 }
  0x36   : > { %1867 = vmatpush2.bf16.msra.mxu0 %v2732_v42  ;;  %v2811_v42 = vld [vmem:[%s3979_s1 + $0x304] ss:$8 sps:$4 sm:$0xff]  }
  0x37   : > { %1910 = vmatpush2.bf16.msra.mxu1 %v2733_v43  ;;  %1868 = vmatprep.subr.bf16.mxu0 %v2734_v44  ;;  %v2375_v43 = vcombine.high %v3417_v38, %v3420_v39  ;;  %v2806_v44 = vld [vmem:[%s3979_s1 + $0x200] ss:$8 sps:$4 sm:$0xff]  }
  0x38   : > { %1911 = vmatprep.subr.bf16.mxu1 %v2736_v45  ;;  %v2809_v45 = vld [vmem:[%s3979_s1 + $0x300] ss:$8 sps:$4 sm:$0xff]  }
  0x3a   : > { %1869 = vmatpush2.bf16.msra.mxu0 %v2738_v46  ;;  %v2814_v46 = vld [vmem:[%s3979_s1 + $0x2f4] ss:$8 sps:$4 sm:$0xff]  }
  0x3b   : > { %1912 = vmatpush2.bf16.msra.mxu1 %v2739_v47  ;;  %1870 = vmatprep.subr.bf16.mxu0 %v2740_v52  ;;  %v2817_v47 = vld [vmem:[%s3979_s1 + $0x3f4] ss:$8 sps:$4 sm:$0xff]   ;;  %v2818_v52 = vld [vmem:[%s3979_s1 + $0x2e0] ss:$8 sps:$4 sm:$0xff]  }
  0x3c   : > { %1913 = vmatprep.subr.bf16.mxu1 %v2742_v54  ;;  %v2826_v54 = vld [vmem:[%s3979_s1 + $0x2d4] ss:$8 sps:$4 sm:$0xff]  }
  0x3e   : > { %1871 = vmatpush2.bf16.msra.mxu0 %v2744_v56  ;;  %v2824_v56 = vld [vmem:[%s3979_s1 + $0x2d0] ss:$8 sps:$4 sm:$0xff]  }
  0x3f   : > { %1914 = vmatpush2.bf16.msra.mxu1 %v2745_v57  ;;  %1872 = vmatprep.subr.bf16.mxu0 %v2746_v58  ;;  %v2827_v57 = vld [vmem:[%s3979_s1 + $0x3d0] ss:$8 sps:$4 sm:$0xff]   ;;  %v2832_v58 = vld [vmem:[%s3979_s1 + $0x2c4] ss:$8 sps:$4 sm:$0xff]  }
  0x40   : > { %1915 = vmatprep.subr.bf16.mxu1 %v2748_v59  ;;  %v2835_v59 = vld [vmem:[%s3979_s1 + $0x3c4] ss:$8 sps:$4 sm:$0xff]  }
  0x42   : > { %1873 = vmatpush2.bf16.msra.mxu0 %v2750_v60  ;;  %v2830_v60 = vld [vmem:[%s3979_s1 + $0x2c0] ss:$8 sps:$4 sm:$0xff]  }
  0x43   : > { %1916 = vmatpush2.bf16.msra.mxu1 %v2751_v61  ;;  %1874 = vmatprep.subr.bf16.mxu0 %v2752_v62  ;;  %v2833_v61 = vld [vmem:[%s3979_s1 + $0x3c0] ss:$8 sps:$4 sm:$0xff]   ;;  %v2838_v62 = vld [vmem:[%s3979_s1 + $0x2b4] ss:$8 sps:$4 sm:$0xff]  }
  0x44   : > { %1917 = vmatprep.subr.bf16.mxu1 %v2754_v63  ;;  %v2841_v63 = vld [vmem:[%s3979_s1 + $0x3b4] ss:$8 sps:$4 sm:$0xff]  }
  0x46   : > { %1875 = vmatpush2.bf16.msra.mxu0 %v2756_v0  ;;  %v2836_v0 = vld [vmem:[%s3979_s1 + $0x2b0] ss:$8 sps:$4 sm:$0xff]  }
  0x47   : > { %1918 = vmatpush2.bf16.msra.mxu1 %v2757_v1  ;;  %1876 = vmatprep.subr.bf16.mxu0 %v2758_v2  ;;  %v2839_v1 = vld [vmem:[%s3979_s1 + $0x3b0] ss:$8 sps:$4 sm:$0xff]   ;;  %v2844_v2 = vld [vmem:[%s3979_s1 + $0x2a4] ss:$8 sps:$4 sm:$0xff]  }
  0x48   : > { %1919 = vmatprep.subr.bf16.mxu1 %v2760_v3  ;;  %v2847_v3 = vld [vmem:[%s3979_s1 + $0x3a4] ss:$8 sps:$4 sm:$0xff]  }
  0x4a   : > { %1877 = vmatpush2.bf16.msra.mxu0 %v2762_v4  ;;  %v2842_v4 = vld [vmem:[%s3979_s1 + $0x2a0] ss:$8 sps:$4 sm:$0xff]  }
  0x4b   : > { %1920 = vmatpush2.bf16.msra.mxu1 %v2763_v5  ;;  %1932 = vmatprep.subr.bf16.mxu0 %v2766_v6  ;;  %v2845_v5 = vld [vmem:[%s3979_s1 + $0x3a0] ss:$8 sps:$4 sm:$0xff]   ;;  %v2850_v6 = vld [vmem:[%s3979_s1 + $0x294] ss:$8 sps:$4 sm:$0xff]  }
  0x4c   : > { %1975 = vmatprep.subr.bf16.mxu1 %v2769_v7  ;;  %v2853_v7 = vld [vmem:[%s3979_s1 + $0x394] ss:$8 sps:$4 sm:$0xff]  }
  0x4d   : > { %1879 = vmatmul.mubr.bf16.vlgmr.msra.gmra.mxu0 %v2368_v8  ;;  %v2848_v8 = vld [vmem:[%s3979_s1 + $0x290] ss:$8 sps:$4 sm:$0xff]  }
  0x4e   : > { %1922 = vmatmul.mubr.bf16.vlgmr.msra.gmra.mxu1 %v2370_v9  ;;  %1933 = vmatpush1.bf16.msra.mxu0 %v2764_v10  ;;  %v2851_v9 = vld [vmem:[%s3979_s1 + $0x390] ss:$8 sps:$4 sm:$0xff]   ;;  %v2856_v10 = vld [vmem:[%s3979_s1 + $0x284] ss:$8 sps:$4 sm:$0xff]  }
  0x4f   : > { %1976 = vmatpush1.bf16.msra.mxu1 %v2767_v11  ;;  %1934 = vmatprep.subr.bf16.mxu0 %v2772_v12  ;;  %v2859_v11 = vld [vmem:[%s3979_s1 + $0x384] ss:$8 sps:$4 sm:$0xff]   ;;  %v2854_v12 = vld [vmem:[%s3979_s1 + $0x280] ss:$8 sps:$4 sm:$0xff]  }
  0x50   : > { %1977 = vmatprep.subr.bf16.mxu1 %v2775_v13  ;;  %1964 = vmatprep.mubr.bf16.mxu0 %v2373_v41  ;;  %v2857_v13 = vld [vmem:[%s3979_s1 + $0x380] ss:$8 sps:$4 sm:$0xff]   ;;  %v2887_v41 = vld [vmem:[%s3979_s1 + $0x530] ss:$8 sps:$4 sm:$0xff]  }
  0x51   : > { %2007 = vmatprep.mubr.bf16.mxu1 %v2375_v43  ;;  %v2895_v43 = vld [vmem:[%s3979_s1 + $0x524] ss:$8 sps:$4 sm:$0xff]  }
  0x52   : > { %1935 = vmatpush1.bf16.msra.mxu0 %v2770_v14  ;;  %v2862_v14 = vld [vmem:[%s3979_s1 + $0x474] ss:$8 sps:$4 sm:$0xff]  }
  0x53   : > { %1978 = vmatpush1.bf16.msra.mxu1 %v2773_v15  ;;  %1936 = vmatprep.subr.bf16.mxu0 %v2778_v16  ;;  %v2865_v15 = vld [vmem:[%s3979_s1 + $0x574] ss:$8 sps:$4 sm:$0xff]   ;;  %v2372_v16 = vcombine.low %v3411_v36, %v3414_v37  ;;  %v2878_v36 = vld [vmem:[%s3979_s1 + $0x440] ss:$8 sps:$4 sm:$0xff]  }
  0x54   : > { %1979 = vmatprep.subr.bf16.mxu1 %v2781_v17  ;;  %v2374_v17 = vcombine.low %v3417_v38, %v3420_v39  ;;  %v2881_v37 = vld [vmem:[%s3979_s1 + $0x540] ss:$8 sps:$4 sm:$0xff]   ;;  %v2886_v38 = vld [vmem:[%s3979_s1 + $0x434] ss:$8 sps:$4 sm:$0xff]  }
  0x55   : > { %v2889_v39 = vld [vmem:[%s3979_s1 + $0x534] ss:$8 sps:$4 sm:$0xff]  }
  0x56   : > { %1937 = vmatpush1.bf16.msra.mxu0 %v2776_v18  ;;  %v2860_v18 = vld [vmem:[%s3979_s1 + $0x470] ss:$8 sps:$4 sm:$0xff]  }
  0x57   : > { %1980 = vmatpush1.bf16.msra.mxu1 %v2779_v19  ;;  %1938 = vmatprep.subr.bf16.mxu0 %v2784_v20  ;;  %v2863_v19 = vld [vmem:[%s3979_s1 + $0x570] ss:$8 sps:$4 sm:$0xff]   ;;  %v2868_v20 = vld [vmem:[%s3979_s1 + $0x464] ss:$8 sps:$4 sm:$0xff]  }
  0x58   : > { %1981 = vmatprep.subr.bf16.mxu1 %v2787_v21  ;;  %v2871_v21 = vld [vmem:[%s3979_s1 + $0x564] ss:$8 sps:$4 sm:$0xff]  }
  0x5a   : > { %1939 = vmatpush1.bf16.msra.mxu0 %v2782_v22  ;;  %v2866_v22 = vld [vmem:[%s3979_s1 + $0x460] ss:$8 sps:$4 sm:$0xff]  }
  0x5b   : > { %1982 = vmatpush1.bf16.msra.mxu1 %v2785_v23  ;;  %1940 = vmatprep.subr.bf16.mxu0 %v2790_v24  ;;  %v2869_v23 = vld [vmem:[%s3979_s1 + $0x560] ss:$8 sps:$4 sm:$0xff]  }
  0x5c   : > { %1983 = vmatprep.subr.bf16.mxu1 %v2793_v25  ;;  %v3563_v24 = vld [vmem:[%s3260_s11 + $0x20] sm:$0xff] }
  0x5d   : > { %v3566_v25 = vld [vmem:[%s3260_s11 + $0x60] sm:$0xff] }
  0x5e   : > { %1941 = vmatpush1.bf16.msra.mxu0 %v2788_v26  ;;  %v3569_v26 = vld [vmem:[%s3260_s11 + $0x28] sm:$0xff] }
  0x5f   : > { %1984 = vmatpush1.bf16.msra.mxu1 %v2791_v27  ;;  %1942 = vmatprep.subr.bf16.mxu0 %v2796_v28  ;;  %v3572_v27 = vld [vmem:[%s3260_s11 + $0x68] sm:$0xff]  ;;  %v2874_v28 = vld [vmem:[%s3979_s1 + $0x454] ss:$8 sps:$4 sm:$0xff]  }
  0x60   : > { %1985 = vmatprep.subr.bf16.mxu1 %v2799_v29  ;;  %v2377_v29 = vcombine.high %v3563_v24, %v3566_v25 }
  0x62   : > { %1943 = vmatpush1.bf16.msra.mxu0 %v2794_v30  ;;  %v2877_v30 = vld [vmem:[%s3979_s1 + $0x554] ss:$8 sps:$4 sm:$0xff]  }
  0x63   : > { %1986 = vmatpush1.bf16.msra.mxu1 %v2797_v31  ;;  %1944 = vmatprep.subr.bf16.mxu0 %v2802_v32  ;;  %v2379_v31 = vcombine.high %v3569_v26, %v3572_v27  ;;  %v2872_v32 = vld [vmem:[%s3979_s1 + $0x450] ss:$8 sps:$4 sm:$0xff]  }
  0x64   : > { %1987 = vmatprep.subr.bf16.mxu1 %v2805_v33  ;;  %v2875_v33 = vld [vmem:[%s3979_s1 + $0x550] ss:$8 sps:$4 sm:$0xff]  }
  0x66   : > { %1945 = vmatpush1.bf16.msra.mxu0 %v2800_v34  ;;  %v2880_v34 = vld [vmem:[%s3979_s1 + $0x444] ss:$8 sps:$4 sm:$0xff]  }
  0x67   : > { %1988 = vmatpush1.bf16.msra.mxu1 %v2803_v35  ;;  %1946 = vmatprep.subr.bf16.mxu0 %v2808_v40  ;;  %v2883_v35 = vld [vmem:[%s3979_s1 + $0x544] ss:$8 sps:$4 sm:$0xff]   ;;  %v2884_v40 = vld [vmem:[%s3979_s1 + $0x430] ss:$8 sps:$4 sm:$0xff]  }
  0x68   : > { %1989 = vmatprep.subr.bf16.mxu1 %v2811_v42  ;;  %v2892_v42 = vld [vmem:[%s3979_s1 + $0x424] ss:$8 sps:$4 sm:$0xff]  }
  0x6a   : > { %1947 = vmatpush1.bf16.msra.mxu0 %v2806_v44  ;;  %v2890_v44 = vld [vmem:[%s3979_s1 + $0x420] ss:$8 sps:$4 sm:$0xff]  }
  0x6b   : > { %1990 = vmatpush1.bf16.msra.mxu1 %v2809_v45  ;;  %1948 = vmatprep.subr.bf16.mxu0 %v2814_v46  ;;  %v2893_v45 = vld [vmem:[%s3979_s1 + $0x520] ss:$8 sps:$4 sm:$0xff]   ;;  %v2898_v46 = vld [vmem:[%s3979_s1 + $0x414] ss:$8 sps:$4 sm:$0xff]  }
  0x6c   : > { %1991 = vmatprep.subr.bf16.mxu1 %v2817_v47  ;;  %v2901_v47 = vld [vmem:[%s3979_s1 + $0x514] ss:$8 sps:$4 sm:$0xff]  }
  0x6e   : > { %1949 = vmatpush2.bf16.msra.mxu0 %v2812_v48  ;;  %v2896_v48 = vld [vmem:[%s3979_s1 + $0x410] ss:$8 sps:$4 sm:$0xff]  }
  0x6f   : > { %1992 = vmatpush2.bf16.msra.mxu1 %v2815_v49  ;;  %1950 = vmatprep.subr.bf16.mxu0 %v2820_v50  ;;  %v2899_v49 = vld [vmem:[%s3979_s1 + $0x510] ss:$8 sps:$4 sm:$0xff]   ;;  %v2904_v50 = vld [vmem:[%s3979_s1 + $0x404] ss:$8 sps:$4 sm:$0xff]  }
  0x70   : > { %1993 = vmatprep.subr.bf16.mxu1 %v2823_v51  ;;  %v2907_v51 = vld [vmem:[%s3979_s1 + $0x504] ss:$8 sps:$4 sm:$0xff]  }
  0x72   : > { %1951 = vmatpush2.bf16.msra.mxu0 %v2818_v52  ;;  %v2902_v52 = vld [vmem:[%s3979_s1 + $0x400] ss:$8 sps:$4 sm:$0xff]  }
  0x73   : > { %1994 = vmatpush2.bf16.msra.mxu1 %v2821_v53  ;;  %1952 = vmatprep.subr.bf16.mxu0 %v2826_v54  ;;  %v2905_v53 = vld [vmem:[%s3979_s1 + $0x500] ss:$8 sps:$4 sm:$0xff]   ;;  %v2910_v54 = vld [vmem:[%s3979_s1 + $0x4f4] ss:$8 sps:$4 sm:$0xff]  }
  0x74   : > { %1995 = vmatprep.subr.bf16.mxu1 %v2829_v55  ;;  %v2913_v55 = vld [vmem:[%s3979_s1 + $0x5f4] ss:$8 sps:$4 sm:$0xff]  }
  0x76   : > { %1953 = vmatpush2.bf16.msra.mxu0 %v2824_v56  ;;  %v2908_v56 = vld [vmem:[%s3979_s1 + $0x4f0] ss:$8 sps:$4 sm:$0xff]  }
  0x77   : > { %1996 = vmatpush2.bf16.msra.mxu1 %v2827_v57  ;;  %1954 = vmatprep.subr.bf16.mxu0 %v2832_v58  ;;  %v2911_v57 = vld [vmem:[%s3979_s1 + $0x5f0] ss:$8 sps:$4 sm:$0xff]   ;;  %v2916_v58 = vld [vmem:[%s3979_s1 + $0x4e4] ss:$8 sps:$4 sm:$0xff]  }
  0x78   : > { %1997 = vmatprep.subr.bf16.mxu1 %v2835_v59  ;;  %v2919_v59 = vld [vmem:[%s3979_s1 + $0x5e4] ss:$8 sps:$4 sm:$0xff]  }
  0x7a   : > { %1955 = vmatpush2.bf16.msra.mxu0 %v2830_v60  ;;  %v2914_v60 = vld [vmem:[%s3979_s1 + $0x4e0] ss:$8 sps:$4 sm:$0xff]  }
  0x7b   : > { %1998 = vmatpush2.bf16.msra.mxu1 %v2833_v61  ;;  %1956 = vmatprep.subr.bf16.mxu0 %v2838_v62  ;;  %v2917_v61 = vld [vmem:[%s3979_s1 + $0x5e0] ss:$8 sps:$4 sm:$0xff]   ;;  %v2922_v62 = vld [vmem:[%s3979_s1 + $0x4d4] ss:$8 sps:$4 sm:$0xff]  }
  0x7c   : > { %1999 = vmatprep.subr.bf16.mxu1 %v2841_v63  ;;  %v2925_v63 = vld [vmem:[%s3979_s1 + $0x5d4] ss:$8 sps:$4 sm:$0xff]  }
  0x7e   : > { %1957 = vmatpush2.bf16.msra.mxu0 %v2836_v0  ;;  %v2920_v0 = vld [vmem:[%s3979_s1 + $0x4d0] ss:$8 sps:$4 sm:$0xff]  }
  0x7f   : > { %2000 = vmatpush2.bf16.msra.mxu1 %v2839_v1  ;;  %1958 = vmatprep.subr.bf16.mxu0 %v2844_v2  ;;  %v2923_v1 = vld [vmem:[%s3979_s1 + $0x5d0] ss:$8 sps:$4 sm:$0xff]   ;;  %v2928_v2 = vld [vmem:[%s3979_s1 + $0x4c4] ss:$8 sps:$4 sm:$0xff]  }
  0x80   : > { %2001 = vmatprep.subr.bf16.mxu1 %v2847_v3  ;;  %v2931_v3 = vld [vmem:[%s3979_s1 + $0x5c4] ss:$8 sps:$4 sm:$0xff]  }
  0x82   : > { %1959 = vmatpush2.bf16.msra.mxu0 %v2842_v4  ;;  %v2926_v4 = vld [vmem:[%s3979_s1 + $0x4c0] ss:$8 sps:$4 sm:$0xff]  }
  0x83   : > { %2002 = vmatpush2.bf16.msra.mxu1 %v2845_v5  ;;  %1960 = vmatprep.subr.bf16.mxu0 %v2850_v6  ;;  %v2929_v5 = vld [vmem:[%s3979_s1 + $0x5c0] ss:$8 sps:$4 sm:$0xff]   ;;  %v2934_v6 = vld [vmem:[%s3979_s1 + $0x4b4] ss:$8 sps:$4 sm:$0xff]  }
  0x84   : > { %2003 = vmatprep.subr.bf16.mxu1 %v2853_v7  ;;  %v2937_v7 = vld [vmem:[%s3979_s1 + $0x5b4] ss:$8 sps:$4 sm:$0xff]  }
  0x86   : > { %1961 = vmatpush2.bf16.msra.mxu0 %v2848_v8  ;;  %v2932_v8 = vld [vmem:[%s3979_s1 + $0x4b0] ss:$8 sps:$4 sm:$0xff]  }
  0x87   : > { %2004 = vmatpush2.bf16.msra.mxu1 %v2851_v9  ;;  %1962 = vmatprep.subr.bf16.mxu0 %v2856_v10  ;;  %v2935_v9 = vld [vmem:[%s3979_s1 + $0x5b0] ss:$8 sps:$4 sm:$0xff]   ;;  %v2940_v10 = vld [vmem:[%s3979_s1 + $0x4a4] ss:$8 sps:$4 sm:$0xff]  }
  0x88   : > { %2005 = vmatprep.subr.bf16.mxu1 %v2859_v11  ;;  %v2943_v11 = vld [vmem:[%s3979_s1 + $0x5a4] ss:$8 sps:$4 sm:$0xff]  }
  0x8a   : > { %1963 = vmatpush2.bf16.msra.mxu0 %v2854_v12  ;;  %v2938_v12 = vld [vmem:[%s3979_s1 + $0x4a0] ss:$8 sps:$4 sm:$0xff]  }
  0x8b   : > { %2006 = vmatpush2.bf16.msra.mxu1 %v2857_v13  ;;  %2018 = vmatprep.subr.bf16.mxu0 %v2862_v14  ;;  %v2941_v13 = vld [vmem:[%s3979_s1 + $0x5a0] ss:$8 sps:$4 sm:$0xff]   ;;  %v2946_v14 = vld [vmem:[%s3979_s1 + $0x494] ss:$8 sps:$4 sm:$0xff]  }
  0x8c   : > { %2061 = vmatprep.subr.bf16.mxu1 %v2865_v15  ;;  %v2949_v15 = vld [vmem:[%s3979_s1 + $0x594] ss:$8 sps:$4 sm:$0xff]  }
  0x8d   : > { %1965 = vmatmul.mubr.bf16.vlgmr.msra.gmra.mxu0 %v2372_v16  ;;  %v2944_v16 = vld [vmem:[%s3979_s1 + $0x490] ss:$8 sps:$4 sm:$0xff]  }
  0x8e   : > { %2008 = vmatmul.mubr.bf16.vlgmr.msra.gmra.mxu1 %v2374_v17  ;;  %2019 = vmatpush1.bf16.msra.mxu0 %v2860_v18  ;;  %v2947_v17 = vld [vmem:[%s3979_s1 + $0x590] ss:$8 sps:$4 sm:$0xff]   ;;  %v2952_v18 = vld [vmem:[%s3979_s1 + $0x484] ss:$8 sps:$4 sm:$0xff]  }
  0x8f   : > { %2062 = vmatpush1.bf16.msra.mxu1 %v2863_v19  ;;  %2020 = vmatprep.subr.bf16.mxu0 %v2868_v20  ;;  %v2955_v19 = vld [vmem:[%s3979_s1 + $0x584] ss:$8 sps:$4 sm:$0xff]   ;;  %v2950_v20 = vld [vmem:[%s3979_s1 + $0x480] ss:$8 sps:$4 sm:$0xff]  }
  0x90   : > { %2063 = vmatprep.subr.bf16.mxu1 %v2871_v21  ;;  %2050 = vmatprep.mubr.bf16.mxu0 %v2377_v29  ;;  %v2953_v21 = vld [vmem:[%s3979_s1 + $0x580] ss:$8 sps:$4 sm:$0xff]   ;;  %v2376_v29 = vcombine.low %v3563_v24, %v3566_v25  ;;  %v2964_v24 = vld [vmem:[%s3979_s1 + $0x664] ss:$8 sps:$4 sm:$0xff]  }
  0x91   : > { %2093 = vmatprep.mubr.bf16.mxu1 %v2379_v31  ;;  %v3760_v31 = vld [vmem:[%s3260_s11 + $0x70] sm:$0xff]  ;;  %v2967_v25 = vld [vmem:[%s3979_s1 + $0x764] ss:$8 sps:$4 sm:$0xff]  }
  0x92   : > { %2021 = vmatpush1.bf16.msra.mxu0 %v2866_v22  ;;  %v2958_v22 = vld [vmem:[%s3979_s1 + $0x674] ss:$8 sps:$4 sm:$0xff]  }
  0x93   : > { %2064 = vmatpush1.bf16.msra.mxu1 %v2869_v23  ;;  %2022 = vmatprep.subr.bf16.mxu0 %v2874_v28  ;;  %v2961_v23 = vld [vmem:[%s3979_s1 + $0x774] ss:$8 sps:$4 sm:$0xff]  }
  0x94   : > { %2065 = vmatprep.subr.bf16.mxu1 %v2877_v30  ;;  %v3753_v28 = vld [vmem:[%s3260_s11 + $0x30] sm:$0xff]  ;;  %v2378_v30 = vcombine.low %v3569_v26, %v3572_v27 }
  0x95   : > { %v2381_v26 = vcombine.high %v3753_v28, %v3760_v31 }
  0x96   : > { %2023 = vmatpush1.bf16.msra.mxu0 %v2872_v32  ;;  %v3763_v32 = vld [vmem:[%s3260_s11 + $0x38] sm:$0xff] }
  0x97   : > { %2066 = vmatpush1.bf16.msra.mxu1 %v2875_v33  ;;  %2024 = vmatprep.subr.bf16.mxu0 %v2880_v34  ;;  %v3766_v33 = vld [vmem:[%s3260_s11 + $0x78] sm:$0xff] }
  0x98   : > { %2067 = vmatprep.subr.bf16.mxu1 %v2883_v35  ;;  %v2956_v34 = vld [vmem:[%s3979_s1 + $0x670] ss:$8 sps:$4 sm:$0xff]   ;;  %v2383_v27 = vcombine.high %v3763_v32, %v3766_v33 }
  0x99   : > { %v2959_v35 = vld [vmem:[%s3979_s1 + $0x770] ss:$8 sps:$4 sm:$0xff]  }
  0x9a   : > { %2025 = vmatpush1.bf16.msra.mxu0 %v2878_v36  ;;  %v2962_v36 = vld [vmem:[%s3979_s1 + $0x660] ss:$8 sps:$4 sm:$0xff]  }
  0x9b   : > { %2068 = vmatpush1.bf16.msra.mxu1 %v2881_v37  ;;  %2026 = vmatprep.subr.bf16.mxu0 %v2886_v38  ;;  %v2965_v37 = vld [vmem:[%s3979_s1 + $0x760] ss:$8 sps:$4 sm:$0xff]   ;;  %v2970_v38 = vld [vmem:[%s3979_s1 + $0x654] ss:$8 sps:$4 sm:$0xff]  }
  0x9c   : > { %2069 = vmatprep.subr.bf16.mxu1 %v2889_v39  ;;  %v2973_v39 = vld [vmem:[%s3979_s1 + $0x754] ss:$8 sps:$4 sm:$0xff]  }
  0x9e   : > { %2027 = vmatpush1.bf16.msra.mxu0 %v2884_v40  ;;  %v2968_v40 = vld [vmem:[%s3979_s1 + $0x650] ss:$8 sps:$4 sm:$0xff]  }
  0x9f   : > { %2070 = vmatpush1.bf16.msra.mxu1 %v2887_v41  ;;  %2028 = vmatprep.subr.bf16.mxu0 %v2892_v42  ;;  %v2971_v41 = vld [vmem:[%s3979_s1 + $0x750] ss:$8 sps:$4 sm:$0xff]   ;;  %v2976_v42 = vld [vmem:[%s3979_s1 + $0x644] ss:$8 sps:$4 sm:$0xff]  }
  0xa0   : > { %2071 = vmatprep.subr.bf16.mxu1 %v2895_v43  ;;  %v2979_v43 = vld [vmem:[%s3979_s1 + $0x744] ss:$8 sps:$4 sm:$0xff]  }
  0xa2   : > { %2029 = vmatpush1.bf16.msra.mxu0 %v2890_v44  ;;  %v2974_v44 = vld [vmem:[%s3979_s1 + $0x640] ss:$8 sps:$4 sm:$0xff]  }
  0xa3   : > { %2072 = vmatpush1.bf16.msra.mxu1 %v2893_v45  ;;  %2030 = vmatprep.subr.bf16.mxu0 %v2898_v46  ;;  %v2977_v45 = vld [vmem:[%s3979_s1 + $0x740] ss:$8 sps:$4 sm:$0xff]   ;;  %v2982_v46 = vld [vmem:[%s3979_s1 + $0x634] ss:$8 sps:$4 sm:$0xff]  }
  0xa4   : > { %2073 = vmatprep.subr.bf16.mxu1 %v2901_v47  ;;  %v2985_v47 = vld [vmem:[%s3979_s1 + $0x734] ss:$8 sps:$4 sm:$0xff]  }
  0xa6   : > { %2031 = vmatpush1.bf16.msra.mxu0 %v2896_v48  ;;  %v2980_v48 = vld [vmem:[%s3979_s1 + $0x630] ss:$8 sps:$4 sm:$0xff]  }
  0xa7   : > { %2074 = vmatpush1.bf16.msra.mxu1 %v2899_v49  ;;  %2032 = vmatprep.subr.bf16.mxu0 %v2904_v50  ;;  %v2983_v49 = vld [vmem:[%s3979_s1 + $0x730] ss:$8 sps:$4 sm:$0xff]   ;;  %v2988_v50 = vld [vmem:[%s3979_s1 + $0x624] ss:$8 sps:$4 sm:$0xff]  }
  0xa8   : > { %2075 = vmatprep.subr.bf16.mxu1 %v2907_v51  ;;  %v2991_v51 = vld [vmem:[%s3979_s1 + $0x724] ss:$8 sps:$4 sm:$0xff]  }
  0xaa   : > { %2033 = vmatpush1.bf16.msra.mxu0 %v2902_v52  ;;  %v2986_v52 = vld [vmem:[%s3979_s1 + $0x620] ss:$8 sps:$4 sm:$0xff]  }
  0xab   : > { %2076 = vmatpush1.bf16.msra.mxu1 %v2905_v53  ;;  %2034 = vmatprep.subr.bf16.mxu0 %v2910_v54  ;;  %v2989_v53 = vld [vmem:[%s3979_s1 + $0x720] ss:$8 sps:$4 sm:$0xff]   ;;  %v2994_v54 = vld [vmem:[%s3979_s1 + $0x614] ss:$8 sps:$4 sm:$0xff]  }
  0xac   : > { %2077 = vmatprep.subr.bf16.mxu1 %v2913_v55  ;;  %v2997_v55 = vld [vmem:[%s3979_s1 + $0x714] ss:$8 sps:$4 sm:$0xff]  }
  0xae   : > { %2035 = vmatpush2.bf16.msra.mxu0 %v2908_v56  ;;  %v2992_v56 = vld [vmem:[%s3979_s1 + $0x610] ss:$8 sps:$4 sm:$0xff]  }
  0xaf   : > { %2078 = vmatpush2.bf16.msra.mxu1 %v2911_v57  ;;  %2036 = vmatprep.subr.bf16.mxu0 %v2916_v58  ;;  %v2995_v57 = vld [vmem:[%s3979_s1 + $0x710] ss:$8 sps:$4 sm:$0xff]   ;;  %v3000_v58 = vld [vmem:[%s3979_s1 + $0x604] ss:$8 sps:$4 sm:$0xff]  }
  0xb0   : > { %2079 = vmatprep.subr.bf16.mxu1 %v2919_v59  ;;  %v3003_v59 = vld [vmem:[%s3979_s1 + $0x704] ss:$8 sps:$4 sm:$0xff]  }
  0xb2   : > { %2037 = vmatpush2.bf16.msra.mxu0 %v2914_v60  ;;  %v2998_v60 = vld [vmem:[%s3979_s1 + $0x600] ss:$8 sps:$4 sm:$0xff]  }
  0xb3   : > { %2080 = vmatpush2.bf16.msra.mxu1 %v2917_v61  ;;  %2038 = vmatprep.subr.bf16.mxu0 %v2922_v62  ;;  %v3001_v61 = vld [vmem:[%s3979_s1 + $0x700] ss:$8 sps:$4 sm:$0xff]   ;;  %v3006_v62 = vld [vmem:[%s3979_s1 + $0x6f4] ss:$8 sps:$4 sm:$0xff]  }
  0xb4   : > { %2081 = vmatprep.subr.bf16.mxu1 %v2925_v63  ;;  %v3009_v63 = vld [vmem:[%s3979_s1 + $0x7f4] ss:$8 sps:$4 sm:$0xff]  }
  0xb6   : > { %2039 = vmatpush2.bf16.msra.mxu0 %v2920_v0  ;;  %v3004_v0 = vld [vmem:[%s3979_s1 + $0x6f0] ss:$8 sps:$4 sm:$0xff]  }
  0xb7   : > { %2082 = vmatpush2.bf16.msra.mxu1 %v2923_v1  ;;  %2040 = vmatprep.subr.bf16.mxu0 %v2928_v2  ;;  %v3007_v1 = vld [vmem:[%s3979_s1 + $0x7f0] ss:$8 sps:$4 sm:$0xff]   ;;  %v3012_v2 = vld [vmem:[%s3979_s1 + $0x6e4] ss:$8 sps:$4 sm:$0xff]  }
  0xb8   : > { %2083 = vmatprep.subr.bf16.mxu1 %v2931_v3  ;;  %v3015_v3 = vld [vmem:[%s3979_s1 + $0x7e4] ss:$8 sps:$4 sm:$0xff]  }
  0xba   : > { %2041 = vmatpush2.bf16.msra.mxu0 %v2926_v4  ;;  %v3010_v4 = vld [vmem:[%s3979_s1 + $0x6e0] ss:$8 sps:$4 sm:$0xff]  }
  0xbb   : > { %2084 = vmatpush2.bf16.msra.mxu1 %v2929_v5  ;;  %2042 = vmatprep.subr.bf16.mxu0 %v2934_v6  ;;  %v3013_v5 = vld [vmem:[%s3979_s1 + $0x7e0] ss:$8 sps:$4 sm:$0xff]   ;;  %v3018_v6 = vld [vmem:[%s3979_s1 + $0x6d4] ss:$8 sps:$4 sm:$0xff]  }
  0xbc   : > { %2085 = vmatprep.subr.bf16.mxu1 %v2937_v7  ;;  %v3021_v7 = vld [vmem:[%s3979_s1 + $0x7d4] ss:$8 sps:$4 sm:$0xff]  }
  0xbe   : > { %2043 = vmatpush2.bf16.msra.mxu0 %v2932_v8  ;;  %v3016_v8 = vld [vmem:[%s3979_s1 + $0x6d0] ss:$8 sps:$4 sm:$0xff]  }
  0xbf   : > { %2086 = vmatpush2.bf16.msra.mxu1 %v2935_v9  ;;  %2044 = vmatprep.subr.bf16.mxu0 %v2940_v10  ;;  %v3019_v9 = vld [vmem:[%s3979_s1 + $0x7d0] ss:$8 sps:$4 sm:$0xff]   ;;  %v3024_v10 = vld [vmem:[%s3979_s1 + $0x6c4] ss:$8 sps:$4 sm:$0xff]  }
  0xc0   : > { %2087 = vmatprep.subr.bf16.mxu1 %v2943_v11  ;;  %v3027_v11 = vld [vmem:[%s3979_s1 + $0x7c4] ss:$8 sps:$4 sm:$0xff]  }
  0xc2   : > { %2045 = vmatpush2.bf16.msra.mxu0 %v2938_v12  ;;  %v3022_v12 = vld [vmem:[%s3979_s1 + $0x6c0] ss:$8 sps:$4 sm:$0xff]  }
  0xc3   : > { %2088 = vmatpush2.bf16.msra.mxu1 %v2941_v13  ;;  %2046 = vmatprep.subr.bf16.mxu0 %v2946_v14  ;;  %v3025_v13 = vld [vmem:[%s3979_s1 + $0x7c0] ss:$8 sps:$4 sm:$0xff]   ;;  %v3030_v14 = vld [vmem:[%s3979_s1 + $0x6b4] ss:$8 sps:$4 sm:$0xff]  }
  0xc4   : > { %2089 = vmatprep.subr.bf16.mxu1 %v2949_v15  ;;  %v3033_v15 = vld [vmem:[%s3979_s1 + $0x7b4] ss:$8 sps:$4 sm:$0xff]  }
  0xc6   : > { %2047 = vmatpush2.bf16.msra.mxu0 %v2944_v16  ;;  %v3028_v16 = vld [vmem:[%s3979_s1 + $0x6b0] ss:$8 sps:$4 sm:$0xff]  }
  0xc7   : > { %2090 = vmatpush2.bf16.msra.mxu1 %v2947_v17  ;;  %2048 = vmatprep.subr.bf16.mxu0 %v2952_v18  ;;  %v3031_v17 = vld [vmem:[%s3979_s1 + $0x7b0] ss:$8 sps:$4 sm:$0xff]   ;;  %v3036_v18 = vld [vmem:[%s3979_s1 + $0x6a4] ss:$8 sps:$4 sm:$0xff]  }
  0xc8   : > { %2091 = vmatprep.subr.bf16.mxu1 %v2955_v19  ;;  %v3039_v19 = vld [vmem:[%s3979_s1 + $0x7a4] ss:$8 sps:$4 sm:$0xff]  }
  0xca   : > { %2049 = vmatpush2.bf16.msra.mxu0 %v2950_v20  ;;  %v3034_v20 = vld [vmem:[%s3979_s1 + $0x6a0] ss:$8 sps:$4 sm:$0xff]  }
  0xcb   : > { %2092 = vmatpush2.bf16.msra.mxu1 %v2953_v21  ;;  %2104 = vmatprep.subr.bf16.mxu0 %v2958_v22  ;;  %v3037_v21 = vld [vmem:[%s3979_s1 + $0x7a0] ss:$8 sps:$4 sm:$0xff]   ;;  %v3042_v22 = vld [vmem:[%s3979_s1 + $0x694] ss:$8 sps:$4 sm:$0xff]  }
  0xcc   : > { %2147 = vmatprep.subr.bf16.mxu1 %v2961_v23  ;;  %v3045_v23 = vld [vmem:[%s3979_s1 + $0x794] ss:$8 sps:$4 sm:$0xff]  }
  0xcd   : > { %2051 = vmatmul.mubr.bf16.vlgmr.msra.gmra.mxu0 %v2376_v29  ;;  %v3040_v29 = vld [vmem:[%s3979_s1 + $0x690] ss:$8 sps:$4 sm:$0xff]  }
  0xce   : > { %2094 = vmatmul.mubr.bf16.vlgmr.msra.gmra.mxu1 %v2378_v30  ;;  %2105 = vmatpush1.bf16.msra.mxu0 %v2956_v34  ;;  %v3043_v30 = vld [vmem:[%s3979_s1 + $0x790] ss:$8 sps:$4 sm:$0xff]   ;;  %v3048_v34 = vld [vmem:[%s3979_s1 + $0x684] ss:$8 sps:$4 sm:$0xff]  }
  0xcf   : > { %2148 = vmatpush1.bf16.msra.mxu1 %v2959_v35  ;;  %2106 = vmatprep.subr.bf16.mxu0 %v2964_v24  ;;  %v3051_v35 = vld [vmem:[%s3979_s1 + $0x784] ss:$8 sps:$4 sm:$0xff]   ;;  %v3046_v24 = vld [vmem:[%s3979_s1 + $0x680] ss:$8 sps:$4 sm:$0xff]  }
  0xd0   : > { %2149 = vmatprep.subr.bf16.mxu1 %v2967_v25  ;;  %2136 = vmatprep.mubr.bf16.mxu0 %v2381_v26  ;;  %v3049_v25 = vld [vmem:[%s3979_s1 + $0x780] ss:$8 sps:$4 sm:$0xff]   ;;  %v2380_v26 = vcombine.low %v3753_v28, %v3760_v31 }
  0xd1   : > { %2179 = vmatprep.mubr.bf16.mxu1 %v2383_v27  ;;  %v2382_v27 = vcombine.low %v3763_v32, %v3766_v33  ;;  %v474_v32 = vld [vmem:[%s3980_s2] sm:$0x3] }
  0xd2   : > { %2107 = vmatpush1.bf16.msra.mxu0 %v2962_v36 }
  0xd3   : > { %2150 = vmatpush1.bf16.msra.mxu1 %v2965_v37  ;;  %2108 = vmatprep.subr.bf16.mxu0 %v2970_v38 }
  0xd4   : > { %2151 = vmatprep.subr.bf16.mxu1 %v2973_v39 }
  0xd6   : > { %2109 = vmatpush1.bf16.msra.mxu0 %v2968_v40 }
  0xd7   : > { %2152 = vmatpush1.bf16.msra.mxu1 %v2971_v41  ;;  %2110 = vmatprep.subr.bf16.mxu0 %v2976_v42  ;;  %v476_v42 = vlaneseq }
  0xd8   : > { %2153 = vmatprep.subr.bf16.mxu1 %v2979_v43 }
  0xda   : > { %2111 = vmatpush1.bf16.msra.mxu0 %v2974_v44 }
  0xdb   : > { %2154 = vmatpush1.bf16.msra.mxu1 %v2977_v45  ;;  %2112 = vmatprep.subr.bf16.mxu0 %v2982_v46 }
  0xdc   : > { %2155 = vmatprep.subr.bf16.mxu1 %v2985_v47  ;;  %v477_v47 = vshrl.u32 %v476_v42, 7 }
  0xde   : > { %2113 = vmatpush1.bf16.msra.mxu0 %v2980_v48  ;;  %v478_v48 = vsub.s32 0, %v477_v47  ;;  %v482_v33 = vsub.s32 1, %v477_v47 }
  0xdf   : > { %2156 = vmatpush1.bf16.msra.mxu1 %v2983_v49  ;;  %2114 = vmatprep.subr.bf16.mxu0 %v2988_v50 }
  0xe0   : > { %2157 = vmatprep.subr.bf16.mxu1 %v2991_v51  ;;  %v479_v51 = vrot.slane %v474_v32, %v478_v48 }
  0xe2   : > { %2115 = vmatpush1.bf16.msra.mxu0 %v2986_v52  ;;  %v483_v52 = vrot.slane %v474_v32, %v482_v33 }
  0xe3   : > { %2158 = vmatpush1.bf16.msra.mxu1 %v2989_v53  ;;  %2116 = vmatprep.subr.bf16.mxu0 %v2994_v54 }
  0xe4   : > { %2159 = vmatprep.subr.bf16.mxu1 %v2997_v55 }
  0xe6   : > { %2117 = vmatpush1.bf16.msra.mxu0 %v2992_v56 }
  0xe7   : > { %2160 = vmatpush1.bf16.msra.mxu1 %v2995_v57  ;;  %2118 = vmatprep.subr.bf16.mxu0 %v3000_v58 }
  0xe8   : > { %2161 = vmatprep.subr.bf16.mxu1 %v3003_v59 }
  0xea   : > { %2119 = vmatpush1.bf16.msra.mxu0 %v2998_v60 }
  0xeb   : > { %2162 = vmatpush1.bf16.msra.mxu1 %v3001_v61  ;;  %2120 = vmatprep.subr.bf16.mxu0 %v3006_v62 }
  0xec   : > { %2163 = vmatprep.subr.bf16.mxu1 %v3009_v63 }
  0xee   : > { %2121 = vmatpush2.bf16.msra.mxu0 %v3004_v0 }
  0xef   : > { %2164 = vmatpush2.bf16.msra.mxu1 %v3007_v1  ;;  %2122 = vmatprep.subr.bf16.mxu0 %v3012_v2 }
  0xf0   : > { %2165 = vmatprep.subr.bf16.mxu1 %v3015_v3 }
  0xf2   : > { %2123 = vmatpush2.bf16.msra.mxu0 %v3010_v4 }
  0xf3   : > { %2166 = vmatpush2.bf16.msra.mxu1 %v3013_v5  ;;  %2124 = vmatprep.subr.bf16.mxu0 %v3018_v6 }
  0xf4   : > { %2167 = vmatprep.subr.bf16.mxu1 %v3021_v7 }
  0xf6   : > { %2125 = vmatpush2.bf16.msra.mxu0 %v3016_v8 }
  0xf7   : > { %2168 = vmatpush2.bf16.msra.mxu1 %v3019_v9  ;;  %2126 = vmatprep.subr.bf16.mxu0 %v3024_v10 }
  0xf8   : > { %2169 = vmatprep.subr.bf16.mxu1 %v3027_v11 }
  0xfa   : > { %2127 = vmatpush2.bf16.msra.mxu0 %v3022_v12 }
  0xfb   : > { %2170 = vmatpush2.bf16.msra.mxu1 %v3025_v13  ;;  %2128 = vmatprep.subr.bf16.mxu0 %v3030_v14 }
  0xfc   : > { %2171 = vmatprep.subr.bf16.mxu1 %v3033_v15 }
  0xfe   : > { %2129 = vmatpush2.bf16.msra.mxu0 %v3028_v16 }
  0xff   : > { %2172 = vmatpush2.bf16.msra.mxu1 %v3031_v17  ;;  %2130 = vmatprep.subr.bf16.mxu0 %v3036_v18 }
 0x100   : > { %2173 = vmatprep.subr.bf16.mxu1 %v3039_v19 }
 0x102   : > { %2131 = vmatpush2.bf16.msra.mxu0 %v3034_v20 }
 0x103   : > { %2174 = vmatpush2.bf16.msra.mxu1 %v3037_v21  ;;  %2132 = vmatprep.subr.bf16.mxu0 %v3042_v22 }
 0x104   : > { %2175 = vmatprep.subr.bf16.mxu1 %v3045_v23 }
 0x106   : > { %2133 = vmatpush2.bf16.msra.mxu0 %v3040_v29 }
 0x107   : > { %2176 = vmatpush2.bf16.msra.mxu1 %v3043_v30  ;;  %2134 = vmatprep.subr.bf16.mxu0 %v3048_v34 }
 0x108   : > { %2177 = vmatprep.subr.bf16.mxu1 %v3051_v35 }
 0x10a   : > { %2135 = vmatpush2.bf16.msra.mxu0 %v3046_v24 }
 0x10b   : > { %2178 = vmatpush2.bf16.msra.mxu1 %v3049_v25 }
 0x10d   : > { %2137 = vmatmul.mubr.bf16.vlgmr.msra.gmra.mxu0 %v2380_v26  ;;  %v1880_v36 = vpop.f32.mrf.mxu0 }
 0x10e   : > { %2180 = vmatmul.mubr.bf16.vlgmr.msra.gmra.mxu1 %v2382_v27  ;;  %v1923_v37 = vpop.f32.mrf.mxu1  ;;  %v1881_v55 = vadd.f32 %v1880_v36, %v479_v51 }
 0x10f   : > { %v1882_v38 = vpop.f32.mrf.mxu0 }
 0x110   : > { %v1925_v39 = vpop.f32.mrf.mxu1  ;;  %v1883_v58 = vadd.f32 %v1882_v38, %v483_v52  ;;  %v1924_v60 = vadd.f32 %v1923_v37, %v1881_v55 }
 0x111   : > { %v1884_v40 = vpop.f32.mrf.mxu0 }
 0x112   : > { %v1927_v41 = vpop.f32.mrf.mxu1  ;;  %v1885_v59 = vadd.f32 %v1884_v40, %v479_v51  ;;  %v1926_v0 = vadd.f32 %v1925_v39, %v1883_v58 }
 0x113   : > { %v1886_v43 = vpop.f32.mrf.mxu0 }
 0x114   : > { %v1929_v44 = vpop.f32.mrf.mxu1  ;;  %v1887_v61 = vadd.f32 %v1886_v43, %v483_v52  ;;  %v1928_v1 = vadd.f32 %v1927_v41, %v1885_v59 }
 0x116   : > { %v1930_v3 = vadd.f32 %v1929_v44, %v1887_v61 }
 0x14d   : > { %v1966_v45 = vpop.f32.mrf.mxu0 }
 0x14e   : > { %v2009_v46 = vpop.f32.mrf.mxu1  ;;  %v1967_v2 = vadd.f32 %v1966_v45, %v1924_v60 }
 0x14f   : > { %v1968_v28 = vpop.f32.mrf.mxu0 }
 0x150   : > { %v2011_v31 = vpop.f32.mrf.mxu1  ;;  %v1969_v4 = vadd.f32 %v1968_v28, %v1926_v0  ;;  %v2010_v8 = vadd.f32 %v2009_v46, %v1967_v2 }
 0x151   : > { %v1970_v49 = vpop.f32.mrf.mxu0 }
 0x152   : > { %v2013_v50 = vpop.f32.mrf.mxu1  ;;  %v1971_v5 = vadd.f32 %v1970_v49, %v1928_v1  ;;  %v2012_v10 = vadd.f32 %v2011_v31, %v1969_v4 }
 0x153   : > { %v1972_v53 = vpop.f32.mrf.mxu0 }
 0x154   : > { %v2015_v54 = vpop.f32.mrf.mxu1  ;;  %v1973_v9 = vadd.f32 %v1972_v53, %v1930_v3  ;;  %v2014_v11 = vadd.f32 %v2013_v50, %v1971_v5 }
 0x156   : > { %v2016_v15 = vadd.f32 %v2015_v54, %v1973_v9 }
 0x18d   : > { %v2052_v56 = vpop.f32.mrf.mxu0 }
 0x18e   : > { %v2095_v57 = vpop.f32.mrf.mxu1  ;;  %v2053_v12 = vadd.f32 %v2052_v56, %v2010_v8 }
 0x18f   : > { %v2054_v62 = vpop.f32.mrf.mxu0 }
 0x190   : > { %v2097_v63 = vpop.f32.mrf.mxu1  ;;  %v2055_v16 = vadd.f32 %v2054_v62, %v2012_v10  ;;  %v2096_v20 = vadd.f32 %v2095_v57, %v2053_v12 }
 0x191   : > { %v2056_v6 = vpop.f32.mrf.mxu0 }
 0x192   : > { %v2099_v7 = vpop.f32.mrf.mxu1  ;;  %v2057_v17 = vadd.f32 %v2056_v6, %v2014_v11  ;;  %v2098_v29 = vadd.f32 %v2097_v63, %v2055_v16 }
 0x193   : > { %v2058_v13 = vpop.f32.mrf.mxu0 }
 0x194   : > { %v2101_v14 = vpop.f32.mrf.mxu1  ;;  %v2059_v21 = vadd.f32 %v2058_v13, %v2016_v15  ;;  %v2100_v30 = vadd.f32 %v2099_v7, %v2057_v17 }
 0x196   : > { %v2102_v25 = vadd.f32 %v2101_v14, %v2059_v21 }
 0x1cd   : > { %v2138_v18 = vpop.f32.mrf.mxu0 }
 0x1ce   : > { %v2181_v19 = vpop.f32.mrf.mxu1  ;;  %v2139_v34 = vadd.f32 %v2138_v18, %v2096_v20 }
 0x1cf   : > { %v2140_v22 = vpop.f32.mrf.mxu0 }
 0x1d0   : > { %v2183_v23 = vpop.f32.mrf.mxu1  ;;  %v2141_v26 = vadd.f32 %v2140_v22, %v2098_v29  ;;  %v2182_v37 = vadd.f32 %v2181_v19, %v2139_v34 }
 0x1d1   : > { %v2142_v35 = vpop.f32.mrf.mxu0 }
 0x1d2   : > { %v2185_v24 = vpop.f32.mrf.mxu1  ;;  %v2143_v27 = vadd.f32 %v2142_v35, %v2100_v30  ;;  %v2184_v41 = vadd.f32 %v2183_v23, %v2141_v26 }
 0x1d3   : > { %v2144_v36 = vpop.f32.mrf.mxu0 }
 0x1d4   : > { %v2186_v38 = vadd.f32 %v2185_v24, %v2143_v27  ;;  %v2145_v39 = vadd.f32 %v2144_v36, %v2102_v25  ;;  %v2187_v40 = vpop.f32.mrf.mxu1 }
 0x1d6   : > { %v2217_v42 = vadd.f32 %v2186_v38, %v2182_v37  ;;  %v2188_v43 = vadd.f32 %v2187_v40, %v2145_v39 }
 0x1d8   : > { %v2218_v44 = vrot.slane %v2217_v42, 4  ;;  %v2224_v45 = vadd.f32 %v2188_v43, %v2184_v41 }
 0x1da   : > { %v2219_v46 = vadd.f32 %v2218_v44, %v2217_v42  ;;  %v2225_v47 = vrot.slane %v2224_v45, 4 }
 0x1dc   : > { %v2220_v28 = vrot.slane %v2219_v46, 2  ;;  %v2226_v31 = vadd.f32 %v2225_v47, %v2224_v45 }
 0x1de   : > { %v2221_v48 = vadd.f32 %v2220_v28, %v2219_v46  ;;  %v2227_v32 = vrot.slane %v2226_v31, 2 }
 0x1e0   : > { %v2222_v33 = vrot.slane %v2221_v48, 1  ;;  %v2228_v49 = vadd.f32 %v2227_v32, %v2226_v31 }
 0x1e2   : > { %v2223_v50 = vadd.f32 %v2222_v33, %v2221_v48  ;;  %v2229_v51 = vrot.slane %v2228_v49, 1 }
 0x1e4   : > { %v2231_v52 = vmul.f32 0.0625, %v2223_v50  ;;  %v2230_v53 = vadd.f32 %v2229_v51, %v2228_v49 }
 0x1e6   : > { %v2233_v54 = vsub.f32 %v2182_v37, %v2231_v52  ;;  %v2235_v55 = vsub.f32 %v2186_v38, %v2231_v52  ;;  %v2232_v56 = vmul.f32 0.0625, %v2230_v53 }
 0x1e8   : > { %v2241_v57 = vmul.f32 %v2233_v54, %v2233_v54  ;;  %v2243_v58 = vmul.f32 %v2235_v55, %v2235_v55  ;;  %v2234_v59 = vsub.f32 %v2184_v41, %v2232_v56  ;;  %v2236_v60 = vsub.f32 %v2188_v43, %v2232_v56 }
 0x1ea   : > { %v2245_v61 = vadd.f32 %v2243_v58, %v2241_v57  ;;  %v2242_v62 = vmul.f32 %v2234_v59, %v2234_v59  ;;  %v2244_v63 = vmul.f32 %v2236_v60, %v2236_v60 }
 0x1ec   : > { %v2246_v0 = vrot.slane %v2245_v61, 4  ;;  %v2252_v1 = vadd.f32 %v2244_v63, %v2242_v62 }
 0x1ee   : > { %v2247_v2 = vadd.f32 %v2246_v0, %v2245_v61  ;;  %v2253_v3 = vrot.slane %v2252_v1, 4 }
 0x1f0   : > { %v2248_v4 = vrot.slane %v2247_v2, 2  ;;  %v2254_v5 = vadd.f32 %v2253_v3, %v2252_v1 }
 0x1f2   : > { %v2249_v6 = vadd.f32 %v2248_v4, %v2247_v2  ;;  %v2255_v7 = vrot.slane %v2254_v5, 2 }
 0x1f4   : > { %v2250_v8 = vrot.slane %v2249_v6, 1  ;;  %v2256_v9 = vadd.f32 %v2255_v7, %v2254_v5 }
 0x1f6   : > { %v2251_v10 = vadd.f32 %v2250_v8, %v2249_v6  ;;  %v2257_v11 = vrot.slane %v2256_v9, 1 }
 0x1f8   : > { %v2259_v12 = vmul.f32 0.0625, %v2251_v10  ;;  %v2258_v13 = vadd.f32 %v2257_v11, %v2256_v9 }
 0x1fa   : > { %v2261_v14 = vadd.f32 1e-05, %v2259_v12  ;;  %v2260_v15 = vmul.f32 0.0625, %v2258_v13 }
 0x1fc   : > { %3052 = vrsqrt.f32 %v2261_v14  ;;  %v2262_v16 = vadd.f32 1e-05, %v2260_v15 }
 0x1fe   : > { %3054 = vrsqrt.f32 %v2262_v16 }
 0x209   : > { %v3053_v17 = vpop.eup %3052 }
 0x20a   : > { %v2265_v18 = vmul.f32 %v3053_v17, %v2233_v54  ;;  %v2267_v19 = vmul.f32 %v3053_v17, %v2235_v55 }
 0x20b   : > { %v3055_v20 = vpop.eup %3054 }
 0x20c   : > { %vm2269_vm0 = vcmp.ge.f32.partialorder %v2265_v18, 0.0  ;;  %vm2271_vm1 = vcmp.ge.f32.partialorder %v2267_v19, 0.0  ;;  %v2273_v21 = vmul.f32 0.2, %v2265_v18  ;;  %v2275_v22 = vmul.f32 0.2, %v2267_v19 }
 0x20d   : > { %v2266_v23 = vmul.f32 %v3055_v20, %v2234_v59  ;;  %v2268_v29 = vmul.f32 %v3055_v20, %v2236_v60 }
 0x20e   : > { %v2277_v30 = vsel %vm2269_vm0, %v2265_v18, %v2273_v21  ;;  %v2279_v34 = vsel %vm2271_vm1, %v2267_v19, %v2275_v22 }
 0x20f   : > { %2281 = vst [vmem:[%s201_s21] sm:$0xff] %v2277_v30  ;;  %2283 = vst [vmem:[%s201_s21 + $0x10] sm:$0xff] %v2279_v34  ;;  %vm2270_vm2 = vcmp.ge.f32.partialorder %v2266_v23, 0.0  ;;  %vm2272_vm3 = vcmp.ge.f32.partialorder %v2268_v29, 0.0  ;;  %v2274_v35 = vmul.f32 0.2, %v2266_v23 }
 0x210   : > { %v2276_v24 = vmul.f32 0.2, %v2268_v29 }
 0x211   : > { %v2278_v25 = vsel %vm2270_vm2, %v2266_v23, %v2274_v35 }
 0x212   : > { %v2280_v26 = vsel %vm2272_vm3, %v2268_v29, %v2276_v24  ;;  %2282 = vst [vmem:[%s201_s21 + $0x8] sm:$0xff] %v2278_v25 }
 0x213   : > { %2284 = vst [vmem:[%s201_s21 + $0x18] sm:$0xff] %v2280_v26 }
 0x214 PF: > { %s13_s14 = sadd.s32 1, %s3078_s14   ;;  %s3982_s12 = smov %s3074_s13 }
 0x215   : > { %p10_p5 = scmp.ge.s32.totalorder %s13_s14, 4   ;;  %s3983_s13 = smov %s3985_s15 }
 0x217   :  { %12 = sbr.rel (!%p10_p5) target bundleno = 2 (0x2), region = 67 }

// kernel: discriminator_forward.8
= control target key start
LH: loop header
LB: loop body
LE: loop exit
PB: predicated region body
PF: predicated region fallthrough
CT: control target
= control target key end

     0   :  { %s10867_s12 = smov 0   ;;  %s10869_s13 = smov 0   ;;  %s14453_s0 = inlined_call_operand.vmem [shape: bf16[2,16,4096], index: 0, kind: input, shape index: {}]   ;;  %s14454_s1 = inlined_call_operand.vmem [shape: bf16[4096,512], index: 1, kind: input, shape index: {}]   ;;  %s14455_s2 = inlined_call_operand.vmem [shape: f32[1,512], index: 2, kind: input, shape index: {}]   ;;  %s14456_s3 = inlined_call_operand.vmem [shape: f32[2,16,512], index: 3, kind: output, shape index: {}]  }
   0x1   :  { %s10871_s14 = smov 0  }
   0x2 LB: > { %s25_s15 = sadd.s32 1, %s10841_s13  ;;  %p8189_p0 = scmp.ge.s32.totalorder %s10845_s14, 1  ;;  %s10845_s14 = sphi %s10871_s14, %s13_s14   ;;  %s10841_s13 = sphi %s10869_s13, %s14485_s13   ;;  %s10837_s12 = sphi %s10867_s12, %s14484_s12  }
   0x3   : > { %p27_p1 = scmp.ge.s32.totalorder %s25_s15, 2  ;;  %p157_p2 = scmp.lt.s32.totalorder %s10845_s14, 3 }
   0x5   : > { %s14487_s15 = smov (%p27_p1, %s25_s15), 0  ;;  %p158_p3 = pnand %p8189_p0, %p157_p2 }
   0x7   : > { %161 = sbr.rel (%p158_p3) target bundleno = 1302 (0x516), region = 32 }
   0xc   : > { %v9278_v0 = vld [vmem:[%s14454_s1 + $0xe4] ss:$16 sps:$4 sm:$0xff]   ;;  %v9282_v2 = vld [vmem:[%s14454_s1 + $0xe0] ss:$16 sps:$4 sm:$0xff]   ;;  %p187_p4 = scmp.lt.s32.totalorder %s10837_s12, 1 }
   0xd   : > { %v9280_v1 = vld [vmem:[%s14454_s1 + $0x2e4] ss:$16 sps:$4 sm:$0xff]   ;;  %6560 = vmatprep.subr.bf16.mxu0 %v9278_v0  ;;  %v9283_v3 = vld [vmem:[%s14454_s1 + $0x2e0] ss:$16 sps:$4 sm:$0xff]  }
   0xe   : > { %6603 = vmatprep.subr.bf16.mxu1 %v9280_v1  ;;  %v9284_v4 = vld [vmem:[%s14454_s1 + $0xc4] ss:$16 sps:$4 sm:$0xff]   ;;  %6561 = vmatpush1.bf16.msra.mxu0 %v9282_v2  ;;  %v9288_v6 = vld [vmem:[%s14454_s1 + $0xc0] ss:$16 sps:$4 sm:$0xff]   ;;  %s14489_s12 = smov (!%p187_p4, %s10837_s12), 1 }
   0xf   : > { %6604 = vmatpush1.bf16.msra.mxu1 %v9283_v3  ;;  %v9286_v5 = vld [vmem:[%s14454_s1 + $0x2c4] ss:$16 sps:$4 sm:$0xff]   ;;  %6562 = vmatprep.subr.bf16.mxu0 %v9284_v4  ;;  %v9289_v7 = vld [vmem:[%s14454_s1 + $0x2c0] ss:$16 sps:$4 sm:$0xff]   ;;  %s9252_s29 = sshll.u32 %s14489_s12, 8  ;;  %s9253_s16 = sshll.u32 %s14489_s12, 6 }
  0x10   : > { %6605 = vmatprep.subr.bf16.mxu1 %v9286_v5  ;;  %v9290_v8 = vld [vmem:[%s14454_s1 + $0xa4] ss:$16 sps:$4 sm:$0xff]   ;;  %v9294_v10 = vld [vmem:[%s14454_s1 + $0xa0] ss:$16 sps:$4 sm:$0xff]   ;;  %s11027_s11 = scalar_lea.vmem %s14453_s0, %s9252_s29  ;;  %s13659_s25 = scalar_lea.vmem %s14456_s3, %s9253_s16 }
  0x11   : > { %v9292_v9 = vld [vmem:[%s14454_s1 + $0x2a4] ss:$16 sps:$4 sm:$0xff]   ;;  %v9295_v11 = vld [vmem:[%s14454_s1 + $0x2a0] ss:$16 sps:$4 sm:$0xff]   ;;  %v203_v50 = vld [vmem:[%s11027_s11 + $0x8] sm:$0xff] }
  0x12   : > { %6563 = vmatpush1.bf16.msra.mxu0 %v9288_v6  ;;  %v9296_v12 = vld [vmem:[%s14454_s1 + $0x84] ss:$16 sps:$4 sm:$0xff]   ;;  %v9300_v14 = vld [vmem:[%s14454_s1 + $0x80] ss:$16 sps:$4 sm:$0xff]   ;;  %v219_v51 = vld [vmem:[%s11027_s11 + $0x88] sm:$0xff] }
  0x13   : > { %6606 = vmatpush1.bf16.msra.mxu1 %v9289_v7  ;;  %6564 = vmatprep.subr.bf16.mxu0 %v9290_v8  ;;  %v9298_v13 = vld [vmem:[%s14454_s1 + $0x284] ss:$16 sps:$4 sm:$0xff]   ;;  %v9301_v15 = vld [vmem:[%s14454_s1 + $0x280] ss:$16 sps:$4 sm:$0xff]   ;;  %v11053_v55 = vcombine.high %v203_v50, %v219_v51 }
  0x14   : > { %6607 = vmatprep.subr.bf16.mxu1 %v9292_v9  ;;  %v9302_v16 = vld [vmem:[%s14454_s1 + $0x64] ss:$16 sps:$4 sm:$0xff]   ;;  %v9306_v18 = vld [vmem:[%s14454_s1 + $0x60] ss:$16 sps:$4 sm:$0xff]   ;;  %v11107_v9 = vcombine.low %v203_v50, %v219_v51 }
  0x15   : > { %v9304_v17 = vld [vmem:[%s14454_s1 + $0x264] ss:$16 sps:$4 sm:$0xff]   ;;  %v9307_v19 = vld [vmem:[%s14454_s1 + $0x260] ss:$16 sps:$4 sm:$0xff]   ;;  %6635 = vmatprep.mubr.bf16.mxu1 %v11053_v55 }
  0x16   : > { %6565 = vmatpush1.bf16.msra.mxu0 %v9294_v10  ;;  %v9308_v20 = vld [vmem:[%s14454_s1 + $0x44] ss:$16 sps:$4 sm:$0xff]   ;;  %v9312_v22 = vld [vmem:[%s14454_s1 + $0x40] ss:$16 sps:$4 sm:$0xff]  }
  0x17   : > { %6608 = vmatpush1.bf16.msra.mxu1 %v9295_v11  ;;  %6566 = vmatprep.subr.bf16.mxu0 %v9296_v12  ;;  %v9310_v21 = vld [vmem:[%s14454_s1 + $0x244] ss:$16 sps:$4 sm:$0xff]   ;;  %v9313_v23 = vld [vmem:[%s14454_s1 + $0x240] ss:$16 sps:$4 sm:$0xff]  }
  0x18   : > { %6609 = vmatprep.subr.bf16.mxu1 %v9298_v13  ;;  %v9314_v24 = vld [vmem:[%s14454_s1 + $0x24] ss:$16 sps:$4 sm:$0xff]   ;;  %v9318_v26 = vld [vmem:[%s14454_s1 + $0x20] ss:$16 sps:$4 sm:$0xff]  }
  0x19   : > { %v9316_v25 = vld [vmem:[%s14454_s1 + $0x224] ss:$16 sps:$4 sm:$0xff]   ;;  %v9319_v27 = vld [vmem:[%s14454_s1 + $0x220] ss:$16 sps:$4 sm:$0xff]  }
  0x1a   : > { %6567 = vmatpush1.bf16.msra.mxu0 %v9300_v14  ;;  %v9320_v28 = vld [vmem:[%s14454_s1 + $0x4] ss:$16 sps:$4 sm:$0xff]   ;;  %v9324_v30 = vld [vmem:[%s14454_s1] ss:$16 sps:$4 sm:$0xff]  }
  0x1b   : > { %6610 = vmatpush1.bf16.msra.mxu1 %v9301_v15  ;;  %6568 = vmatprep.subr.bf16.mxu0 %v9302_v16  ;;  %v9322_v29 = vld [vmem:[%s14454_s1 + $0x204] ss:$16 sps:$4 sm:$0xff]   ;;  %v9325_v31 = vld [vmem:[%s14454_s1 + $0x200] ss:$16 sps:$4 sm:$0xff]  }
  0x1c   : > { %6611 = vmatprep.subr.bf16.mxu1 %v9304_v17  ;;  %v9326_v32 = vld [vmem:[%s14454_s1 + $0x1e4] ss:$16 sps:$4 sm:$0xff]   ;;  %v9330_v34 = vld [vmem:[%s14454_s1 + $0x1e0] ss:$16 sps:$4 sm:$0xff]  }
  0x1d   : > { %v9328_v33 = vld [vmem:[%s14454_s1 + $0x3e4] ss:$16 sps:$4 sm:$0xff]   ;;  %v9331_v35 = vld [vmem:[%s14454_s1 + $0x3e0] ss:$16 sps:$4 sm:$0xff]  }
  0x1e   : > { %6569 = vmatpush1.bf16.msra.mxu0 %v9306_v18  ;;  %v9332_v36 = vld [vmem:[%s14454_s1 + $0x1c4] ss:$16 sps:$4 sm:$0xff]   ;;  %v9336_v38 = vld [vmem:[%s14454_s1 + $0x1c0] ss:$16 sps:$4 sm:$0xff]  }
  0x1f   : > { %6612 = vmatpush1.bf16.msra.mxu1 %v9307_v19  ;;  %6570 = vmatprep.subr.bf16.mxu0 %v9308_v20  ;;  %v9334_v37 = vld [vmem:[%s14454_s1 + $0x3c4] ss:$16 sps:$4 sm:$0xff]   ;;  %v9337_v39 = vld [vmem:[%s14454_s1 + $0x3c0] ss:$16 sps:$4 sm:$0xff]  }
  0x20   : > { %6613 = vmatprep.subr.bf16.mxu1 %v9310_v21  ;;  %v9338_v40 = vld [vmem:[%s14454_s1 + $0x1a4] ss:$16 sps:$4 sm:$0xff]   ;;  %v9342_v42 = vld [vmem:[%s14454_s1 + $0x1a0] ss:$16 sps:$4 sm:$0xff]  }
  0x21   : > { %v9340_v41 = vld [vmem:[%s14454_s1 + $0x3a4] ss:$16 sps:$4 sm:$0xff]   ;;  %v9343_v43 = vld [vmem:[%s14454_s1 + $0x3a0] ss:$16 sps:$4 sm:$0xff]  }
  0x22   : > { %6571 = vmatpush1.bf16.msra.mxu0 %v9312_v22  ;;  %v9344_v44 = vld [vmem:[%s14454_s1 + $0x184] ss:$16 sps:$4 sm:$0xff]   ;;  %v9348_v46 = vld [vmem:[%s14454_s1 + $0x180] ss:$16 sps:$4 sm:$0xff]  }
  0x23   : > { %6614 = vmatpush1.bf16.msra.mxu1 %v9313_v23  ;;  %6572 = vmatprep.subr.bf16.mxu0 %v9314_v24  ;;  %v9346_v45 = vld [vmem:[%s14454_s1 + $0x384] ss:$16 sps:$4 sm:$0xff]   ;;  %v9349_v47 = vld [vmem:[%s14454_s1 + $0x380] ss:$16 sps:$4 sm:$0xff]  }
  0x24   : > { %6615 = vmatprep.subr.bf16.mxu1 %v9316_v25  ;;  %v202_v48 = vld [vmem:[%s11027_s11] sm:$0xff] }
  0x25   : > { %v218_v49 = vld [vmem:[%s11027_s11 + $0x80] sm:$0xff] }
  0x26   : > { %6573 = vmatpush1.bf16.msra.mxu0 %v9318_v26  ;;  %v9350_v52 = vld [vmem:[%s14454_s1 + $0x164] ss:$16 sps:$4 sm:$0xff]   ;;  %v11048_v53 = vcombine.high %v202_v48, %v218_v49  ;;  %v9354_v56 = vld [vmem:[%s14454_s1 + $0x160] ss:$16 sps:$4 sm:$0xff]   ;;  %v11105_v8 = vcombine.low %v202_v48, %v218_v49 }
  0x27   : > { %6616 = vmatpush1.bf16.msra.mxu1 %v9319_v27  ;;  %6574 = vmatprep.subr.bf16.mxu0 %v9320_v28  ;;  %v9352_v54 = vld [vmem:[%s14454_s1 + $0x364] ss:$16 sps:$4 sm:$0xff]   ;;  %v9355_v57 = vld [vmem:[%s14454_s1 + $0x360] ss:$16 sps:$4 sm:$0xff]  }
  0x28   : > { %6617 = vmatprep.subr.bf16.mxu1 %v9322_v29  ;;  %6592 = vmatprep.mubr.bf16.mxu0 %v11048_v53  ;;  %v9356_v58 = vld [vmem:[%s14454_s1 + $0x144] ss:$16 sps:$4 sm:$0xff]   ;;  %v9360_v60 = vld [vmem:[%s14454_s1 + $0x140] ss:$16 sps:$4 sm:$0xff]  }
  0x29   : > { %v9358_v59 = vld [vmem:[%s14454_s1 + $0x344] ss:$16 sps:$4 sm:$0xff]   ;;  %v9361_v61 = vld [vmem:[%s14454_s1 + $0x340] ss:$16 sps:$4 sm:$0xff]  }
  0x2a   : > { %6575 = vmatpush1.bf16.msra.mxu0 %v9324_v30  ;;  %v9362_v62 = vld [vmem:[%s14454_s1 + $0x124] ss:$16 sps:$4 sm:$0xff]   ;;  %v9366_v0 = vld [vmem:[%s14454_s1 + $0x120] ss:$16 sps:$4 sm:$0xff]  }
  0x2b   : > { %6618 = vmatpush1.bf16.msra.mxu1 %v9325_v31  ;;  %6576 = vmatprep.subr.bf16.mxu0 %v9326_v32  ;;  %v9364_v63 = vld [vmem:[%s14454_s1 + $0x324] ss:$16 sps:$4 sm:$0xff]   ;;  %v9367_v1 = vld [vmem:[%s14454_s1 + $0x320] ss:$16 sps:$4 sm:$0xff]  }
  0x2c   : > { %6619 = vmatprep.subr.bf16.mxu1 %v9328_v33  ;;  %v9368_v2 = vld [vmem:[%s14454_s1 + $0x104] ss:$16 sps:$4 sm:$0xff]   ;;  %v9372_v4 = vld [vmem:[%s14454_s1 + $0x100] ss:$16 sps:$4 sm:$0xff]  }
  0x2d   : > { %v9370_v3 = vld [vmem:[%s14454_s1 + $0x304] ss:$16 sps:$4 sm:$0xff]   ;;  %v9373_v5 = vld [vmem:[%s14454_s1 + $0x300] ss:$16 sps:$4 sm:$0xff]  }
  0x2e   : > { %6577 = vmatpush2.bf16.msra.mxu0 %v9330_v34  ;;  %v9376_v6 = vld [vmem:[%s14454_s1 + $0x4e4] ss:$16 sps:$4 sm:$0xff]   ;;  %v9374_v10 = vld [vmem:[%s14454_s1 + $0x4e0] ss:$16 sps:$4 sm:$0xff]  }
  0x2f   : > { %6620 = vmatpush2.bf16.msra.mxu1 %v9331_v35  ;;  %6578 = vmatprep.subr.bf16.mxu0 %v9332_v36  ;;  %v9379_v7 = vld [vmem:[%s14454_s1 + $0x6e4] ss:$16 sps:$4 sm:$0xff]   ;;  %v9377_v11 = vld [vmem:[%s14454_s1 + $0x6e0] ss:$16 sps:$4 sm:$0xff]  }
  0x30   : > { %6621 = vmatprep.subr.bf16.mxu1 %v9334_v37  ;;  %v9382_v12 = vld [vmem:[%s14454_s1 + $0x4c4] ss:$16 sps:$4 sm:$0xff]   ;;  %v9380_v14 = vld [vmem:[%s14454_s1 + $0x4c0] ss:$16 sps:$4 sm:$0xff]  }
  0x31   : > { %v9385_v13 = vld [vmem:[%s14454_s1 + $0x6c4] ss:$16 sps:$4 sm:$0xff]   ;;  %v9383_v15 = vld [vmem:[%s14454_s1 + $0x6c0] ss:$16 sps:$4 sm:$0xff]  }
  0x32   : > { %6579 = vmatpush2.bf16.msra.mxu0 %v9336_v38  ;;  %v9388_v16 = vld [vmem:[%s14454_s1 + $0x4a4] ss:$16 sps:$4 sm:$0xff]   ;;  %v9386_v18 = vld [vmem:[%s14454_s1 + $0x4a0] ss:$16 sps:$4 sm:$0xff]   ;;  %v11196_v38 = vld [vmem:[%s11027_s11 + $0x18] sm:$0xff] }
  0x33   : > { %6622 = vmatpush2.bf16.msra.mxu1 %v9337_v39  ;;  %6580 = vmatprep.subr.bf16.mxu0 %v9338_v40  ;;  %v9391_v17 = vld [vmem:[%s14454_s1 + $0x6a4] ss:$16 sps:$4 sm:$0xff]   ;;  %v9389_v19 = vld [vmem:[%s14454_s1 + $0x6a0] ss:$16 sps:$4 sm:$0xff]   ;;  %v11199_v39 = vld [vmem:[%s11027_s11 + $0x98] sm:$0xff] }
  0x34   : > { %6623 = vmatprep.subr.bf16.mxu1 %v9340_v41  ;;  %v9394_v20 = vld [vmem:[%s14454_s1 + $0x484] ss:$16 sps:$4 sm:$0xff]   ;;  %v9392_v22 = vld [vmem:[%s14454_s1 + $0x480] ss:$16 sps:$4 sm:$0xff]  }
  0x35   : > { %v9397_v21 = vld [vmem:[%s14454_s1 + $0x684] ss:$16 sps:$4 sm:$0xff]   ;;  %v9395_v23 = vld [vmem:[%s14454_s1 + $0x680] ss:$16 sps:$4 sm:$0xff]  }
  0x36   : > { %6581 = vmatpush2.bf16.msra.mxu0 %v9342_v42  ;;  %v9400_v24 = vld [vmem:[%s14454_s1 + $0x464] ss:$16 sps:$4 sm:$0xff]   ;;  %v9398_v26 = vld [vmem:[%s14454_s1 + $0x460] ss:$16 sps:$4 sm:$0xff]  }
  0x37   : > { %6624 = vmatpush2.bf16.msra.mxu1 %v9343_v43  ;;  %6582 = vmatprep.subr.bf16.mxu0 %v9344_v44  ;;  %v9403_v25 = vld [vmem:[%s14454_s1 + $0x664] ss:$16 sps:$4 sm:$0xff]   ;;  %v9401_v27 = vld [vmem:[%s14454_s1 + $0x660] ss:$16 sps:$4 sm:$0xff]   ;;  %v11213_v43 = vcombine.high %v11196_v38, %v11199_v39 }
  0x38   : > { %6625 = vmatprep.subr.bf16.mxu1 %v9346_v45  ;;  %v9406_v28 = vld [vmem:[%s14454_s1 + $0x444] ss:$16 sps:$4 sm:$0xff]   ;;  %v9404_v30 = vld [vmem:[%s14454_s1 + $0x440] ss:$16 sps:$4 sm:$0xff]  }
  0x39   : > { %v9409_v29 = vld [vmem:[%s14454_s1 + $0x644] ss:$16 sps:$4 sm:$0xff]   ;;  %v9407_v31 = vld [vmem:[%s14454_s1 + $0x640] ss:$16 sps:$4 sm:$0xff]  }
  0x3a   : > { %6583 = vmatpush2.bf16.msra.mxu0 %v9348_v46  ;;  %v9412_v32 = vld [vmem:[%s14454_s1 + $0x424] ss:$16 sps:$4 sm:$0xff]   ;;  %v9410_v34 = vld [vmem:[%s14454_s1 + $0x420] ss:$16 sps:$4 sm:$0xff]  }
  0x3b   : > { %6626 = vmatpush2.bf16.msra.mxu1 %v9349_v47  ;;  %6584 = vmatprep.subr.bf16.mxu0 %v9350_v52  ;;  %v9415_v33 = vld [vmem:[%s14454_s1 + $0x624] ss:$16 sps:$4 sm:$0xff]   ;;  %v9413_v35 = vld [vmem:[%s14454_s1 + $0x620] ss:$16 sps:$4 sm:$0xff]  }
  0x3c   : > { %6627 = vmatprep.subr.bf16.mxu1 %v9352_v54  ;;  %v11190_v36 = vld [vmem:[%s11027_s11 + $0x10] sm:$0xff] }
  0x3d   : > { %v11193_v37 = vld [vmem:[%s11027_s11 + $0x90] sm:$0xff] }
  0x3e   : > { %6585 = vmatpush2.bf16.msra.mxu0 %v9354_v56  ;;  %v9418_v40 = vld [vmem:[%s14454_s1 + $0x404] ss:$16 sps:$4 sm:$0xff]   ;;  %v11206_v41 = vcombine.high %v11190_v36, %v11193_v37  ;;  %v9416_v44 = vld [vmem:[%s14454_s1 + $0x400] ss:$16 sps:$4 sm:$0xff]  }
  0x3f   : > { %6628 = vmatpush2.bf16.msra.mxu1 %v9355_v57  ;;  %6586 = vmatprep.subr.bf16.mxu0 %v9356_v58  ;;  %v9421_v42 = vld [vmem:[%s14454_s1 + $0x604] ss:$16 sps:$4 sm:$0xff]   ;;  %v9419_v45 = vld [vmem:[%s14454_s1 + $0x600] ss:$16 sps:$4 sm:$0xff]  }
  0x40   : > { %6629 = vmatprep.subr.bf16.mxu1 %v9358_v59  ;;  %v9424_v46 = vld [vmem:[%s14454_s1 + $0x5e4] ss:$16 sps:$4 sm:$0xff]   ;;  %v9422_v48 = vld [vmem:[%s14454_s1 + $0x5e0] ss:$16 sps:$4 sm:$0xff]  }
  0x41   : > { %v9427_v47 = vld [vmem:[%s14454_s1 + $0x7e4] ss:$16 sps:$4 sm:$0xff]   ;;  %v9425_v49 = vld [vmem:[%s14454_s1 + $0x7e0] ss:$16 sps:$4 sm:$0xff]  }
  0x42   : > { %6587 = vmatpush2.bf16.msra.mxu0 %v9360_v60  ;;  %v9430_v50 = vld [vmem:[%s14454_s1 + $0x5c4] ss:$16 sps:$4 sm:$0xff]   ;;  %v9428_v52 = vld [vmem:[%s14454_s1 + $0x5c0] ss:$16 sps:$4 sm:$0xff]  }
  0x43   : > { %6630 = vmatpush2.bf16.msra.mxu1 %v9361_v61  ;;  %6588 = vmatprep.subr.bf16.mxu0 %v9362_v62  ;;  %v9433_v51 = vld [vmem:[%s14454_s1 + $0x7c4] ss:$16 sps:$4 sm:$0xff]   ;;  %v9431_v54 = vld [vmem:[%s14454_s1 + $0x7c0] ss:$16 sps:$4 sm:$0xff]  }
  0x44   : > { %6631 = vmatprep.subr.bf16.mxu1 %v9364_v63  ;;  %v9436_v56 = vld [vmem:[%s14454_s1 + $0x5a4] ss:$16 sps:$4 sm:$0xff]   ;;  %v9434_v58 = vld [vmem:[%s14454_s1 + $0x5a0] ss:$16 sps:$4 sm:$0xff]  }
  0x45   : > { %v9439_v57 = vld [vmem:[%s14454_s1 + $0x7a4] ss:$16 sps:$4 sm:$0xff]   ;;  %v9437_v59 = vld [vmem:[%s14454_s1 + $0x7a0] ss:$16 sps:$4 sm:$0xff]  }
  0x46   : > { %6589 = vmatpush2.bf16.msra.mxu0 %v9366_v0  ;;  %v9442_v60 = vld [vmem:[%s14454_s1 + $0x584] ss:$16 sps:$4 sm:$0xff]   ;;  %v9440_v62 = vld [vmem:[%s14454_s1 + $0x580] ss:$16 sps:$4 sm:$0xff]  }
  0x47   : > { %6632 = vmatpush2.bf16.msra.mxu1 %v9367_v1  ;;  %6590 = vmatprep.subr.bf16.mxu0 %v9368_v2  ;;  %v9445_v61 = vld [vmem:[%s14454_s1 + $0x784] ss:$16 sps:$4 sm:$0xff]   ;;  %v9443_v63 = vld [vmem:[%s14454_s1 + $0x780] ss:$16 sps:$4 sm:$0xff]  }
  0x48   : > { %6633 = vmatprep.subr.bf16.mxu1 %v9370_v3  ;;  %v9448_v0 = vld [vmem:[%s14454_s1 + $0x564] ss:$16 sps:$4 sm:$0xff]   ;;  %v9446_v2 = vld [vmem:[%s14454_s1 + $0x560] ss:$16 sps:$4 sm:$0xff]  }
  0x49   : > { %v9451_v1 = vld [vmem:[%s14454_s1 + $0x764] ss:$16 sps:$4 sm:$0xff]   ;;  %v9449_v3 = vld [vmem:[%s14454_s1 + $0x760] ss:$16 sps:$4 sm:$0xff]  }
  0x4a   : > { %6591 = vmatpush2.bf16.msra.mxu0 %v9372_v4  ;;  %v9454_v4 = vld [vmem:[%s14454_s1 + $0x544] ss:$16 sps:$4 sm:$0xff]  }
  0x4b   : > { %6634 = vmatpush2.bf16.msra.mxu1 %v9373_v5  ;;  %6646 = vmatprep.subr.bf16.mxu0 %v9376_v6  ;;  %v9457_v5 = vld [vmem:[%s14454_s1 + $0x744] ss:$16 sps:$4 sm:$0xff]   ;;  %v9452_v6 = vld [vmem:[%s14454_s1 + $0x540] ss:$16 sps:$4 sm:$0xff]  }
  0x4c   : > { %6689 = vmatprep.subr.bf16.mxu1 %v9379_v7  ;;  %v9455_v7 = vld [vmem:[%s14454_s1 + $0x740] ss:$16 sps:$4 sm:$0xff]  }
  0x4d   : > { %6593 = vmatmul.mubr.bf16.vlgmr.msra.gmra.mxu0 %v11105_v8 }
  0x4e   : > { %6636 = vmatmul.mubr.bf16.vlgmr.msra.gmra.mxu1 %v11107_v9  ;;  %6647 = vmatpush1.bf16.msra.mxu0 %v9374_v10  ;;  %v9460_v10 = vld [vmem:[%s14454_s1 + $0x524] ss:$16 sps:$4 sm:$0xff]  }
  0x4f   : > { %6690 = vmatpush1.bf16.msra.mxu1 %v9377_v11  ;;  %6648 = vmatprep.subr.bf16.mxu0 %v9382_v12  ;;  %v9463_v11 = vld [vmem:[%s14454_s1 + $0x724] ss:$16 sps:$4 sm:$0xff]   ;;  %v9458_v12 = vld [vmem:[%s14454_s1 + $0x520] ss:$16 sps:$4 sm:$0xff]  }
  0x50   : > { %6691 = vmatprep.subr.bf16.mxu1 %v9385_v13  ;;  %6678 = vmatprep.mubr.bf16.mxu0 %v11206_v41  ;;  %v9461_v13 = vld [vmem:[%s14454_s1 + $0x720] ss:$16 sps:$4 sm:$0xff]  }
  0x51   : > { %6721 = vmatprep.mubr.bf16.mxu1 %v11213_v43 }
  0x52   : > { %6649 = vmatpush1.bf16.msra.mxu0 %v9380_v14  ;;  %v9466_v14 = vld [vmem:[%s14454_s1 + $0x504] ss:$16 sps:$4 sm:$0xff]  }
  0x53   : > { %6692 = vmatpush1.bf16.msra.mxu1 %v9383_v15  ;;  %6650 = vmatprep.subr.bf16.mxu0 %v9388_v16  ;;  %v9469_v15 = vld [vmem:[%s14454_s1 + $0x704] ss:$16 sps:$4 sm:$0xff]   ;;  %v9464_v16 = vld [vmem:[%s14454_s1 + $0x500] ss:$16 sps:$4 sm:$0xff]  }
  0x54   : > { %6693 = vmatprep.subr.bf16.mxu1 %v9391_v17  ;;  %v9467_v17 = vld [vmem:[%s14454_s1 + $0x700] ss:$16 sps:$4 sm:$0xff]  }
  0x56   : > { %6651 = vmatpush1.bf16.msra.mxu0 %v9386_v18  ;;  %v9472_v18 = vld [vmem:[%s14454_s1 + $0x8e4] ss:$16 sps:$4 sm:$0xff]  }
  0x57   : > { %6694 = vmatpush1.bf16.msra.mxu1 %v9389_v19  ;;  %6652 = vmatprep.subr.bf16.mxu0 %v9394_v20  ;;  %v9475_v19 = vld [vmem:[%s14454_s1 + $0xae4] ss:$16 sps:$4 sm:$0xff]   ;;  %v11327_v20 = vcombine.low %v11190_v36, %v11193_v37  ;;  %v9482_v36 = vld [vmem:[%s14454_s1 + $0x8a0] ss:$16 sps:$4 sm:$0xff]  }
  0x58   : > { %6695 = vmatprep.subr.bf16.mxu1 %v9397_v21  ;;  %v11331_v21 = vcombine.low %v11196_v38, %v11199_v39  ;;  %v9485_v37 = vld [vmem:[%s14454_s1 + $0xaa0] ss:$16 sps:$4 sm:$0xff]   ;;  %v9490_v38 = vld [vmem:[%s14454_s1 + $0x884] ss:$16 sps:$4 sm:$0xff]  }
  0x59   : > { %v9493_v39 = vld [vmem:[%s14454_s1 + $0xa84] ss:$16 sps:$4 sm:$0xff]  }
  0x5a   : > { %6653 = vmatpush1.bf16.msra.mxu0 %v9392_v22  ;;  %v9470_v22 = vld [vmem:[%s14454_s1 + $0x8e0] ss:$16 sps:$4 sm:$0xff]  }
  0x5b   : > { %6696 = vmatpush1.bf16.msra.mxu1 %v9395_v23  ;;  %6654 = vmatprep.subr.bf16.mxu0 %v9400_v24  ;;  %v9473_v23 = vld [vmem:[%s14454_s1 + $0xae0] ss:$16 sps:$4 sm:$0xff]   ;;  %v9478_v24 = vld [vmem:[%s14454_s1 + $0x8c4] ss:$16 sps:$4 sm:$0xff]  }
  0x5c   : > { %6697 = vmatprep.subr.bf16.mxu1 %v9403_v25  ;;  %v9481_v25 = vld [vmem:[%s14454_s1 + $0xac4] ss:$16 sps:$4 sm:$0xff]  }
  0x5e   : > { %6655 = vmatpush1.bf16.msra.mxu0 %v9398_v26  ;;  %v9476_v26 = vld [vmem:[%s14454_s1 + $0x8c0] ss:$16 sps:$4 sm:$0xff]  }
  0x5f   : > { %6698 = vmatpush1.bf16.msra.mxu1 %v9401_v27  ;;  %6656 = vmatprep.subr.bf16.mxu0 %v9406_v28  ;;  %v9479_v27 = vld [vmem:[%s14454_s1 + $0xac0] ss:$16 sps:$4 sm:$0xff]  }
  0x60   : > { %6699 = vmatprep.subr.bf16.mxu1 %v9409_v29  ;;  %v11352_v28 = vld [vmem:[%s11027_s11 + $0x20] sm:$0xff] }
  0x61   : > { %v11357_v29 = vld [vmem:[%s11027_s11 + $0xa0] sm:$0xff] }
  0x62   : > { %6657 = vmatpush1.bf16.msra.mxu0 %v9404_v30  ;;  %v11360_v30 = vld [vmem:[%s11027_s11 + $0x28] sm:$0xff] }
  0x63   : > { %6700 = vmatpush1.bf16.msra.mxu1 %v9407_v31  ;;  %6658 = vmatprep.subr.bf16.mxu0 %v9412_v32  ;;  %v11363_v31 = vld [vmem:[%s11027_s11 + $0xa8] sm:$0xff]  ;;  %v9484_v32 = vld [vmem:[%s14454_s1 + $0x8a4] ss:$16 sps:$4 sm:$0xff]  }
  0x64   : > { %6701 = vmatprep.subr.bf16.mxu1 %v9415_v33  ;;  %v11370_v33 = vcombine.high %v11352_v28, %v11357_v29 }
  0x66   : > { %6659 = vmatpush1.bf16.msra.mxu0 %v9410_v34  ;;  %v9487_v34 = vld [vmem:[%s14454_s1 + $0xaa4] ss:$16 sps:$4 sm:$0xff]  }
  0x67   : > { %6702 = vmatpush1.bf16.msra.mxu1 %v9413_v35  ;;  %6660 = vmatprep.subr.bf16.mxu0 %v9418_v40  ;;  %v11377_v35 = vcombine.high %v11360_v30, %v11363_v31  ;;  %v9488_v40 = vld [vmem:[%s14454_s1 + $0x880] ss:$16 sps:$4 sm:$0xff]  }
  0x68   : > { %6703 = vmatprep.subr.bf16.mxu1 %v9421_v42  ;;  %v9491_v42 = vld [vmem:[%s14454_s1 + $0xa80] ss:$16 sps:$4 sm:$0xff]  }
  0x6a   : > { %6661 = vmatpush1.bf16.msra.mxu0 %v9416_v44  ;;  %v9496_v44 = vld [vmem:[%s14454_s1 + $0x864] ss:$16 sps:$4 sm:$0xff]  }
  0x6b   : > { %6704 = vmatpush1.bf16.msra.mxu1 %v9419_v45  ;;  %6662 = vmatprep.subr.bf16.mxu0 %v9424_v46  ;;  %v9499_v45 = vld [vmem:[%s14454_s1 + $0xa64] ss:$16 sps:$4 sm:$0xff]   ;;  %v9494_v46 = vld [vmem:[%s14454_s1 + $0x860] ss:$16 sps:$4 sm:$0xff]  }
  0x6c   : > { %6705 = vmatprep.subr.bf16.mxu1 %v9427_v47  ;;  %v9497_v47 = vld [vmem:[%s14454_s1 + $0xa60] ss:$16 sps:$4 sm:$0xff]  }
  0x6e   : > { %6663 = vmatpush2.bf16.msra.mxu0 %v9422_v48  ;;  %v9502_v48 = vld [vmem:[%s14454_s1 + $0x844] ss:$16 sps:$4 sm:$0xff]  }
  0x6f   : > { %6706 = vmatpush2.bf16.msra.mxu1 %v9425_v49  ;;  %6664 = vmatprep.subr.bf16.mxu0 %v9430_v50  ;;  %v9505_v49 = vld [vmem:[%s14454_s1 + $0xa44] ss:$16 sps:$4 sm:$0xff]   ;;  %v9500_v50 = vld [vmem:[%s14454_s1 + $0x840] ss:$16 sps:$4 sm:$0xff]  }
  0x70   : > { %6707 = vmatprep.subr.bf16.mxu1 %v9433_v51  ;;  %v9503_v51 = vld [vmem:[%s14454_s1 + $0xa40] ss:$16 sps:$4 sm:$0xff]  }
  0x72   : > { %6665 = vmatpush2.bf16.msra.mxu0 %v9428_v52  ;;  %v9508_v52 = vld [vmem:[%s14454_s1 + $0x824] ss:$16 sps:$4 sm:$0xff]  }
  0x73   : > { %6708 = vmatpush2.bf16.msra.mxu1 %v9431_v54  ;;  %6666 = vmatprep.subr.bf16.mxu0 %v9436_v56  ;;  %v9511_v54 = vld [vmem:[%s14454_s1 + $0xa24] ss:$16 sps:$4 sm:$0xff]   ;;  %v9506_v56 = vld [vmem:[%s14454_s1 + $0x820] ss:$16 sps:$4 sm:$0xff]  }
  0x74   : > { %6709 = vmatprep.subr.bf16.mxu1 %v9439_v57  ;;  %v9509_v57 = vld [vmem:[%s14454_s1 + $0xa20] ss:$16 sps:$4 sm:$0xff]  }
  0x76   : > { %6667 = vmatpush2.bf16.msra.mxu0 %v9434_v58  ;;  %v9514_v58 = vld [vmem:[%s14454_s1 + $0x804] ss:$16 sps:$4 sm:$0xff]  }
  0x77   : > { %6710 = vmatpush2.bf16.msra.mxu1 %v9437_v59  ;;  %6668 = vmatprep.subr.bf16.mxu0 %v9442_v60  ;;  %v9517_v59 = vld [vmem:[%s14454_s1 + $0xa04] ss:$16 sps:$4 sm:$0xff]   ;;  %v9512_v60 = vld [vmem:[%s14454_s1 + $0x800] ss:$16 sps:$4 sm:$0xff]  }
  0x78   : > { %6711 = vmatprep.subr.bf16.mxu1 %v9445_v61  ;;  %v9515_v61 = vld [vmem:[%s14454_s1 + $0xa00] ss:$16 sps:$4 sm:$0xff]  }
  0x7a   : > { %6669 = vmatpush2.bf16.msra.mxu0 %v9440_v62  ;;  %v9520_v62 = vld [vmem:[%s14454_s1 + $0x9e4] ss:$16 sps:$4 sm:$0xff]  }
  0x7b   : > { %6712 = vmatpush2.bf16.msra.mxu1 %v9443_v63  ;;  %6670 = vmatprep.subr.bf16.mxu0 %v9448_v0  ;;  %v9523_v63 = vld [vmem:[%s14454_s1 + $0xbe4] ss:$16 sps:$4 sm:$0xff]   ;;  %v9518_v0 = vld [vmem:[%s14454_s1 + $0x9e0] ss:$16 sps:$4 sm:$0xff]  }
  0x7c   : > { %6713 = vmatprep.subr.bf16.mxu1 %v9451_v1  ;;  %v9521_v1 = vld [vmem:[%s14454_s1 + $0xbe0] ss:$16 sps:$4 sm:$0xff]  }
  0x7e   : > { %6671 = vmatpush2.bf16.msra.mxu0 %v9446_v2  ;;  %v9526_v2 = vld [vmem:[%s14454_s1 + $0x9c4] ss:$16 sps:$4 sm:$0xff]  }
  0x7f   : > { %6714 = vmatpush2.bf16.msra.mxu1 %v9449_v3  ;;  %6672 = vmatprep.subr.bf16.mxu0 %v9454_v4  ;;  %v9529_v3 = vld [vmem:[%s14454_s1 + $0xbc4] ss:$16 sps:$4 sm:$0xff]   ;;  %v9524_v4 = vld [vmem:[%s14454_s1 + $0x9c0] ss:$16 sps:$4 sm:$0xff]  }
  0x80   : > { %6715 = vmatprep.subr.bf16.mxu1 %v9457_v5  ;;  %v9527_v5 = vld [vmem:[%s14454_s1 + $0xbc0] ss:$16 sps:$4 sm:$0xff]  }
  0x82   : > { %6673 = vmatpush2.bf16.msra.mxu0 %v9452_v6  ;;  %v9532_v6 = vld [vmem:[%s14454_s1 + $0x9a4] ss:$16 sps:$4 sm:$0xff]  }
  0x83   : > { %6716 = vmatpush2.bf16.msra.mxu1 %v9455_v7  ;;  %6674 = vmatprep.subr.bf16.mxu0 %v9460_v10  ;;  %v9535_v7 = vld [vmem:[%s14454_s1 + $0xba4] ss:$16 sps:$4 sm:$0xff]   ;;  %v9530_v10 = vld [vmem:[%s14454_s1 + $0x9a0] ss:$16 sps:$4 sm:$0xff]  }
  0x84   : > { %6717 = vmatprep.subr.bf16.mxu1 %v9463_v11  ;;  %v9533_v11 = vld [vmem:[%s14454_s1 + $0xba0] ss:$16 sps:$4 sm:$0xff]  }
  0x86   : > { %6675 = vmatpush2.bf16.msra.mxu0 %v9458_v12  ;;  %v9538_v12 = vld [vmem:[%s14454_s1 + $0x984] ss:$16 sps:$4 sm:$0xff]  }
  0x87   : > { %6718 = vmatpush2.bf16.msra.mxu1 %v9461_v13  ;;  %6676 = vmatprep.subr.bf16.mxu0 %v9466_v14  ;;  %v9541_v13 = vld [vmem:[%s14454_s1 + $0xb84] ss:$16 sps:$4 sm:$0xff]   ;;  %v9536_v14 = vld [vmem:[%s14454_s1 + $0x980] ss:$16 sps:$4 sm:$0xff]  }
  0x88   : > { %6719 = vmatprep.subr.bf16.mxu1 %v9469_v15  ;;  %v9539_v15 = vld [vmem:[%s14454_s1 + $0xb80] ss:$16 sps:$4 sm:$0xff]  }
  0x8a   : > { %6677 = vmatpush2.bf16.msra.mxu0 %v9464_v16  ;;  %v9544_v16 = vld [vmem:[%s14454_s1 + $0x964] ss:$16 sps:$4 sm:$0xff]  }
  0x8b   : > { %6720 = vmatpush2.bf16.msra.mxu1 %v9467_v17  ;;  %6732 = vmatprep.subr.bf16.mxu0 %v9472_v18  ;;  %v9547_v17 = vld [vmem:[%s14454_s1 + $0xb64] ss:$16 sps:$4 sm:$0xff]   ;;  %v9542_v18 = vld [vmem:[%s14454_s1 + $0x960] ss:$16 sps:$4 sm:$0xff]  }
  0x8c   : > { %6775 = vmatprep.subr.bf16.mxu1 %v9475_v19  ;;  %v9545_v19 = vld [vmem:[%s14454_s1 + $0xb60] ss:$16 sps:$4 sm:$0xff]  }
  0x8d   : > { %6679 = vmatmul.mubr.bf16.vlgmr.msra.gmra.mxu0 %v11327_v20 }
  0x8e   : > { %6722 = vmatmul.mubr.bf16.vlgmr.msra.gmra.mxu1 %v11331_v21  ;;  %6733 = vmatpush1.bf16.msra.mxu0 %v9470_v22  ;;  %v9550_v22 = vld [vmem:[%s14454_s1 + $0x944] ss:$16 sps:$4 sm:$0xff]  }
  0x8f   : > { %6776 = vmatpush1.bf16.msra.mxu1 %v9473_v23  ;;  %6734 = vmatprep.subr.bf16.mxu0 %v9478_v24  ;;  %v9553_v23 = vld [vmem:[%s14454_s1 + $0xb44] ss:$16 sps:$4 sm:$0xff]   ;;  %v9548_v24 = vld [vmem:[%s14454_s1 + $0x940] ss:$16 sps:$4 sm:$0xff]  }
  0x90   : > { %6777 = vmatprep.subr.bf16.mxu1 %v9481_v25  ;;  %6764 = vmatprep.mubr.bf16.mxu0 %v11370_v33  ;;  %v9551_v25 = vld [vmem:[%s14454_s1 + $0xb40] ss:$16 sps:$4 sm:$0xff]  }
  0x91   : > { %6807 = vmatprep.mubr.bf16.mxu1 %v11377_v35 }
  0x92   : > { %6735 = vmatpush1.bf16.msra.mxu0 %v9476_v26  ;;  %v9556_v26 = vld [vmem:[%s14454_s1 + $0x924] ss:$16 sps:$4 sm:$0xff]  }
  0x93   : > { %6778 = vmatpush1.bf16.msra.mxu1 %v9479_v27  ;;  %6736 = vmatprep.subr.bf16.mxu0 %v9484_v32  ;;  %v9559_v27 = vld [vmem:[%s14454_s1 + $0xb24] ss:$16 sps:$4 sm:$0xff]   ;;  %v9554_v32 = vld [vmem:[%s14454_s1 + $0x920] ss:$16 sps:$4 sm:$0xff]  }
  0x94   : > { %6779 = vmatprep.subr.bf16.mxu1 %v9487_v34  ;;  %v9557_v34 = vld [vmem:[%s14454_s1 + $0xb20] ss:$16 sps:$4 sm:$0xff]  }
  0x96   : > { %6737 = vmatpush1.bf16.msra.mxu0 %v9482_v36  ;;  %v9562_v36 = vld [vmem:[%s14454_s1 + $0x904] ss:$16 sps:$4 sm:$0xff]  }
  0x97   : > { %6780 = vmatpush1.bf16.msra.mxu1 %v9485_v37  ;;  %6738 = vmatprep.subr.bf16.mxu0 %v9490_v38  ;;  %v9565_v37 = vld [vmem:[%s14454_s1 + $0xb04] ss:$16 sps:$4 sm:$0xff]   ;;  %v9560_v38 = vld [vmem:[%s14454_s1 + $0x900] ss:$16 sps:$4 sm:$0xff]  }
  0x98   : > { %6781 = vmatprep.subr.bf16.mxu1 %v9493_v39  ;;  %v9563_v39 = vld [vmem:[%s14454_s1 + $0xb00] ss:$16 sps:$4 sm:$0xff]  }
  0x9a   : > { %6739 = vmatpush1.bf16.msra.mxu0 %v9488_v40  ;;  %v9568_v40 = vld [vmem:[%s14454_s1 + $0xce4] ss:$16 sps:$4 sm:$0xff]  }
  0x9b   : > { %6782 = vmatpush1.bf16.msra.mxu1 %v9491_v42  ;;  %6740 = vmatprep.subr.bf16.mxu0 %v9496_v44  ;;  %v9571_v42 = vld [vmem:[%s14454_s1 + $0xee4] ss:$16 sps:$4 sm:$0xff]  }
  0x9c   : > { %6783 = vmatprep.subr.bf16.mxu1 %v9499_v45  ;;  %v11550_v44 = vld [vmem:[%s11027_s11 + $0x30] sm:$0xff] }
  0x9d   : > { %v9566_v45 = vld [vmem:[%s14454_s1 + $0xce0] ss:$16 sps:$4 sm:$0xff]  }
  0x9e   : > { %6741 = vmatpush1.bf16.msra.mxu0 %v9494_v46  ;;  %v11556_v46 = vld [vmem:[%s11027_s11 + $0xb0] sm:$0xff] }
  0x9f   : > { %6784 = vmatpush1.bf16.msra.mxu1 %v9497_v47  ;;  %6742 = vmatprep.subr.bf16.mxu0 %v9502_v48  ;;  %v11559_v47 = vld [vmem:[%s11027_s11 + $0x38] sm:$0xff]  ;;  %v11563_v48 = vcombine.low %v11352_v28, %v11357_v29  ;;  %v9577_v28 = vld [vmem:[%s14454_s1 + $0xec4] ss:$16 sps:$4 sm:$0xff]   ;;  %v11583_v29 = vcombine.high %v11550_v44, %v11556_v46 }
  0xa0   : > { %6785 = vmatprep.subr.bf16.mxu1 %v9505_v49  ;;  %v11567_v49 = vcombine.low %v11360_v30, %v11363_v31  ;;  %v9572_v31 = vld [vmem:[%s14454_s1 + $0xcc0] ss:$16 sps:$4 sm:$0xff]  }
  0xa2   : > { %6743 = vmatpush1.bf16.msra.mxu0 %v9500_v50  ;;  %v11570_v50 = vld [vmem:[%s11027_s11 + $0xb8] sm:$0xff] }
  0xa3   : > { %6786 = vmatpush1.bf16.msra.mxu1 %v9503_v51  ;;  %6744 = vmatprep.subr.bf16.mxu0 %v9508_v52  ;;  %v9569_v51 = vld [vmem:[%s14454_s1 + $0xee0] ss:$16 sps:$4 sm:$0xff]   ;;  %v9574_v52 = vld [vmem:[%s14454_s1 + $0xcc4] ss:$16 sps:$4 sm:$0xff]   ;;  %v11587_v30 = vcombine.high %v11559_v47, %v11570_v50 }
  0xa4   : > { %6787 = vmatprep.subr.bf16.mxu1 %v9511_v54  ;;  %v9575_v54 = vld [vmem:[%s14454_s1 + $0xec0] ss:$16 sps:$4 sm:$0xff]  }
  0xa6   : > { %6745 = vmatpush1.bf16.msra.mxu0 %v9506_v56  ;;  %v9580_v56 = vld [vmem:[%s14454_s1 + $0xca4] ss:$16 sps:$4 sm:$0xff]  }
  0xa7   : > { %6788 = vmatpush1.bf16.msra.mxu1 %v9509_v57  ;;  %6746 = vmatprep.subr.bf16.mxu0 %v9514_v58  ;;  %v9583_v57 = vld [vmem:[%s14454_s1 + $0xea4] ss:$16 sps:$4 sm:$0xff]   ;;  %v9578_v58 = vld [vmem:[%s14454_s1 + $0xca0] ss:$16 sps:$4 sm:$0xff]  }
  0xa8   : > { %6789 = vmatprep.subr.bf16.mxu1 %v9517_v59  ;;  %v9581_v59 = vld [vmem:[%s14454_s1 + $0xea0] ss:$16 sps:$4 sm:$0xff]  }
  0xaa   : > { %6747 = vmatpush1.bf16.msra.mxu0 %v9512_v60  ;;  %v9586_v60 = vld [vmem:[%s14454_s1 + $0xc84] ss:$16 sps:$4 sm:$0xff]  }
  0xab   : > { %6790 = vmatpush1.bf16.msra.mxu1 %v9515_v61  ;;  %6748 = vmatprep.subr.bf16.mxu0 %v9520_v62  ;;  %v9589_v61 = vld [vmem:[%s14454_s1 + $0xe84] ss:$16 sps:$4 sm:$0xff]   ;;  %v9584_v62 = vld [vmem:[%s14454_s1 + $0xc80] ss:$16 sps:$4 sm:$0xff]  }
  0xac   : > { %6791 = vmatprep.subr.bf16.mxu1 %v9523_v63  ;;  %v9587_v63 = vld [vmem:[%s14454_s1 + $0xe80] ss:$16 sps:$4 sm:$0xff]  }
  0xae   : > { %6749 = vmatpush2.bf16.msra.mxu0 %v9518_v0  ;;  %v9592_v0 = vld [vmem:[%s14454_s1 + $0xc64] ss:$16 sps:$4 sm:$0xff]  }
  0xaf   : > { %6792 = vmatpush2.bf16.msra.mxu1 %v9521_v1  ;;  %6750 = vmatprep.subr.bf16.mxu0 %v9526_v2  ;;  %v9595_v1 = vld [vmem:[%s14454_s1 + $0xe64] ss:$16 sps:$4 sm:$0xff]   ;;  %v9590_v2 = vld [vmem:[%s14454_s1 + $0xc60] ss:$16 sps:$4 sm:$0xff]  }
  0xb0   : > { %6793 = vmatprep.subr.bf16.mxu1 %v9529_v3  ;;  %v9593_v3 = vld [vmem:[%s14454_s1 + $0xe60] ss:$16 sps:$4 sm:$0xff]  }
  0xb2   : > { %6751 = vmatpush2.bf16.msra.mxu0 %v9524_v4  ;;  %v9598_v4 = vld [vmem:[%s14454_s1 + $0xc44] ss:$16 sps:$4 sm:$0xff]  }
  0xb3   : > { %6794 = vmatpush2.bf16.msra.mxu1 %v9527_v5  ;;  %6752 = vmatprep.subr.bf16.mxu0 %v9532_v6  ;;  %v9601_v5 = vld [vmem:[%s14454_s1 + $0xe44] ss:$16 sps:$4 sm:$0xff]   ;;  %v9596_v6 = vld [vmem:[%s14454_s1 + $0xc40] ss:$16 sps:$4 sm:$0xff]  }
  0xb4   : > { %6795 = vmatprep.subr.bf16.mxu1 %v9535_v7  ;;  %v9599_v7 = vld [vmem:[%s14454_s1 + $0xe40] ss:$16 sps:$4 sm:$0xff]  }
  0xb6   : > { %6753 = vmatpush2.bf16.msra.mxu0 %v9530_v10  ;;  %v9604_v10 = vld [vmem:[%s14454_s1 + $0xc24] ss:$16 sps:$4 sm:$0xff]  }
  0xb7   : > { %6796 = vmatpush2.bf16.msra.mxu1 %v9533_v11  ;;  %6754 = vmatprep.subr.bf16.mxu0 %v9538_v12  ;;  %v9607_v11 = vld [vmem:[%s14454_s1 + $0xe24] ss:$16 sps:$4 sm:$0xff]   ;;  %v9602_v12 = vld [vmem:[%s14454_s1 + $0xc20] ss:$16 sps:$4 sm:$0xff]  }
  0xb8   : > { %6797 = vmatprep.subr.bf16.mxu1 %v9541_v13  ;;  %v9605_v13 = vld [vmem:[%s14454_s1 + $0xe20] ss:$16 sps:$4 sm:$0xff]  }
  0xba   : > { %6755 = vmatpush2.bf16.msra.mxu0 %v9536_v14  ;;  %v9610_v14 = vld [vmem:[%s14454_s1 + $0xc04] ss:$16 sps:$4 sm:$0xff]  }
  0xbb   : > { %6798 = vmatpush2.bf16.msra.mxu1 %v9539_v15  ;;  %6756 = vmatprep.subr.bf16.mxu0 %v9544_v16  ;;  %v9613_v15 = vld [vmem:[%s14454_s1 + $0xe04] ss:$16 sps:$4 sm:$0xff]   ;;  %v9608_v16 = vld [vmem:[%s14454_s1 + $0xc00] ss:$16 sps:$4 sm:$0xff]  }
  0xbc   : > { %6799 = vmatprep.subr.bf16.mxu1 %v9547_v17  ;;  %v9611_v17 = vld [vmem:[%s14454_s1 + $0xe00] ss:$16 sps:$4 sm:$0xff]  }
  0xbe   : > { %6757 = vmatpush2.bf16.msra.mxu0 %v9542_v18  ;;  %v9616_v18 = vld [vmem:[%s14454_s1 + $0xde4] ss:$16 sps:$4 sm:$0xff]  }
  0xbf   : > { %6800 = vmatpush2.bf16.msra.mxu1 %v9545_v19  ;;  %6758 = vmatprep.subr.bf16.mxu0 %v9550_v22  ;;  %v9619_v19 = vld [vmem:[%s14454_s1 + $0xfe4] ss:$16 sps:$4 sm:$0xff]   ;;  %v9614_v22 = vld [vmem:[%s14454_s1 + $0xde0] ss:$16 sps:$4 sm:$0xff]  }
  0xc0   : > { %6801 = vmatprep.subr.bf16.mxu1 %v9553_v23  ;;  %v9617_v23 = vld [vmem:[%s14454_s1 + $0xfe0] ss:$16 sps:$4 sm:$0xff]  }
  0xc2   : > { %6759 = vmatpush2.bf16.msra.mxu0 %v9548_v24  ;;  %v9622_v24 = vld [vmem:[%s14454_s1 + $0xdc4] ss:$16 sps:$4 sm:$0xff]  }
  0xc3   : > { %6802 = vmatpush2.bf16.msra.mxu1 %v9551_v25  ;;  %6760 = vmatprep.subr.bf16.mxu0 %v9556_v26  ;;  %v9625_v25 = vld [vmem:[%s14454_s1 + $0xfc4] ss:$16 sps:$4 sm:$0xff]   ;;  %v9620_v26 = vld [vmem:[%s14454_s1 + $0xdc0] ss:$16 sps:$4 sm:$0xff]  }
  0xc4   : > { %6803 = vmatprep.subr.bf16.mxu1 %v9559_v27  ;;  %v9623_v27 = vld [vmem:[%s14454_s1 + $0xfc0] ss:$16 sps:$4 sm:$0xff]  }
  0xc6   : > { %6761 = vmatpush2.bf16.msra.mxu0 %v9554_v32  ;;  %v9628_v32 = vld [vmem:[%s14454_s1 + $0xda4] ss:$16 sps:$4 sm:$0xff]  }
  0xc7   : > { %6804 = vmatpush2.bf16.msra.mxu1 %v9557_v34  ;;  %6762 = vmatprep.subr.bf16.mxu0 %v9562_v36  ;;  %v9631_v34 = vld [vmem:[%s14454_s1 + $0xfa4] ss:$16 sps:$4 sm:$0xff]   ;;  %v9626_v36 = vld [vmem:[%s14454_s1 + $0xda0] ss:$16 sps:$4 sm:$0xff]  }
  0xc8   : > { %6805 = vmatprep.subr.bf16.mxu1 %v9565_v37  ;;  %v9629_v37 = vld [vmem:[%s14454_s1 + $0xfa0] ss:$16 sps:$4 sm:$0xff]  }
  0xca   : > { %6763 = vmatpush2.bf16.msra.mxu0 %v9560_v38  ;;  %v9634_v38 = vld [vmem:[%s14454_s1 + $0xd84] ss:$16 sps:$4 sm:$0xff]  }
  0xcb   : > { %6806 = vmatpush2.bf16.msra.mxu1 %v9563_v39  ;;  %6818 = vmatprep.subr.bf16.mxu0 %v9568_v40  ;;  %v9637_v39 = vld [vmem:[%s14454_s1 + $0xf84] ss:$16 sps:$4 sm:$0xff]   ;;  %v9632_v40 = vld [vmem:[%s14454_s1 + $0xd80] ss:$16 sps:$4 sm:$0xff]  }
  0xcc   : > { %6861 = vmatprep.subr.bf16.mxu1 %v9571_v42  ;;  %v9635_v42 = vld [vmem:[%s14454_s1 + $0xf80] ss:$16 sps:$4 sm:$0xff]  }
  0xcd   : > { %6765 = vmatmul.mubr.bf16.vlgmr.msra.gmra.mxu0 %v11563_v48 }
  0xce   : > { %6808 = vmatmul.mubr.bf16.vlgmr.msra.gmra.mxu1 %v11567_v49  ;;  %6819 = vmatpush1.bf16.msra.mxu0 %v9566_v45  ;;  %v9640_v45 = vld [vmem:[%s14454_s1 + $0xd64] ss:$16 sps:$4 sm:$0xff]  }
  0xcf   : > { %6862 = vmatpush1.bf16.msra.mxu1 %v9569_v51  ;;  %6820 = vmatprep.subr.bf16.mxu0 %v9574_v52  ;;  %v9643_v51 = vld [vmem:[%s14454_s1 + $0xf64] ss:$16 sps:$4 sm:$0xff]   ;;  %v9638_v52 = vld [vmem:[%s14454_s1 + $0xd60] ss:$16 sps:$4 sm:$0xff]  }
  0xd0   : > { %6863 = vmatprep.subr.bf16.mxu1 %v9577_v28  ;;  %6850 = vmatprep.mubr.bf16.mxu0 %v11583_v29  ;;  %v9641_v28 = vld [vmem:[%s14454_s1 + $0xf60] ss:$16 sps:$4 sm:$0xff]  }
  0xd1   : > { %6893 = vmatprep.mubr.bf16.mxu1 %v11587_v30 }
  0xd2   : > { %6821 = vmatpush1.bf16.msra.mxu0 %v9572_v31  ;;  %v9646_v31 = vld [vmem:[%s14454_s1 + $0xd44] ss:$16 sps:$4 sm:$0xff]  }
  0xd3   : > { %6864 = vmatpush1.bf16.msra.mxu1 %v9575_v54  ;;  %6822 = vmatprep.subr.bf16.mxu0 %v9580_v56  ;;  %v9649_v54 = vld [vmem:[%s14454_s1 + $0xf44] ss:$16 sps:$4 sm:$0xff]   ;;  %v9644_v56 = vld [vmem:[%s14454_s1 + $0xd40] ss:$16 sps:$4 sm:$0xff]  }
  0xd4   : > { %6865 = vmatprep.subr.bf16.mxu1 %v9583_v57  ;;  %v9647_v57 = vld [vmem:[%s14454_s1 + $0xf40] ss:$16 sps:$4 sm:$0xff]  }
  0xd6   : > { %6823 = vmatpush1.bf16.msra.mxu0 %v9578_v58  ;;  %v9652_v58 = vld [vmem:[%s14454_s1 + $0xd24] ss:$16 sps:$4 sm:$0xff]  }
  0xd7   : > { %6866 = vmatpush1.bf16.msra.mxu1 %v9581_v59  ;;  %6824 = vmatprep.subr.bf16.mxu0 %v9586_v60  ;;  %v9655_v59 = vld [vmem:[%s14454_s1 + $0xf24] ss:$16 sps:$4 sm:$0xff]   ;;  %v9650_v60 = vld [vmem:[%s14454_s1 + $0xd20] ss:$16 sps:$4 sm:$0xff]  }
  0xd8   : > { %6867 = vmatprep.subr.bf16.mxu1 %v9589_v61  ;;  %v9653_v61 = vld [vmem:[%s14454_s1 + $0xf20] ss:$16 sps:$4 sm:$0xff]  }
  0xda   : > { %6825 = vmatpush1.bf16.msra.mxu0 %v9584_v62  ;;  %v9658_v62 = vld [vmem:[%s14454_s1 + $0xd04] ss:$16 sps:$4 sm:$0xff]  }
  0xdb   : > { %6868 = vmatpush1.bf16.msra.mxu1 %v9587_v63  ;;  %6826 = vmatprep.subr.bf16.mxu0 %v9592_v0  ;;  %v9661_v63 = vld [vmem:[%s14454_s1 + $0xf04] ss:$16 sps:$4 sm:$0xff]   ;;  %v9656_v0 = vld [vmem:[%s14454_s1 + $0xd00] ss:$16 sps:$4 sm:$0xff]  }
  0xdc   : > { %6869 = vmatprep.subr.bf16.mxu1 %v9595_v1  ;;  %v9659_v1 = vld [vmem:[%s14454_s1 + $0xf00] ss:$16 sps:$4 sm:$0xff]  }
  0xde   : > { %6827 = vmatpush1.bf16.msra.mxu0 %v9590_v2  ;;  %v9664_v2 = vld [vmem:[%s14454_s1 + $0x10e4] ss:$16 sps:$4 sm:$0xff]  }
  0xdf   : > { %6870 = vmatpush1.bf16.msra.mxu1 %v9593_v3  ;;  %6828 = vmatprep.subr.bf16.mxu0 %v9598_v4  ;;  %v9667_v3 = vld [vmem:[%s14454_s1 + $0x12e4] ss:$16 sps:$4 sm:$0xff]  }
  0xe0   : > { %6871 = vmatprep.subr.bf16.mxu1 %v9601_v5  ;;  %v11774_v4 = vld [vmem:[%s11027_s11 + $0x40] sm:$0xff] }
  0xe1   : > { %v9662_v5 = vld [vmem:[%s14454_s1 + $0x10e0] ss:$16 sps:$4 sm:$0xff]  }
  0xe2   : > { %6829 = vmatpush1.bf16.msra.mxu0 %v9596_v6  ;;  %v11780_v6 = vld [vmem:[%s11027_s11 + $0xc0] sm:$0xff] }
  0xe3   : > { %6872 = vmatpush1.bf16.msra.mxu1 %v9599_v7  ;;  %6830 = vmatprep.subr.bf16.mxu0 %v9604_v10  ;;  %v11783_v7 = vld [vmem:[%s11027_s11 + $0x48] sm:$0xff]  ;;  %v11787_v10 = vcombine.low %v11550_v44, %v11556_v46  ;;  %v9673_v44 = vld [vmem:[%s14454_s1 + $0x12c4] ss:$16 sps:$4 sm:$0xff]   ;;  %v11807_v46 = vcombine.high %v11774_v4, %v11780_v6 }
  0xe4   : > { %6873 = vmatprep.subr.bf16.mxu1 %v9607_v11  ;;  %v11791_v11 = vcombine.low %v11559_v47, %v11570_v50  ;;  %v9668_v50 = vld [vmem:[%s14454_s1 + $0x10c0] ss:$16 sps:$4 sm:$0xff]  }
  0xe6   : > { %6831 = vmatpush1.bf16.msra.mxu0 %v9602_v12  ;;  %v11794_v12 = vld [vmem:[%s11027_s11 + $0xc8] sm:$0xff] }
  0xe7   : > { %6874 = vmatpush1.bf16.msra.mxu1 %v9605_v13  ;;  %6832 = vmatprep.subr.bf16.mxu0 %v9610_v14  ;;  %v9665_v13 = vld [vmem:[%s14454_s1 + $0x12e0] ss:$16 sps:$4 sm:$0xff]   ;;  %v9670_v14 = vld [vmem:[%s14454_s1 + $0x10c4] ss:$16 sps:$4 sm:$0xff]   ;;  %v11811_v47 = vcombine.high %v11783_v7, %v11794_v12 }
  0xe8   : > { %6875 = vmatprep.subr.bf16.mxu1 %v9613_v15  ;;  %v9671_v15 = vld [vmem:[%s14454_s1 + $0x12c0] ss:$16 sps:$4 sm:$0xff]  }
  0xea   : > { %6833 = vmatpush1.bf16.msra.mxu0 %v9608_v16  ;;  %v9676_v16 = vld [vmem:[%s14454_s1 + $0x10a4] ss:$16 sps:$4 sm:$0xff]  }
  0xeb   : > { %6876 = vmatpush1.bf16.msra.mxu1 %v9611_v17  ;;  %6834 = vmatprep.subr.bf16.mxu0 %v9616_v18  ;;  %v9679_v17 = vld [vmem:[%s14454_s1 + $0x12a4] ss:$16 sps:$4 sm:$0xff]   ;;  %v9674_v18 = vld [vmem:[%s14454_s1 + $0x10a0] ss:$16 sps:$4 sm:$0xff]  }
  0xec   : > { %6877 = vmatprep.subr.bf16.mxu1 %v9619_v19  ;;  %v9677_v19 = vld [vmem:[%s14454_s1 + $0x12a0] ss:$16 sps:$4 sm:$0xff]  }
  0xee   : > { %6835 = vmatpush2.bf16.msra.mxu0 %v9614_v22  ;;  %v9682_v22 = vld [vmem:[%s14454_s1 + $0x1084] ss:$16 sps:$4 sm:$0xff]  }
  0xef   : > { %6878 = vmatpush2.bf16.msra.mxu1 %v9617_v23  ;;  %6836 = vmatprep.subr.bf16.mxu0 %v9622_v24  ;;  %v9685_v23 = vld [vmem:[%s14454_s1 + $0x1284] ss:$16 sps:$4 sm:$0xff]   ;;  %v9680_v24 = vld [vmem:[%s14454_s1 + $0x1080] ss:$16 sps:$4 sm:$0xff]  }
  0xf0   : > { %6879 = vmatprep.subr.bf16.mxu1 %v9625_v25  ;;  %v9683_v25 = vld [vmem:[%s14454_s1 + $0x1280] ss:$16 sps:$4 sm:$0xff]  }
  0xf2   : > { %6837 = vmatpush2.bf16.msra.mxu0 %v9620_v26  ;;  %v9688_v26 = vld [vmem:[%s14454_s1 + $0x1064] ss:$16 sps:$4 sm:$0xff]  }
  0xf3   : > { %6880 = vmatpush2.bf16.msra.mxu1 %v9623_v27  ;;  %6838 = vmatprep.subr.bf16.mxu0 %v9628_v32  ;;  %v9691_v27 = vld [vmem:[%s14454_s1 + $0x1264] ss:$16 sps:$4 sm:$0xff]   ;;  %v9686_v32 = vld [vmem:[%s14454_s1 + $0x1060] ss:$16 sps:$4 sm:$0xff]  }
  0xf4   : > { %6881 = vmatprep.subr.bf16.mxu1 %v9631_v34  ;;  %v9689_v34 = vld [vmem:[%s14454_s1 + $0x1260] ss:$16 sps:$4 sm:$0xff]  }
  0xf6   : > { %6839 = vmatpush2.bf16.msra.mxu0 %v9626_v36  ;;  %v9694_v36 = vld [vmem:[%s14454_s1 + $0x1044] ss:$16 sps:$4 sm:$0xff]  }
  0xf7   : > { %6882 = vmatpush2.bf16.msra.mxu1 %v9629_v37  ;;  %6840 = vmatprep.subr.bf16.mxu0 %v9634_v38  ;;  %v9697_v37 = vld [vmem:[%s14454_s1 + $0x1244] ss:$16 sps:$4 sm:$0xff]   ;;  %v9692_v38 = vld [vmem:[%s14454_s1 + $0x1040] ss:$16 sps:$4 sm:$0xff]  }
  0xf8   : > { %6883 = vmatprep.subr.bf16.mxu1 %v9637_v39  ;;  %v9695_v39 = vld [vmem:[%s14454_s1 + $0x1240] ss:$16 sps:$4 sm:$0xff]  }
  0xfa   : > { %6841 = vmatpush2.bf16.msra.mxu0 %v9632_v40  ;;  %v9700_v40 = vld [vmem:[%s14454_s1 + $0x1024] ss:$16 sps:$4 sm:$0xff]  }
  0xfb   : > { %6884 = vmatpush2.bf16.msra.mxu1 %v9635_v42  ;;  %6842 = vmatprep.subr.bf16.mxu0 %v9640_v45  ;;  %v9703_v42 = vld [vmem:[%s14454_s1 + $0x1224] ss:$16 sps:$4 sm:$0xff]   ;;  %v9698_v45 = vld [vmem:[%s14454_s1 + $0x1020] ss:$16 sps:$4 sm:$0xff]  }
  0xfc   : > { %6885 = vmatprep.subr.bf16.mxu1 %v9643_v51  ;;  %v9701_v51 = vld [vmem:[%s14454_s1 + $0x1220] ss:$16 sps:$4 sm:$0xff]  }
  0xfe   : > { %6843 = vmatpush2.bf16.msra.mxu0 %v9638_v52  ;;  %v9706_v52 = vld [vmem:[%s14454_s1 + $0x1004] ss:$16 sps:$4 sm:$0xff]  }
  0xff   : > { %6886 = vmatpush2.bf16.msra.mxu1 %v9641_v28  ;;  %6844 = vmatprep.subr.bf16.mxu0 %v9646_v31  ;;  %v9709_v28 = vld [vmem:[%s14454_s1 + $0x1204] ss:$16 sps:$4 sm:$0xff]   ;;  %v9704_v31 = vld [vmem:[%s14454_s1 + $0x1000] ss:$16 sps:$4 sm:$0xff]  }
 0x100   : > { %6887 = vmatprep.subr.bf16.mxu1 %v9649_v54  ;;  %v9707_v54 = vld [vmem:[%s14454_s1 + $0x1200] ss:$16 sps:$4 sm:$0xff]  }
 0x102   : > { %6845 = vmatpush2.bf16.msra.mxu0 %v9644_v56  ;;  %v9712_v56 = vld [vmem:[%s14454_s1 + $0x11e4] ss:$16 sps:$4 sm:$0xff]  }
 0x103   : > { %6888 = vmatpush2.bf16.msra.mxu1 %v9647_v57  ;;  %6846 = vmatprep.subr.bf16.mxu0 %v9652_v58  ;;  %v9715_v57 = vld [vmem:[%s14454_s1 + $0x13e4] ss:$16 sps:$4 sm:$0xff]   ;;  %v9710_v58 = vld [vmem:[%s14454_s1 + $0x11e0] ss:$16 sps:$4 sm:$0xff]  }
 0x104   : > { %6889 = vmatprep.subr.bf16.mxu1 %v9655_v59  ;;  %v9713_v59 = vld [vmem:[%s14454_s1 + $0x13e0] ss:$16 sps:$4 sm:$0xff]  }
 0x106   : > { %6847 = vmatpush2.bf16.msra.mxu0 %v9650_v60  ;;  %v9718_v60 = vld [vmem:[%s14454_s1 + $0x11c4] ss:$16 sps:$4 sm:$0xff]  }
 0x107   : > { %6890 = vmatpush2.bf16.msra.mxu1 %v9653_v61  ;;  %6848 = vmatprep.subr.bf16.mxu0 %v9658_v62  ;;  %v9721_v61 = vld [vmem:[%s14454_s1 + $0x13c4] ss:$16 sps:$4 sm:$0xff]   ;;  %v9716_v62 = vld [vmem:[%s14454_s1 + $0x11c0] ss:$16 sps:$4 sm:$0xff]  }
 0x108   : > { %6891 = vmatprep.subr.bf16.mxu1 %v9661_v63  ;;  %v9719_v63 = vld [vmem:[%s14454_s1 + $0x13c0] ss:$16 sps:$4 sm:$0xff]  }
 0x10a   : > { %6849 = vmatpush2.bf16.msra.mxu0 %v9656_v0  ;;  %v9724_v0 = vld [vmem:[%s14454_s1 + $0x11a4] ss:$16 sps:$4 sm:$0xff]  }
 0x10b   : > { %6892 = vmatpush2.bf16.msra.mxu1 %v9659_v1  ;;  %6904 = vmatprep.subr.bf16.mxu0 %v9664_v2  ;;  %v9727_v1 = vld [vmem:[%s14454_s1 + $0x13a4] ss:$16 sps:$4 sm:$0xff]   ;;  %v9722_v2 = vld [vmem:[%s14454_s1 + $0x11a0] ss:$16 sps:$4 sm:$0xff]  }
 0x10c   : > { %6947 = vmatprep.subr.bf16.mxu1 %v9667_v3  ;;  %v9725_v3 = vld [vmem:[%s14454_s1 + $0x13a0] ss:$16 sps:$4 sm:$0xff]  }
 0x10d   : > { %6851 = vmatmul.mubr.bf16.vlgmr.msra.gmra.mxu0 %v11787_v10 }
 0x10e   : > { %6894 = vmatmul.mubr.bf16.vlgmr.msra.gmra.mxu1 %v11791_v11  ;;  %6905 = vmatpush1.bf16.msra.mxu0 %v9662_v5  ;;  %v9730_v5 = vld [vmem:[%s14454_s1 + $0x1184] ss:$16 sps:$4 sm:$0xff]  }
 0x10f   : > { %6948 = vmatpush1.bf16.msra.mxu1 %v9665_v13  ;;  %6906 = vmatprep.subr.bf16.mxu0 %v9670_v14  ;;  %v9733_v13 = vld [vmem:[%s14454_s1 + $0x1384] ss:$16 sps:$4 sm:$0xff]   ;;  %v9728_v14 = vld [vmem:[%s14454_s1 + $0x1180] ss:$16 sps:$4 sm:$0xff]  }
 0x110   : > { %6949 = vmatprep.subr.bf16.mxu1 %v9673_v44  ;;  %6936 = vmatprep.mubr.bf16.mxu0 %v11807_v46  ;;  %v9731_v44 = vld [vmem:[%s14454_s1 + $0x1380] ss:$16 sps:$4 sm:$0xff]  }
 0x111   : > { %6979 = vmatprep.mubr.bf16.mxu1 %v11811_v47 }
 0x112   : > { %6907 = vmatpush1.bf16.msra.mxu0 %v9668_v50  ;;  %v9736_v50 = vld [vmem:[%s14454_s1 + $0x1164] ss:$16 sps:$4 sm:$0xff]  }
 0x113   : > { %6950 = vmatpush1.bf16.msra.mxu1 %v9671_v15  ;;  %6908 = vmatprep.subr.bf16.mxu0 %v9676_v16  ;;  %v9739_v15 = vld [vmem:[%s14454_s1 + $0x1364] ss:$16 sps:$4 sm:$0xff]   ;;  %v9734_v16 = vld [vmem:[%s14454_s1 + $0x1160] ss:$16 sps:$4 sm:$0xff]  }
 0x114   : > { %6951 = vmatprep.subr.bf16.mxu1 %v9679_v17  ;;  %v9737_v17 = vld [vmem:[%s14454_s1 + $0x1360] ss:$16 sps:$4 sm:$0xff]  }
 0x116   : > { %6909 = vmatpush1.bf16.msra.mxu0 %v9674_v18  ;;  %v9742_v18 = vld [vmem:[%s14454_s1 + $0x1144] ss:$16 sps:$4 sm:$0xff]  }
 0x117   : > { %6952 = vmatpush1.bf16.msra.mxu1 %v9677_v19  ;;  %6910 = vmatprep.subr.bf16.mxu0 %v9682_v22  ;;  %v9745_v19 = vld [vmem:[%s14454_s1 + $0x1344] ss:$16 sps:$4 sm:$0xff]   ;;  %v9740_v22 = vld [vmem:[%s14454_s1 + $0x1140] ss:$16 sps:$4 sm:$0xff]  }
 0x118   : > { %6953 = vmatprep.subr.bf16.mxu1 %v9685_v23  ;;  %v9743_v23 = vld [vmem:[%s14454_s1 + $0x1340] ss:$16 sps:$4 sm:$0xff]  }
 0x11a   : > { %6911 = vmatpush1.bf16.msra.mxu0 %v9680_v24  ;;  %v9748_v24 = vld [vmem:[%s14454_s1 + $0x1124] ss:$16 sps:$4 sm:$0xff]  }
 0x11b   : > { %6954 = vmatpush1.bf16.msra.mxu1 %v9683_v25  ;;  %6912 = vmatprep.subr.bf16.mxu0 %v9688_v26  ;;  %v9751_v25 = vld [vmem:[%s14454_s1 + $0x1324] ss:$16 sps:$4 sm:$0xff]   ;;  %v9746_v26 = vld [vmem:[%s14454_s1 + $0x1120] ss:$16 sps:$4 sm:$0xff]  }
 0x11c   : > { %6955 = vmatprep.subr.bf16.mxu1 %v9691_v27  ;;  %v9749_v27 = vld [vmem:[%s14454_s1 + $0x1320] ss:$16 sps:$4 sm:$0xff]  }
 0x11e   : > { %6913 = vmatpush1.bf16.msra.mxu0 %v9686_v32  ;;  %v9754_v32 = vld [vmem:[%s14454_s1 + $0x1104] ss:$16 sps:$4 sm:$0xff]  }
 0x11f   : > { %6956 = vmatpush1.bf16.msra.mxu1 %v9689_v34  ;;  %6914 = vmatprep.subr.bf16.mxu0 %v9694_v36  ;;  %v9757_v34 = vld [vmem:[%s14454_s1 + $0x1304] ss:$16 sps:$4 sm:$0xff]   ;;  %v9752_v36 = vld [vmem:[%s14454_s1 + $0x1100] ss:$16 sps:$4 sm:$0xff]  }
 0x120   : > { %6957 = vmatprep.subr.bf16.mxu1 %v9697_v37  ;;  %v9755_v37 = vld [vmem:[%s14454_s1 + $0x1300] ss:$16 sps:$4 sm:$0xff]  }
 0x122   : > { %6915 = vmatpush1.bf16.msra.mxu0 %v9692_v38  ;;  %v9760_v38 = vld [vmem:[%s14454_s1 + $0x14e4] ss:$16 sps:$4 sm:$0xff]  }
 0x123   : > { %6958 = vmatpush1.bf16.msra.mxu1 %v9695_v39  ;;  %6916 = vmatprep.subr.bf16.mxu0 %v9700_v40  ;;  %v9763_v39 = vld [vmem:[%s14454_s1 + $0x16e4] ss:$16 sps:$4 sm:$0xff]  }
 0x124   : > { %6959 = vmatprep.subr.bf16.mxu1 %v9703_v42  ;;  %v11998_v40 = vld [vmem:[%s11027_s11 + $0x50] sm:$0xff] }
 0x125   : > { %v9758_v42 = vld [vmem:[%s14454_s1 + $0x14e0] ss:$16 sps:$4 sm:$0xff]  }
 0x126   : > { %6917 = vmatpush1.bf16.msra.mxu0 %v9698_v45  ;;  %v12005_v45 = vcombine.low %v11774_v4, %v11780_v6  ;;  %v9766_v4 = vld [vmem:[%s14454_s1 + $0x14c4] ss:$16 sps:$4 sm:$0xff]  }
 0x127   : > { %6960 = vmatpush1.bf16.msra.mxu1 %v9701_v51  ;;  %6918 = vmatprep.subr.bf16.mxu0 %v9706_v52  ;;  %v12009_v51 = vcombine.low %v11783_v7, %v11794_v12  ;;  %v12012_v52 = vld [vmem:[%s11027_s11 + $0xd0] sm:$0xff] }
 0x128   : > { %6961 = vmatprep.subr.bf16.mxu1 %v9709_v28  ;;  %v12015_v28 = vld [vmem:[%s11027_s11 + $0x58] sm:$0xff]  ;;  %v9769_v6 = vld [vmem:[%s14454_s1 + $0x16c4] ss:$16 sps:$4 sm:$0xff]   ;;  %v9764_v7 = vld [vmem:[%s14454_s1 + $0x14c0] ss:$16 sps:$4 sm:$0xff]  }
 0x129   : > { %v9767_v12 = vld [vmem:[%s14454_s1 + $0x16c0] ss:$16 sps:$4 sm:$0xff]  }
 0x12a   : > { %6919 = vmatpush1.bf16.msra.mxu0 %v9704_v31  ;;  %v12018_v31 = vld [vmem:[%s11027_s11 + $0xd8] sm:$0xff] }
 0x12b   : > { %6962 = vmatpush1.bf16.msra.mxu1 %v9707_v54  ;;  %6920 = vmatprep.subr.bf16.mxu0 %v9712_v56  ;;  %v9761_v54 = vld [vmem:[%s14454_s1 + $0x16e0] ss:$16 sps:$4 sm:$0xff]   ;;  %v12037_v56 = vcombine.high %v11998_v40, %v12012_v52 }
 0x12c   : > { %6963 = vmatprep.subr.bf16.mxu1 %v9715_v57  ;;  %v12041_v57 = vcombine.high %v12015_v28, %v12018_v31 }
 0x12e   : > { %6921 = vmatpush2.bf16.msra.mxu0 %v9710_v58  ;;  %v9772_v58 = vld [vmem:[%s14454_s1 + $0x14a4] ss:$16 sps:$4 sm:$0xff]  }
 0x12f   : > { %6964 = vmatpush2.bf16.msra.mxu1 %v9713_v59  ;;  %6922 = vmatprep.subr.bf16.mxu0 %v9718_v60  ;;  %v9775_v59 = vld [vmem:[%s14454_s1 + $0x16a4] ss:$16 sps:$4 sm:$0xff]   ;;  %v9770_v60 = vld [vmem:[%s14454_s1 + $0x14a0] ss:$16 sps:$4 sm:$0xff]  }
 0x130   : > { %6965 = vmatprep.subr.bf16.mxu1 %v9721_v61  ;;  %v9773_v61 = vld [vmem:[%s14454_s1 + $0x16a0] ss:$16 sps:$4 sm:$0xff]  }
 0x132   : > { %6923 = vmatpush2.bf16.msra.mxu0 %v9716_v62  ;;  %v9778_v62 = vld [vmem:[%s14454_s1 + $0x1484] ss:$16 sps:$4 sm:$0xff]  }
 0x133   : > { %6966 = vmatpush2.bf16.msra.mxu1 %v9719_v63  ;;  %6924 = vmatprep.subr.bf16.mxu0 %v9724_v0  ;;  %v9781_v63 = vld [vmem:[%s14454_s1 + $0x1684] ss:$16 sps:$4 sm:$0xff]   ;;  %v9776_v0 = vld [vmem:[%s14454_s1 + $0x1480] ss:$16 sps:$4 sm:$0xff]  }
 0x134   : > { %6967 = vmatprep.subr.bf16.mxu1 %v9727_v1  ;;  %v9779_v1 = vld [vmem:[%s14454_s1 + $0x1680] ss:$16 sps:$4 sm:$0xff]  }
 0x136   : > { %6925 = vmatpush2.bf16.msra.mxu0 %v9722_v2  ;;  %v9784_v2 = vld [vmem:[%s14454_s1 + $0x1464] ss:$16 sps:$4 sm:$0xff]  }
 0x137   : > { %6968 = vmatpush2.bf16.msra.mxu1 %v9725_v3  ;;  %6926 = vmatprep.subr.bf16.mxu0 %v9730_v5  ;;  %v9787_v3 = vld [vmem:[%s14454_s1 + $0x1664] ss:$16 sps:$4 sm:$0xff]   ;;  %v9782_v5 = vld [vmem:[%s14454_s1 + $0x1460] ss:$16 sps:$4 sm:$0xff]  }
 0x138   : > { %6969 = vmatprep.subr.bf16.mxu1 %v9733_v13  ;;  %v9785_v13 = vld [vmem:[%s14454_s1 + $0x1660] ss:$16 sps:$4 sm:$0xff]  }
 0x13a   : > { %6927 = vmatpush2.bf16.msra.mxu0 %v9728_v14  ;;  %v9790_v14 = vld [vmem:[%s14454_s1 + $0x1444] ss:$16 sps:$4 sm:$0xff]  }
 0x13b   : > { %6970 = vmatpush2.bf16.msra.mxu1 %v9731_v44  ;;  %6928 = vmatprep.subr.bf16.mxu0 %v9736_v50  ;;  %v9793_v44 = vld [vmem:[%s14454_s1 + $0x1644] ss:$16 sps:$4 sm:$0xff]   ;;  %v9788_v50 = vld [vmem:[%s14454_s1 + $0x1440] ss:$16 sps:$4 sm:$0xff]  }
 0x13c   : > { %6971 = vmatprep.subr.bf16.mxu1 %v9739_v15  ;;  %v9791_v15 = vld [vmem:[%s14454_s1 + $0x1640] ss:$16 sps:$4 sm:$0xff]  }
 0x13e   : > { %6929 = vmatpush2.bf16.msra.mxu0 %v9734_v16  ;;  %v9796_v16 = vld [vmem:[%s14454_s1 + $0x1424] ss:$16 sps:$4 sm:$0xff]  }
 0x13f   : > { %6972 = vmatpush2.bf16.msra.mxu1 %v9737_v17  ;;  %6930 = vmatprep.subr.bf16.mxu0 %v9742_v18  ;;  %v9799_v17 = vld [vmem:[%s14454_s1 + $0x1624] ss:$16 sps:$4 sm:$0xff]   ;;  %v9794_v18 = vld [vmem:[%s14454_s1 + $0x1420] ss:$16 sps:$4 sm:$0xff]  }
 0x140   : > { %6973 = vmatprep.subr.bf16.mxu1 %v9745_v19  ;;  %v9797_v19 = vld [vmem:[%s14454_s1 + $0x1620] ss:$16 sps:$4 sm:$0xff]  }
 0x142   : > { %6931 = vmatpush2.bf16.msra.mxu0 %v9740_v22  ;;  %v9802_v22 = vld [vmem:[%s14454_s1 + $0x1404] ss:$16 sps:$4 sm:$0xff]  }
 0x143   : > { %6974 = vmatpush2.bf16.msra.mxu1 %v9743_v23  ;;  %6932 = vmatprep.subr.bf16.mxu0 %v9748_v24  ;;  %v9805_v23 = vld [vmem:[%s14454_s1 + $0x1604] ss:$16 sps:$4 sm:$0xff]   ;;  %v9800_v24 = vld [vmem:[%s14454_s1 + $0x1400] ss:$16 sps:$4 sm:$0xff]  }
 0x144   : > { %6975 = vmatprep.subr.bf16.mxu1 %v9751_v25  ;;  %v9803_v25 = vld [vmem:[%s14454_s1 + $0x1600] ss:$16 sps:$4 sm:$0xff]  }
 0x146   : > { %6933 = vmatpush2.bf16.msra.mxu0 %v9746_v26  ;;  %v9808_v26 = vld [vmem:[%s14454_s1 + $0x15e4] ss:$16 sps:$4 sm:$0xff]  }
 0x147   : > { %6976 = vmatpush2.bf16.msra.mxu1 %v9749_v27  ;;  %6934 = vmatprep.subr.bf16.mxu0 %v9754_v32  ;;  %v9811_v27 = vld [vmem:[%s14454_s1 + $0x17e4] ss:$16 sps:$4 sm:$0xff]   ;;  %v9806_v32 = vld [vmem:[%s14454_s1 + $0x15e0] ss:$16 sps:$4 sm:$0xff]  }
 0x148   : > { %6977 = vmatprep.subr.bf16.mxu1 %v9757_v34  ;;  %v9809_v34 = vld [vmem:[%s14454_s1 + $0x17e0] ss:$16 sps:$4 sm:$0xff]  }
 0x14a   : > { %6935 = vmatpush2.bf16.msra.mxu0 %v9752_v36  ;;  %v9814_v36 = vld [vmem:[%s14454_s1 + $0x15c4] ss:$16 sps:$4 sm:$0xff]  }
 0x14b   : > { %6978 = vmatpush2.bf16.msra.mxu1 %v9755_v37  ;;  %6990 = vmatprep.subr.bf16.mxu0 %v9760_v38  ;;  %v9817_v37 = vld [vmem:[%s14454_s1 + $0x17c4] ss:$16 sps:$4 sm:$0xff]   ;;  %v9812_v38 = vld [vmem:[%s14454_s1 + $0x15c0] ss:$16 sps:$4 sm:$0xff]  }
 0x14c   : > { %7033 = vmatprep.subr.bf16.mxu1 %v9763_v39  ;;  %v9815_v39 = vld [vmem:[%s14454_s1 + $0x17c0] ss:$16 sps:$4 sm:$0xff]  }
 0x14d   : > { %6937 = vmatmul.mubr.bf16.vlgmr.msra.gmra.mxu0 %v12005_v45 }
 0x14e   : > { %6980 = vmatmul.mubr.bf16.vlgmr.msra.gmra.mxu1 %v12009_v51  ;;  %6991 = vmatpush1.bf16.msra.mxu0 %v9758_v42  ;;  %v9820_v42 = vld [vmem:[%s14454_s1 + $0x15a4] ss:$16 sps:$4 sm:$0xff]  }
 0x14f   : > { %7034 = vmatpush1.bf16.msra.mxu1 %v9761_v54  ;;  %6992 = vmatprep.subr.bf16.mxu0 %v9766_v4  ;;  %v9823_v54 = vld [vmem:[%s14454_s1 + $0x17a4] ss:$16 sps:$4 sm:$0xff]   ;;  %v9818_v4 = vld [vmem:[%s14454_s1 + $0x15a0] ss:$16 sps:$4 sm:$0xff]  }
 0x150   : > { %7035 = vmatprep.subr.bf16.mxu1 %v9769_v6  ;;  %7022 = vmatprep.mubr.bf16.mxu0 %v12037_v56  ;;  %v9821_v6 = vld [vmem:[%s14454_s1 + $0x17a0] ss:$16 sps:$4 sm:$0xff]  }
 0x151   : > { %7065 = vmatprep.mubr.bf16.mxu1 %v12041_v57 }
 0x152   : > { %6993 = vmatpush1.bf16.msra.mxu0 %v9764_v7  ;;  %v9826_v7 = vld [vmem:[%s14454_s1 + $0x1584] ss:$16 sps:$4 sm:$0xff]  }
 0x153   : > { %7036 = vmatpush1.bf16.msra.mxu1 %v9767_v12  ;;  %6994 = vmatprep.subr.bf16.mxu0 %v9772_v58  ;;  %v9829_v12 = vld [vmem:[%s14454_s1 + $0x1784] ss:$16 sps:$4 sm:$0xff]   ;;  %v9824_v58 = vld [vmem:[%s14454_s1 + $0x1580] ss:$16 sps:$4 sm:$0xff]  }
 0x154   : > { %7037 = vmatprep.subr.bf16.mxu1 %v9775_v59  ;;  %v9827_v59 = vld [vmem:[%s14454_s1 + $0x1780] ss:$16 sps:$4 sm:$0xff]  }
 0x156   : > { %6995 = vmatpush1.bf16.msra.mxu0 %v9770_v60  ;;  %v9832_v60 = vld [vmem:[%s14454_s1 + $0x1564] ss:$16 sps:$4 sm:$0xff]  }
 0x157   : > { %7038 = vmatpush1.bf16.msra.mxu1 %v9773_v61  ;;  %6996 = vmatprep.subr.bf16.mxu0 %v9778_v62  ;;  %v9835_v61 = vld [vmem:[%s14454_s1 + $0x1764] ss:$16 sps:$4 sm:$0xff]   ;;  %v9830_v62 = vld [vmem:[%s14454_s1 + $0x1560] ss:$16 sps:$4 sm:$0xff]  }
 0x158   : > { %7039 = vmatprep.subr.bf16.mxu1 %v9781_v63  ;;  %v9833_v63 = vld [vmem:[%s14454_s1 + $0x1760] ss:$16 sps:$4 sm:$0xff]  }
 0x15a   : > { %6997 = vmatpush1.bf16.msra.mxu0 %v9776_v0  ;;  %v9838_v0 = vld [vmem:[%s14454_s1 + $0x1544] ss:$16 sps:$4 sm:$0xff]  }
 0x15b   : > { %7040 = vmatpush1.bf16.msra.mxu1 %v9779_v1  ;;  %6998 = vmatprep.subr.bf16.mxu0 %v9784_v2  ;;  %v9841_v1 = vld [vmem:[%s14454_s1 + $0x1744] ss:$16 sps:$4 sm:$0xff]   ;;  %v9836_v2 = vld [vmem:[%s14454_s1 + $0x1540] ss:$16 sps:$4 sm:$0xff]  }
 0x15c   : > { %7041 = vmatprep.subr.bf16.mxu1 %v9787_v3  ;;  %v9839_v3 = vld [vmem:[%s14454_s1 + $0x1740] ss:$16 sps:$4 sm:$0xff]  }
 0x15e   : > { %6999 = vmatpush1.bf16.msra.mxu0 %v9782_v5  ;;  %v9844_v5 = vld [vmem:[%s14454_s1 + $0x1524] ss:$16 sps:$4 sm:$0xff]  }
 0x15f   : > { %7042 = vmatpush1.bf16.msra.mxu1 %v9785_v13  ;;  %7000 = vmatprep.subr.bf16.mxu0 %v9790_v14  ;;  %v9847_v13 = vld [vmem:[%s14454_s1 + $0x1724] ss:$16 sps:$4 sm:$0xff]   ;;  %v9842_v14 = vld [vmem:[%s14454_s1 + $0x1520] ss:$16 sps:$4 sm:$0xff]  }
 0x160   : > { %7043 = vmatprep.subr.bf16.mxu1 %v9793_v44  ;;  %v9845_v44 = vld [vmem:[%s14454_s1 + $0x1720] ss:$16 sps:$4 sm:$0xff]  }
 0x162   : > { %7001 = vmatpush1.bf16.msra.mxu0 %v9788_v50  ;;  %v9850_v50 = vld [vmem:[%s14454_s1 + $0x1504] ss:$16 sps:$4 sm:$0xff]  }
 0x163   : > { %7044 = vmatpush1.bf16.msra.mxu1 %v9791_v15  ;;  %7002 = vmatprep.subr.bf16.mxu0 %v9796_v16  ;;  %v9853_v15 = vld [vmem:[%s14454_s1 + $0x1704] ss:$16 sps:$4 sm:$0xff]   ;;  %v9848_v16 = vld [vmem:[%s14454_s1 + $0x1500] ss:$16 sps:$4 sm:$0xff]  }
 0x164   : > { %7045 = vmatprep.subr.bf16.mxu1 %v9799_v17  ;;  %v9851_v17 = vld [vmem:[%s14454_s1 + $0x1700] ss:$16 sps:$4 sm:$0xff]  }
 0x166   : > { %7003 = vmatpush1.bf16.msra.mxu0 %v9794_v18  ;;  %v9856_v18 = vld [vmem:[%s14454_s1 + $0x18e4] ss:$16 sps:$4 sm:$0xff]  }
 0x167   : > { %7046 = vmatpush1.bf16.msra.mxu1 %v9797_v19  ;;  %7004 = vmatprep.subr.bf16.mxu0 %v9802_v22  ;;  %v9859_v19 = vld [vmem:[%s14454_s1 + $0x1ae4] ss:$16 sps:$4 sm:$0xff]  }
 0x168   : > { %7047 = vmatprep.subr.bf16.mxu1 %v9805_v23  ;;  %v12222_v22 = vld [vmem:[%s11027_s11 + $0x60] sm:$0xff] }
 0x169   : > { %v9854_v23 = vld [vmem:[%s14454_s1 + $0x18e0] ss:$16 sps:$4 sm:$0xff]  }
 0x16a   : > { %7005 = vmatpush1.bf16.msra.mxu0 %v9800_v24  ;;  %v12229_v24 = vcombine.low %v11998_v40, %v12012_v52  ;;  %v9862_v40 = vld [vmem:[%s14454_s1 + $0x18c4] ss:$16 sps:$4 sm:$0xff]  }
 0x16b   : > { %7048 = vmatpush1.bf16.msra.mxu1 %v9803_v25  ;;  %7006 = vmatprep.subr.bf16.mxu0 %v9808_v26  ;;  %v12233_v25 = vcombine.low %v12015_v28, %v12018_v31  ;;  %v12236_v26 = vld [vmem:[%s11027_s11 + $0xe0] sm:$0xff] }
 0x16c   : > { %7049 = vmatprep.subr.bf16.mxu1 %v9811_v27  ;;  %v12239_v27 = vld [vmem:[%s11027_s11 + $0x68] sm:$0xff]  ;;  %v9865_v52 = vld [vmem:[%s14454_s1 + $0x1ac4] ss:$16 sps:$4 sm:$0xff]   ;;  %v9860_v28 = vld [vmem:[%s14454_s1 + $0x18c0] ss:$16 sps:$4 sm:$0xff]  }
 0x16d   : > { %14466 = vst [vmem:[#allocation2_spill] sm:$0xff] %v12233_v25  ;;  %v9863_v31 = vld [vmem:[%s14454_s1 + $0x1ac0] ss:$16 sps:$4 sm:$0xff]  }
 0x16e   : > { %7007 = vmatpush2.bf16.msra.mxu0 %v9806_v32  ;;  %v12242_v32 = vld [vmem:[%s11027_s11 + $0xe8] sm:$0xff] }
 0x16f   : > { %7050 = vmatpush2.bf16.msra.mxu1 %v9809_v34  ;;  %7008 = vmatprep.subr.bf16.mxu0 %v9814_v36  ;;  %v9857_v34 = vld [vmem:[%s14454_s1 + $0x1ae0] ss:$16 sps:$4 sm:$0xff]   ;;  %v12261_v36 = vcombine.high %v12222_v22, %v12236_v26 }
 0x170   : > { %7051 = vmatprep.subr.bf16.mxu1 %v9817_v37  ;;  %v12265_v37 = vcombine.high %v12239_v27, %v12242_v32 }
 0x171   : > { %14467 = vst [vmem:[#allocation3_spill] sm:$0xff] %v12261_v36 }
 0x172   : > { %7009 = vmatpush2.bf16.msra.mxu0 %v9812_v38  ;;  %14468 = vst [vmem:[#allocation4_spill] sm:$0xff] %v12265_v37  ;;  %v9868_v38 = vld [vmem:[%s14454_s1 + $0x18a4] ss:$16 sps:$4 sm:$0xff]  }
 0x173   : > { %7052 = vmatpush2.bf16.msra.mxu1 %v9815_v39  ;;  %7010 = vmatprep.subr.bf16.mxu0 %v9820_v42  ;;  %v9871_v39 = vld [vmem:[%s14454_s1 + $0x1aa4] ss:$16 sps:$4 sm:$0xff]   ;;  %v9866_v42 = vld [vmem:[%s14454_s1 + $0x18a0] ss:$16 sps:$4 sm:$0xff]  }
 0x174   : > { %7053 = vmatprep.subr.bf16.mxu1 %v9823_v54  ;;  %v9869_v54 = vld [vmem:[%s14454_s1 + $0x1aa0] ss:$16 sps:$4 sm:$0xff]  }
 0x176   : > { %7011 = vmatpush2.bf16.msra.mxu0 %v9818_v4  ;;  %v9874_v4 = vld [vmem:[%s14454_s1 + $0x1884] ss:$16 sps:$4 sm:$0xff]  }
 0x177   : > { %7054 = vmatpush2.bf16.msra.mxu1 %v9821_v6  ;;  %7012 = vmatprep.subr.bf16.mxu0 %v9826_v7  ;;  %v9877_v6 = vld [vmem:[%s14454_s1 + $0x1a84] ss:$16 sps:$4 sm:$0xff]   ;;  %v9872_v7 = vld [vmem:[%s14454_s1 + $0x1880] ss:$16 sps:$4 sm:$0xff]  }
 0x178   : > { %7055 = vmatprep.subr.bf16.mxu1 %v9829_v12  ;;  %v9875_v12 = vld [vmem:[%s14454_s1 + $0x1a80] ss:$16 sps:$4 sm:$0xff]  }
 0x17a   : > { %7013 = vmatpush2.bf16.msra.mxu0 %v9824_v58  ;;  %v9880_v58 = vld [vmem:[%s14454_s1 + $0x1864] ss:$16 sps:$4 sm:$0xff]  }
 0x17b   : > { %7056 = vmatpush2.bf16.msra.mxu1 %v9827_v59  ;;  %7014 = vmatprep.subr.bf16.mxu0 %v9832_v60  ;;  %v9883_v59 = vld [vmem:[%s14454_s1 + $0x1a64] ss:$16 sps:$4 sm:$0xff]   ;;  %v9878_v60 = vld [vmem:[%s14454_s1 + $0x1860] ss:$16 sps:$4 sm:$0xff]  }
 0x17c   : > { %7057 = vmatprep.subr.bf16.mxu1 %v9835_v61  ;;  %v9881_v61 = vld [vmem:[%s14454_s1 + $0x1a60] ss:$16 sps:$4 sm:$0xff]  }
 0x17e   : > { %7015 = vmatpush2.bf16.msra.mxu0 %v9830_v62  ;;  %v9886_v62 = vld [vmem:[%s14454_s1 + $0x1844] ss:$16 sps:$4 sm:$0xff]  }
 0x17f   : > { %7058 = vmatpush2.bf16.msra.mxu1 %v9833_v63  ;;  %7016 = vmatprep.subr.bf16.mxu0 %v9838_v0  ;;  %v9889_v63 = vld [vmem:[%s14454_s1 + $0x1a44] ss:$16 sps:$4 sm:$0xff]   ;;  %v9884_v0 = vld [vmem:[%s14454_s1 + $0x1840] ss:$16 sps:$4 sm:$0xff]  }
 0x180   : > { %7059 = vmatprep.subr.bf16.mxu1 %v9841_v1  ;;  %v9887_v1 = vld [vmem:[%s14454_s1 + $0x1a40] ss:$16 sps:$4 sm:$0xff]  }
 0x182   : > { %7017 = vmatpush2.bf16.msra.mxu0 %v9836_v2  ;;  %v9892_v2 = vld [vmem:[%s14454_s1 + $0x1824] ss:$16 sps:$4 sm:$0xff]  }
 0x183   : > { %7060 = vmatpush2.bf16.msra.mxu1 %v9839_v3  ;;  %7018 = vmatprep.subr.bf16.mxu0 %v9844_v5  ;;  %v9895_v3 = vld [vmem:[%s14454_s1 + $0x1a24] ss:$16 sps:$4 sm:$0xff]   ;;  %v9890_v5 = vld [vmem:[%s14454_s1 + $0x1820] ss:$16 sps:$4 sm:$0xff]  }
 0x184   : > { %7061 = vmatprep.subr.bf16.mxu1 %v9847_v13  ;;  %v9893_v13 = vld [vmem:[%s14454_s1 + $0x1a20] ss:$16 sps:$4 sm:$0xff]  }
 0x186   : > { %7019 = vmatpush2.bf16.msra.mxu0 %v9842_v14  ;;  %v9898_v14 = vld [vmem:[%s14454_s1 + $0x1804] ss:$16 sps:$4 sm:$0xff]  }
 0x187   : > { %7062 = vmatpush2.bf16.msra.mxu1 %v9845_v44  ;;  %7020 = vmatprep.subr.bf16.mxu0 %v9850_v50  ;;  %v9901_v44 = vld [vmem:[%s14454_s1 + $0x1a04] ss:$16 sps:$4 sm:$0xff]   ;;  %v9896_v50 = vld [vmem:[%s14454_s1 + $0x1800] ss:$16 sps:$4 sm:$0xff]  }
 0x188   : > { %7063 = vmatprep.subr.bf16.mxu1 %v9853_v15  ;;  %v9899_v15 = vld [vmem:[%s14454_s1 + $0x1a00] ss:$16 sps:$4 sm:$0xff]  }
 0x18a   : > { %7021 = vmatpush2.bf16.msra.mxu0 %v9848_v16  ;;  %v9904_v16 = vld [vmem:[%s14454_s1 + $0x19e4] ss:$16 sps:$4 sm:$0xff]  }
 0x18b   : > { %7064 = vmatpush2.bf16.msra.mxu1 %v9851_v17  ;;  %7076 = vmatprep.subr.bf16.mxu0 %v9856_v18  ;;  %v9907_v17 = vld [vmem:[%s14454_s1 + $0x1be4] ss:$16 sps:$4 sm:$0xff]   ;;  %v9902_v18 = vld [vmem:[%s14454_s1 + $0x19e0] ss:$16 sps:$4 sm:$0xff]  }
 0x18c   : > { %7119 = vmatprep.subr.bf16.mxu1 %v9859_v19  ;;  %v9905_v19 = vld [vmem:[%s14454_s1 + $0x1be0] ss:$16 sps:$4 sm:$0xff]  }
 0x18d   : > { %7023 = vmatmul.mubr.bf16.vlgmr.msra.gmra.mxu0 %v12229_v24 }
 0x18e   : > { %7066 = vmatmul.mubr.bf16.vlgmr.msra.gmra.mxu1 %v12233_v25  ;;  %7077 = vmatpush1.bf16.msra.mxu0 %v9854_v23  ;;  %v9910_v23 = vld [vmem:[%s14454_s1 + $0x19c4] ss:$16 sps:$4 sm:$0xff]  }
 0x18f   : > { %7120 = vmatpush1.bf16.msra.mxu1 %v9857_v34  ;;  %7078 = vmatprep.subr.bf16.mxu0 %v9862_v40  ;;  %v9913_v34 = vld [vmem:[%s14454_s1 + $0x1bc4] ss:$16 sps:$4 sm:$0xff]   ;;  %v9908_v40 = vld [vmem:[%s14454_s1 + $0x19c0] ss:$16 sps:$4 sm:$0xff]  }
 0x190   : > { %7121 = vmatprep.subr.bf16.mxu1 %v9865_v52  ;;  %7108 = vmatprep.mubr.bf16.mxu0 %v12261_v36  ;;  %v9911_v52 = vld [vmem:[%s14454_s1 + $0x1bc0] ss:$16 sps:$4 sm:$0xff]  }
 0x191   : > { %7151 = vmatprep.mubr.bf16.mxu1 %v12265_v37 }
 0x192   : > { %7079 = vmatpush1.bf16.msra.mxu0 %v9860_v28  ;;  %v9916_v28 = vld [vmem:[%s14454_s1 + $0x19a4] ss:$16 sps:$4 sm:$0xff]  }
 0x193   : > { %7122 = vmatpush1.bf16.msra.mxu1 %v9863_v31  ;;  %7080 = vmatprep.subr.bf16.mxu0 %v9868_v38  ;;  %v9919_v31 = vld [vmem:[%s14454_s1 + $0x1ba4] ss:$16 sps:$4 sm:$0xff]   ;;  %v9914_v38 = vld [vmem:[%s14454_s1 + $0x19a0] ss:$16 sps:$4 sm:$0xff]  }
 0x194   : > { %7123 = vmatprep.subr.bf16.mxu1 %v9871_v39  ;;  %v9917_v39 = vld [vmem:[%s14454_s1 + $0x1ba0] ss:$16 sps:$4 sm:$0xff]  }
 0x196   : > { %7081 = vmatpush1.bf16.msra.mxu0 %v9866_v42  ;;  %v9922_v42 = vld [vmem:[%s14454_s1 + $0x1984] ss:$16 sps:$4 sm:$0xff]  }
 0x197   : > { %7124 = vmatpush1.bf16.msra.mxu1 %v9869_v54  ;;  %7082 = vmatprep.subr.bf16.mxu0 %v9874_v4  ;;  %v9925_v54 = vld [vmem:[%s14454_s1 + $0x1b84] ss:$16 sps:$4 sm:$0xff]   ;;  %v9920_v4 = vld [vmem:[%s14454_s1 + $0x1980] ss:$16 sps:$4 sm:$0xff]  }
 0x198   : > { %7125 = vmatprep.subr.bf16.mxu1 %v9877_v6  ;;  %v9923_v6 = vld [vmem:[%s14454_s1 + $0x1b80] ss:$16 sps:$4 sm:$0xff]  }
 0x19a   : > { %7083 = vmatpush1.bf16.msra.mxu0 %v9872_v7  ;;  %v9928_v7 = vld [vmem:[%s14454_s1 + $0x1964] ss:$16 sps:$4 sm:$0xff]  }
 0x19b   : > { %7126 = vmatpush1.bf16.msra.mxu1 %v9875_v12  ;;  %7084 = vmatprep.subr.bf16.mxu0 %v9880_v58  ;;  %v9931_v12 = vld [vmem:[%s14454_s1 + $0x1b64] ss:$16 sps:$4 sm:$0xff]   ;;  %v9926_v58 = vld [vmem:[%s14454_s1 + $0x1960] ss:$16 sps:$4 sm:$0xff]  }
 0x19c   : > { %7127 = vmatprep.subr.bf16.mxu1 %v9883_v59  ;;  %v9929_v59 = vld [vmem:[%s14454_s1 + $0x1b60] ss:$16 sps:$4 sm:$0xff]  }
 0x19e   : > { %7085 = vmatpush1.bf16.msra.mxu0 %v9878_v60  ;;  %v9934_v60 = vld [vmem:[%s14454_s1 + $0x1944] ss:$16 sps:$4 sm:$0xff]  }
 0x19f   : > { %7128 = vmatpush1.bf16.msra.mxu1 %v9881_v61  ;;  %7086 = vmatprep.subr.bf16.mxu0 %v9886_v62  ;;  %v9937_v61 = vld [vmem:[%s14454_s1 + $0x1b44] ss:$16 sps:$4 sm:$0xff]   ;;  %v9932_v62 = vld [vmem:[%s14454_s1 + $0x1940] ss:$16 sps:$4 sm:$0xff]  }
 0x1a0   : > { %7129 = vmatprep.subr.bf16.mxu1 %v9889_v63  ;;  %v9935_v63 = vld [vmem:[%s14454_s1 + $0x1b40] ss:$16 sps:$4 sm:$0xff]  }
 0x1a2   : > { %7087 = vmatpush1.bf16.msra.mxu0 %v9884_v0  ;;  %v9940_v0 = vld [vmem:[%s14454_s1 + $0x1924] ss:$16 sps:$4 sm:$0xff]  }
 0x1a3   : > { %7130 = vmatpush1.bf16.msra.mxu1 %v9887_v1  ;;  %7088 = vmatprep.subr.bf16.mxu0 %v9892_v2  ;;  %v9943_v1 = vld [vmem:[%s14454_s1 + $0x1b24] ss:$16 sps:$4 sm:$0xff]   ;;  %v9938_v2 = vld [vmem:[%s14454_s1 + $0x1920] ss:$16 sps:$4 sm:$0xff]  }
 0x1a4   : > { %7131 = vmatprep.subr.bf16.mxu1 %v9895_v3  ;;  %v9941_v3 = vld [vmem:[%s14454_s1 + $0x1b20] ss:$16 sps:$4 sm:$0xff]  }
 0x1a6   : > { %7089 = vmatpush1.bf16.msra.mxu0 %v9890_v5  ;;  %v9946_v5 = vld [vmem:[%s14454_s1 + $0x1904] ss:$16 sps:$4 sm:$0xff]  }
 0x1a7   : > { %7132 = vmatpush1.bf16.msra.mxu1 %v9893_v13  ;;  %7090 = vmatprep.subr.bf16.mxu0 %v9898_v14  ;;  %v9949_v13 = vld [vmem:[%s14454_s1 + $0x1b04] ss:$16 sps:$4 sm:$0xff]   ;;  %v9944_v14 = vld [vmem:[%s14454_s1 + $0x1900] ss:$16 sps:$4 sm:$0xff]  }
 0x1a8   : > { %7133 = vmatprep.subr.bf16.mxu1 %v9901_v44  ;;  %v9947_v44 = vld [vmem:[%s14454_s1 + $0x1b00] ss:$16 sps:$4 sm:$0xff]  }
 0x1aa   : > { %7091 = vmatpush1.bf16.msra.mxu0 %v9896_v50  ;;  %v9952_v50 = vld [vmem:[%s14454_s1 + $0x1ce4] ss:$16 sps:$4 sm:$0xff]  }
 0x1ab   : > { %7134 = vmatpush1.bf16.msra.mxu1 %v9899_v15  ;;  %7092 = vmatprep.subr.bf16.mxu0 %v9904_v16  ;;  %v9955_v15 = vld [vmem:[%s14454_s1 + $0x1ee4] ss:$16 sps:$4 sm:$0xff]  }
 0x1ac   : > { %7135 = vmatprep.subr.bf16.mxu1 %v9907_v17  ;;  %v12446_v16 = vld [vmem:[%s11027_s11 + $0x70] sm:$0xff] }
 0x1ad   : > { %v12449_v17 = vld [vmem:[%s11027_s11 + $0xf0] sm:$0xff] }
 0x1ae   : > { %7093 = vmatpush2.bf16.msra.mxu0 %v9902_v18  ;;  %v12452_v18 = vld [vmem:[%s11027_s11 + $0x78] sm:$0xff] }
 0x1af   : > { %7136 = vmatpush2.bf16.msra.mxu1 %v9905_v19  ;;  %7094 = vmatprep.subr.bf16.mxu0 %v9910_v23  ;;  %v12455_v19 = vld [vmem:[%s11027_s11 + $0xf8] sm:$0xff]  ;;  %v9950_v23 = vld [vmem:[%s14454_s1 + $0x1ce0] ss:$16 sps:$4 sm:$0xff]  }
 0x1b0   : > { %7137 = vmatprep.subr.bf16.mxu1 %v9913_v34  ;;  %v9953_v34 = vld [vmem:[%s14454_s1 + $0x1ee0] ss:$16 sps:$4 sm:$0xff]  }
 0x1b2   : > { %7095 = vmatpush2.bf16.msra.mxu0 %v9908_v40  ;;  %v12465_v40 = vcombine.low %v12222_v22, %v12236_v26  ;;  %v9956_v22 = vld [vmem:[%s14454_s1 + $0x1cc0] ss:$16 sps:$4 sm:$0xff]  }
 0x1b3   : > { %7138 = vmatpush2.bf16.msra.mxu1 %v9911_v52  ;;  %7096 = vmatprep.subr.bf16.mxu0 %v9916_v28  ;;  %v12469_v52 = vcombine.low %v12239_v27, %v12242_v32  ;;  %v9958_v28 = vld [vmem:[%s14454_s1 + $0x1cc4] ss:$16 sps:$4 sm:$0xff]   ;;  %v9959_v26 = vld [vmem:[%s14454_s1 + $0x1ec0] ss:$16 sps:$4 sm:$0xff]   ;;  %v12485_v27 = vcombine.high %v12446_v16, %v12449_v17  ;;  %v12489_v32 = vcombine.high %v12452_v18, %v12455_v19 }
 0x1b4   : > { %7139 = vmatprep.subr.bf16.mxu1 %v9919_v31  ;;  %14469 = vst [vmem:[#allocation5_spill] sm:$0xff] %v12465_v40  ;;  %v9961_v31 = vld [vmem:[%s14454_s1 + $0x1ec4] ss:$16 sps:$4 sm:$0xff]  }
 0x1b5   : > { %14470 = vst [vmem:[#allocation6_spill] sm:$0xff] %v12469_v52  ;;  %14471 = vst [vmem:[#allocation7_spill] sm:$0xff] %v12485_v27 }
 0x1b6   : > { %7097 = vmatpush2.bf16.msra.mxu0 %v9914_v38  ;;  %14472 = vst [vmem:[#allocation8_spill] sm:$0xff] %v12489_v32  ;;  %v9964_v38 = vld [vmem:[%s14454_s1 + $0x1ca4] ss:$16 sps:$4 sm:$0xff]  }
 0x1b7   : > { %7140 = vmatpush2.bf16.msra.mxu1 %v9917_v39  ;;  %7098 = vmatprep.subr.bf16.mxu0 %v9922_v42  ;;  %v9967_v39 = vld [vmem:[%s14454_s1 + $0x1ea4] ss:$16 sps:$4 sm:$0xff]   ;;  %v9962_v42 = vld [vmem:[%s14454_s1 + $0x1ca0] ss:$16 sps:$4 sm:$0xff]  }
 0x1b8   : > { %7141 = vmatprep.subr.bf16.mxu1 %v9925_v54  ;;  %v9965_v54 = vld [vmem:[%s14454_s1 + $0x1ea0] ss:$16 sps:$4 sm:$0xff]  }
 0x1ba   : > { %7099 = vmatpush2.bf16.msra.mxu0 %v9920_v4  ;;  %v9970_v4 = vld [vmem:[%s14454_s1 + $0x1c84] ss:$16 sps:$4 sm:$0xff]  }
 0x1bb   : > { %7142 = vmatpush2.bf16.msra.mxu1 %v9923_v6  ;;  %7100 = vmatprep.subr.bf16.mxu0 %v9928_v7  ;;  %v9973_v6 = vld [vmem:[%s14454_s1 + $0x1e84] ss:$16 sps:$4 sm:$0xff]   ;;  %v9968_v7 = vld [vmem:[%s14454_s1 + $0x1c80] ss:$16 sps:$4 sm:$0xff]  }
 0x1bc   : > { %7143 = vmatprep.subr.bf16.mxu1 %v9931_v12  ;;  %v9971_v12 = vld [vmem:[%s14454_s1 + $0x1e80] ss:$16 sps:$4 sm:$0xff]  }
 0x1be   : > { %7101 = vmatpush2.bf16.msra.mxu0 %v9926_v58  ;;  %v9976_v58 = vld [vmem:[%s14454_s1 + $0x1c64] ss:$16 sps:$4 sm:$0xff]  }
 0x1bf   : > { %7144 = vmatpush2.bf16.msra.mxu1 %v9929_v59  ;;  %7102 = vmatprep.subr.bf16.mxu0 %v9934_v60  ;;  %v9979_v59 = vld [vmem:[%s14454_s1 + $0x1e64] ss:$16 sps:$4 sm:$0xff]   ;;  %v9974_v60 = vld [vmem:[%s14454_s1 + $0x1c60] ss:$16 sps:$4 sm:$0xff]  }
 0x1c0   : > { %7145 = vmatprep.subr.bf16.mxu1 %v9937_v61  ;;  %v9977_v61 = vld [vmem:[%s14454_s1 + $0x1e60] ss:$16 sps:$4 sm:$0xff]  }
 0x1c2   : > { %7103 = vmatpush2.bf16.msra.mxu0 %v9932_v62  ;;  %v9982_v62 = vld [vmem:[%s14454_s1 + $0x1c44] ss:$16 sps:$4 sm:$0xff]  }
 0x1c3   : > { %7146 = vmatpush2.bf16.msra.mxu1 %v9935_v63  ;;  %7104 = vmatprep.subr.bf16.mxu0 %v9940_v0  ;;  %v9985_v63 = vld [vmem:[%s14454_s1 + $0x1e44] ss:$16 sps:$4 sm:$0xff]   ;;  %v9980_v0 = vld [vmem:[%s14454_s1 + $0x1c40] ss:$16 sps:$4 sm:$0xff]  }
 0x1c4   : > { %7147 = vmatprep.subr.bf16.mxu1 %v9943_v1  ;;  %v9983_v1 = vld [vmem:[%s14454_s1 + $0x1e40] ss:$16 sps:$4 sm:$0xff]  }
 0x1c6   : > { %7105 = vmatpush2.bf16.msra.mxu0 %v9938_v2  ;;  %v9988_v2 = vld [vmem:[%s14454_s1 + $0x1c24] ss:$16 sps:$4 sm:$0xff]  }
 0x1c7   : > { %7148 = vmatpush2.bf16.msra.mxu1 %v9941_v3  ;;  %7106 = vmatprep.subr.bf16.mxu0 %v9946_v5  ;;  %v9991_v3 = vld [vmem:[%s14454_s1 + $0x1e24] ss:$16 sps:$4 sm:$0xff]   ;;  %v9986_v5 = vld [vmem:[%s14454_s1 + $0x1c20] ss:$16 sps:$4 sm:$0xff]  }
 0x1c8   : > { %7149 = vmatprep.subr.bf16.mxu1 %v9949_v13  ;;  %v9989_v13 = vld [vmem:[%s14454_s1 + $0x1e20] ss:$16 sps:$4 sm:$0xff]  }
 0x1ca   : > { %7107 = vmatpush2.bf16.msra.mxu0 %v9944_v14  ;;  %v9994_v14 = vld [vmem:[%s14454_s1 + $0x1c04] ss:$16 sps:$4 sm:$0xff]  }
 0x1cb   : > { %7150 = vmatpush2.bf16.msra.mxu1 %v9947_v44  ;;  %7162 = vmatprep.subr.bf16.mxu0 %v9952_v50  ;;  %v9997_v44 = vld [vmem:[%s14454_s1 + $0x1e04] ss:$16 sps:$4 sm:$0xff]   ;;  %v9992_v50 = vld [vmem:[%s14454_s1 + $0x1c00] ss:$16 sps:$4 sm:$0xff]  }
 0x1cc   : > { %7205 = vmatprep.subr.bf16.mxu1 %v9955_v15  ;;  %v9995_v15 = vld [vmem:[%s14454_s1 + $0x1e00] ss:$16 sps:$4 sm:$0xff]  }
 0x1cd   : > { %7109 = vmatmul.mubr.bf16.vlgmr.msra.gmra.mxu0 %v12465_v40 }
 0x1ce   : > { %7152 = vmatmul.mubr.bf16.vlgmr.msra.gmra.mxu1 %v12469_v52  ;;  %7163 = vmatpush1.bf16.msra.mxu0 %v9950_v23  ;;  %v10000_v23 = vld [vmem:[%s14454_s1 + $0x1de4] ss:$16 sps:$4 sm:$0xff]  }
 0x1cf   : > { %7206 = vmatpush1.bf16.msra.mxu1 %v9953_v34  ;;  %7164 = vmatprep.subr.bf16.mxu0 %v9958_v28  ;;  %v10003_v34 = vld [vmem:[%s14454_s1 + $0x1fe4] ss:$16 sps:$4 sm:$0xff]   ;;  %v9998_v28 = vld [vmem:[%s14454_s1 + $0x1de0] ss:$16 sps:$4 sm:$0xff]  }
 0x1d0   : > { %7207 = vmatprep.subr.bf16.mxu1 %v9961_v31  ;;  %7194 = vmatprep.mubr.bf16.mxu0 %v12485_v27  ;;  %v10001_v31 = vld [vmem:[%s14454_s1 + $0x1fe0] ss:$16 sps:$4 sm:$0xff]  }
 0x1d1   : > { %7237 = vmatprep.mubr.bf16.mxu1 %v12489_v32 }
 0x1d2   : > { %7165 = vmatpush1.bf16.msra.mxu0 %v9956_v22  ;;  %v10006_v22 = vld [vmem:[%s14454_s1 + $0x1dc4] ss:$16 sps:$4 sm:$0xff]  }
 0x1d3   : > { %7208 = vmatpush1.bf16.msra.mxu1 %v9959_v26  ;;  %7166 = vmatprep.subr.bf16.mxu0 %v9964_v38  ;;  %v10009_v26 = vld [vmem:[%s14454_s1 + $0x1fc4] ss:$16 sps:$4 sm:$0xff]   ;;  %v10004_v38 = vld [vmem:[%s14454_s1 + $0x1dc0] ss:$16 sps:$4 sm:$0xff]  }
 0x1d4   : > { %7209 = vmatprep.subr.bf16.mxu1 %v9967_v39  ;;  %v10007_v39 = vld [vmem:[%s14454_s1 + $0x1fc0] ss:$16 sps:$4 sm:$0xff]  }
 0x1d6   : > { %7167 = vmatpush1.bf16.msra.mxu0 %v9962_v42  ;;  %v10012_v42 = vld [vmem:[%s14454_s1 + $0x1da4] ss:$16 sps:$4 sm:$0xff]  }
 0x1d7   : > { %7210 = vmatpush1.bf16.msra.mxu1 %v9965_v54  ;;  %7168 = vmatprep.subr.bf16.mxu0 %v9970_v4  ;;  %v10015_v54 = vld [vmem:[%s14454_s1 + $0x1fa4] ss:$16 sps:$4 sm:$0xff]   ;;  %v10010_v4 = vld [vmem:[%s14454_s1 + $0x1da0] ss:$16 sps:$4 sm:$0xff]  }
 0x1d8   : > { %7211 = vmatprep.subr.bf16.mxu1 %v9973_v6  ;;  %v10013_v6 = vld [vmem:[%s14454_s1 + $0x1fa0] ss:$16 sps:$4 sm:$0xff]  }
 0x1da   : > { %7169 = vmatpush1.bf16.msra.mxu0 %v9968_v7  ;;  %v10018_v7 = vld [vmem:[%s14454_s1 + $0x1d84] ss:$16 sps:$4 sm:$0xff]  }
 0x1db   : > { %7212 = vmatpush1.bf16.msra.mxu1 %v9971_v12  ;;  %7170 = vmatprep.subr.bf16.mxu0 %v9976_v58  ;;  %v10021_v12 = vld [vmem:[%s14454_s1 + $0x1f84] ss:$16 sps:$4 sm:$0xff]   ;;  %v10016_v58 = vld [vmem:[%s14454_s1 + $0x1d80] ss:$16 sps:$4 sm:$0xff]  }
 0x1dc   : > { %7213 = vmatprep.subr.bf16.mxu1 %v9979_v59  ;;  %v10019_v59 = vld [vmem:[%s14454_s1 + $0x1f80] ss:$16 sps:$4 sm:$0xff]  }
 0x1de   : > { %7171 = vmatpush1.bf16.msra.mxu0 %v9974_v60  ;;  %v10024_v60 = vld [vmem:[%s14454_s1 + $0x1d64] ss:$16 sps:$4 sm:$0xff]  }
 0x1df   : > { %7214 = vmatpush1.bf16.msra.mxu1 %v9977_v61  ;;  %7172 = vmatprep.subr.bf16.mxu0 %v9982_v62  ;;  %v10027_v61 = vld [vmem:[%s14454_s1 + $0x1f64] ss:$16 sps:$4 sm:$0xff]   ;;  %v10022_v62 = vld [vmem:[%s14454_s1 + $0x1d60] ss:$16 sps:$4 sm:$0xff]  }
 0x1e0   : > { %7215 = vmatprep.subr.bf16.mxu1 %v9985_v63  ;;  %v10025_v63 = vld [vmem:[%s14454_s1 + $0x1f60] ss:$16 sps:$4 sm:$0xff]  }
 0x1e2   : > { %7173 = vmatpush1.bf16.msra.mxu0 %v9980_v0  ;;  %v10030_v0 = vld [vmem:[%s14454_s1 + $0x1d44] ss:$16 sps:$4 sm:$0xff]  }
 0x1e3   : > { %7216 = vmatpush1.bf16.msra.mxu1 %v9983_v1  ;;  %7174 = vmatprep.subr.bf16.mxu0 %v9988_v2  ;;  %v10033_v1 = vld [vmem:[%s14454_s1 + $0x1f44] ss:$16 sps:$4 sm:$0xff]   ;;  %v10028_v2 = vld [vmem:[%s14454_s1 + $0x1d40] ss:$16 sps:$4 sm:$0xff]  }
 0x1e4   : > { %7217 = vmatprep.subr.bf16.mxu1 %v9991_v3  ;;  %v10031_v3 = vld [vmem:[%s14454_s1 + $0x1f40] ss:$16 sps:$4 sm:$0xff]  }
 0x1e6   : > { %7175 = vmatpush1.bf16.msra.mxu0 %v9986_v5  ;;  %v10036_v5 = vld [vmem:[%s14454_s1 + $0x1d24] ss:$16 sps:$4 sm:$0xff]  }
 0x1e7   : > { %7218 = vmatpush1.bf16.msra.mxu1 %v9989_v13  ;;  %7176 = vmatprep.subr.bf16.mxu0 %v9994_v14  ;;  %v10039_v13 = vld [vmem:[%s14454_s1 + $0x1f24] ss:$16 sps:$4 sm:$0xff]   ;;  %v10034_v14 = vld [vmem:[%s14454_s1 + $0x1d20] ss:$16 sps:$4 sm:$0xff]  }
 0x1e8   : > { %7219 = vmatprep.subr.bf16.mxu1 %v9997_v44  ;;  %v10037_v44 = vld [vmem:[%s14454_s1 + $0x1f20] ss:$16 sps:$4 sm:$0xff]  }
 0x1ea   : > { %7177 = vmatpush1.bf16.msra.mxu0 %v9992_v50  ;;  %v10042_v50 = vld [vmem:[%s14454_s1 + $0x1d04] ss:$16 sps:$4 sm:$0xff]  }
 0x1eb   : > { %7220 = vmatpush1.bf16.msra.mxu1 %v9995_v15  ;;  %7178 = vmatprep.subr.bf16.mxu0 %v10000_v23  ;;  %v10045_v15 = vld [vmem:[%s14454_s1 + $0x1f04] ss:$16 sps:$4 sm:$0xff]   ;;  %v10040_v23 = vld [vmem:[%s14454_s1 + $0x1d00] ss:$16 sps:$4 sm:$0xff]  }
 0x1ec   : > { %7221 = vmatprep.subr.bf16.mxu1 %v10003_v34  ;;  %v10043_v34 = vld [vmem:[%s14454_s1 + $0x1f00] ss:$16 sps:$4 sm:$0xff]  }
 0x1ee   : > { %7179 = vmatpush2.bf16.msra.mxu0 %v9998_v28  ;;  %v10048_v28 = vld [vmem:[%s14454_s1 + $0xec] ss:$16 sps:$4 sm:$0xff]  }
 0x1ef   : > { %7222 = vmatpush2.bf16.msra.mxu1 %v10001_v31  ;;  %7180 = vmatprep.subr.bf16.mxu0 %v10006_v22  ;;  %v10051_v31 = vld [vmem:[%s14454_s1 + $0x2ec] ss:$16 sps:$4 sm:$0xff]   ;;  %v10046_v22 = vld [vmem:[%s14454_s1 + $0xe8] ss:$16 sps:$4 sm:$0xff]  }
 0x1f0   : > { %7223 = vmatprep.subr.bf16.mxu1 %v10009_v26  ;;  %v10049_v26 = vld [vmem:[%s14454_s1 + $0x2e8] ss:$16 sps:$4 sm:$0xff]  }
 0x1f2   : > { %7181 = vmatpush2.bf16.msra.mxu0 %v10004_v38  ;;  %v12677_v38 = vcombine.low %v12446_v16, %v12449_v17  ;;  %v10052_v16 = vld [vmem:[%s14454_s1 + $0xc8] ss:$16 sps:$4 sm:$0xff]  }
 0x1f3   : > { %7224 = vmatpush2.bf16.msra.mxu1 %v10007_v39  ;;  %7182 = vmatprep.subr.bf16.mxu0 %v10012_v42  ;;  %v12681_v39 = vcombine.low %v12452_v18, %v12455_v19  ;;  %v10054_v42 = vld [vmem:[%s14454_s1 + $0xcc] ss:$16 sps:$4 sm:$0xff]   ;;  %v10055_v17 = vld [vmem:[%s14454_s1 + $0x2c8] ss:$16 sps:$4 sm:$0xff]  }
 0x1f4   : > { %7225 = vmatprep.subr.bf16.mxu1 %v10015_v54  ;;  %14473 = vst [vmem:[#allocation9_spill] sm:$0xff] %v12677_v38  ;;  %v10057_v54 = vld [vmem:[%s14454_s1 + $0x2cc] ss:$16 sps:$4 sm:$0xff]  }
 0x1f5   : > { %14474 = vst [vmem:[#allocation10_spill] sm:$0xff] %v12681_v39  ;;  %v10060_v18 = vld [vmem:[%s14454_s1 + $0xac] ss:$16 sps:$4 sm:$0xff]  }
 0x1f6   : > { %7183 = vmatpush2.bf16.msra.mxu0 %v10010_v4  ;;  %v10063_v19 = vld [vmem:[%s14454_s1 + $0x2ac] ss:$16 sps:$4 sm:$0xff]   ;;  %v10058_v4 = vld [vmem:[%s14454_s1 + $0xa8] ss:$16 sps:$4 sm:$0xff]  }
 0x1f7   : > { %7226 = vmatpush2.bf16.msra.mxu1 %v10013_v6  ;;  %7184 = vmatprep.subr.bf16.mxu0 %v10018_v7  ;;  %v10061_v6 = vld [vmem:[%s14454_s1 + $0x2a8] ss:$16 sps:$4 sm:$0xff]   ;;  %v10066_v7 = vld [vmem:[%s14454_s1 + $0x8c] ss:$16 sps:$4 sm:$0xff]  }
 0x1f8   : > { %7227 = vmatprep.subr.bf16.mxu1 %v10021_v12  ;;  %v10069_v12 = vld [vmem:[%s14454_s1 + $0x28c] ss:$16 sps:$4 sm:$0xff]  }
 0x1fa   : > { %7185 = vmatpush2.bf16.msra.mxu0 %v10016_v58  ;;  %v10072_v58 = vld [vmem:[%s14454_s1 + $0x6c] ss:$16 sps:$4 sm:$0xff]  }
 0x1fb   : > { %7228 = vmatpush2.bf16.msra.mxu1 %v10019_v59  ;;  %7186 = vmatprep.subr.bf16.mxu0 %v10024_v60  ;;  %v10075_v59 = vld [vmem:[%s14454_s1 + $0x26c] ss:$16 sps:$4 sm:$0xff]   ;;  %v10070_v60 = vld [vmem:[%s14454_s1 + $0x68] ss:$16 sps:$4 sm:$0xff]  }
 0x1fc   : > { %7229 = vmatprep.subr.bf16.mxu1 %v10027_v61  ;;  %v10073_v61 = vld [vmem:[%s14454_s1 + $0x268] ss:$16 sps:$4 sm:$0xff]  }
 0x1fe   : > { %7187 = vmatpush2.bf16.msra.mxu0 %v10022_v62  ;;  %v10078_v62 = vld [vmem:[%s14454_s1 + $0x4c] ss:$16 sps:$4 sm:$0xff]  }
 0x1ff   : > { %7230 = vmatpush2.bf16.msra.mxu1 %v10025_v63  ;;  %7188 = vmatprep.subr.bf16.mxu0 %v10030_v0  ;;  %v10081_v63 = vld [vmem:[%s14454_s1 + $0x24c] ss:$16 sps:$4 sm:$0xff]   ;;  %v10076_v0 = vld [vmem:[%s14454_s1 + $0x48] ss:$16 sps:$4 sm:$0xff]  }
 0x200   : > { %7231 = vmatprep.subr.bf16.mxu1 %v10033_v1  ;;  %v10079_v1 = vld [vmem:[%s14454_s1 + $0x248] ss:$16 sps:$4 sm:$0xff]  }
 0x202   : > { %7189 = vmatpush2.bf16.msra.mxu0 %v10028_v2  ;;  %v10084_v2 = vld [vmem:[%s14454_s1 + $0x2c] ss:$16 sps:$4 sm:$0xff]  }
 0x203   : > { %7232 = vmatpush2.bf16.msra.mxu1 %v10031_v3  ;;  %7190 = vmatprep.subr.bf16.mxu0 %v10036_v5  ;;  %v10087_v3 = vld [vmem:[%s14454_s1 + $0x22c] ss:$16 sps:$4 sm:$0xff]   ;;  %v10082_v5 = vld [vmem:[%s14454_s1 + $0x28] ss:$16 sps:$4 sm:$0xff]  }
 0x204   : > { %7233 = vmatprep.subr.bf16.mxu1 %v10039_v13  ;;  %v10085_v13 = vld [vmem:[%s14454_s1 + $0x228] ss:$16 sps:$4 sm:$0xff]  }
 0x206   : > { %7191 = vmatpush2.bf16.msra.mxu0 %v10034_v14  ;;  %v10090_v14 = vld [vmem:[%s14454_s1 + $0xc] ss:$16 sps:$4 sm:$0xff]  }
 0x207   : > { %7234 = vmatpush2.bf16.msra.mxu1 %v10037_v44  ;;  %7192 = vmatprep.subr.bf16.mxu0 %v10042_v50  ;;  %v10093_v44 = vld [vmem:[%s14454_s1 + $0x20c] ss:$16 sps:$4 sm:$0xff]   ;;  %v10088_v50 = vld [vmem:[%s14454_s1 + $0x8] ss:$16 sps:$4 sm:$0xff]  }
 0x208   : > { %7235 = vmatprep.subr.bf16.mxu1 %v10045_v15  ;;  %v10091_v15 = vld [vmem:[%s14454_s1 + $0x208] ss:$16 sps:$4 sm:$0xff]  }
 0x20a   : > { %7193 = vmatpush2.bf16.msra.mxu0 %v10040_v23  ;;  %v10096_v23 = vld [vmem:[%s14454_s1 + $0x1ec] ss:$16 sps:$4 sm:$0xff]  }
 0x20b   : > { %7236 = vmatpush2.bf16.msra.mxu1 %v10043_v34  ;;  %7248 = vmatprep.subr.bf16.mxu0 %v10048_v28  ;;  %v10099_v34 = vld [vmem:[%s14454_s1 + $0x3ec] ss:$16 sps:$4 sm:$0xff]   ;;  %v10094_v28 = vld [vmem:[%s14454_s1 + $0x1e8] ss:$16 sps:$4 sm:$0xff]  }
 0x20c   : > { %7291 = vmatprep.subr.bf16.mxu1 %v10051_v31  ;;  %v10097_v31 = vld [vmem:[%s14454_s1 + $0x3e8] ss:$16 sps:$4 sm:$0xff]  }
 0x20d   : > { %7195 = vmatmul.mubr.bf16.vlgmr.msra.gmra.mxu0 %v12677_v38 }
 0x20e   : > { %7238 = vmatmul.mubr.bf16.vlgmr.msra.gmra.mxu1 %v12681_v39  ;;  %7249 = vmatpush1.bf16.msra.mxu0 %v10046_v22  ;;  %v10102_v22 = vld [vmem:[%s14454_s1 + $0x1cc] ss:$16 sps:$4 sm:$0xff]  }
 0x20f   : > { %7292 = vmatpush1.bf16.msra.mxu1 %v10049_v26  ;;  %7250 = vmatprep.subr.bf16.mxu0 %v10054_v42  ;;  %v10105_v26 = vld [vmem:[%s14454_s1 + $0x3cc] ss:$16 sps:$4 sm:$0xff]   ;;  %v10100_v42 = vld [vmem:[%s14454_s1 + $0x1c8] ss:$16 sps:$4 sm:$0xff]  }
 0x210   : > { %7293 = vmatprep.subr.bf16.mxu1 %v10057_v54  ;;  %7280 = vmatprep.mubr.bf16.mxu0 %v11048_v53  ;;  %v10064_v53 = vld [vmem:[%s14454_s1 + $0x88] ss:$16 sps:$4 sm:$0xff]  }
 0x211   : > { %7323 = vmatprep.mubr.bf16.mxu1 %v11053_v55  ;;  %v10067_v55 = vld [vmem:[%s14454_s1 + $0x288] ss:$16 sps:$4 sm:$0xff]  }
 0x212   : > { %7251 = vmatpush1.bf16.msra.mxu0 %v10052_v16  ;;  %v10103_v54 = vld [vmem:[%s14454_s1 + $0x3c8] ss:$16 sps:$4 sm:$0xff]   ;;  %v10108_v16 = vld [vmem:[%s14454_s1 + $0x1ac] ss:$16 sps:$4 sm:$0xff]  }
 0x213   : > { %7294 = vmatpush1.bf16.msra.mxu1 %v10055_v17  ;;  %7252 = vmatprep.subr.bf16.mxu0 %v10060_v18  ;;  %v10111_v17 = vld [vmem:[%s14454_s1 + $0x3ac] ss:$16 sps:$4 sm:$0xff]   ;;  %v10106_v18 = vld [vmem:[%s14454_s1 + $0x1a8] ss:$16 sps:$4 sm:$0xff]  }
 0x214   : > { %7295 = vmatprep.subr.bf16.mxu1 %v10063_v19  ;;  %v10109_v19 = vld [vmem:[%s14454_s1 + $0x3a8] ss:$16 sps:$4 sm:$0xff]  }
 0x216   : > { %7253 = vmatpush1.bf16.msra.mxu0 %v10058_v4  ;;  %v10114_v4 = vld [vmem:[%s14454_s1 + $0x18c] ss:$16 sps:$4 sm:$0xff]  }
 0x217   : > { %7296 = vmatpush1.bf16.msra.mxu1 %v10061_v6  ;;  %7254 = vmatprep.subr.bf16.mxu0 %v10066_v7  ;;  %v10117_v6 = vld [vmem:[%s14454_s1 + $0x38c] ss:$16 sps:$4 sm:$0xff]   ;;  %v10112_v7 = vld [vmem:[%s14454_s1 + $0x188] ss:$16 sps:$4 sm:$0xff]  }
 0x218   : > { %7297 = vmatprep.subr.bf16.mxu1 %v10069_v12  ;;  %v10115_v12 = vld [vmem:[%s14454_s1 + $0x388] ss:$16 sps:$4 sm:$0xff]  }
 0x21a   : > { %7255 = vmatpush1.bf16.msra.mxu0 %v10064_v53  ;;  %v10120_v53 = vld [vmem:[%s14454_s1 + $0x16c] ss:$16 sps:$4 sm:$0xff]  }
 0x21b   : > { %7298 = vmatpush1.bf16.msra.mxu1 %v10067_v55  ;;  %7256 = vmatprep.subr.bf16.mxu0 %v10072_v58  ;;  %v10123_v55 = vld [vmem:[%s14454_s1 + $0x36c] ss:$16 sps:$4 sm:$0xff]   ;;  %v10118_v58 = vld [vmem:[%s14454_s1 + $0x168] ss:$16 sps:$4 sm:$0xff]  }
 0x21c   : > { %7299 = vmatprep.subr.bf16.mxu1 %v10075_v59  ;;  %v10121_v59 = vld [vmem:[%s14454_s1 + $0x368] ss:$16 sps:$4 sm:$0xff]  }
 0x21e   : > { %7257 = vmatpush1.bf16.msra.mxu0 %v10070_v60  ;;  %v10126_v60 = vld [vmem:[%s14454_s1 + $0x14c] ss:$16 sps:$4 sm:$0xff]  }
 0x21f   : > { %7300 = vmatpush1.bf16.msra.mxu1 %v10073_v61  ;;  %7258 = vmatprep.subr.bf16.mxu0 %v10078_v62  ;;  %v10129_v61 = vld [vmem:[%s14454_s1 + $0x34c] ss:$16 sps:$4 sm:$0xff]   ;;  %v10124_v62 = vld [vmem:[%s14454_s1 + $0x148] ss:$16 sps:$4 sm:$0xff]  }
 0x220   : > { %7301 = vmatprep.subr.bf16.mxu1 %v10081_v63  ;;  %v10127_v63 = vld [vmem:[%s14454_s1 + $0x348] ss:$16 sps:$4 sm:$0xff]  }
 0x222   : > { %7259 = vmatpush1.bf16.msra.mxu0 %v10076_v0  ;;  %v10132_v0 = vld [vmem:[%s14454_s1 + $0x12c] ss:$16 sps:$4 sm:$0xff]  }
 0x223   : > { %7302 = vmatpush1.bf16.msra.mxu1 %v10079_v1  ;;  %7260 = vmatprep.subr.bf16.mxu0 %v10084_v2  ;;  %v10135_v1 = vld [vmem:[%s14454_s1 + $0x32c] ss:$16 sps:$4 sm:$0xff]   ;;  %v10130_v2 = vld [vmem:[%s14454_s1 + $0x128] ss:$16 sps:$4 sm:$0xff]  }
 0x224   : > { %7303 = vmatprep.subr.bf16.mxu1 %v10087_v3  ;;  %v10133_v3 = vld [vmem:[%s14454_s1 + $0x328] ss:$16 sps:$4 sm:$0xff]  }
 0x226   : > { %7261 = vmatpush1.bf16.msra.mxu0 %v10082_v5  ;;  %v10138_v5 = vld [vmem:[%s14454_s1 + $0x10c] ss:$16 sps:$4 sm:$0xff]  }
 0x227   : > { %7304 = vmatpush1.bf16.msra.mxu1 %v10085_v13  ;;  %7262 = vmatprep.subr.bf16.mxu0 %v10090_v14  ;;  %v10141_v13 = vld [vmem:[%s14454_s1 + $0x30c] ss:$16 sps:$4 sm:$0xff]   ;;  %v10136_v14 = vld [vmem:[%s14454_s1 + $0x108] ss:$16 sps:$4 sm:$0xff]  }
 0x228   : > { %7305 = vmatprep.subr.bf16.mxu1 %v10093_v44  ;;  %v10139_v44 = vld [vmem:[%s14454_s1 + $0x308] ss:$16 sps:$4 sm:$0xff]  }
 0x22a   : > { %7263 = vmatpush1.bf16.msra.mxu0 %v10088_v50  ;;  %v10144_v50 = vld [vmem:[%s14454_s1 + $0x4ec] ss:$16 sps:$4 sm:$0xff]  }
 0x22b   : > { %7306 = vmatpush1.bf16.msra.mxu1 %v10091_v15  ;;  %7264 = vmatprep.subr.bf16.mxu0 %v10096_v23  ;;  %v10147_v15 = vld [vmem:[%s14454_s1 + $0x6ec] ss:$16 sps:$4 sm:$0xff]   ;;  %v10142_v23 = vld [vmem:[%s14454_s1 + $0x4e8] ss:$16 sps:$4 sm:$0xff]  }
 0x22c   : > { %7307 = vmatprep.subr.bf16.mxu1 %v10099_v34  ;;  %v10145_v34 = vld [vmem:[%s14454_s1 + $0x6e8] ss:$16 sps:$4 sm:$0xff]  }
 0x22e   : > { %7265 = vmatpush2.bf16.msra.mxu0 %v10094_v28  ;;  %v10150_v28 = vld [vmem:[%s14454_s1 + $0x4cc] ss:$16 sps:$4 sm:$0xff]  }
 0x22f   : > { %7308 = vmatpush2.bf16.msra.mxu1 %v10097_v31  ;;  %7266 = vmatprep.subr.bf16.mxu0 %v10102_v22  ;;  %v10153_v31 = vld [vmem:[%s14454_s1 + $0x6cc] ss:$16 sps:$4 sm:$0xff]   ;;  %v10148_v22 = vld [vmem:[%s14454_s1 + $0x4c8] ss:$16 sps:$4 sm:$0xff]  }
 0x230   : > { %7309 = vmatprep.subr.bf16.mxu1 %v10105_v26  ;;  %v10151_v26 = vld [vmem:[%s14454_s1 + $0x6c8] ss:$16 sps:$4 sm:$0xff]  }
 0x232   : > { %7267 = vmatpush2.bf16.msra.mxu0 %v10100_v42  ;;  %v10156_v42 = vld [vmem:[%s14454_s1 + $0x4ac] ss:$16 sps:$4 sm:$0xff]  }
 0x233   : > { %7310 = vmatpush2.bf16.msra.mxu1 %v10103_v54  ;;  %7268 = vmatprep.subr.bf16.mxu0 %v10108_v16  ;;  %v10159_v54 = vld [vmem:[%s14454_s1 + $0x6ac] ss:$16 sps:$4 sm:$0xff]   ;;  %v10154_v16 = vld [vmem:[%s14454_s1 + $0x4a8] ss:$16 sps:$4 sm:$0xff]  }
 0x234   : > { %7311 = vmatprep.subr.bf16.mxu1 %v10111_v17  ;;  %v10165_v17 = vld [vmem:[%s14454_s1 + $0x68c] ss:$16 sps:$4 sm:$0xff]  }
 0x236   : > { %7269 = vmatpush2.bf16.msra.mxu0 %v10106_v18  ;;  %v10160_v18 = vld [vmem:[%s14454_s1 + $0x488] ss:$16 sps:$4 sm:$0xff]  }
 0x237   : > { %7312 = vmatpush2.bf16.msra.mxu1 %v10109_v19  ;;  %7270 = vmatprep.subr.bf16.mxu0 %v10114_v4  ;;  %v10171_v19 = vld [vmem:[%s14454_s1 + $0x66c] ss:$16 sps:$4 sm:$0xff]   ;;  %v10166_v4 = vld [vmem:[%s14454_s1 + $0x468] ss:$16 sps:$4 sm:$0xff]  }
 0x238   : > { %7313 = vmatprep.subr.bf16.mxu1 %v10117_v6  ;;  %v10169_v6 = vld [vmem:[%s14454_s1 + $0x668] ss:$16 sps:$4 sm:$0xff]  }
 0x23a   : > { %7271 = vmatpush2.bf16.msra.mxu0 %v10112_v7  ;;  %v10174_v7 = vld [vmem:[%s14454_s1 + $0x44c] ss:$16 sps:$4 sm:$0xff]  }
 0x23b   : > { %7314 = vmatpush2.bf16.msra.mxu1 %v10115_v12  ;;  %7272 = vmatprep.subr.bf16.mxu0 %v10120_v53  ;;  %v10177_v12 = vld [vmem:[%s14454_s1 + $0x64c] ss:$16 sps:$4 sm:$0xff]   ;;  %v10172_v53 = vld [vmem:[%s14454_s1 + $0x448] ss:$16 sps:$4 sm:$0xff]  }
 0x23c   : > { %7315 = vmatprep.subr.bf16.mxu1 %v10123_v55  ;;  %v10175_v55 = vld [vmem:[%s14454_s1 + $0x648] ss:$16 sps:$4 sm:$0xff]  }
 0x23e   : > { %7273 = vmatpush2.bf16.msra.mxu0 %v10118_v58  ;;  %v10180_v58 = vld [vmem:[%s14454_s1 + $0x42c] ss:$16 sps:$4 sm:$0xff]  }
 0x23f   : > { %7316 = vmatpush2.bf16.msra.mxu1 %v10121_v59  ;;  %7274 = vmatprep.subr.bf16.mxu0 %v10126_v60  ;;  %v10183_v59 = vld [vmem:[%s14454_s1 + $0x62c] ss:$16 sps:$4 sm:$0xff]   ;;  %v10178_v60 = vld [vmem:[%s14454_s1 + $0x428] ss:$16 sps:$4 sm:$0xff]  }
 0x240   : > { %7317 = vmatprep.subr.bf16.mxu1 %v10129_v61  ;;  %v10181_v61 = vld [vmem:[%s14454_s1 + $0x628] ss:$16 sps:$4 sm:$0xff]  }
 0x242   : > { %7275 = vmatpush2.bf16.msra.mxu0 %v10124_v62  ;;  %v10186_v62 = vld [vmem:[%s14454_s1 + $0x40c] ss:$16 sps:$4 sm:$0xff]  }
 0x243   : > { %7318 = vmatpush2.bf16.msra.mxu1 %v10127_v63  ;;  %7276 = vmatprep.subr.bf16.mxu0 %v10132_v0  ;;  %v10189_v63 = vld [vmem:[%s14454_s1 + $0x60c] ss:$16 sps:$4 sm:$0xff]   ;;  %v10184_v0 = vld [vmem:[%s14454_s1 + $0x408] ss:$16 sps:$4 sm:$0xff]  }
 0x244   : > { %7319 = vmatprep.subr.bf16.mxu1 %v10135_v1  ;;  %v10187_v1 = vld [vmem:[%s14454_s1 + $0x608] ss:$16 sps:$4 sm:$0xff]  }
 0x246   : > { %7277 = vmatpush2.bf16.msra.mxu0 %v10130_v2  ;;  %v10192_v2 = vld [vmem:[%s14454_s1 + $0x5ec] ss:$16 sps:$4 sm:$0xff]  }
 0x247   : > { %7320 = vmatpush2.bf16.msra.mxu1 %v10133_v3  ;;  %7278 = vmatprep.subr.bf16.mxu0 %v10138_v5  ;;  %v10195_v3 = vld [vmem:[%s14454_s1 + $0x7ec] ss:$16 sps:$4 sm:$0xff]   ;;  %v10190_v5 = vld [vmem:[%s14454_s1 + $0x5e8] ss:$16 sps:$4 sm:$0xff]  }
 0x248   : > { %7321 = vmatprep.subr.bf16.mxu1 %v10141_v13  ;;  %v10193_v13 = vld [vmem:[%s14454_s1 + $0x7e8] ss:$16 sps:$4 sm:$0xff]  }
 0x24a   : > { %7279 = vmatpush2.bf16.msra.mxu0 %v10136_v14  ;;  %v12979_v14 = vpop.f32.mrf.mxu0 }
 0x24b   : > { %7322 = vmatpush2.bf16.msra.mxu1 %v10139_v44  ;;  %7334 = vmatprep.subr.bf16.mxu0 %v10144_v50  ;;  %v12981_v44 = vpop.f32.mrf.mxu1  ;;  %v10198_v50 = vld [vmem:[%s14454_s1 + $0x5cc] ss:$16 sps:$4 sm:$0xff]  }
 0x24c   : > { %7377 = vmatprep.subr.bf16.mxu1 %v10147_v15  ;;  %v10201_v15 = vld [vmem:[%s14454_s1 + $0x7cc] ss:$16 sps:$4 sm:$0xff]  }
 0x24d   : > { %7281 = vmatmul.mubr.bf16.vlgmr.msra.gmra.mxu0 %v11105_v8  ;;  %v10157_v8 = vld [vmem:[%s14454_s1 + $0x6a8] ss:$16 sps:$4 sm:$0xff]  }
 0x24e   : > { %7324 = vmatmul.mubr.bf16.vlgmr.msra.gmra.mxu1 %v11107_v9  ;;  %7335 = vmatpush1.bf16.msra.mxu0 %v10142_v23  ;;  %v10162_v9 = vld [vmem:[%s14454_s1 + $0x48c] ss:$16 sps:$4 sm:$0xff]   ;;  %v10196_v23 = vld [vmem:[%s14454_s1 + $0x5c8] ss:$16 sps:$4 sm:$0xff]  }
 0x24f   : > { %7378 = vmatpush1.bf16.msra.mxu1 %v10145_v34  ;;  %7336 = vmatprep.subr.bf16.mxu0 %v10150_v28  ;;  %v10199_v34 = vld [vmem:[%s14454_s1 + $0x7c8] ss:$16 sps:$4 sm:$0xff]   ;;  %v12995_v28 = vpop.f32.mrf.mxu0 }
 0x250   : > { %7379 = vmatprep.subr.bf16.mxu1 %v10153_v31  ;;  %7366 = vmatprep.mubr.bf16.mxu0 %v11206_v41  ;;  %v10163_v41 = vld [vmem:[%s14454_s1 + $0x688] ss:$16 sps:$4 sm:$0xff]   ;;  %v12997_v31 = vpop.f32.mrf.mxu1 }
 0x251   : > { %7409 = vmatprep.mubr.bf16.mxu1 %v11213_v43  ;;  %v10168_v43 = vld [vmem:[%s14454_s1 + $0x46c] ss:$16 sps:$4 sm:$0xff]  }
 0x252   : > { %7337 = vmatpush1.bf16.msra.mxu0 %v10148_v22  ;;  %v10204_v22 = vld [vmem:[%s14454_s1 + $0x5ac] ss:$16 sps:$4 sm:$0xff]  }
 0x253   : > { %7380 = vmatpush1.bf16.msra.mxu1 %v10151_v26  ;;  %7338 = vmatprep.subr.bf16.mxu0 %v10156_v42  ;;  %v10207_v26 = vld [vmem:[%s14454_s1 + $0x7ac] ss:$16 sps:$4 sm:$0xff]   ;;  %v10202_v42 = vld [vmem:[%s14454_s1 + $0x5a8] ss:$16 sps:$4 sm:$0xff]  }
 0x254   : > { %7381 = vmatprep.subr.bf16.mxu1 %v10159_v54  ;;  %v10205_v54 = vld [vmem:[%s14454_s1 + $0x7a8] ss:$16 sps:$4 sm:$0xff]  }
 0x256   : > { %7339 = vmatpush1.bf16.msra.mxu0 %v10154_v16  ;;  %v13011_v16 = vpop.f32.mrf.mxu0 }
 0x257   : > { %7382 = vmatpush1.bf16.msra.mxu1 %v10157_v8  ;;  %7340 = vmatprep.subr.bf16.mxu0 %v10162_v9  ;;  %v13013_v8 = vpop.f32.mrf.mxu1  ;;  %v10210_v9 = vld [vmem:[%s14454_s1 + $0x58c] ss:$16 sps:$4 sm:$0xff]  }
 0x258   : > { %7383 = vmatprep.subr.bf16.mxu1 %v10165_v17  ;;  %v10213_v17 = vld [vmem:[%s14454_s1 + $0x78c] ss:$16 sps:$4 sm:$0xff]  }
 0x25a   : > { %7341 = vmatpush1.bf16.msra.mxu0 %v10160_v18  ;;  %v10208_v18 = vld [vmem:[%s14454_s1 + $0x588] ss:$16 sps:$4 sm:$0xff]  }
 0x25b   : > { %7384 = vmatpush1.bf16.msra.mxu1 %v10163_v41  ;;  %7342 = vmatprep.subr.bf16.mxu0 %v10168_v43  ;;  %v10211_v41 = vld [vmem:[%s14454_s1 + $0x788] ss:$16 sps:$4 sm:$0xff]   ;;  %v13027_v43 = vpop.f32.mrf.mxu0 }
 0x25c   : > { %7385 = vmatprep.subr.bf16.mxu1 %v10171_v19  ;;  %v13029_v19 = vpop.f32.mrf.mxu1 }
 0x25e   : > { %7343 = vmatpush1.bf16.msra.mxu0 %v10166_v4  ;;  %v10216_v4 = vld [vmem:[%s14454_s1 + $0x56c] ss:$16 sps:$4 sm:$0xff]  }
 0x25f   : > { %7386 = vmatpush1.bf16.msra.mxu1 %v10169_v6  ;;  %7344 = vmatprep.subr.bf16.mxu0 %v10174_v7  ;;  %v10219_v6 = vld [vmem:[%s14454_s1 + $0x76c] ss:$16 sps:$4 sm:$0xff]   ;;  %v13037_v7 = vpop.f32.mrf.mxu0 }
 0x260   : > { %7387 = vmatprep.subr.bf16.mxu1 %v10177_v12  ;;  %v13039_v12 = vpop.f32.mrf.mxu1 }
 0x262   : > { %7345 = vmatpush1.bf16.msra.mxu0 %v10172_v53  ;;  %v10214_v53 = vld [vmem:[%s14454_s1 + $0x568] ss:$16 sps:$4 sm:$0xff]  }
 0x263   : > { %7388 = vmatpush1.bf16.msra.mxu1 %v10175_v55  ;;  %7346 = vmatprep.subr.bf16.mxu0 %v10180_v58  ;;  %v10217_v55 = vld [vmem:[%s14454_s1 + $0x768] ss:$16 sps:$4 sm:$0xff]   ;;  %v10222_v58 = vld [vmem:[%s14454_s1 + $0x54c] ss:$16 sps:$4 sm:$0xff]  }
 0x264   : > { %7389 = vmatprep.subr.bf16.mxu1 %v10183_v59  ;;  %v10225_v59 = vld [vmem:[%s14454_s1 + $0x74c] ss:$16 sps:$4 sm:$0xff]  }
 0x266   : > { %7347 = vmatpush1.bf16.msra.mxu0 %v10178_v60  ;;  %v13053_v60 = vpop.f32.mrf.mxu0 }
 0x267   : > { %7390 = vmatpush1.bf16.msra.mxu1 %v10181_v61  ;;  %7348 = vmatprep.subr.bf16.mxu0 %v10186_v62  ;;  %v13055_v61 = vpop.f32.mrf.mxu1  ;;  %v10220_v62 = vld [vmem:[%s14454_s1 + $0x548] ss:$16 sps:$4 sm:$0xff]  }
 0x268   : > { %7391 = vmatprep.subr.bf16.mxu1 %v10189_v63  ;;  %v10223_v63 = vld [vmem:[%s14454_s1 + $0x748] ss:$16 sps:$4 sm:$0xff]  }
 0x26a   : > { %7349 = vmatpush1.bf16.msra.mxu0 %v10184_v0  ;;  %v10228_v0 = vld [vmem:[%s14454_s1 + $0x52c] ss:$16 sps:$4 sm:$0xff]  }
 0x26b   : > { %7392 = vmatpush1.bf16.msra.mxu1 %v10187_v1  ;;  %7350 = vmatprep.subr.bf16.mxu0 %v10192_v2  ;;  %v10231_v1 = vld [vmem:[%s14454_s1 + $0x72c] ss:$16 sps:$4 sm:$0xff]   ;;  %v13069_v2 = vpop.f32.mrf.mxu0 }
 0x26c   : > { %7393 = vmatprep.subr.bf16.mxu1 %v10195_v3  ;;  %v13071_v3 = vpop.f32.mrf.mxu1 }
 0x26e   : > { %7351 = vmatpush2.bf16.msra.mxu0 %v10190_v5  ;;  %v10226_v5 = vld [vmem:[%s14454_s1 + $0x528] ss:$16 sps:$4 sm:$0xff]  }
 0x26f   : > { %7394 = vmatpush2.bf16.msra.mxu1 %v10193_v13  ;;  %7352 = vmatprep.subr.bf16.mxu0 %v10198_v50  ;;  %v10229_v13 = vld [vmem:[%s14454_s1 + $0x728] ss:$16 sps:$4 sm:$0xff]   ;;  %v10234_v50 = vld [vmem:[%s14454_s1 + $0x50c] ss:$16 sps:$4 sm:$0xff]  }
 0x270   : > { %7395 = vmatprep.subr.bf16.mxu1 %v10201_v15  ;;  %v10237_v15 = vld [vmem:[%s14454_s1 + $0x70c] ss:$16 sps:$4 sm:$0xff]  }
 0x272   : > { %7353 = vmatpush2.bf16.msra.mxu0 %v10196_v23  ;;  %v13085_v23 = vpop.f32.mrf.mxu0 }
 0x273   : > { %7396 = vmatpush2.bf16.msra.mxu1 %v10199_v34  ;;  %7354 = vmatprep.subr.bf16.mxu0 %v10204_v22  ;;  %v13087_v34 = vpop.f32.mrf.mxu1  ;;  %v10232_v22 = vld [vmem:[%s14454_s1 + $0x508] ss:$16 sps:$4 sm:$0xff]  }
 0x274   : > { %7397 = vmatprep.subr.bf16.mxu1 %v10207_v26  ;;  %v10235_v26 = vld [vmem:[%s14454_s1 + $0x708] ss:$16 sps:$4 sm:$0xff]  }
 0x276   : > { %7355 = vmatpush2.bf16.msra.mxu0 %v10202_v42  ;;  %v13095_v42 = vpop.f32.mrf.mxu0 }
 0x277   : > { %7398 = vmatpush2.bf16.msra.mxu1 %v10205_v54  ;;  %7356 = vmatprep.subr.bf16.mxu0 %v10210_v9  ;;  %v13097_v54 = vpop.f32.mrf.mxu1  ;;  %v10240_v9 = vld [vmem:[%s14454_s1 + $0x8ec] ss:$16 sps:$4 sm:$0xff]  }
 0x278   : > { %7399 = vmatprep.subr.bf16.mxu1 %v10213_v17  ;;  %v10243_v17 = vld [vmem:[%s14454_s1 + $0xaec] ss:$16 sps:$4 sm:$0xff]  }
 0x27a   : > { %7357 = vmatpush2.bf16.msra.mxu0 %v10208_v18  ;;  %v10238_v18 = vld [vmem:[%s14454_s1 + $0x8e8] ss:$16 sps:$4 sm:$0xff]  }
 0x27b   : > { %7400 = vmatpush2.bf16.msra.mxu1 %v10211_v41  ;;  %7358 = vmatprep.subr.bf16.mxu0 %v10216_v4  ;;  %v10241_v41 = vld [vmem:[%s14454_s1 + $0xae8] ss:$16 sps:$4 sm:$0xff]   ;;  %v13111_v4 = vpop.f32.mrf.mxu0 }
 0x27c   : > { %7401 = vmatprep.subr.bf16.mxu1 %v10219_v6  ;;  %v13113_v6 = vpop.f32.mrf.mxu1 }
 0x27e   : > { %7359 = vmatpush2.bf16.msra.mxu0 %v10214_v53  ;;  %v10246_v53 = vld [vmem:[%s14454_s1 + $0x8cc] ss:$16 sps:$4 sm:$0xff]  }
 0x27f   : > { %7402 = vmatpush2.bf16.msra.mxu1 %v10217_v55  ;;  %7360 = vmatprep.subr.bf16.mxu0 %v10222_v58  ;;  %v10249_v55 = vld [vmem:[%s14454_s1 + $0xacc] ss:$16 sps:$4 sm:$0xff]   ;;  %v10244_v58 = vld [vmem:[%s14454_s1 + $0x8c8] ss:$16 sps:$4 sm:$0xff]  }
 0x280   : > { %7403 = vmatprep.subr.bf16.mxu1 %v10225_v59  ;;  %v10247_v59 = vld [vmem:[%s14454_s1 + $0xac8] ss:$16 sps:$4 sm:$0xff]  }
 0x282   : > { %7361 = vmatpush2.bf16.msra.mxu0 %v10220_v62  ;;  %v13129_v62 = vpop.f32.mrf.mxu0 }
 0x283   : > { %7404 = vmatpush2.bf16.msra.mxu1 %v10223_v63  ;;  %7362 = vmatprep.subr.bf16.mxu0 %v10228_v0  ;;  %v13131_v63 = vpop.f32.mrf.mxu1  ;;  %v10250_v0 = vld [vmem:[%s14454_s1 + $0x8a8] ss:$16 sps:$4 sm:$0xff]  }
 0x284   : > { %7405 = vmatprep.subr.bf16.mxu1 %v10231_v1  ;;  %v10253_v1 = vld [vmem:[%s14454_s1 + $0xaa8] ss:$16 sps:$4 sm:$0xff]  }
 0x286   : > { %7363 = vmatpush2.bf16.msra.mxu0 %v10226_v5  ;;  %v13147_v5 = vpop.f32.mrf.mxu0 }
 0x287   : > { %7406 = vmatpush2.bf16.msra.mxu1 %v10229_v13  ;;  %7364 = vmatprep.subr.bf16.mxu0 %v10234_v50  ;;  %v13149_v13 = vpop.f32.mrf.mxu1 }
 0x288   : > { %7407 = vmatprep.subr.bf16.mxu1 %v10237_v15  ;;  %v13157_v50 = vpop.f32.mrf.mxu0 }
 0x289   : > { %v13159_v15 = vpop.f32.mrf.mxu1 }
 0x28a   : > { %7365 = vmatpush2.bf16.msra.mxu0 %v10232_v22  ;;  %v10256_v22 = vld [vmem:[%s14454_s1 + $0x888] ss:$16 sps:$4 sm:$0xff]  }
 0x28b   : > { %7408 = vmatpush2.bf16.msra.mxu1 %v10235_v26  ;;  %7420 = vmatprep.subr.bf16.mxu0 %v10240_v9  ;;  %v10259_v26 = vld [vmem:[%s14454_s1 + $0xa88] ss:$16 sps:$4 sm:$0xff]   ;;  %v1260_v9 = vlaneseq }
 0x28c   : > { %7463 = vmatprep.subr.bf16.mxu1 %v10243_v17  ;;  %v10264_v17 = vld [vmem:[%s14454_s1 + $0x86c] ss:$16 sps:$4 sm:$0xff]  }
 0x28d   : > { %7367 = vmatmul.mubr.bf16.vlgmr.msra.gmra.mxu0 %v11327_v20  ;;  %v10252_v20 = vld [vmem:[%s14454_s1 + $0x8ac] ss:$16 sps:$4 sm:$0xff]  }
 0x28e   : > { %7410 = vmatmul.mubr.bf16.vlgmr.msra.gmra.mxu1 %v11331_v21  ;;  %7421 = vmatpush1.bf16.msra.mxu0 %v10238_v18  ;;  %v10255_v21 = vld [vmem:[%s14454_s1 + $0xaac] ss:$16 sps:$4 sm:$0xff]  }
 0x28f   : > { %7464 = vmatpush1.bf16.msra.mxu1 %v10241_v41  ;;  %7422 = vmatprep.subr.bf16.mxu0 %v10246_v53  ;;  %v10267_v18 = vld [vmem:[%s14454_s1 + $0xa6c] ss:$16 sps:$4 sm:$0xff]   ;;  %v13173_v41 = vpop.f32.mrf.mxu0  ;;  %v13175_v53 = vpop.f32.mrf.mxu1 }
 0x290   : > { %7465 = vmatprep.subr.bf16.mxu1 %v10249_v55  ;;  %7452 = vmatprep.mubr.bf16.mxu0 %v11370_v33  ;;  %v10258_v33 = vld [vmem:[%s14454_s1 + $0x88c] ss:$16 sps:$4 sm:$0xff]   ;;  %v10262_v55 = vld [vmem:[%s14454_s1 + $0x868] ss:$16 sps:$4 sm:$0xff]  }
 0x291   : > { %7495 = vmatprep.mubr.bf16.mxu1 %v11377_v35  ;;  %v10261_v35 = vld [vmem:[%s14454_s1 + $0xa8c] ss:$16 sps:$4 sm:$0xff]  }
 0x292   : > { %7423 = vmatpush1.bf16.msra.mxu0 %v10244_v58  ;;  %v10265_v58 = vld [vmem:[%s14454_s1 + $0xa68] ss:$16 sps:$4 sm:$0xff]  }
 0x293   : > { %7466 = vmatpush1.bf16.msra.mxu1 %v10247_v59  ;;  %7424 = vmatprep.subr.bf16.mxu0 %v10252_v20  ;;  %v13183_v59 = vshrl.u32 %v1260_v9, 7  ;;  %v10270_v20 = vld [vmem:[%s14454_s1 + $0x84c] ss:$16 sps:$4 sm:$0xff]  }
 0x294   : > { %7467 = vmatprep.subr.bf16.mxu1 %v10255_v21  ;;  %v10273_v21 = vld [vmem:[%s14454_s1 + $0xa4c] ss:$16 sps:$4 sm:$0xff]  }
 0x295   : > { %v10279_v9 = vld [vmem:[%s14454_s1 + $0xa2c] ss:$16 sps:$4 sm:$0xff]  }
 0x296   : > { %7425 = vmatpush1.bf16.msra.mxu0 %v10250_v0  ;;  %v13191_v0 = vpop.f32.mrf.mxu0 }
 0x297   : > { %7468 = vmatpush1.bf16.msra.mxu1 %v10253_v1  ;;  %7426 = vmatprep.subr.bf16.mxu0 %v10258_v33  ;;  %v13193_v1 = vpop.f32.mrf.mxu1  ;;  %v10268_v33 = vld [vmem:[%s14454_s1 + $0x848] ss:$16 sps:$4 sm:$0xff]  }
 0x298   : > { %7469 = vmatprep.subr.bf16.mxu1 %v10261_v35  ;;  %v10271_v35 = vld [vmem:[%s14454_s1 + $0xa48] ss:$16 sps:$4 sm:$0xff]  }
 0x29a   : > { %7427 = vmatpush1.bf16.msra.mxu0 %v10256_v22  ;;  %v1262_v22 = vsub.s32 0, %v13183_v59 }
 0x29b   : > { %7470 = vmatpush1.bf16.msra.mxu1 %v10259_v26  ;;  %7428 = vmatprep.subr.bf16.mxu0 %v10264_v17  ;;  %v10276_v26 = vld [vmem:[%s14454_s1 + $0x82c] ss:$16 sps:$4 sm:$0xff]   ;;  %v1258_v17 = vld [vmem:[%s14455_s2] sm:$0xf] }
 0x29c   : > { %7471 = vmatprep.subr.bf16.mxu1 %v10267_v18  ;;  %v1266_v18 = vsub.s32 1, %v13183_v59  ;;  %v1263_v39 = vrot.slane %v1258_v17, %v1262_v22  ;;  %v10280_v22 = vld [vmem:[%s14454_s1 + $0x808] ss:$16 sps:$4 sm:$0xff]  }
 0x29e   : > { %7429 = vmatpush1.bf16.msra.mxu0 %v10262_v55  ;;  %v13212_v55 = vpop.f32.mrf.mxu0  ;;  %v1267_v27 = vrot.slane %v1258_v17, %v1266_v18  ;;  %v10288_v17 = vld [vmem:[%s14454_s1 + $0x9ec] ss:$16 sps:$4 sm:$0xff]  }
 0x29f   : > { %7472 = vmatpush1.bf16.msra.mxu1 %v10265_v58  ;;  %7430 = vmatprep.subr.bf16.mxu0 %v10270_v20  ;;  %v13214_v58 = vpop.f32.mrf.mxu1  ;;  %v10274_v20 = vld [vmem:[%s14454_s1 + $0x828] ss:$16 sps:$4 sm:$0xff]   ;;  %v10291_v18 = vld [vmem:[%s14454_s1 + $0xbec] ss:$16 sps:$4 sm:$0xff]  }
 0x2a0   : > { %7473 = vmatprep.subr.bf16.mxu1 %v10273_v21  ;;  %v10277_v21 = vld [vmem:[%s14454_s1 + $0xa28] ss:$16 sps:$4 sm:$0xff]   ;;  %v13222_v38 = vpop.f32.mrf.mxu0 }
 0x2a1   : > { %v13224_v32 = vpop.f32.mrf.mxu1 }
 0x2a2   : > { %7431 = vmatpush1.bf16.msra.mxu0 %v10268_v33  ;;  %v10282_v33 = vld [vmem:[%s14454_s1 + $0x80c] ss:$16 sps:$4 sm:$0xff]   ;;  %v13239_v52 = vpop.f32.mrf.mxu0 }
 0x2a3   : > { %7474 = vmatpush1.bf16.msra.mxu1 %v10271_v35  ;;  %7432 = vmatprep.subr.bf16.mxu0 %v10276_v26  ;;  %v10285_v35 = vld [vmem:[%s14454_s1 + $0xa0c] ss:$16 sps:$4 sm:$0xff]   ;;  %v10283_v26 = vld [vmem:[%s14454_s1 + $0xa08] ss:$16 sps:$4 sm:$0xff]   ;;  %v13241_v40 = vpop.f32.mrf.mxu1 }
 0x2a4   : > { %7475 = vmatprep.subr.bf16.mxu1 %v10279_v9  ;;  %v6595_v9 = vadd.f32 %v12979_v14, %v1263_v39  ;;  %v6601_v14 = vadd.f32 %v13027_v43, %v1267_v27  ;;  %v13259_v36 = vpop.f32.mrf.mxu0 }
 0x2a5   : > { %v13261_v25 = vpop.f32.mrf.mxu1 }
 0x2a6   : > { %7433 = vmatpush1.bf16.msra.mxu0 %v10274_v20  ;;  %v6599_v20 = vadd.f32 %v13011_v16, %v1263_v39  ;;  %v6638_v37 = vadd.f32 %v12981_v44, %v6595_v9  ;;  %v10297_v39 = vld [vmem:[%s14454_s1 + $0xbcc] ss:$16 sps:$4 sm:$0xff]   ;;  %v6644_v43 = vadd.f32 %v13029_v19, %v6601_v14  ;;  %v10295_v9 = vld [vmem:[%s14454_s1 + $0xbc8] ss:$16 sps:$4 sm:$0xff]  }
 0x2a7   : > { %7476 = vmatpush1.bf16.msra.mxu1 %v10277_v21  ;;  %7434 = vmatprep.subr.bf16.mxu0 %v10282_v33  ;;  %v6597_v21 = vadd.f32 %v12995_v28, %v1267_v27  ;;  %v10286_v33 = vld [vmem:[%s14454_s1 + $0x9e8] ss:$16 sps:$4 sm:$0xff]   ;;  %v10294_v27 = vld [vmem:[%s14454_s1 + $0x9cc] ss:$16 sps:$4 sm:$0xff]  }
 0x2a8   : > { %7477 = vmatprep.subr.bf16.mxu1 %v10285_v35  ;;  %v10289_v35 = vld [vmem:[%s14454_s1 + $0xbe8] ss:$16 sps:$4 sm:$0xff]   ;;  %v6642_v28 = vadd.f32 %v13013_v8, %v6599_v20  ;;  %v6681_v44 = vadd.f32 %v13037_v7, %v6638_v37  ;;  %v10300_v37 = vld [vmem:[%s14454_s1 + $0x9ac] ss:$16 sps:$4 sm:$0xff]   ;;  %v6687_v7 = vadd.f32 %v13085_v23, %v6644_v43 }
 0x2a9   : > { %v6640_v16 = vadd.f32 %v12997_v31, %v6597_v21  ;;  %v13283_v31 = vpop.f32.mrf.mxu1  ;;  %v10303_v19 = vld [vmem:[%s14454_s1 + $0xbac] ss:$16 sps:$4 sm:$0xff]   ;;  %v10298_v21 = vld [vmem:[%s14454_s1 + $0x9a8] ss:$16 sps:$4 sm:$0xff]  }
 0x2aa   : > { %7435 = vmatpush1.bf16.msra.mxu0 %v10280_v22  ;;  %v6685_v22 = vadd.f32 %v13069_v2, %v6642_v28  ;;  %v6724_v2 = vadd.f32 %v13039_v12, %v6681_v44  ;;  %v10301_v14 = vld [vmem:[%s14454_s1 + $0xba8] ss:$16 sps:$4 sm:$0xff]  }
 0x2ab   : > { %7478 = vmatpush1.bf16.msra.mxu1 %v10283_v26  ;;  %7436 = vmatprep.subr.bf16.mxu0 %v10288_v17  ;;  %v10292_v26 = vld [vmem:[%s14454_s1 + $0x9c8] ss:$16 sps:$4 sm:$0xff]   ;;  %v6683_v8 = vadd.f32 %v13053_v60, %v6640_v16  ;;  %v13281_v17 = vpop.f32.mrf.mxu0  ;;  %v13295_v60 = vpop.f32.mrf.mxu1 }
 0x2ac   : > { %7479 = vmatprep.subr.bf16.mxu1 %v10291_v18  ;;  %v6728_v20 = vadd.f32 %v13071_v3, %v6685_v22  ;;  %v6767_v12 = vadd.f32 %v13095_v42, %v6724_v2  ;;  %v10306_v3 = vld [vmem:[%s14454_s1 + $0x98c] ss:$16 sps:$4 sm:$0xff]   ;;  %v10304_v16 = vld [vmem:[%s14454_s1 + $0x988] ss:$16 sps:$4 sm:$0xff]  }
 0x2ad   : > { %v13293_v18 = vpop.f32.mrf.mxu0  ;;  %v6726_v23 = vadd.f32 %v13055_v61, %v6683_v8  ;;  %v13317_v61 = vpop.f32.mrf.mxu1 }
 0x2ae   : > { %7437 = vmatpush2.bf16.msra.mxu0 %v10286_v33  ;;  %v10309_v33 = vld [vmem:[%s14454_s1 + $0xb8c] ss:$16 sps:$4 sm:$0xff]  }
 0x2af   : > { %7480 = vmatpush2.bf16.msra.mxu1 %v10289_v35  ;;  %7438 = vmatprep.subr.bf16.mxu0 %v10294_v27  ;;  %v6730_v35 = vadd.f32 %v13087_v34, %v6687_v7  ;;  %v6771_v27 = vadd.f32 %v13129_v62, %v6728_v20  ;;  %v13315_v28 = vpop.f32.mrf.mxu0  ;;  %v10307_v34 = vld [vmem:[%s14454_s1 + $0xb88] ss:$16 sps:$4 sm:$0xff]   ;;  %v6810_v62 = vadd.f32 %v13097_v54, %v6767_v12  ;;  %v10327_v12 = vld [vmem:[%s14454_s1 + $0xb2c] ss:$16 sps:$4 sm:$0xff]  }
 0x2b0   : > { %7481 = vmatprep.subr.bf16.mxu1 %v10297_v39  ;;  %v6769_v39 = vadd.f32 %v13111_v4, %v6726_v23  ;;  %v10312_v4 = vld [vmem:[%s14454_s1 + $0x96c] ss:$16 sps:$4 sm:$0xff]  }
 0x2b1   : > { %v6773_v42 = vadd.f32 %v13147_v5, %v6730_v35  ;;  %v10315_v5 = vld [vmem:[%s14454_s1 + $0xb6c] ss:$16 sps:$4 sm:$0xff]   ;;  %v6814_v44 = vadd.f32 %v13131_v63, %v6771_v27  ;;  %v6853_v22 = vadd.f32 %v13157_v50, %v6810_v62  ;;  %v10313_v63 = vld [vmem:[%s14454_s1 + $0xb68] ss:$16 sps:$4 sm:$0xff]  }
 0x2b2   : > { %7439 = vmatpush2.bf16.msra.mxu0 %v10292_v26  ;;  %v6812_v43 = vadd.f32 %v13113_v6, %v6769_v39  ;;  %v7028_v26 = vpop.f32.mrf.mxu0  ;;  %v10321_v50 = vld [vmem:[%s14454_s1 + $0xb4c] ss:$16 sps:$4 sm:$0xff]   ;;  %v10322_v35 = vld [vmem:[%s14454_s1 + $0x928] ss:$16 sps:$4 sm:$0xff]  }
 0x2b3   : > { %7482 = vmatpush2.bf16.msra.mxu1 %v10295_v9  ;;  %7440 = vmatprep.subr.bf16.mxu0 %v10300_v37  ;;  %v7071_v9 = vpop.f32.mrf.mxu1  ;;  %v6816_v54 = vadd.f32 %v13149_v13, %v6773_v42  ;;  %v6857_v8 = vadd.f32 %v13191_v0, %v6814_v44  ;;  %v10310_v37 = vld [vmem:[%s14454_s1 + $0x968] ss:$16 sps:$4 sm:$0xff]   ;;  %v10318_v13 = vld [vmem:[%s14454_s1 + $0x94c] ss:$16 sps:$4 sm:$0xff]  }
 0x2b4   : > { %7483 = vmatprep.subr.bf16.mxu1 %v10303_v19  ;;  %v6855_v6 = vadd.f32 %v13173_v41, %v6812_v43  ;;  %v6896_v19 = vadd.f32 %v13159_v15, %v6853_v22  ;;  %v7030_v7 = vpop.f32.mrf.mxu0  ;;  %v10316_v41 = vld [vmem:[%s14454_s1 + $0x948] ss:$16 sps:$4 sm:$0xff]  }
 0x2b5   : > { %v6859_v0 = vadd.f32 %v13212_v55, %v6816_v54  ;;  %v7073_v2 = vpop.f32.mrf.mxu1  ;;  %v6900_v20 = vadd.f32 %v13193_v1, %v6857_v8  ;;  %v10324_v1 = vld [vmem:[%s14454_s1 + $0x92c] ss:$16 sps:$4 sm:$0xff]   ;;  %v10325_v27 = vld [vmem:[%s14454_s1 + $0xb28] ss:$16 sps:$4 sm:$0xff]  }
 0x2b6   : > { %7441 = vmatpush2.bf16.msra.mxu0 %v10298_v21  ;;  %v10319_v21 = vld [vmem:[%s14454_s1 + $0xb48] ss:$16 sps:$4 sm:$0xff]   ;;  %v6939_v55 = vadd.f32 %v13222_v38, %v6896_v19  ;;  %v7110_v23 = vpop.f32.mrf.mxu0 }
 0x2b7   : > { %7484 = vmatpush2.bf16.msra.mxu1 %v10301_v14  ;;  %7442 = vmatprep.subr.bf16.mxu0 %v10306_v3  ;;  %v6898_v14 = vadd.f32 %v13175_v53, %v6855_v6  ;;  %v13362_v15 = vpop.f32.mrf.mxu1  ;;  %v6902_v3 = vadd.f32 %v13214_v58, %v6859_v0  ;;  %v10337_v54 = vld [vmem:[%s14454_s1 + $0xee8] ss:$16 sps:$4 sm:$0xff]  }
 0x2b8   : > { %7485 = vmatprep.subr.bf16.mxu1 %v10309_v33  ;;  %v6943_v33 = vadd.f32 %v13259_v36, %v6900_v20  ;;  %v6982_v39 = vadd.f32 %v13224_v32, %v6939_v55  ;;  %v7112_v42 = vpop.f32.mrf.mxu0  ;;  %v10330_v36 = vld [vmem:[%s14454_s1 + $0x90c] ss:$16 sps:$4 sm:$0xff]   ;;  %v10340_v20 = vld [vmem:[%s14454_s1 + $0xcc8] ss:$16 sps:$4 sm:$0xff]   ;;  %v13428_v55 = vadd.s32 8, %v13183_v59 }
 0x2b9   : > { %v6941_v53 = vadd.f32 %v13239_v52, %v6898_v14  ;;  %v6945_v38 = vadd.f32 %v13281_v17, %v6902_v3  ;;  %v7155_v58 = vpop.f32.mrf.mxu1  ;;  %v10333_v52 = vld [vmem:[%s14454_s1 + $0xb0c] ss:$16 sps:$4 sm:$0xff]  }
 0x2ba   : > { %7443 = vmatpush2.bf16.msra.mxu0 %v10304_v16  ;;  %v6986_v17 = vadd.f32 %v13261_v25, %v6943_v33  ;;  %v7114_v25 = vpop.f32.mrf.mxu0  ;;  %vm7966_vm0 = vcmp.lt.s32.totalorder %v13428_v55, 9 }
 0x2bb   : > { %7486 = vmatpush2.bf16.msra.mxu1 %v10307_v34  ;;  %7444 = vmatprep.subr.bf16.mxu0 %v10312_v4  ;;  %v6984_v16 = vadd.f32 %v13241_v40, %v6941_v53  ;;  %v7025_v34 = vadd.f32 %v13293_v18, %v6982_v39  ;;  %v6988_v32 = vadd.f32 %v13283_v31, %v6945_v38  ;;  %v10328_v4 = vld [vmem:[%s14454_s1 + $0x908] ss:$16 sps:$4 sm:$0xff]   ;;  %v7157_v43 = vpop.f32.mrf.mxu1  ;;  %v10336_v40 = vld [vmem:[%s14454_s1 + $0xcec] ss:$16 sps:$4 sm:$0xff]  }
 0x2bc   : > { %7487 = vmatprep.subr.bf16.mxu1 %v10315_v5  ;;  %v7029_v62 = vadd.f32 %v7028_v26, %v6986_v17  ;;  %v10331_v5 = vld [vmem:[%s14454_s1 + $0xb08] ss:$16 sps:$4 sm:$0xff]   ;;  %v10339_v31 = vld [vmem:[%s14454_s1 + $0xeec] ss:$16 sps:$4 sm:$0xff]  }
 0x2bd   : > { %v7027_v44 = vadd.f32 %v13315_v28, %v6984_v16  ;;  %v7031_v18 = vadd.f32 %v7030_v7, %v6988_v32  ;;  %v7068_v22 = vadd.f32 %v13295_v60, %v7025_v34  ;;  %v10334_v28 = vld [vmem:[%s14454_s1 + $0xce8] ss:$16 sps:$4 sm:$0xff]   ;;  %v7159_v6 = vpop.f32.mrf.mxu1  ;;  %v10342_v60 = vld [vmem:[%s14454_s1 + $0xccc] ss:$16 sps:$4 sm:$0xff]  }
 0x2be   : > { %7445 = vmatpush2.bf16.msra.mxu0 %v10310_v37  ;;  %v7072_v26 = vadd.f32 %v7071_v9, %v7029_v62  ;;  %v10345_v9 = vld [vmem:[%s14454_s1 + $0xecc] ss:$16 sps:$4 sm:$0xff]   ;;  %v10346_v38 = vld [vmem:[%s14454_s1 + $0xca8] ss:$16 sps:$4 sm:$0xff]  }
 0x2bf   : > { %7488 = vmatpush2.bf16.msra.mxu1 %v10313_v63  ;;  %7446 = vmatprep.subr.bf16.mxu0 %v10318_v13  ;;  %v7070_v8 = vadd.f32 %v13317_v61, %v7027_v44  ;;  %v7111_v37 = vadd.f32 %v7110_v23, %v7068_v22  ;;  %v7116_v63 = vpop.f32.mrf.mxu0  ;;  %v7074_v13 = vadd.f32 %v7073_v2, %v7031_v18  ;;  %v10357_v39 = vld [vmem:[%s14454_s1 + $0xe8c] ss:$16 sps:$4 sm:$0xff]   ;;  %v10352_v34 = vld [vmem:[%s14454_s1 + $0xc88] ss:$16 sps:$4 sm:$0xff]  }
 0x2c0   : > { %7489 = vmatprep.subr.bf16.mxu1 %v10321_v50  ;;  %v7115_v50 = vadd.f32 %v7114_v25, %v7072_v26  ;;  %v10355_v32 = vld [vmem:[%s14454_s1 + $0xe88] ss:$16 sps:$4 sm:$0xff]   ;;  %v10363_v44 = vld [vmem:[%s14454_s1 + $0xe6c] ss:$16 sps:$4 sm:$0xff]  }
 0x2c1   : > { %v7113_v0 = vadd.f32 %v7112_v42, %v7070_v8  ;;  %v7117_v61 = vadd.f32 %v7116_v63, %v7074_v13  ;;  %v7154_v2 = vadd.f32 %v13362_v15, %v7111_v37  ;;  %v10361_v18 = vld [vmem:[%s14454_s1 + $0xe68] ss:$16 sps:$4 sm:$0xff]   ;;  %v10372_v13 = vld [vmem:[%s14454_s1 + $0xc2c] ss:$16 sps:$4 sm:$0xff]  }
 0x2c2   : > { %7447 = vmatpush2.bf16.msra.mxu0 %v10316_v41  ;;  %v10343_v41 = vld [vmem:[%s14454_s1 + $0xec8] ss:$16 sps:$4 sm:$0xff]   ;;  %v7158_v23 = vadd.f32 %v7157_v43, %v7115_v50  ;;  %v10375_v50 = vld [vmem:[%s14454_s1 + $0xe2c] ss:$16 sps:$4 sm:$0xff]  }
 0x2c3   : > { %7490 = vmatpush2.bf16.msra.mxu1 %v10319_v21  ;;  %7448 = vmatprep.subr.bf16.mxu0 %v10324_v1  ;;  %v7156_v15 = vadd.f32 %v7155_v58, %v7113_v0  ;;  %v7160_v33 = vadd.f32 %v7159_v6, %v7117_v61  ;;  %v10364_v63 = vld [vmem:[%s14454_s1 + $0xc48] ss:$16 sps:$4 sm:$0xff]  }
 0x2c4   : > { %7491 = vmatprep.subr.bf16.mxu1 %v10327_v12  ;;  %v10367_v6 = vld [vmem:[%s14454_s1 + $0xe48] ss:$16 sps:$4 sm:$0xff]  }
 0x2c5   : > { %v10373_v61 = vld [vmem:[%s14454_s1 + $0xe28] ss:$16 sps:$4 sm:$0xff]  }
 0x2c6   : > { %7449 = vmatpush2.bf16.msra.mxu0 %v10322_v35  ;;  %v10349_v35 = vld [vmem:[%s14454_s1 + $0xea8] ss:$16 sps:$4 sm:$0xff]  }
 0x2c7   : > { %7492 = vmatpush2.bf16.msra.mxu1 %v10325_v27  ;;  %7450 = vmatprep.subr.bf16.mxu0 %v10330_v36 }
 0x2c8   : > { %7493 = vmatprep.subr.bf16.mxu1 %v10333_v52 }
 0x2ca   : > { %7451 = vmatpush2.bf16.msra.mxu0 %v10328_v4 }
 0x2cb   : > { %7494 = vmatpush2.bf16.msra.mxu1 %v10331_v5  ;;  %7506 = vmatprep.subr.bf16.mxu0 %v10336_v40  ;;  %v10360_v5 = vld [vmem:[%s14454_s1 + $0xc6c] ss:$16 sps:$4 sm:$0xff]  }
 0x2cc   : > { %7549 = vmatprep.subr.bf16.mxu1 %v10339_v31  ;;  %v10358_v31 = vld [vmem:[%s14454_s1 + $0xc68] ss:$16 sps:$4 sm:$0xff]  }
 0x2cd   : > { %v7196_v19 = vpop.f32.mrf.mxu0  ;;  %7453 = vmatmul.mubr.bf16.vlgmr.msra.gmra.mxu0 %v11563_v48  ;;  %v10348_v48 = vld [vmem:[%s14454_s1 + $0xcac] ss:$16 sps:$4 sm:$0xff]  }
 0x2ce   : > { %v7239_v7 = vpop.f32.mrf.mxu1  ;;  %7496 = vmatmul.mubr.bf16.vlgmr.msra.gmra.mxu1 %v11567_v49  ;;  %7507 = vmatpush1.bf16.msra.mxu0 %v10334_v28  ;;  %v10351_v49 = vld [vmem:[%s14454_s1 + $0xeac] ss:$16 sps:$4 sm:$0xff]   ;;  %v7197_v1 = vadd.f32 %v7196_v19, %v7154_v2 }
 0x2cf   : > { %7550 = vmatpush1.bf16.msra.mxu1 %v10337_v54  ;;  %v7198_v21 = vpop.f32.mrf.mxu0  ;;  %7508 = vmatprep.subr.bf16.mxu0 %v10342_v60  ;;  %v10366_v28 = vld [vmem:[%s14454_s1 + $0xc4c] ss:$16 sps:$4 sm:$0xff]  }
 0x2d0   : > { %v7241_v14 = vpop.f32.mrf.mxu1  ;;  %7551 = vmatprep.subr.bf16.mxu1 %v10345_v9  ;;  %7538 = vmatprep.mubr.bf16.mxu0 %v11583_v29  ;;  %v7199_v27 = vadd.f32 %v7198_v21, %v7156_v15  ;;  %v7240_v36 = vadd.f32 %v7239_v7, %v7197_v1  ;;  %v10369_v54 = vld [vmem:[%s14454_s1 + $0xe4c] ss:$16 sps:$4 sm:$0xff]   ;;  %v10370_v7 = vld [vmem:[%s14454_s1 + $0xc28] ss:$16 sps:$4 sm:$0xff]  }
 0x2d1   : > { %7581 = vmatprep.mubr.bf16.mxu1 %v11587_v30  ;;  %v7200_v12 = vpop.f32.mrf.mxu0  ;;  %v10354_v30 = vld [vmem:[%s14454_s1 + $0xc8c] ss:$16 sps:$4 sm:$0xff]  }
 0x2d2   : > { %v7243_v3 = vpop.f32.mrf.mxu1  ;;  %v7201_v53 = vadd.f32 %v7200_v12, %v7158_v23  ;;  %7509 = vmatpush1.bf16.msra.mxu0 %v10340_v20  ;;  %v7242_v62 = vadd.f32 %v7241_v14, %v7199_v27  ;;  %v10378_v2 = vld [vmem:[%s14454_s1 + $0xc0c] ss:$16 sps:$4 sm:$0xff]   ;;  %v10379_v23 = vld [vmem:[%s14454_s1 + $0xe08] ss:$16 sps:$4 sm:$0xff]  }
 0x2d3   : > { %7552 = vmatpush1.bf16.msra.mxu1 %v10343_v41  ;;  %v7202_v29 = vpop.f32.mrf.mxu0  ;;  %7510 = vmatprep.subr.bf16.mxu0 %v10348_v48  ;;  %v10381_v21 = vld [vmem:[%s14454_s1 + $0xe0c] ss:$16 sps:$4 sm:$0xff]  }
 0x2d4   : > { %7553 = vmatprep.subr.bf16.mxu1 %v10351_v49  ;;  %v7244_v42 = vadd.f32 %v7243_v3, %v7201_v53  ;;  %v7203_v58 = vadd.f32 %v7202_v29, %v7160_v33  ;;  %v7245_v52 = vpop.f32.mrf.mxu1  ;;  %v10376_v49 = vld [vmem:[%s14454_s1 + $0xc08] ss:$16 sps:$4 sm:$0xff]   ;;  %v10384_v3 = vld [vmem:[%s14454_s1 + $0xdec] ss:$16 sps:$4 sm:$0xff]  }
 0x2d5   : > { %v10387_v33 = vld [vmem:[%s14454_s1 + $0xfec] ss:$16 sps:$4 sm:$0xff]  }
 0x2d6   : > { %v7971_v17 = vsel %vm7966_vm0, %v7244_v42, 0.0  ;;  %v13453_v16 = vadd.f32 %v7245_v52, %v7203_v58  ;;  %7511 = vmatpush1.bf16.msra.mxu0 %v10346_v38  ;;  %v10393_v52 = vld [vmem:[%s14454_s1 + $0xfcc] ss:$16 sps:$4 sm:$0xff]  }
 0x2d7   : > { %7554 = vmatpush1.bf16.msra.mxu1 %v10349_v35  ;;  %v7975_v4 = vadd.f32 %v7971_v17, %v7240_v36  ;;  %7512 = vmatprep.subr.bf16.mxu0 %v10354_v30  ;;  %v10382_v30 = vld [vmem:[%s14454_s1 + $0xde8] ss:$16 sps:$4 sm:$0xff]  }
 0x2d8   : > { %7555 = vmatprep.subr.bf16.mxu1 %v10357_v39  ;;  %v7972_v25 = vsel %vm7966_vm0, %v13453_v16, 0.0  ;;  %v10385_v39 = vld [vmem:[%s14454_s1 + $0xfe8] ss:$16 sps:$4 sm:$0xff]  }
 0x2d9   : > { %v7976_v43 = vrot.slane %v7975_v4, 4  ;;  %v7982_v40 = vadd.f32 %v7972_v25, %v7242_v62 }
 0x2da   : > { %7513 = vmatpush1.bf16.msra.mxu0 %v10352_v34 }
 0x2db   : > { %7556 = vmatpush1.bf16.msra.mxu1 %v10355_v32  ;;  %v7977_v22 = vadd.f32 %v7976_v43, %v7975_v4  ;;  %v7983_v26 = vrot.slane %v7982_v40, 4  ;;  %7514 = vmatprep.subr.bf16.mxu0 %v10360_v5  ;;  %v10391_v4 = vld [vmem:[%s14454_s1 + $0xfc8] ss:$16 sps:$4 sm:$0xff]   ;;  %v10396_v5 = vld [vmem:[%s14454_s1 + $0xdac] ss:$16 sps:$4 sm:$0xff]  }
 0x2dc   : > { %7557 = vmatprep.subr.bf16.mxu1 %v10363_v44  ;;  %v10399_v44 = vld [vmem:[%s14454_s1 + $0xfac] ss:$16 sps:$4 sm:$0xff]  }
 0x2dd   : > { %v7978_v8 = vrot.slane %v7977_v22, 2  ;;  %v7984_v37 = vadd.f32 %v7983_v26, %v7982_v40  ;;  %v10402_v26 = vld [vmem:[%s14454_s1 + $0xd8c] ss:$16 sps:$4 sm:$0xff]  }
 0x2de   : > { %7515 = vmatpush1.bf16.msra.mxu0 %v10358_v31 }
 0x2df   : > { %7558 = vmatpush1.bf16.msra.mxu1 %v10361_v18  ;;  %v7979_v60 = vadd.f32 %v7978_v8, %v7977_v22  ;;  %v7985_v9 = vrot.slane %v7984_v37, 2  ;;  %7516 = vmatprep.subr.bf16.mxu0 %v10366_v28  ;;  %v10394_v18 = vld [vmem:[%s14454_s1 + $0xda8] ss:$16 sps:$4 sm:$0xff]   ;;  %v10405_v28 = vld [vmem:[%s14454_s1 + $0xf8c] ss:$16 sps:$4 sm:$0xff]  }
 0x2e0   : > { %7559 = vmatprep.subr.bf16.mxu1 %v10369_v54  ;;  %v10397_v22 = vld [vmem:[%s14454_s1 + $0xfa8] ss:$16 sps:$4 sm:$0xff]  }
 0x2e1   : > { %v7980_v0 = vrot.slane %v7979_v60, 1  ;;  %v7986_v19 = vadd.f32 %v7985_v9, %v7984_v37  ;;  %v10408_v9 = vld [vmem:[%s14454_s1 + $0xd6c] ss:$16 sps:$4 sm:$0xff]  }
 0x2e2   : > { %7517 = vmatpush1.bf16.msra.mxu0 %v10364_v63 }
 0x2e3   : > { %7560 = vmatpush1.bf16.msra.mxu1 %v10367_v6  ;;  %v7981_v20 = vadd.f32 %v7980_v0, %v7979_v60  ;;  %v7987_v41 = vrot.slane %v7986_v19, 1  ;;  %7518 = vmatprep.subr.bf16.mxu0 %v10372_v13  ;;  %v10400_v6 = vld [vmem:[%s14454_s1 + $0xd88] ss:$16 sps:$4 sm:$0xff]   ;;  %v10411_v13 = vld [vmem:[%s14454_s1 + $0xf6c] ss:$16 sps:$4 sm:$0xff]  }
 0x2e4   : > { %7561 = vmatprep.subr.bf16.mxu1 %v10375_v50  ;;  %v10403_v60 = vld [vmem:[%s14454_s1 + $0xf88] ss:$16 sps:$4 sm:$0xff]  }
 0x2e5   : > { %v8003_v14 = vmul.f32 0.11111111, %v7981_v20  ;;  %v7988_v48 = vadd.f32 %v7987_v41, %v7986_v19  ;;  %v10409_v20 = vld [vmem:[%s14454_s1 + $0xf68] ss:$16 sps:$4 sm:$0xff]   ;;  %v10414_v41 = vld [vmem:[%s14454_s1 + $0xd4c] ss:$16 sps:$4 sm:$0xff]  }
 0x2e6   : > { %7519 = vmatpush1.bf16.msra.mxu0 %v10370_v7 }
 0x2e7   : > { %7562 = vmatpush1.bf16.msra.mxu1 %v10373_v61  ;;  %v13512_v15 = vsub.f32 %v7240_v36, %v8003_v14  ;;  %v13514_v1 = vsub.f32 %v7244_v42, %v8003_v14  ;;  %v8004_v12 = vmul.f32 0.11111111, %v7988_v48  ;;  %7520 = vmatprep.subr.bf16.mxu0 %v10378_v2  ;;  %v10390_v36 = vld [vmem:[%s14454_s1 + $0xdcc] ss:$16 sps:$4 sm:$0xff]   ;;  %v10406_v61 = vld [vmem:[%s14454_s1 + $0xd68] ss:$16 sps:$4 sm:$0xff]  }
 0x2e8   : > { %7563 = vmatprep.subr.bf16.mxu1 %v10381_v21  ;;  %v10417_v2 = vld [vmem:[%s14454_s1 + $0xf4c] ss:$16 sps:$4 sm:$0xff]  }
 0x2e9   : > { %v8019_v53 = vsel %vm7966_vm0, %v13514_v1, 0.0  ;;  %v8023_v38 = vmul.f32 %v13512_v15, %v13512_v15  ;;  %v13527_v35 = vsub.f32 %v7242_v62, %v8004_v12  ;;  %v13530_v27 = vsub.f32 %v13453_v16, %v8004_v12  ;;  %v10388_v62 = vld [vmem:[%s14454_s1 + $0xdc8] ss:$16 sps:$4 sm:$0xff]   ;;  %v10420_v12 = vld [vmem:[%s14454_s1 + $0xd2c] ss:$16 sps:$4 sm:$0xff]  }
 0x2ea   : > { %v8027_v29 = vmul.f32 %v8019_v53, %v8019_v53  ;;  %7521 = vmatpush1.bf16.msra.mxu0 %v10376_v49  ;;  %v10412_v49 = vld [vmem:[%s14454_s1 + $0xd48] ss:$16 sps:$4 sm:$0xff]  }
 0x2eb   : > { %7564 = vmatpush1.bf16.msra.mxu1 %v10379_v23  ;;  %v8020_v42 = vsel %vm7966_vm0, %v13530_v27, 0.0  ;;  %v8024_v58 = vmul.f32 %v13527_v35, %v13527_v35  ;;  %7522 = vmatprep.subr.bf16.mxu0 %v10384_v3  ;;  %v10415_v23 = vld [vmem:[%s14454_s1 + $0xf48] ss:$16 sps:$4 sm:$0xff]   ;;  %v10423_v3 = vld [vmem:[%s14454_s1 + $0xf2c] ss:$16 sps:$4 sm:$0xff]  }
 0x2ec   : > { %7565 = vmatprep.subr.bf16.mxu1 %v10387_v33  ;;  %v8031_v17 = vadd.f32 %v8027_v29, %v8023_v38  ;;  %v8028_v16 = vmul.f32 %v8020_v42, %v8020_v42  ;;  %v10418_v33 = vld [vmem:[%s14454_s1 + $0xd28] ss:$16 sps:$4 sm:$0xff]   ;;  %v10426_v38 = vld [vmem:[%s14454_s1 + $0xd0c] ss:$16 sps:$4 sm:$0xff]  }
 0x2ed   : > { %v10421_v53 = vld [vmem:[%s14454_s1 + $0xf28] ss:$16 sps:$4 sm:$0xff]   ;;  %v10429_v29 = vld [vmem:[%s14454_s1 + $0xf0c] ss:$16 sps:$4 sm:$0xff]  }
 0x2ee   : > { %v8032_v34 = vrot.slane %v8031_v17, 4  ;;  %v8038_v32 = vadd.f32 %v8028_v16, %v8024_v58  ;;  %7523 = vmatpush2.bf16.msra.mxu0 %v10382_v30  ;;  %v10424_v30 = vld [vmem:[%s14454_s1 + $0xd08] ss:$16 sps:$4 sm:$0xff]   ;;  %v10432_v42 = vld [vmem:[%s14454_s1 + $0x10ec] ss:$16 sps:$4 sm:$0xff]  }
 0x2ef   : > { %7566 = vmatpush2.bf16.msra.mxu1 %v10385_v39  ;;  %7524 = vmatprep.subr.bf16.mxu0 %v10390_v36  ;;  %v10427_v39 = vld [vmem:[%s14454_s1 + $0xf08] ss:$16 sps:$4 sm:$0xff]   ;;  %v10435_v58 = vld [vmem:[%s14454_s1 + $0x12ec] ss:$16 sps:$4 sm:$0xff]  }
 0x2f0   : > { %7567 = vmatprep.subr.bf16.mxu1 %v10393_v52  ;;  %v8033_v25 = vadd.f32 %v8032_v34, %v8031_v17  ;;  %v8039_v43 = vrot.slane %v8038_v32, 4  ;;  %v10430_v36 = vld [vmem:[%s14454_s1 + $0x10e8] ss:$16 sps:$4 sm:$0xff]   ;;  %v10438_v16 = vld [vmem:[%s14454_s1 + $0x10cc] ss:$16 sps:$4 sm:$0xff]  }
 0x2f1   : > { %v10433_v52 = vld [vmem:[%s14454_s1 + $0x12e8] ss:$16 sps:$4 sm:$0xff]   ;;  %v10441_v34 = vld [vmem:[%s14454_s1 + $0x12cc] ss:$16 sps:$4 sm:$0xff]  }
 0x2f2   : > { %v8034_v40 = vrot.slane %v8033_v25, 2  ;;  %v8040_v31 = vadd.f32 %v8039_v43, %v8038_v32  ;;  %7525 = vmatpush2.bf16.msra.mxu0 %v10388_v62  ;;  %v10447_v43 = vld [vmem:[%s14454_s1 + $0x12ac] ss:$16 sps:$4 sm:$0xff]  }
 0x2f3   : > { %7568 = vmatpush2.bf16.msra.mxu1 %v10391_v4  ;;  %7526 = vmatprep.subr.bf16.mxu0 %v10396_v5  ;;  %v10436_v5 = vld [vmem:[%s14454_s1 + $0x10c8] ss:$16 sps:$4 sm:$0xff]  }
 0x2f4   : > { %7569 = vmatprep.subr.bf16.mxu1 %v10399_v44  ;;  %v8035_v54 = vadd.f32 %v8034_v40, %v8033_v25  ;;  %v8041_v8 = vrot.slane %v8040_v31, 2  ;;  %v10439_v44 = vld [vmem:[%s14454_s1 + $0x12c8] ss:$16 sps:$4 sm:$0xff]   ;;  %v10444_v25 = vld [vmem:[%s14454_s1 + $0x10ac] ss:$16 sps:$4 sm:$0xff]  }
 0x2f6   : > { %v8036_v37 = vrot.slane %v8035_v54, 1  ;;  %v8042_v63 = vadd.f32 %v8041_v8, %v8040_v31  ;;  %7527 = vmatpush2.bf16.msra.mxu0 %v10394_v18  ;;  %v10442_v18 = vld [vmem:[%s14454_s1 + $0x10a8] ss:$16 sps:$4 sm:$0xff]  }
 0x2f7   : > { %7570 = vmatpush2.bf16.msra.mxu1 %v10397_v22  ;;  %7528 = vmatprep.subr.bf16.mxu0 %v10402_v26  ;;  %v10450_v26 = vld [vmem:[%s14454_s1 + $0x108c] ss:$16 sps:$4 sm:$0xff]   ;;  %v10451_v8 = vld [vmem:[%s14454_s1 + $0x1288] ss:$16 sps:$4 sm:$0xff]  }
 0x2f8   : > { %7571 = vmatprep.subr.bf16.mxu1 %v10405_v28  ;;  %v8037_v50 = vadd.f32 %v8036_v37, %v8035_v54  ;;  %v8043_v0 = vrot.slane %v8042_v63, 1  ;;  %v10453_v28 = vld [vmem:[%s14454_s1 + $0x128c] ss:$16 sps:$4 sm:$0xff]   ;;  %v10448_v54 = vld [vmem:[%s14454_s1 + $0x1088] ss:$16 sps:$4 sm:$0xff]  }
 0x2f9   : > { %v10456_v37 = vld [vmem:[%s14454_s1 + $0x106c] ss:$16 sps:$4 sm:$0xff]  }
 0x2fa   : > { %v8059_v19 = vmul.f32 0.11111111, %v8037_v50  ;;  %v8044_v7 = vadd.f32 %v8043_v0, %v8042_v63  ;;  %7529 = vmatpush2.bf16.msra.mxu0 %v10400_v6  ;;  %v10459_v63 = vld [vmem:[%s14454_s1 + $0x126c] ss:$16 sps:$4 sm:$0xff]   ;;  %v10454_v6 = vld [vmem:[%s14454_s1 + $0x1068] ss:$16 sps:$4 sm:$0xff]  }
 0x2fb   : > { %7572 = vmatpush2.bf16.msra.mxu1 %v10403_v60  ;;  %7530 = vmatprep.subr.bf16.mxu0 %v10408_v9  ;;  %v10457_v60 = vld [vmem:[%s14454_s1 + $0x1268] ss:$16 sps:$4 sm:$0xff]   ;;  %v10462_v9 = vld [vmem:[%s14454_s1 + $0x104c] ss:$16 sps:$4 sm:$0xff]  }
 0x2fc   : > { %7573 = vmatprep.subr.bf16.mxu1 %v10411_v13  ;;  %v8063_v21 = vadd.f32 1e-05, %v8059_v19  ;;  %v8060_v14 = vmul.f32 0.11111111, %v8044_v7  ;;  %v10465_v13 = vld [vmem:[%s14454_s1 + $0x124c] ss:$16 sps:$4 sm:$0xff]  }
 0x2fd   : > { %v10460_v50 = vld [vmem:[%s14454_s1 + $0x1048] ss:$16 sps:$4 sm:$0xff]   ;;  %v10468_v19 = vld [vmem:[%s14454_s1 + $0x102c] ss:$16 sps:$4 sm:$0xff]  }
 0x2fe   : > { %10814 = vrsqrt.f32 %v8063_v21  ;;  %v8064_v48 = vadd.f32 1e-05, %v8060_v14  ;;  %7531 = vmatpush2.bf16.msra.mxu0 %v10406_v61  ;;  %v10463_v0 = vld [vmem:[%s14454_s1 + $0x1248] ss:$16 sps:$4 sm:$0xff]   ;;  %v10471_v7 = vld [vmem:[%s14454_s1 + $0x122c] ss:$16 sps:$4 sm:$0xff]  }
 0x2ff   : > { %7574 = vmatpush2.bf16.msra.mxu1 %v10409_v20  ;;  %7532 = vmatprep.subr.bf16.mxu0 %v10414_v41  ;;  %v10466_v61 = vld [vmem:[%s14454_s1 + $0x1028] ss:$16 sps:$4 sm:$0xff]   ;;  %v10474_v41 = vld [vmem:[%s14454_s1 + $0x100c] ss:$16 sps:$4 sm:$0xff]  }
 0x300   : > { %7575 = vmatprep.subr.bf16.mxu1 %v10417_v2  ;;  %10816 = vrsqrt.f32 %v8064_v48  ;;  %v10469_v20 = vld [vmem:[%s14454_s1 + $0x1228] ss:$16 sps:$4 sm:$0xff]   ;;  %v10477_v2 = vld [vmem:[%s14454_s1 + $0x120c] ss:$16 sps:$4 sm:$0xff]  }
 0x301   : > { %v10472_v21 = vld [vmem:[%s14454_s1 + $0x1008] ss:$16 sps:$4 sm:$0xff]   ;;  %v10480_v48 = vld [vmem:[%s14454_s1 + $0x11ec] ss:$16 sps:$4 sm:$0xff]  }
 0x302   : > { %7533 = vmatpush2.bf16.msra.mxu0 %v10412_v49  ;;  %v10475_v14 = vld [vmem:[%s14454_s1 + $0x1208] ss:$16 sps:$4 sm:$0xff]   ;;  %v10483_v49 = vld [vmem:[%s14454_s1 + $0x13ec] ss:$16 sps:$4 sm:$0xff]  }
 0x303   : > { %7576 = vmatpush2.bf16.msra.mxu1 %v10415_v23  ;;  %7534 = vmatprep.subr.bf16.mxu0 %v10420_v12  ;;  %v10478_v23 = vld [vmem:[%s14454_s1 + $0x11e8] ss:$16 sps:$4 sm:$0xff]  }
 0x304   : > { %7577 = vmatprep.subr.bf16.mxu1 %v10423_v3  ;;  %v10481_v12 = vld [vmem:[%s14454_s1 + $0x13e8] ss:$16 sps:$4 sm:$0xff]   ;;  %v10486_v3 = vld [vmem:[%s14454_s1 + $0x11cc] ss:$16 sps:$4 sm:$0xff]  }
 0x306   : > { %7535 = vmatpush2.bf16.msra.mxu0 %v10418_v33  ;;  %v10489_v33 = vld [vmem:[%s14454_s1 + $0x13cc] ss:$16 sps:$4 sm:$0xff]  }
 0x307   : > { %7578 = vmatpush2.bf16.msra.mxu1 %v10421_v53  ;;  %7536 = vmatprep.subr.bf16.mxu0 %v10426_v38  ;;  %v10484_v53 = vld [vmem:[%s14454_s1 + $0x11c8] ss:$16 sps:$4 sm:$0xff]  }
 0x308   : > { %7579 = vmatprep.subr.bf16.mxu1 %v10429_v29  ;;  %v10487_v38 = vld [vmem:[%s14454_s1 + $0x13c8] ss:$16 sps:$4 sm:$0xff]   ;;  %v10492_v29 = vld [vmem:[%s14454_s1 + $0x11ac] ss:$16 sps:$4 sm:$0xff]  }
 0x30a   : > { %7537 = vmatpush2.bf16.msra.mxu0 %v10424_v30  ;;  %v10495_v30 = vld [vmem:[%s14454_s1 + $0x13ac] ss:$16 sps:$4 sm:$0xff]  }
 0x30b   : > { %7580 = vmatpush2.bf16.msra.mxu1 %v10427_v39  ;;  %v10815_v17 = vpop.eup %10814  ;;  %7592 = vmatprep.subr.bf16.mxu0 %v10432_v42  ;;  %v10490_v39 = vld [vmem:[%s14454_s1 + $0x11a8] ss:$16 sps:$4 sm:$0xff]  }
 0x30c   : > { %7635 = vmatprep.subr.bf16.mxu1 %v10435_v58  ;;  %v8071_v32 = vmul.f32 %v10815_v17, %v13512_v15  ;;  %v8075_v62 = vmul.f32 %v10815_v17, %v13514_v1  ;;  %v10493_v42 = vld [vmem:[%s14454_s1 + $0x13a8] ss:$16 sps:$4 sm:$0xff]   ;;  %v10498_v58 = vld [vmem:[%s14454_s1 + $0x118c] ss:$16 sps:$4 sm:$0xff]  }
 0x30d   : > { %v10817_v4 = vpop.eup %10816  ;;  %7539 = vmatmul.mubr.bf16.vlgmr.msra.gmra.mxu0 %v11787_v10  ;;  %v10499_v17 = vld [vmem:[%s14454_s1 + $0x1388] ss:$16 sps:$4 sm:$0xff]  }
 0x30e   : > { %7582 = vmatmul.mubr.bf16.vlgmr.msra.gmra.mxu1 %v11791_v11  ;;  %vm8079_vm1 = vcmp.ge.f32.partialorder %v8071_v32, 0.0  ;;  %vm8083_vm2 = vcmp.ge.f32.partialorder %v8075_v62, 0.0  ;;  %v8087_v10 = vmul.f32 0.2, %v8071_v32  ;;  %v8091_v15 = vmul.f32 0.2, %v8075_v62  ;;  %7593 = vmatpush1.bf16.msra.mxu0 %v10430_v36 }
 0x30f   : > { %7636 = vmatpush1.bf16.msra.mxu1 %v10433_v52  ;;  %v8072_v11 = vmul.f32 %v10817_v4, %v13527_v35  ;;  %v8076_v1 = vmul.f32 %v10817_v4, %v13530_v27  ;;  %7594 = vmatprep.subr.bf16.mxu0 %v10438_v16  ;;  %v10501_v36 = vld [vmem:[%s14454_s1 + $0x138c] ss:$16 sps:$4 sm:$0xff]   ;;  %v10496_v52 = vld [vmem:[%s14454_s1 + $0x1188] ss:$16 sps:$4 sm:$0xff]  }
 0x310   : > { %7637 = vmatprep.subr.bf16.mxu1 %v10441_v34  ;;  %v8095_v40 = vsel %vm8079_vm1, %v8071_v32, %v8087_v10  ;;  %v8099_v31 = vsel %vm8083_vm2, %v8075_v62, %v8091_v15  ;;  %7624 = vmatprep.mubr.bf16.mxu0 %v11807_v46  ;;  %v10445_v46 = vld [vmem:[%s14454_s1 + $0x12a8] ss:$16 sps:$4 sm:$0xff]   ;;  %v10504_v16 = vld [vmem:[%s14454_s1 + $0x116c] ss:$16 sps:$4 sm:$0xff]  }
 0x311   : > { %7667 = vmatprep.mubr.bf16.mxu1 %v11811_v47  ;;  %8103 = vst [vmem:[%s13659_s25] sm:$0xff] %v8095_v40  ;;  %8107 = vst [vmem:[%s13659_s25 + $0x20] sm:$0xff] %v8099_v31  ;;  %vm8080_vm3 = vcmp.ge.f32.partialorder %v8072_v11, 0.0  ;;  %vm8084_vm4 = vcmp.ge.f32.partialorder %v8076_v1, 0.0  ;;  %v8088_v35 = vmul.f32 0.2, %v8072_v11 }
 0x312   : > { %v8092_v27 = vmul.f32 0.2, %v8076_v1  ;;  %7595 = vmatpush1.bf16.msra.mxu0 %v10436_v5  ;;  %v10507_v34 = vld [vmem:[%s14454_s1 + $0x136c] ss:$16 sps:$4 sm:$0xff]   ;;  %v10502_v32 = vld [vmem:[%s14454_s1 + $0x1168] ss:$16 sps:$4 sm:$0xff]  }
 0x313   : > { %7638 = vmatpush1.bf16.msra.mxu1 %v10439_v44  ;;  %v8096_v22 = vsel %vm8080_vm3, %v8072_v11, %v8088_v35  ;;  %7596 = vmatprep.subr.bf16.mxu0 %v10444_v25  ;;  %v10505_v62 = vld [vmem:[%s14454_s1 + $0x1368] ss:$16 sps:$4 sm:$0xff]   ;;  %v10510_v4 = vld [vmem:[%s14454_s1 + $0x114c] ss:$16 sps:$4 sm:$0xff]  }
 0x314   : > { %v8100_v47 = vsel %vm8084_vm4, %v8076_v1, %v8092_v27  ;;  %7639 = vmatprep.subr.bf16.mxu1 %v10447_v43  ;;  %8104 = vst [vmem:[%s13659_s25 + $0x8] sm:$0xff] %v8096_v22  ;;  %v10513_v5 = vld [vmem:[%s14454_s1 + $0x134c] ss:$16 sps:$4 sm:$0xff]   ;;  %v10508_v44 = vld [vmem:[%s14454_s1 + $0x1148] ss:$16 sps:$4 sm:$0xff]  }
 0x315   : > { %8108 = vst [vmem:[%s13659_s25 + $0x28] sm:$0xff] %v8100_v47  ;;  %v10511_v10 = vld [vmem:[%s14454_s1 + $0x1348] ss:$16 sps:$4 sm:$0xff]   ;;  %v10516_v15 = vld [vmem:[%s14454_s1 + $0x112c] ss:$16 sps:$4 sm:$0xff]  }
 0x316   : > { %7597 = vmatpush1.bf16.msra.mxu0 %v10442_v18  ;;  %v10519_v11 = vld [vmem:[%s14454_s1 + $0x132c] ss:$16 sps:$4 sm:$0xff]   ;;  %v10514_v1 = vld [vmem:[%s14454_s1 + $0x1128] ss:$16 sps:$4 sm:$0xff]  }
 0x317   : > { %7640 = vmatpush1.bf16.msra.mxu1 %v10445_v46  ;;  %7598 = vmatprep.subr.bf16.mxu0 %v10450_v26  ;;  %v10517_v25 = vld [vmem:[%s14454_s1 + $0x1328] ss:$16 sps:$4 sm:$0xff]   ;;  %v10522_v43 = vld [vmem:[%s14454_s1 + $0x110c] ss:$16 sps:$4 sm:$0xff]  }
 0x318   : > { %7641 = vmatprep.subr.bf16.mxu1 %v10453_v28  ;;  %v10525_v40 = vld [vmem:[%s14454_s1 + $0x130c] ss:$16 sps:$4 sm:$0xff]   ;;  %v10520_v31 = vld [vmem:[%s14454_s1 + $0x1108] ss:$16 sps:$4 sm:$0xff]  }
 0x319   : > { %v10523_v35 = vld [vmem:[%s14454_s1 + $0x1308] ss:$16 sps:$4 sm:$0xff]   ;;  %v10528_v27 = vld [vmem:[%s14454_s1 + $0x14ec] ss:$16 sps:$4 sm:$0xff]  }
 0x31a   : > { %7599 = vmatpush1.bf16.msra.mxu0 %v10448_v54  ;;  %v10531_v18 = vld [vmem:[%s14454_s1 + $0x16ec] ss:$16 sps:$4 sm:$0xff]   ;;  %v10526_v46 = vld [vmem:[%s14454_s1 + $0x14e8] ss:$16 sps:$4 sm:$0xff]  }
 0x31b   : > { %7642 = vmatpush1.bf16.msra.mxu1 %v10451_v8  ;;  %7600 = vmatprep.subr.bf16.mxu0 %v10456_v37  ;;  %v10529_v22 = vld [vmem:[%s14454_s1 + $0x16e8] ss:$16 sps:$4 sm:$0xff]   ;;  %v10534_v47 = vld [vmem:[%s14454_s1 + $0x14cc] ss:$16 sps:$4 sm:$0xff]  }
 0x31c   : > { %7643 = vmatprep.subr.bf16.mxu1 %v10459_v63  ;;  %v10537_v26 = vld [vmem:[%s14454_s1 + $0x16cc] ss:$16 sps:$4 sm:$0xff]   ;;  %v10532_v28 = vld [vmem:[%s14454_s1 + $0x14c8] ss:$16 sps:$4 sm:$0xff]  }
 0x31d   : > { %v10535_v54 = vld [vmem:[%s14454_s1 + $0x16c8] ss:$16 sps:$4 sm:$0xff]   ;;  %v10540_v8 = vld [vmem:[%s14454_s1 + $0x14ac] ss:$16 sps:$4 sm:$0xff]  }
 0x31e   : > { %7601 = vmatpush1.bf16.msra.mxu0 %v10454_v6  ;;  %v10541_v37 = vld [vmem:[%s14454_s1 + $0x16a8] ss:$16 sps:$4 sm:$0xff]   ;;  %v10546_v63 = vld [vmem:[%s14454_s1 + $0x148c] ss:$16 sps:$4 sm:$0xff]  }
 0x31f   : > { %7644 = vmatpush1.bf16.msra.mxu1 %v10457_v60  ;;  %7602 = vmatprep.subr.bf16.mxu0 %v10462_v9  ;;  %v10547_v6 = vld [vmem:[%s14454_s1 + $0x1688] ss:$16 sps:$4 sm:$0xff]   ;;  %v10552_v60 = vld [vmem:[%s14454_s1 + $0x146c] ss:$16 sps:$4 sm:$0xff]  }
 0x320   : > { %7645 = vmatprep.subr.bf16.mxu1 %v10465_v13  ;;  %v10555_v9 = vld [vmem:[%s14454_s1 + $0x166c] ss:$16 sps:$4 sm:$0xff]   ;;  %v10550_v13 = vld [vmem:[%s14454_s1 + $0x1468] ss:$16 sps:$4 sm:$0xff]  }
 0x322   : > { %7603 = vmatpush1.bf16.msra.mxu0 %v10460_v50  ;;  %v10553_v50 = vld [vmem:[%s14454_s1 + $0x1668] ss:$16 sps:$4 sm:$0xff]  }
 0x323   : > { %7646 = vmatpush1.bf16.msra.mxu1 %v10463_v0  ;;  %7604 = vmatprep.subr.bf16.mxu0 %v10468_v19  ;;  %v10558_v0 = vld [vmem:[%s14454_s1 + $0x144c] ss:$16 sps:$4 sm:$0xff]  }
 0x324   : > { %7647 = vmatprep.subr.bf16.mxu1 %v10471_v7  ;;  %v10561_v19 = vld [vmem:[%s14454_s1 + $0x164c] ss:$16 sps:$4 sm:$0xff]   ;;  %v10556_v7 = vld [vmem:[%s14454_s1 + $0x1448] ss:$16 sps:$4 sm:$0xff]  }
 0x326   : > { %7605 = vmatpush1.bf16.msra.mxu0 %v10466_v61  ;;  %v10559_v61 = vld [vmem:[%s14454_s1 + $0x1648] ss:$16 sps:$4 sm:$0xff]  }
 0x327   : > { %7648 = vmatpush1.bf16.msra.mxu1 %v10469_v20  ;;  %7606 = vmatprep.subr.bf16.mxu0 %v10474_v41  ;;  %v10564_v20 = vld [vmem:[%s14454_s1 + $0x142c] ss:$16 sps:$4 sm:$0xff]  }
 0x328   : > { %7649 = vmatprep.subr.bf16.mxu1 %v10477_v2  ;;  %v10567_v41 = vld [vmem:[%s14454_s1 + $0x162c] ss:$16 sps:$4 sm:$0xff]   ;;  %v10562_v2 = vld [vmem:[%s14454_s1 + $0x1428] ss:$16 sps:$4 sm:$0xff]  }
 0x32a   : > { %7607 = vmatpush1.bf16.msra.mxu0 %v10472_v21  ;;  %v10565_v21 = vld [vmem:[%s14454_s1 + $0x1628] ss:$16 sps:$4 sm:$0xff]  }
 0x32b   : > { %7650 = vmatpush1.bf16.msra.mxu1 %v10475_v14  ;;  %7608 = vmatprep.subr.bf16.mxu0 %v10480_v48  ;;  %v10570_v14 = vld [vmem:[%s14454_s1 + $0x140c] ss:$16 sps:$4 sm:$0xff]  }
 0x32c   : > { %7651 = vmatprep.subr.bf16.mxu1 %v10483_v49  ;;  %v10573_v48 = vld [vmem:[%s14454_s1 + $0x160c] ss:$16 sps:$4 sm:$0xff]   ;;  %v10568_v49 = vld [vmem:[%s14454_s1 + $0x1408] ss:$16 sps:$4 sm:$0xff]  }
 0x32e   : > { %7609 = vmatpush2.bf16.msra.mxu0 %v10478_v23  ;;  %v10571_v23 = vld [vmem:[%s14454_s1 + $0x1608] ss:$16 sps:$4 sm:$0xff]  }
 0x32f   : > { %7652 = vmatpush2.bf16.msra.mxu1 %v10481_v12  ;;  %7610 = vmatprep.subr.bf16.mxu0 %v10486_v3  ;;  %v10576_v12 = vld [vmem:[%s14454_s1 + $0x15ec] ss:$16 sps:$4 sm:$0xff]  }
 0x330   : > { %7653 = vmatprep.subr.bf16.mxu1 %v10489_v33  ;;  %v10579_v3 = vld [vmem:[%s14454_s1 + $0x17ec] ss:$16 sps:$4 sm:$0xff]   ;;  %v10574_v33 = vld [vmem:[%s14454_s1 + $0x15e8] ss:$16 sps:$4 sm:$0xff]  }
 0x332   : > { %7611 = vmatpush2.bf16.msra.mxu0 %v10484_v53  ;;  %v10577_v53 = vld [vmem:[%s14454_s1 + $0x17e8] ss:$16 sps:$4 sm:$0xff]  }
 0x333   : > { %7654 = vmatpush2.bf16.msra.mxu1 %v10487_v38  ;;  %7612 = vmatprep.subr.bf16.mxu0 %v10492_v29  ;;  %v10582_v38 = vld [vmem:[%s14454_s1 + $0x15cc] ss:$16 sps:$4 sm:$0xff]  }
 0x334   : > { %7655 = vmatprep.subr.bf16.mxu1 %v10495_v30  ;;  %v10585_v29 = vld [vmem:[%s14454_s1 + $0x17cc] ss:$16 sps:$4 sm:$0xff]   ;;  %v10580_v30 = vld [vmem:[%s14454_s1 + $0x15c8] ss:$16 sps:$4 sm:$0xff]  }
 0x336   : > { %7613 = vmatpush2.bf16.msra.mxu0 %v10490_v39  ;;  %v10583_v39 = vld [vmem:[%s14454_s1 + $0x17c8] ss:$16 sps:$4 sm:$0xff]  }
 0x337   : > { %7656 = vmatpush2.bf16.msra.mxu1 %v10493_v42  ;;  %7614 = vmatprep.subr.bf16.mxu0 %v10498_v58  ;;  %v10588_v42 = vld [vmem:[%s14454_s1 + $0x15ac] ss:$16 sps:$4 sm:$0xff]  }
 0x338   : > { %7657 = vmatprep.subr.bf16.mxu1 %v10501_v36  ;;  %v10591_v58 = vld [vmem:[%s14454_s1 + $0x17ac] ss:$16 sps:$4 sm:$0xff]   ;;  %v10586_v36 = vld [vmem:[%s14454_s1 + $0x15a8] ss:$16 sps:$4 sm:$0xff]  }
 0x33a   : > { %7615 = vmatpush2.bf16.msra.mxu0 %v10496_v52  ;;  %v10589_v52 = vld [vmem:[%s14454_s1 + $0x17a8] ss:$16 sps:$4 sm:$0xff]  }
 0x33b   : > { %7658 = vmatpush2.bf16.msra.mxu1 %v10499_v17  ;;  %7616 = vmatprep.subr.bf16.mxu0 %v10504_v16  ;;  %v10594_v17 = vld [vmem:[%s14454_s1 + $0x158c] ss:$16 sps:$4 sm:$0xff]  }
 0x33c   : > { %7659 = vmatprep.subr.bf16.mxu1 %v10507_v34  ;;  %v10597_v16 = vld [vmem:[%s14454_s1 + $0x178c] ss:$16 sps:$4 sm:$0xff]   ;;  %v10592_v34 = vld [vmem:[%s14454_s1 + $0x1588] ss:$16 sps:$4 sm:$0xff]  }
 0x33e   : > { %7617 = vmatpush2.bf16.msra.mxu0 %v10502_v32  ;;  %v10595_v32 = vld [vmem:[%s14454_s1 + $0x1788] ss:$16 sps:$4 sm:$0xff]  }
 0x33f   : > { %7660 = vmatpush2.bf16.msra.mxu1 %v10505_v62  ;;  %7618 = vmatprep.subr.bf16.mxu0 %v10510_v4  ;;  %v10600_v62 = vld [vmem:[%s14454_s1 + $0x156c] ss:$16 sps:$4 sm:$0xff]  }
 0x340   : > { %7661 = vmatprep.subr.bf16.mxu1 %v10513_v5  ;;  %v10603_v4 = vld [vmem:[%s14454_s1 + $0x176c] ss:$16 sps:$4 sm:$0xff]   ;;  %v10598_v5 = vld [vmem:[%s14454_s1 + $0x1568] ss:$16 sps:$4 sm:$0xff]  }
 0x342   : > { %7619 = vmatpush2.bf16.msra.mxu0 %v10508_v44  ;;  %v10601_v44 = vld [vmem:[%s14454_s1 + $0x1768] ss:$16 sps:$4 sm:$0xff]  }
 0x343   : > { %7662 = vmatpush2.bf16.msra.mxu1 %v10511_v10  ;;  %7620 = vmatprep.subr.bf16.mxu0 %v10516_v15  ;;  %v10606_v10 = vld [vmem:[%s14454_s1 + $0x154c] ss:$16 sps:$4 sm:$0xff]  }
 0x344   : > { %7663 = vmatprep.subr.bf16.mxu1 %v10519_v11  ;;  %v10609_v15 = vld [vmem:[%s14454_s1 + $0x174c] ss:$16 sps:$4 sm:$0xff]   ;;  %v10604_v11 = vld [vmem:[%s14454_s1 + $0x1548] ss:$16 sps:$4 sm:$0xff]  }
 0x346   : > { %7621 = vmatpush2.bf16.msra.mxu0 %v10514_v1  ;;  %v10607_v1 = vld [vmem:[%s14454_s1 + $0x1748] ss:$16 sps:$4 sm:$0xff]  }
 0x347   : > { %7664 = vmatpush2.bf16.msra.mxu1 %v10517_v25  ;;  %7622 = vmatprep.subr.bf16.mxu0 %v10522_v43  ;;  %v10612_v25 = vld [vmem:[%s14454_s1 + $0x152c] ss:$16 sps:$4 sm:$0xff]  }
 0x348   : > { %7665 = vmatprep.subr.bf16.mxu1 %v10525_v40  ;;  %v10615_v43 = vld [vmem:[%s14454_s1 + $0x172c] ss:$16 sps:$4 sm:$0xff]   ;;  %v10610_v40 = vld [vmem:[%s14454_s1 + $0x1528] ss:$16 sps:$4 sm:$0xff]  }
 0x34a   : > { %7623 = vmatpush2.bf16.msra.mxu0 %v10520_v31  ;;  %v10613_v31 = vld [vmem:[%s14454_s1 + $0x1728] ss:$16 sps:$4 sm:$0xff]  }
 0x34b   : > { %7666 = vmatpush2.bf16.msra.mxu1 %v10523_v35  ;;  %7678 = vmatprep.subr.bf16.mxu0 %v10528_v27  ;;  %v10618_v35 = vld [vmem:[%s14454_s1 + $0x150c] ss:$16 sps:$4 sm:$0xff]  }
 0x34c   : > { %7721 = vmatprep.subr.bf16.mxu1 %v10531_v18  ;;  %v10621_v27 = vld [vmem:[%s14454_s1 + $0x170c] ss:$16 sps:$4 sm:$0xff]   ;;  %v10616_v18 = vld [vmem:[%s14454_s1 + $0x1508] ss:$16 sps:$4 sm:$0xff]  }
 0x34d   : > { %7625 = vmatmul.mubr.bf16.vlgmr.msra.gmra.mxu0 %v12005_v45  ;;  %v10543_v45 = vld [vmem:[%s14454_s1 + $0x16ac] ss:$16 sps:$4 sm:$0xff]  }
 0x34e   : > { %7668 = vmatmul.mubr.bf16.vlgmr.msra.gmra.mxu1 %v12009_v51  ;;  %7679 = vmatpush1.bf16.msra.mxu0 %v10526_v46  ;;  %v10538_v51 = vld [vmem:[%s14454_s1 + $0x14a8] ss:$16 sps:$4 sm:$0xff]  }
 0x34f   : > { %7722 = vmatpush1.bf16.msra.mxu1 %v10529_v22  ;;  %7680 = vmatprep.subr.bf16.mxu0 %v10534_v47  ;;  %v10619_v46 = vld [vmem:[%s14454_s1 + $0x1708] ss:$16 sps:$4 sm:$0xff]   ;;  %v10624_v22 = vld [vmem:[%s14454_s1 + $0x18ec] ss:$16 sps:$4 sm:$0xff]  }
 0x350   : > { %7723 = vmatprep.subr.bf16.mxu1 %v10537_v26  ;;  %7710 = vmatprep.mubr.bf16.mxu0 %v12037_v56  ;;  %v10549_v56 = vld [vmem:[%s14454_s1 + $0x168c] ss:$16 sps:$4 sm:$0xff]   ;;  %v10622_v26 = vld [vmem:[%s14454_s1 + $0x18e8] ss:$16 sps:$4 sm:$0xff]  }
 0x351   : > { %7753 = vmatprep.mubr.bf16.mxu1 %v12041_v57  ;;  %v10544_v57 = vld [vmem:[%s14454_s1 + $0x1488] ss:$16 sps:$4 sm:$0xff]   ;;  %v10627_v47 = vld [vmem:[%s14454_s1 + $0x1aec] ss:$16 sps:$4 sm:$0xff]  }
 0x352   : > { %7681 = vmatpush1.bf16.msra.mxu0 %v10532_v28  ;;  %v10625_v28 = vld [vmem:[%s14454_s1 + $0x1ae8] ss:$16 sps:$4 sm:$0xff]  }
 0x353   : > { %7724 = vmatpush1.bf16.msra.mxu1 %v10535_v54  ;;  %7682 = vmatprep.subr.bf16.mxu0 %v10540_v8  ;;  %v10630_v54 = vld [vmem:[%s14454_s1 + $0x18cc] ss:$16 sps:$4 sm:$0xff]  }
 0x354   : > { %7725 = vmatprep.subr.bf16.mxu1 %v10543_v45  ;;  %v10633_v8 = vld [vmem:[%s14454_s1 + $0x1acc] ss:$16 sps:$4 sm:$0xff]   ;;  %v14475_v45 = vld [vmem:[#allocation2_spill] sm:$0xff] }
 0x356   : > { %7683 = vmatpush1.bf16.msra.mxu0 %v10538_v51  ;;  %v10628_v51 = vld [vmem:[%s14454_s1 + $0x18c8] ss:$16 sps:$4 sm:$0xff]  }
 0x357   : > { %7726 = vmatpush1.bf16.msra.mxu1 %v10541_v37  ;;  %7684 = vmatprep.subr.bf16.mxu0 %v10546_v63  ;;  %v10631_v37 = vld [vmem:[%s14454_s1 + $0x1ac8] ss:$16 sps:$4 sm:$0xff]   ;;  %v10636_v63 = vld [vmem:[%s14454_s1 + $0x18ac] ss:$16 sps:$4 sm:$0xff]  }
 0x358   : > { %7727 = vmatprep.subr.bf16.mxu1 %v10549_v56  ;;  %v14476_v56 = vld [vmem:[#allocation3_spill] sm:$0xff] }
 0x35a   : > { %7685 = vmatpush1.bf16.msra.mxu0 %v10544_v57  ;;  %v14477_v57 = vld [vmem:[#allocation4_spill] sm:$0xff] }
 0x35b   : > { %7728 = vmatpush1.bf16.msra.mxu1 %v10547_v6  ;;  %7686 = vmatprep.subr.bf16.mxu0 %v10552_v60  ;;  %v10634_v6 = vld [vmem:[%s14454_s1 + $0x18a8] ss:$16 sps:$4 sm:$0xff]  }
 0x35c   : > { %7729 = vmatprep.subr.bf16.mxu1 %v10555_v9  ;;  %v10637_v60 = vld [vmem:[%s14454_s1 + $0x1aa8] ss:$16 sps:$4 sm:$0xff]   ;;  %v10642_v9 = vld [vmem:[%s14454_s1 + $0x188c] ss:$16 sps:$4 sm:$0xff]  }
 0x35e   : > { %7687 = vmatpush1.bf16.msra.mxu0 %v10550_v13  ;;  %v10645_v13 = vld [vmem:[%s14454_s1 + $0x1a8c] ss:$16 sps:$4 sm:$0xff]  }
 0x35f   : > { %7730 = vmatpush1.bf16.msra.mxu1 %v10553_v50  ;;  %7688 = vmatprep.subr.bf16.mxu0 %v10558_v0  ;;  %v10640_v50 = vld [vmem:[%s14454_s1 + $0x1888] ss:$16 sps:$4 sm:$0xff]  }
 0x360   : > { %7731 = vmatprep.subr.bf16.mxu1 %v10561_v19  ;;  %v10643_v0 = vld [vmem:[%s14454_s1 + $0x1a88] ss:$16 sps:$4 sm:$0xff]   ;;  %v10648_v19 = vld [vmem:[%s14454_s1 + $0x186c] ss:$16 sps:$4 sm:$0xff]  }
 0x362   : > { %7689 = vmatpush1.bf16.msra.mxu0 %v10556_v7  ;;  %v10651_v7 = vld [vmem:[%s14454_s1 + $0x1a6c] ss:$16 sps:$4 sm:$0xff]  }
 0x363   : > { %7732 = vmatpush1.bf16.msra.mxu1 %v10559_v61  ;;  %7690 = vmatprep.subr.bf16.mxu0 %v10564_v20  ;;  %v10646_v61 = vld [vmem:[%s14454_s1 + $0x1868] ss:$16 sps:$4 sm:$0xff]  }
 0x364   : > { %7733 = vmatprep.subr.bf16.mxu1 %v10567_v41  ;;  %v10649_v20 = vld [vmem:[%s14454_s1 + $0x1a68] ss:$16 sps:$4 sm:$0xff]   ;;  %v10654_v41 = vld [vmem:[%s14454_s1 + $0x184c] ss:$16 sps:$4 sm:$0xff]  }
 0x366   : > { %7691 = vmatpush1.bf16.msra.mxu0 %v10562_v2  ;;  %v10657_v2 = vld [vmem:[%s14454_s1 + $0x1a4c] ss:$16 sps:$4 sm:$0xff]  }
 0x367   : > { %7734 = vmatpush1.bf16.msra.mxu1 %v10565_v21  ;;  %7692 = vmatprep.subr.bf16.mxu0 %v10570_v14  ;;  %v10652_v21 = vld [vmem:[%s14454_s1 + $0x1848] ss:$16 sps:$4 sm:$0xff]  }
 0x368   : > { %7735 = vmatprep.subr.bf16.mxu1 %v10573_v48  ;;  %v10655_v14 = vld [vmem:[%s14454_s1 + $0x1a48] ss:$16 sps:$4 sm:$0xff]   ;;  %v10660_v48 = vld [vmem:[%s14454_s1 + $0x182c] ss:$16 sps:$4 sm:$0xff]  }
 0x36a   : > { %7693 = vmatpush1.bf16.msra.mxu0 %v10568_v49  ;;  %v10663_v49 = vld [vmem:[%s14454_s1 + $0x1a2c] ss:$16 sps:$4 sm:$0xff]  }
 0x36b   : > { %7736 = vmatpush1.bf16.msra.mxu1 %v10571_v23  ;;  %7694 = vmatprep.subr.bf16.mxu0 %v10576_v12  ;;  %v10658_v23 = vld [vmem:[%s14454_s1 + $0x1828] ss:$16 sps:$4 sm:$0xff]  }
 0x36c   : > { %7737 = vmatprep.subr.bf16.mxu1 %v10579_v3  ;;  %v10661_v12 = vld [vmem:[%s14454_s1 + $0x1a28] ss:$16 sps:$4 sm:$0xff]   ;;  %v10666_v3 = vld [vmem:[%s14454_s1 + $0x180c] ss:$16 sps:$4 sm:$0xff]  }
 0x36e   : > { %7695 = vmatpush2.bf16.msra.mxu0 %v10574_v33  ;;  %v10669_v33 = vld [vmem:[%s14454_s1 + $0x1a0c] ss:$16 sps:$4 sm:$0xff]  }
 0x36f   : > { %7738 = vmatpush2.bf16.msra.mxu1 %v10577_v53  ;;  %7696 = vmatprep.subr.bf16.mxu0 %v10582_v38  ;;  %v10664_v53 = vld [vmem:[%s14454_s1 + $0x1808] ss:$16 sps:$4 sm:$0xff]  }
 0x370   : > { %7739 = vmatprep.subr.bf16.mxu1 %v10585_v29  ;;  %v10667_v38 = vld [vmem:[%s14454_s1 + $0x1a08] ss:$16 sps:$4 sm:$0xff]   ;;  %v10672_v29 = vld [vmem:[%s14454_s1 + $0x19ec] ss:$16 sps:$4 sm:$0xff]  }
 0x372   : > { %7697 = vmatpush2.bf16.msra.mxu0 %v10580_v30  ;;  %v10675_v30 = vld [vmem:[%s14454_s1 + $0x1bec] ss:$16 sps:$4 sm:$0xff]  }
 0x373   : > { %7740 = vmatpush2.bf16.msra.mxu1 %v10583_v39  ;;  %7698 = vmatprep.subr.bf16.mxu0 %v10588_v42  ;;  %v10670_v39 = vld [vmem:[%s14454_s1 + $0x19e8] ss:$16 sps:$4 sm:$0xff]  }
 0x374   : > { %7741 = vmatprep.subr.bf16.mxu1 %v10591_v58  ;;  %v10673_v42 = vld [vmem:[%s14454_s1 + $0x1be8] ss:$16 sps:$4 sm:$0xff]   ;;  %v10678_v58 = vld [vmem:[%s14454_s1 + $0x19cc] ss:$16 sps:$4 sm:$0xff]  }
 0x376   : > { %7699 = vmatpush2.bf16.msra.mxu0 %v10586_v36  ;;  %v10681_v36 = vld [vmem:[%s14454_s1 + $0x1bcc] ss:$16 sps:$4 sm:$0xff]  }
 0x377   : > { %7742 = vmatpush2.bf16.msra.mxu1 %v10589_v52  ;;  %7700 = vmatprep.subr.bf16.mxu0 %v10594_v17  ;;  %v10676_v52 = vld [vmem:[%s14454_s1 + $0x19c8] ss:$16 sps:$4 sm:$0xff]  }
 0x378   : > { %7743 = vmatprep.subr.bf16.mxu1 %v10597_v16  ;;  %v10679_v17 = vld [vmem:[%s14454_s1 + $0x1bc8] ss:$16 sps:$4 sm:$0xff]   ;;  %v10684_v16 = vld [vmem:[%s14454_s1 + $0x19ac] ss:$16 sps:$4 sm:$0xff]  }
 0x37a   : > { %7701 = vmatpush2.bf16.msra.mxu0 %v10592_v34  ;;  %v10687_v34 = vld [vmem:[%s14454_s1 + $0x1bac] ss:$16 sps:$4 sm:$0xff]  }
 0x37b   : > { %7744 = vmatpush2.bf16.msra.mxu1 %v10595_v32  ;;  %7702 = vmatprep.subr.bf16.mxu0 %v10600_v62  ;;  %v10682_v32 = vld [vmem:[%s14454_s1 + $0x19a8] ss:$16 sps:$4 sm:$0xff]  }
 0x37c   : > { %7745 = vmatprep.subr.bf16.mxu1 %v10603_v4  ;;  %v10685_v62 = vld [vmem:[%s14454_s1 + $0x1ba8] ss:$16 sps:$4 sm:$0xff]   ;;  %v10690_v4 = vld [vmem:[%s14454_s1 + $0x198c] ss:$16 sps:$4 sm:$0xff]  }
 0x37e   : > { %7703 = vmatpush2.bf16.msra.mxu0 %v10598_v5  ;;  %v10693_v5 = vld [vmem:[%s14454_s1 + $0x1b8c] ss:$16 sps:$4 sm:$0xff]  }
 0x37f   : > { %7746 = vmatpush2.bf16.msra.mxu1 %v10601_v44  ;;  %7704 = vmatprep.subr.bf16.mxu0 %v10606_v10  ;;  %v10688_v44 = vld [vmem:[%s14454_s1 + $0x1988] ss:$16 sps:$4 sm:$0xff]  }
 0x380   : > { %7747 = vmatprep.subr.bf16.mxu1 %v10609_v15  ;;  %v10691_v10 = vld [vmem:[%s14454_s1 + $0x1b88] ss:$16 sps:$4 sm:$0xff]   ;;  %v10696_v15 = vld [vmem:[%s14454_s1 + $0x196c] ss:$16 sps:$4 sm:$0xff]  }
 0x382   : > { %7705 = vmatpush2.bf16.msra.mxu0 %v10604_v11  ;;  %v10699_v11 = vld [vmem:[%s14454_s1 + $0x1b6c] ss:$16 sps:$4 sm:$0xff]  }
 0x383   : > { %7748 = vmatpush2.bf16.msra.mxu1 %v10607_v1  ;;  %7706 = vmatprep.subr.bf16.mxu0 %v10612_v25  ;;  %v10694_v1 = vld [vmem:[%s14454_s1 + $0x1968] ss:$16 sps:$4 sm:$0xff]  }
 0x384   : > { %7749 = vmatprep.subr.bf16.mxu1 %v10615_v43  ;;  %v10697_v25 = vld [vmem:[%s14454_s1 + $0x1b68] ss:$16 sps:$4 sm:$0xff]   ;;  %v10702_v43 = vld [vmem:[%s14454_s1 + $0x194c] ss:$16 sps:$4 sm:$0xff]  }
 0x386   : > { %7707 = vmatpush2.bf16.msra.mxu0 %v10610_v40  ;;  %v10705_v40 = vld [vmem:[%s14454_s1 + $0x1b4c] ss:$16 sps:$4 sm:$0xff]  }
 0x387   : > { %7750 = vmatpush2.bf16.msra.mxu1 %v10613_v31  ;;  %7708 = vmatprep.subr.bf16.mxu0 %v10618_v35  ;;  %v10700_v31 = vld [vmem:[%s14454_s1 + $0x1948] ss:$16 sps:$4 sm:$0xff]  }
 0x388   : > { %7751 = vmatprep.subr.bf16.mxu1 %v10621_v27  ;;  %v10703_v35 = vld [vmem:[%s14454_s1 + $0x1b48] ss:$16 sps:$4 sm:$0xff]   ;;  %v10708_v27 = vld [vmem:[%s14454_s1 + $0x192c] ss:$16 sps:$4 sm:$0xff]  }
 0x38a   : > { %7709 = vmatpush2.bf16.msra.mxu0 %v10616_v18  ;;  %v10711_v18 = vld [vmem:[%s14454_s1 + $0x1b2c] ss:$16 sps:$4 sm:$0xff]  }
 0x38b   : > { %7752 = vmatpush2.bf16.msra.mxu1 %v10619_v46  ;;  %7764 = vmatprep.subr.bf16.mxu0 %v10624_v22  ;;  %v10706_v46 = vld [vmem:[%s14454_s1 + $0x1928] ss:$16 sps:$4 sm:$0xff]  }
 0x38c   : > { %7807 = vmatprep.subr.bf16.mxu1 %v10627_v47  ;;  %v10709_v22 = vld [vmem:[%s14454_s1 + $0x1b28] ss:$16 sps:$4 sm:$0xff]   ;;  %v10714_v47 = vld [vmem:[%s14454_s1 + $0x190c] ss:$16 sps:$4 sm:$0xff]  }
 0x38d   : > { %7711 = vmatmul.mubr.bf16.vlgmr.msra.gmra.mxu0 %v12229_v24  ;;  %v10639_v24 = vld [vmem:[%s14454_s1 + $0x1aac] ss:$16 sps:$4 sm:$0xff]  }
 0x38e   : > { %7754 = vmatmul.mubr.bf16.vlgmr.msra.gmra.mxu1 %v14475_v45  ;;  %7765 = vmatpush1.bf16.msra.mxu0 %v10622_v26  ;;  %v10717_v26 = vld [vmem:[%s14454_s1 + $0x1b0c] ss:$16 sps:$4 sm:$0xff]  }
 0x38f   : > { %7808 = vmatpush1.bf16.msra.mxu1 %v10625_v28  ;;  %7766 = vmatprep.subr.bf16.mxu0 %v10630_v54  ;;  %v10712_v28 = vld [vmem:[%s14454_s1 + $0x1908] ss:$16 sps:$4 sm:$0xff]   ;;  %v10723_v45 = vld [vmem:[%s14454_s1 + $0x1eec] ss:$16 sps:$4 sm:$0xff]  }
 0x390   : > { %7809 = vmatprep.subr.bf16.mxu1 %v10633_v8  ;;  %7796 = vmatprep.mubr.bf16.mxu0 %v14476_v56  ;;  %v10715_v54 = vld [vmem:[%s14454_s1 + $0x1b08] ss:$16 sps:$4 sm:$0xff]   ;;  %v10720_v8 = vld [vmem:[%s14454_s1 + $0x1cec] ss:$16 sps:$4 sm:$0xff]  }
 0x391   : > { %7839 = vmatprep.mubr.bf16.mxu1 %v14477_v57  ;;  %v14478_v56 = vld [vmem:[#allocation5_spill] sm:$0xff]  ;;  %v14479_v57 = vld [vmem:[#allocation6_spill] sm:$0xff] }
 0x392   : > { %7767 = vmatpush1.bf16.msra.mxu0 %v10628_v51  ;;  %v10718_v51 = vld [vmem:[%s14454_s1 + $0x1ce8] ss:$16 sps:$4 sm:$0xff]  }
 0x393   : > { %7810 = vmatpush1.bf16.msra.mxu1 %v10631_v37  ;;  %7768 = vmatprep.subr.bf16.mxu0 %v10636_v63  ;;  %v10721_v37 = vld [vmem:[%s14454_s1 + $0x1ee8] ss:$16 sps:$4 sm:$0xff]   ;;  %v10726_v63 = vld [vmem:[%s14454_s1 + $0x1ccc] ss:$16 sps:$4 sm:$0xff]  }
 0x394   : > { %7811 = vmatprep.subr.bf16.mxu1 %v10639_v24  ;;  %v10729_v24 = vld [vmem:[%s14454_s1 + $0x1ecc] ss:$16 sps:$4 sm:$0xff]  }
 0x396   : > { %7769 = vmatpush1.bf16.msra.mxu0 %v10634_v6  ;;  %v10724_v6 = vld [vmem:[%s14454_s1 + $0x1cc8] ss:$16 sps:$4 sm:$0xff]  }
 0x397   : > { %7812 = vmatpush1.bf16.msra.mxu1 %v10637_v60  ;;  %7770 = vmatprep.subr.bf16.mxu0 %v10642_v9  ;;  %v10727_v60 = vld [vmem:[%s14454_s1 + $0x1ec8] ss:$16 sps:$4 sm:$0xff]   ;;  %v10732_v9 = vld [vmem:[%s14454_s1 + $0x1cac] ss:$16 sps:$4 sm:$0xff]  }
 0x398   : > { %7813 = vmatprep.subr.bf16.mxu1 %v10645_v13  ;;  %v10735_v13 = vld [vmem:[%s14454_s1 + $0x1eac] ss:$16 sps:$4 sm:$0xff]  }
 0x39a   : > { %7771 = vmatpush1.bf16.msra.mxu0 %v10640_v50  ;;  %v14480_v50 = vld [vmem:[#allocation7_spill] sm:$0xff] }
 0x39b   : > { %7814 = vmatpush1.bf16.msra.mxu1 %v10643_v0  ;;  %7772 = vmatprep.subr.bf16.mxu0 %v10648_v19  ;;  %v14481_v0 = vld [vmem:[#allocation8_spill] sm:$0xff]  ;;  %v10730_v19 = vld [vmem:[%s14454_s1 + $0x1ca8] ss:$16 sps:$4 sm:$0xff]  }
 0x39c   : > { %7815 = vmatprep.subr.bf16.mxu1 %v10651_v7  ;;  %v10733_v7 = vld [vmem:[%s14454_s1 + $0x1ea8] ss:$16 sps:$4 sm:$0xff]  }
 0x39e   : > { %7773 = vmatpush1.bf16.msra.mxu0 %v10646_v61  ;;  %v10738_v61 = vld [vmem:[%s14454_s1 + $0x1c8c] ss:$16 sps:$4 sm:$0xff]  }
 0x39f   : > { %7816 = vmatpush1.bf16.msra.mxu1 %v10649_v20  ;;  %7774 = vmatprep.subr.bf16.mxu0 %v10654_v41  ;;  %v10741_v20 = vld [vmem:[%s14454_s1 + $0x1e8c] ss:$16 sps:$4 sm:$0xff]   ;;  %v10736_v41 = vld [vmem:[%s14454_s1 + $0x1c88] ss:$16 sps:$4 sm:$0xff]  }
 0x3a0   : > { %7817 = vmatprep.subr.bf16.mxu1 %v10657_v2  ;;  %v10739_v2 = vld [vmem:[%s14454_s1 + $0x1e88] ss:$16 sps:$4 sm:$0xff]  }
 0x3a2   : > { %7775 = vmatpush1.bf16.msra.mxu0 %v10652_v21  ;;  %v10744_v21 = vld [vmem:[%s14454_s1 + $0x1c6c] ss:$16 sps:$4 sm:$0xff]  }
 0x3a3   : > { %7818 = vmatpush1.bf16.msra.mxu1 %v10655_v14  ;;  %7776 = vmatprep.subr.bf16.mxu0 %v10660_v48  ;;  %v10747_v14 = vld [vmem:[%s14454_s1 + $0x1e6c] ss:$16 sps:$4 sm:$0xff]   ;;  %v10742_v48 = vld [vmem:[%s14454_s1 + $0x1c68] ss:$16 sps:$4 sm:$0xff]  }
 0x3a4   : > { %7819 = vmatprep.subr.bf16.mxu1 %v10663_v49  ;;  %v10745_v49 = vld [vmem:[%s14454_s1 + $0x1e68] ss:$16 sps:$4 sm:$0xff]  }
 0x3a6   : > { %7777 = vmatpush1.bf16.msra.mxu0 %v10658_v23  ;;  %v10750_v23 = vld [vmem:[%s14454_s1 + $0x1c4c] ss:$16 sps:$4 sm:$0xff]  }
 0x3a7   : > { %7820 = vmatpush1.bf16.msra.mxu1 %v10661_v12  ;;  %7778 = vmatprep.subr.bf16.mxu0 %v10666_v3  ;;  %v10753_v12 = vld [vmem:[%s14454_s1 + $0x1e4c] ss:$16 sps:$4 sm:$0xff]   ;;  %v10748_v3 = vld [vmem:[%s14454_s1 + $0x1c48] ss:$16 sps:$4 sm:$0xff]  }
 0x3a8   : > { %7821 = vmatprep.subr.bf16.mxu1 %v10669_v33  ;;  %v10751_v33 = vld [vmem:[%s14454_s1 + $0x1e48] ss:$16 sps:$4 sm:$0xff]  }
 0x3aa   : > { %7779 = vmatpush1.bf16.msra.mxu0 %v10664_v53  ;;  %v10756_v53 = vld [vmem:[%s14454_s1 + $0x1c2c] ss:$16 sps:$4 sm:$0xff]  }
 0x3ab   : > { %7822 = vmatpush1.bf16.msra.mxu1 %v10667_v38  ;;  %7780 = vmatprep.subr.bf16.mxu0 %v10672_v29  ;;  %v10759_v38 = vld [vmem:[%s14454_s1 + $0x1e2c] ss:$16 sps:$4 sm:$0xff]   ;;  %v10754_v29 = vld [vmem:[%s14454_s1 + $0x1c28] ss:$16 sps:$4 sm:$0xff]  }
 0x3ac   : > { %7823 = vmatprep.subr.bf16.mxu1 %v10675_v30  ;;  %v10757_v30 = vld [vmem:[%s14454_s1 + $0x1e28] ss:$16 sps:$4 sm:$0xff]  }
 0x3ae   : > { %7781 = vmatpush2.bf16.msra.mxu0 %v10670_v39  ;;  %v10762_v39 = vld [vmem:[%s14454_s1 + $0x1c0c] ss:$16 sps:$4 sm:$0xff]  }
 0x3af   : > { %7824 = vmatpush2.bf16.msra.mxu1 %v10673_v42  ;;  %7782 = vmatprep.subr.bf16.mxu0 %v10678_v58  ;;  %v10765_v42 = vld [vmem:[%s14454_s1 + $0x1e0c] ss:$16 sps:$4 sm:$0xff]   ;;  %v10760_v58 = vld [vmem:[%s14454_s1 + $0x1c08] ss:$16 sps:$4 sm:$0xff]  }
 0x3b0   : > { %7825 = vmatprep.subr.bf16.mxu1 %v10681_v36  ;;  %v10763_v36 = vld [vmem:[%s14454_s1 + $0x1e08] ss:$16 sps:$4 sm:$0xff]  }
 0x3b2   : > { %7783 = vmatpush2.bf16.msra.mxu0 %v10676_v52  ;;  %v10768_v52 = vld [vmem:[%s14454_s1 + $0x1dec] ss:$16 sps:$4 sm:$0xff]  }
 0x3b3   : > { %7826 = vmatpush2.bf16.msra.mxu1 %v10679_v17  ;;  %7784 = vmatprep.subr.bf16.mxu0 %v10684_v16  ;;  %v10771_v17 = vld [vmem:[%s14454_s1 + $0x1fec] ss:$16 sps:$4 sm:$0xff]   ;;  %v10766_v16 = vld [vmem:[%s14454_s1 + $0x1de8] ss:$16 sps:$4 sm:$0xff]  }
 0x3b4   : > { %7827 = vmatprep.subr.bf16.mxu1 %v10687_v34  ;;  %v10769_v34 = vld [vmem:[%s14454_s1 + $0x1fe8] ss:$16 sps:$4 sm:$0xff]  }
 0x3b6   : > { %7785 = vmatpush2.bf16.msra.mxu0 %v10682_v32  ;;  %v10774_v32 = vld [vmem:[%s14454_s1 + $0x1dcc] ss:$16 sps:$4 sm:$0xff]  }
 0x3b7   : > { %7828 = vmatpush2.bf16.msra.mxu1 %v10685_v62  ;;  %7786 = vmatprep.subr.bf16.mxu0 %v10690_v4  ;;  %v10777_v62 = vld [vmem:[%s14454_s1 + $0x1fcc] ss:$16 sps:$4 sm:$0xff]   ;;  %v10772_v4 = vld [vmem:[%s14454_s1 + $0x1dc8] ss:$16 sps:$4 sm:$0xff]  }
 0x3b8   : > { %7829 = vmatprep.subr.bf16.mxu1 %v10693_v5  ;;  %v10775_v5 = vld [vmem:[%s14454_s1 + $0x1fc8] ss:$16 sps:$4 sm:$0xff]  }
 0x3ba   : > { %7787 = vmatpush2.bf16.msra.mxu0 %v10688_v44  ;;  %v10780_v44 = vld [vmem:[%s14454_s1 + $0x1dac] ss:$16 sps:$4 sm:$0xff]  }
 0x3bb   : > { %7830 = vmatpush2.bf16.msra.mxu1 %v10691_v10  ;;  %7788 = vmatprep.subr.bf16.mxu0 %v10696_v15  ;;  %v10783_v10 = vld [vmem:[%s14454_s1 + $0x1fac] ss:$16 sps:$4 sm:$0xff]   ;;  %v10778_v15 = vld [vmem:[%s14454_s1 + $0x1da8] ss:$16 sps:$4 sm:$0xff]  }
 0x3bc   : > { %7831 = vmatprep.subr.bf16.mxu1 %v10699_v11  ;;  %v10781_v11 = vld [vmem:[%s14454_s1 + $0x1fa8] ss:$16 sps:$4 sm:$0xff]  }
 0x3be   : > { %7789 = vmatpush2.bf16.msra.mxu0 %v10694_v1  ;;  %v10786_v1 = vld [vmem:[%s14454_s1 + $0x1d8c] ss:$16 sps:$4 sm:$0xff]  }
 0x3bf   : > { %7832 = vmatpush2.bf16.msra.mxu1 %v10697_v25  ;;  %7790 = vmatprep.subr.bf16.mxu0 %v10702_v43  ;;  %v10789_v25 = vld [vmem:[%s14454_s1 + $0x1f8c] ss:$16 sps:$4 sm:$0xff]   ;;  %v10784_v43 = vld [vmem:[%s14454_s1 + $0x1d88] ss:$16 sps:$4 sm:$0xff]  }
 0x3c0   : > { %7833 = vmatprep.subr.bf16.mxu1 %v10705_v40  ;;  %v10787_v40 = vld [vmem:[%s14454_s1 + $0x1f88] ss:$16 sps:$4 sm:$0xff]  }
 0x3c2   : > { %7791 = vmatpush2.bf16.msra.mxu0 %v10700_v31  ;;  %v10792_v31 = vld [vmem:[%s14454_s1 + $0x1d6c] ss:$16 sps:$4 sm:$0xff]  }
 0x3c3   : > { %7834 = vmatpush2.bf16.msra.mxu1 %v10703_v35  ;;  %7792 = vmatprep.subr.bf16.mxu0 %v10708_v27  ;;  %v10795_v35 = vld [vmem:[%s14454_s1 + $0x1f6c] ss:$16 sps:$4 sm:$0xff]   ;;  %v10790_v27 = vld [vmem:[%s14454_s1 + $0x1d68] ss:$16 sps:$4 sm:$0xff]  }
 0x3c4   : > { %7835 = vmatprep.subr.bf16.mxu1 %v10711_v18  ;;  %v10793_v18 = vld [vmem:[%s14454_s1 + $0x1f68] ss:$16 sps:$4 sm:$0xff]  }
 0x3c6   : > { %7793 = vmatpush2.bf16.msra.mxu0 %v10706_v46  ;;  %v10798_v46 = vld [vmem:[%s14454_s1 + $0x1d4c] ss:$16 sps:$4 sm:$0xff]  }
 0x3c7   : > { %7836 = vmatpush2.bf16.msra.mxu1 %v10709_v22  ;;  %7794 = vmatprep.subr.bf16.mxu0 %v10714_v47  ;;  %v10801_v22 = vld [vmem:[%s14454_s1 + $0x1f4c] ss:$16 sps:$4 sm:$0xff]   ;;  %v10796_v47 = vld [vmem:[%s14454_s1 + $0x1d48] ss:$16 sps:$4 sm:$0xff]  }
 0x3c8   : > { %7837 = vmatprep.subr.bf16.mxu1 %v10717_v26  ;;  %v10799_v26 = vld [vmem:[%s14454_s1 + $0x1f48] ss:$16 sps:$4 sm:$0xff]  }
 0x3ca   : > { %7795 = vmatpush2.bf16.msra.mxu0 %v10712_v28  ;;  %v10804_v28 = vld [vmem:[%s14454_s1 + $0x1d2c] ss:$16 sps:$4 sm:$0xff]  }
 0x3cb   : > { %7838 = vmatpush2.bf16.msra.mxu1 %v10715_v54  ;;  %7850 = vmatprep.subr.bf16.mxu0 %v10720_v8  ;;  %v10807_v54 = vld [vmem:[%s14454_s1 + $0x1f2c] ss:$16 sps:$4 sm:$0xff]   ;;  %v10802_v8 = vld [vmem:[%s14454_s1 + $0x1d28] ss:$16 sps:$4 sm:$0xff]  }
 0x3cc   : > { %7893 = vmatprep.subr.bf16.mxu1 %v10723_v45  ;;  %v10805_v45 = vld [vmem:[%s14454_s1 + $0x1f28] ss:$16 sps:$4 sm:$0xff]  }
 0x3cd   : > { %7797 = vmatmul.mubr.bf16.vlgmr.msra.gmra.mxu0 %v14478_v56  ;;  %v14482_v56 = vld [vmem:[#allocation9_spill] sm:$0xff] }
 0x3ce   : > { %7840 = vmatmul.mubr.bf16.vlgmr.msra.gmra.mxu1 %v14479_v57  ;;  %7851 = vmatpush1.bf16.msra.mxu0 %v10718_v51  ;;  %v10810_v51 = vld [vmem:[%s14454_s1 + $0x1d0c] ss:$16 sps:$4 sm:$0xff]   ;;  %v14483_v57 = vld [vmem:[#allocation10_spill] sm:$0xff] }
 0x3cf   : > { %7894 = vmatpush1.bf16.msra.mxu1 %v10721_v37  ;;  %7852 = vmatprep.subr.bf16.mxu0 %v10726_v63  ;;  %v10813_v37 = vld [vmem:[%s14454_s1 + $0x1f0c] ss:$16 sps:$4 sm:$0xff]   ;;  %v10808_v63 = vld [vmem:[%s14454_s1 + $0x1d08] ss:$16 sps:$4 sm:$0xff]  }
 0x3d0   : > { %7895 = vmatprep.subr.bf16.mxu1 %v10729_v24  ;;  %7882 = vmatprep.mubr.bf16.mxu0 %v14480_v50  ;;  %v10811_v24 = vld [vmem:[%s14454_s1 + $0x1f08] ss:$16 sps:$4 sm:$0xff]  }
 0x3d1   : > { %7925 = vmatprep.mubr.bf16.mxu1 %v14481_v0 }
 0x3d2   : > { %7853 = vmatpush1.bf16.msra.mxu0 %v10724_v6  ;;  %v7282_v6 = vpop.f32.mrf.mxu0 }
 0x3d3   : > { %7896 = vmatpush1.bf16.msra.mxu1 %v10727_v60  ;;  %7854 = vmatprep.subr.bf16.mxu0 %v10732_v9  ;;  %v7325_v60 = vpop.f32.mrf.mxu1 }
 0x3d4   : > { %7897 = vmatprep.subr.bf16.mxu1 %v10735_v13  ;;  %v7284_v9 = vpop.f32.mrf.mxu0 }
 0x3d5   : > { %v7327_v13 = vpop.f32.mrf.mxu1 }
 0x3d6   : > { %7855 = vmatpush1.bf16.msra.mxu0 %v10730_v19  ;;  %v7286_v50 = vpop.f32.mrf.mxu0 }
 0x3d7   : > { %7898 = vmatpush1.bf16.msra.mxu1 %v10733_v7  ;;  %7856 = vmatprep.subr.bf16.mxu0 %v10738_v61  ;;  %v7329_v0 = vpop.f32.mrf.mxu1 }
 0x3d8   : > { %7899 = vmatprep.subr.bf16.mxu1 %v10741_v20  ;;  %v7288_v19 = vpop.f32.mrf.mxu0 }
 0x3d9   : > { %v7331_v7 = vpop.f32.mrf.mxu1 }
 0x3da   : > { %7857 = vmatpush1.bf16.msra.mxu0 %v10736_v41  ;;  %v7368_v61 = vpop.f32.mrf.mxu0 }
 0x3db   : > { %7900 = vmatpush1.bf16.msra.mxu1 %v10739_v2  ;;  %7858 = vmatprep.subr.bf16.mxu0 %v10744_v21  ;;  %v7411_v20 = vpop.f32.mrf.mxu1 }
 0x3dc   : > { %7901 = vmatprep.subr.bf16.mxu1 %v10747_v14  ;;  %v7370_v41 = vpop.f32.mrf.mxu0 }
 0x3dd   : > { %v7413_v2 = vpop.f32.mrf.mxu1 }
 0x3de   : > { %7859 = vmatpush1.bf16.msra.mxu0 %v10742_v48  ;;  %v7372_v21 = vpop.f32.mrf.mxu0 }
 0x3df   : > { %7902 = vmatpush1.bf16.msra.mxu1 %v10745_v49  ;;  %7860 = vmatprep.subr.bf16.mxu0 %v10750_v23  ;;  %v7415_v14 = vpop.f32.mrf.mxu1 }
 0x3e0   : > { %7903 = vmatprep.subr.bf16.mxu1 %v10753_v12  ;;  %v7374_v48 = vpop.f32.mrf.mxu0 }
 0x3e1   : > { %v7417_v49 = vpop.f32.mrf.mxu1 }
 0x3e2   : > { %7861 = vmatpush1.bf16.msra.mxu0 %v10748_v3  ;;  %v7454_v23 = vpop.f32.mrf.mxu0 }
 0x3e3   : > { %7904 = vmatpush1.bf16.msra.mxu1 %v10751_v33  ;;  %7862 = vmatprep.subr.bf16.mxu0 %v10756_v53  ;;  %v7497_v12 = vpop.f32.mrf.mxu1 }
 0x3e4   : > { %7905 = vmatprep.subr.bf16.mxu1 %v10759_v38  ;;  %v7456_v3 = vpop.f32.mrf.mxu0 }
 0x3e5   : > { %v7499_v33 = vpop.f32.mrf.mxu1 }
 0x3e6   : > { %7863 = vmatpush1.bf16.msra.mxu0 %v10754_v29  ;;  %v7458_v53 = vpop.f32.mrf.mxu0 }
 0x3e7   : > { %7906 = vmatpush1.bf16.msra.mxu1 %v10757_v30  ;;  %7864 = vmatprep.subr.bf16.mxu0 %v10762_v39  ;;  %v7501_v38 = vpop.f32.mrf.mxu1 }
 0x3e8   : > { %7907 = vmatprep.subr.bf16.mxu1 %v10765_v42  ;;  %v7460_v29 = vpop.f32.mrf.mxu0 }
 0x3e9   : > { %v7503_v30 = vpop.f32.mrf.mxu1 }
 0x3ea   : > { %7865 = vmatpush1.bf16.msra.mxu0 %v10760_v58  ;;  %v7540_v39 = vpop.f32.mrf.mxu0 }
 0x3eb   : > { %7908 = vmatpush1.bf16.msra.mxu1 %v10763_v36  ;;  %7866 = vmatprep.subr.bf16.mxu0 %v10768_v52  ;;  %v7583_v42 = vpop.f32.mrf.mxu1 }
 0x3ec   : > { %7909 = vmatprep.subr.bf16.mxu1 %v10771_v17  ;;  %v7542_v58 = vpop.f32.mrf.mxu0 }
 0x3ed   : > { %v7585_v36 = vpop.f32.mrf.mxu1 }
 0x3ee   : > { %7867 = vmatpush2.bf16.msra.mxu0 %v10766_v16  ;;  %v7544_v52 = vpop.f32.mrf.mxu0  ;;  %v1270_v16 = vsub.s32 2, %v13183_v59 }
 0x3ef   : > { %7910 = vmatpush2.bf16.msra.mxu1 %v10769_v34  ;;  %7868 = vmatprep.subr.bf16.mxu0 %v10774_v32  ;;  %v7587_v17 = vpop.f32.mrf.mxu1  ;;  %v1274_v34 = vsub.s32 3, %v13183_v59 }
 0x3f0   : > { %7911 = vmatprep.subr.bf16.mxu1 %v10777_v62  ;;  %v7546_v32 = vpop.f32.mrf.mxu0 }
 0x3f1   : > { %v7589_v62 = vpop.f32.mrf.mxu1 }
 0x3f2   : > { %7869 = vmatpush2.bf16.msra.mxu0 %v10772_v4  ;;  %v10822_v4 = vld [vmem:[%s14455_s2] sm:$0xf] }
 0x3f3   : > { %7912 = vmatpush2.bf16.msra.mxu1 %v10775_v5  ;;  %7870 = vmatprep.subr.bf16.mxu0 %v10780_v44  ;;  %v1271_v5 = vrot.slane %v10822_v4, %v1270_v16 }
 0x3f4   : > { %7913 = vmatprep.subr.bf16.mxu1 %v10783_v10 }
 0x3f6   : > { %7871 = vmatpush2.bf16.msra.mxu0 %v10778_v15  ;;  %v1275_v15 = vrot.slane %v10822_v4, %v1274_v34 }
 0x3f7   : > { %7914 = vmatpush2.bf16.msra.mxu1 %v10781_v11  ;;  %7872 = vmatprep.subr.bf16.mxu0 %v10786_v1  ;;  %v7283_v11 = vadd.f32 %v7282_v6, %v1271_v5 }
 0x3f8   : > { %7915 = vmatprep.subr.bf16.mxu1 %v10789_v25 }
 0x3fa   : > { %7873 = vmatpush2.bf16.msra.mxu0 %v10784_v43  ;;  %v7287_v43 = vadd.f32 %v7286_v50, %v1271_v5 }
 0x3fb   : > { %7916 = vmatpush2.bf16.msra.mxu1 %v10787_v40  ;;  %7874 = vmatprep.subr.bf16.mxu0 %v10792_v31  ;;  %v7285_v40 = vadd.f32 %v7284_v9, %v1275_v15  ;;  %v7289_v31 = vadd.f32 %v7288_v19, %v1275_v15 }
 0x3fc   : > { %7917 = vmatprep.subr.bf16.mxu1 %v10795_v35  ;;  %v7326_v35 = vadd.f32 %v7325_v60, %v7283_v11  ;;  %v7330_v59 = vadd.f32 %v7329_v0, %v7287_v43 }
 0x3fe   : > { %7875 = vmatpush2.bf16.msra.mxu0 %v10790_v27 }
 0x3ff   : > { %7918 = vmatpush2.bf16.msra.mxu1 %v10793_v18  ;;  %7876 = vmatprep.subr.bf16.mxu0 %v10798_v46  ;;  %v7328_v46 = vadd.f32 %v7327_v13, %v7285_v40 }
 0x400   : > { %7919 = vmatprep.subr.bf16.mxu1 %v10801_v22  ;;  %v7369_v22 = vadd.f32 %v7368_v61, %v7326_v35 }
 0x402   : > { %7877 = vmatpush2.bf16.msra.mxu0 %v10796_v47  ;;  %v7332_v47 = vadd.f32 %v7331_v7, %v7289_v31 }
 0x403   : > { %7920 = vmatpush2.bf16.msra.mxu1 %v10799_v26  ;;  %7878 = vmatprep.subr.bf16.mxu0 %v10804_v28  ;;  %v7373_v26 = vadd.f32 %v7372_v21, %v7330_v59  ;;  %v7371_v28 = vadd.f32 %v7370_v41, %v7328_v46 }
 0x404   : > { %7921 = vmatprep.subr.bf16.mxu1 %v10807_v54 }
 0x406   : > { %7879 = vmatpush2.bf16.msra.mxu0 %v10802_v8 }
 0x407   : > { %7922 = vmatpush2.bf16.msra.mxu1 %v10805_v45  ;;  %7880 = vmatprep.subr.bf16.mxu0 %v10810_v51  ;;  %v7375_v45 = vadd.f32 %v7374_v48, %v7332_v47  ;;  %v7412_v51 = vadd.f32 %v7411_v20, %v7369_v22 }
 0x408   : > { %7923 = vmatprep.subr.bf16.mxu1 %v10813_v37 }
 0x409   : > { %v7418_v6 = vadd.f32 %v7417_v49, %v7375_v45 }
 0x40a   : > { %7881 = vmatpush2.bf16.msra.mxu0 %v10808_v63 }
 0x40b   : > { %7924 = vmatpush2.bf16.msra.mxu1 %v10811_v24  ;;  %v7416_v24 = vadd.f32 %v7415_v14, %v7373_v26  ;;  %v7461_v0 = vadd.f32 %v7460_v29, %v7418_v6 }
 0x40d   : > { %7883 = vmatmul.mubr.bf16.vlgmr.msra.gmra.mxu0 %v14482_v56  ;;  %v7626_v44 = vpop.f32.mrf.mxu0  ;;  %v7414_v56 = vadd.f32 %v7413_v2, %v7371_v28  ;;  %v7459_v9 = vadd.f32 %v7458_v53, %v7416_v24  ;;  %v7504_v34 = vadd.f32 %v7503_v30, %v7461_v0 }
 0x40e   : > { %7926 = vmatmul.mubr.bf16.vlgmr.msra.gmra.mxu1 %v14483_v57  ;;  %v7669_v10 = vpop.f32.mrf.mxu1  ;;  %v7455_v57 = vadd.f32 %v7454_v23, %v7412_v51 }
 0x40f   : > { %v7628_v1 = vpop.f32.mrf.mxu0  ;;  %v7457_v60 = vadd.f32 %v7456_v3, %v7414_v56  ;;  %v7502_v61 = vadd.f32 %v7501_v38, %v7459_v9  ;;  %v7547_v4 = vadd.f32 %v7546_v32, %v7504_v34 }
 0x410   : > { %v7671_v25 = vpop.f32.mrf.mxu1  ;;  %v7498_v13 = vadd.f32 %v7497_v12, %v7455_v57 }
 0x411   : > { %v7630_v27 = vpop.f32.mrf.mxu0  ;;  %v7500_v7 = vadd.f32 %v7499_v33, %v7457_v60  ;;  %v7545_v48 = vadd.f32 %v7544_v52, %v7502_v61  ;;  %v7590_v11 = vadd.f32 %v7589_v62, %v7547_v4 }
 0x412   : > { %v7673_v18 = vpop.f32.mrf.mxu1  ;;  %v7541_v21 = vadd.f32 %v7540_v39, %v7498_v13 }
 0x413   : > { %v7632_v54 = vpop.f32.mrf.mxu0  ;;  %v7543_v20 = vadd.f32 %v7542_v58, %v7500_v7  ;;  %v7588_v23 = vadd.f32 %v7587_v17, %v7545_v48 }
 0x414   : > { %v7675_v8 = vpop.f32.mrf.mxu1  ;;  %v7584_v5 = vadd.f32 %v7583_v42, %v7541_v21  ;;  %v7633_v38 = vadd.f32 %v7632_v54, %v7590_v11 }
 0x415   : > { %v7586_v49 = vadd.f32 %v7585_v36, %v7543_v20  ;;  %v7631_v29 = vadd.f32 %v7630_v27, %v7588_v23 }
 0x416   : > { %v7627_v53 = vadd.f32 %v7626_v44, %v7584_v5  ;;  %v7676_v58 = vadd.f32 %v7675_v8, %v7633_v38 }
 0x417   : > { %v7629_v12 = vadd.f32 %v7628_v1, %v7586_v49  ;;  %v7674_v40 = vadd.f32 %v7673_v18, %v7631_v29 }
 0x418   : > { %v7670_v33 = vadd.f32 %v7669_v10, %v7627_v53 }
 0x419   : > { %v7672_v30 = vadd.f32 %v7671_v25, %v7629_v12 }
 0x44d   : > { %v7712_v37 = vpop.f32.mrf.mxu0 }
 0x44e   : > { %v7755_v63 = vpop.f32.mrf.mxu1  ;;  %v7713_v52 = vadd.f32 %v7712_v37, %v7670_v33 }
 0x44f   : > { %v7714_v50 = vpop.f32.mrf.mxu0 }
 0x450   : > { %v7757_v19 = vpop.f32.mrf.mxu1  ;;  %v7715_v42 = vadd.f32 %v7714_v50, %v7672_v30  ;;  %v7756_v36 = vadd.f32 %v7755_v63, %v7713_v52 }
 0x451   : > { %v7716_v41 = vpop.f32.mrf.mxu0 }
 0x452   : > { %v7759_v16 = vpop.f32.mrf.mxu1  ;;  %v7717_v32 = vadd.f32 %v7716_v41, %v7674_v40  ;;  %v7758_v59 = vadd.f32 %v7757_v19, %v7715_v42 }
 0x453   : > { %v7718_v14 = vpop.f32.mrf.mxu0 }
 0x454   : > { %v7761_v2 = vpop.f32.mrf.mxu1  ;;  %v7719_v17 = vadd.f32 %v7718_v14, %v7676_v58  ;;  %v7760_v44 = vadd.f32 %v7759_v16, %v7717_v32 }
 0x456   : > { %v7762_v1 = vadd.f32 %v7761_v2, %v7719_v17 }
 0x48d   : > { %v7798_v3 = vpop.f32.mrf.mxu0 }
 0x48e   : > { %v7841_v15 = vpop.f32.mrf.mxu1  ;;  %v7799_v46 = vadd.f32 %v7798_v3, %v7756_v36 }
 0x48f   : > { %v7800_v39 = vpop.f32.mrf.mxu0 }
 0x490   : > { %v7843_v43 = vpop.f32.mrf.mxu1  ;;  %v7801_v10 = vadd.f32 %v7800_v39, %v7758_v59  ;;  %v7842_v25 = vadd.f32 %v7841_v15, %v7799_v46 }
 0x491   : > { %v7802_v31 = vpop.f32.mrf.mxu0 }
 0x492   : > { %v7845_v35 = vpop.f32.mrf.mxu1  ;;  %v7803_v22 = vadd.f32 %v7802_v31, %v7760_v44  ;;  %v7844_v45 = vadd.f32 %v7843_v43, %v7801_v10 }
 0x493   : > { %v7804_v62 = vpop.f32.mrf.mxu0 }
 0x494   : > { %v7847_v27 = vpop.f32.mrf.mxu1  ;;  %v7805_v18 = vadd.f32 %v7804_v62, %v7762_v1  ;;  %v7846_v8 = vadd.f32 %v7845_v35, %v7803_v22 }
 0x496   : > { %v7848_v63 = vadd.f32 %v7847_v27, %v7805_v18 }
 0x4cd   : > { %v7884_v47 = vpop.f32.mrf.mxu0 }
 0x4ce   : > { %v7927_v26 = vpop.f32.mrf.mxu1  ;;  %v7885_v51 = vadd.f32 %v7884_v47, %v7842_v25 }
 0x4cf   : > { %v7886_v28 = vpop.f32.mrf.mxu0 }
 0x4d0   : > { %v7929_v54 = vpop.f32.mrf.mxu1  ;;  %v7887_v57 = vadd.f32 %v7886_v28, %v7844_v45  ;;  %v7928_v50 = vadd.f32 %v7927_v26, %v7885_v51 }
 0x4d1   : > { %v7888_v37 = vpop.f32.mrf.mxu0 }
 0x4d2   : > { %v7931_v24 = vpop.f32.mrf.mxu1  ;;  %v7889_v56 = vadd.f32 %v7888_v37, %v7846_v8  ;;  %v7930_v61 = vadd.f32 %v7929_v54, %v7887_v57 }
 0x4d3   : > { %v7890_v6 = vpop.f32.mrf.mxu0 }
 0x4d4   : > { %v7932_v9 = vadd.f32 %v7931_v24, %v7889_v56  ;;  %v7891_v60 = vadd.f32 %v7890_v6, %v7848_v63  ;;  %v7933_v19 = vpop.f32.mrf.mxu1 }
 0x4d6   : > { %v7973_v0 = vsel %vm7966_vm0, %v7932_v9, 0.0  ;;  %v7934_v13 = vadd.f32 %v7933_v19, %v7891_v60 }
 0x4d7   : > { %v7989_v7 = vadd.f32 %v7973_v0, %v7928_v50 }
 0x4d8   : > { %v7974_v21 = vsel %vm7966_vm0, %v7934_v13, 0.0 }
 0x4d9   : > { %v7990_v41 = vrot.slane %v7989_v7, 4  ;;  %v7996_v16 = vadd.f32 %v7974_v21, %v7930_v61 }
 0x4db   : > { %v7991_v34 = vadd.f32 %v7990_v41, %v7989_v7  ;;  %v7997_v48 = vrot.slane %v7996_v16, 4 }
 0x4dd   : > { %v7992_v20 = vrot.slane %v7991_v34, 2  ;;  %v7998_v4 = vadd.f32 %v7997_v48, %v7996_v16 }
 0x4df   : > { %v7993_v5 = vadd.f32 %v7992_v20, %v7991_v34  ;;  %v7999_v14 = vrot.slane %v7998_v4, 2 }
 0x4e1   : > { %v7994_v2 = vrot.slane %v7993_v5, 1  ;;  %v8000_v23 = vadd.f32 %v7999_v14, %v7998_v4 }
 0x4e3   : > { %v7995_v49 = vadd.f32 %v7994_v2, %v7993_v5  ;;  %v8001_v53 = vrot.slane %v8000_v23, 1 }
 0x4e5   : > { %v8005_v3 = vmul.f32 0.11111111, %v7995_v49  ;;  %v8002_v15 = vadd.f32 %v8001_v53, %v8000_v23 }
 0x4e7   : > { %v8009_v11 = vsub.f32 %v7928_v50, %v8005_v3  ;;  %v8013_v29 = vsub.f32 %v7932_v9, %v8005_v3  ;;  %v8006_v12 = vmul.f32 0.11111111, %v8002_v15 }
 0x4e9   : > { %v8021_v38 = vsel %vm7966_vm0, %v8013_v29, 0.0  ;;  %v8025_v33 = vmul.f32 %v8009_v11, %v8009_v11  ;;  %v8010_v39 = vsub.f32 %v7930_v61, %v8006_v12  ;;  %v8014_v43 = vsub.f32 %v7934_v13, %v8006_v12 }
 0x4ea   : > { %v8029_v40 = vmul.f32 %v8021_v38, %v8021_v38 }
 0x4eb   : > { %v8022_v30 = vsel %vm7966_vm0, %v8014_v43, 0.0  ;;  %v8026_v52 = vmul.f32 %v8010_v39, %v8010_v39 }
 0x4ec   : > { %v8045_v58 = vadd.f32 %v8029_v40, %v8025_v33  ;;  %v8030_v32 = vmul.f32 %v8022_v30, %v8022_v30 }
 0x4ee   : > { %v8046_v42 = vrot.slane %v8045_v58, 4  ;;  %v8052_v31 = vadd.f32 %v8030_v32, %v8026_v52 }
 0x4f0   : > { %v8047_v35 = vadd.f32 %v8046_v42, %v8045_v58  ;;  %v8053_v17 = vrot.slane %v8052_v31, 4 }
 0x4f2   : > { %v8048_v36 = vrot.slane %v8047_v35, 2  ;;  %v8054_v44 = vadd.f32 %v8053_v17, %v8052_v31 }
 0x4f4   : > { %v8049_v59 = vadd.f32 %v8048_v36, %v8047_v35  ;;  %v8055_v46 = vrot.slane %v8054_v44, 2 }
 0x4f6   : > { %v8050_v62 = vrot.slane %v8049_v59, 1  ;;  %v8056_v27 = vadd.f32 %v8055_v46, %v8054_v44 }
 0x4f8   : > { %v8051_v1 = vadd.f32 %v8050_v62, %v8049_v59  ;;  %v8057_v22 = vrot.slane %v8056_v27, 1 }
 0x4fa   : > { %v8061_v10 = vmul.f32 0.11111111, %v8051_v1  ;;  %v8058_v47 = vadd.f32 %v8057_v22, %v8056_v27 }
 0x4fc   : > { %v8065_v26 = vadd.f32 1e-05, %v8061_v10  ;;  %v8062_v55 = vmul.f32 0.11111111, %v8058_v47 }
 0x4fe   : > { %10818 = vrsqrt.f32 %v8065_v26  ;;  %v8066_v18 = vadd.f32 1e-05, %v8062_v55 }
 0x500   : > { %10820 = vrsqrt.f32 %v8066_v18 }
 0x50b   : > { %v10819_v25 = vpop.eup %10818 }
 0x50c   : > { %v8073_v28 = vmul.f32 %v10819_v25, %v8009_v11  ;;  %v8077_v54 = vmul.f32 %v10819_v25, %v8013_v29 }
 0x50d   : > { %v10821_v8 = vpop.eup %10820 }
 0x50e   : > { %vm8081_vm5 = vcmp.ge.f32.partialorder %v8073_v28, 0.0  ;;  %vm8085_vm6 = vcmp.ge.f32.partialorder %v8077_v54, 0.0  ;;  %v8089_v45 = vmul.f32 0.2, %v8073_v28  ;;  %v8093_v51 = vmul.f32 0.2, %v8077_v54 }
 0x50f   : > { %v8074_v37 = vmul.f32 %v10821_v8, %v8010_v39  ;;  %v8078_v24 = vmul.f32 %v10821_v8, %v8014_v43 }
 0x510   : > { %v8097_v63 = vsel %vm8081_vm5, %v8073_v28, %v8089_v45  ;;  %v8101_v56 = vsel %vm8085_vm6, %v8077_v54, %v8093_v51 }
 0x511   : > { %8105 = vst [vmem:[%s13659_s25 + $0x10] sm:$0xff] %v8097_v63  ;;  %8109 = vst [vmem:[%s13659_s25 + $0x30] sm:$0xff] %v8101_v56  ;;  %vm8082_vm7 = vcmp.ge.f32.partialorder %v8074_v37, 0.0  ;;  %vm8086_vm8 = vcmp.ge.f32.partialorder %v8078_v24, 0.0  ;;  %v8090_v57 = vmul.f32 0.2, %v8074_v37 }
 0x512   : > { %v8094_v6 = vmul.f32 0.2, %v8078_v24 }
 0x513   : > { %v8098_v9 = vsel %vm8082_vm7, %v8074_v37, %v8090_v57 }
 0x514   : > { %v8102_v60 = vsel %vm8086_vm8, %v8078_v24, %v8094_v6  ;;  %8106 = vst [vmem:[%s13659_s25 + $0x18] sm:$0xff] %v8098_v9 }
 0x515   : > { %8110 = vst [vmem:[%s13659_s25 + $0x38] sm:$0xff] %v8102_v60 }
 0x516 PF: > { %s13_s14 = sadd.s32 1, %s10845_s14   ;;  %s14484_s12 = smov %s10841_s13 }
 0x517   : > { %p10_p5 = scmp.ge.s32.totalorder %s13_s14, 4   ;;  %s14485_s13 = smov %s14487_s15 }
 0x519   :  { %12 = sbr.rel (!%p10_p5) target bundleno = 2 (0x2), region = 67 }

// kernel: discriminator_forward.9
= control target key start
LH: loop header
LB: loop body
LE: loop exit
PB: predicated region body
PF: predicated region fallthrough
CT: control target
= control target key end

     0   :  { %s9201_s1 = inlined_call_operand.vmem [shape: bf16[8192,128], index: 1, kind: input, shape index: {}]   ;;  %s9202_s0 = inlined_call_operand.vmem [shape: bf16[8,8192], index: 0, kind: input, shape index: {}]   ;;  %s9203_s2 = inlined_call_operand.vmem [shape: f32[1,128], index: 2, kind: input, shape index: {}]   ;;  %s9204_s3 = inlined_call_operand.vmem [shape: f32[8,128], index: 3, kind: output, shape index: {}]  }
   0x1   :  { %v6940_v0 = vld [vmem:[%s9201_s1 + $0x78] sm:$0xff]   ;;  %v6944_v4 = vld [vmem:[%s9201_s1 + $0x70] sm:$0xff]   ;;  %v6948_v8 = vld [vmem:[%s9201_s1 + $0x68] sm:$0xff]  }
   0x2   :  { %v6941_v1 = vld [vmem:[%s9201_s1 + $0xf8] sm:$0xff]   ;;  %6236 = vmatprep.subr.bf16.mxu0 %v6940_v0  ;;  %v6945_v5 = vld [vmem:[%s9201_s1 + $0xf0] sm:$0xff]   ;;  %v6949_v9 = vld [vmem:[%s9201_s1 + $0xe8] sm:$0xff]  }
   0x3   :  { %v6942_v2 = vld [vmem:[%s9201_s1 + $0x38] sm:$0xff]   ;;  %6258 = vmatprep.subr.bf16.mxu1 %v6941_v1  ;;  %v6946_v6 = vld [vmem:[%s9201_s1 + $0x30] sm:$0xff]   ;;  %v6950_v10 = vld [vmem:[%s9201_s1 + $0x28] sm:$0xff]  }
   0x4   :  { %v6943_v3 = vld [vmem:[%s9201_s1 + $0xb8] sm:$0xff]   ;;  %6237 = vmatpush3.bf16.msra.mxu0 %v6942_v2  ;;  %v6947_v7 = vld [vmem:[%s9201_s1 + $0xb0] sm:$0xff]   ;;  %v6951_v11 = vld [vmem:[%s9201_s1 + $0xa8] sm:$0xff]  }
   0x5   :  { %6259 = vmatpush3.bf16.msra.mxu1 %v6943_v3  ;;  %6238 = vmatprep.subr.bf16.mxu0 %v6944_v4  ;;  %v6952_v12 = vld [vmem:[%s9201_s1 + $0x60] sm:$0xff]   ;;  %v6956_v16 = vld [vmem:[%s9201_s1 + $0x58] sm:$0xff]   ;;  %v6960_v20 = vld [vmem:[%s9201_s1 + $0x50] sm:$0xff]  }
   0x6   :  { %6260 = vmatprep.subr.bf16.mxu1 %v6945_v5  ;;  %v6953_v13 = vld [vmem:[%s9201_s1 + $0xe0] sm:$0xff]   ;;  %v6957_v17 = vld [vmem:[%s9201_s1 + $0xd8] sm:$0xff]   ;;  %v6961_v21 = vld [vmem:[%s9201_s1 + $0xd0] sm:$0xff]  }
   0x7   :  { %v6954_v14 = vld [vmem:[%s9201_s1 + $0x20] sm:$0xff]   ;;  %v6958_v18 = vld [vmem:[%s9201_s1 + $0x18] sm:$0xff]   ;;  %v6962_v22 = vld [vmem:[%s9201_s1 + $0x10] sm:$0xff]  }
   0x8   :  { %6239 = vmatpush3.bf16.msra.mxu0 %v6946_v6  ;;  %v6955_v15 = vld [vmem:[%s9201_s1 + $0xa0] sm:$0xff]   ;;  %v6959_v19 = vld [vmem:[%s9201_s1 + $0x98] sm:$0xff]   ;;  %v6963_v23 = vld [vmem:[%s9201_s1 + $0x90] sm:$0xff]  }
   0x9   :  { %6261 = vmatpush3.bf16.msra.mxu1 %v6947_v7  ;;  %6240 = vmatprep.subr.bf16.mxu0 %v6948_v8  ;;  %v6964_v24 = vld [vmem:[%s9201_s1 + $0x48] sm:$0xff]   ;;  %v6968_v28 = vld [vmem:[%s9201_s1 + $0x40] sm:$0xff]   ;;  %v6976_v38 = vld [vmem:[%s9201_s1 + $0x178] sm:$0xff]  }
   0xa   :  { %6262 = vmatprep.subr.bf16.mxu1 %v6949_v9  ;;  %v6965_v25 = vld [vmem:[%s9201_s1 + $0xc8] sm:$0xff]   ;;  %v6969_v29 = vld [vmem:[%s9201_s1 + $0xc0] sm:$0xff]   ;;  %v6977_v39 = vld [vmem:[%s9201_s1 + $0x1f8] sm:$0xff]  }
   0xb   :  { %v6966_v26 = vld [vmem:[%s9201_s1 + $0x8] sm:$0xff]   ;;  %v6970_v30 = vld [vmem:[%s9201_s1] sm:$0xff]   ;;  %v6978_v40 = vld [vmem:[%s9201_s1 + $0x138] sm:$0xff]  }
   0xc   :  { %6241 = vmatpush3.bf16.msra.mxu0 %v6950_v10  ;;  %v6967_v27 = vld [vmem:[%s9201_s1 + $0x88] sm:$0xff]   ;;  %v6971_v31 = vld [vmem:[%s9201_s1 + $0x80] sm:$0xff]   ;;  %v6979_v41 = vld [vmem:[%s9201_s1 + $0x1b8] sm:$0xff]  }
   0xd   :  { %6263 = vmatpush3.bf16.msra.mxu1 %v6951_v11  ;;  %6242 = vmatprep.subr.bf16.mxu0 %v6952_v12  ;;  %v15_v32 = vld [vmem:[%s9202_s0] sm:$0xff]  ;;  %v16_v33 = vld [vmem:[%s9202_s0 + $0x8] sm:$0xff]  ;;  %v6980_v42 = vld [vmem:[%s9201_s1 + $0x170] sm:$0xff]  }
   0xe   :  { %6264 = vmatprep.subr.bf16.mxu1 %v6953_v13  ;;  %v5660_v34 = vcombine.low %v15_v32, %v15_v32  ;;  %v5661_v35 = vcombine.high %v15_v32, %v15_v32  ;;  %v5662_v36 = vcombine.low %v16_v33, %v16_v33  ;;  %v5663_v37 = vcombine.high %v16_v33, %v16_v33  ;;  %v6981_v43 = vld [vmem:[%s9201_s1 + $0x1f0] sm:$0xff]   ;;  %v6984_v46 = vld [vmem:[%s9201_s1 + $0x168] sm:$0xff]   ;;  %v6988_v50 = vld [vmem:[%s9201_s1 + $0x160] sm:$0xff]  }
   0xf   :  { %v6982_v44 = vld [vmem:[%s9201_s1 + $0x130] sm:$0xff]   ;;  %v6985_v47 = vld [vmem:[%s9201_s1 + $0x1e8] sm:$0xff]   ;;  %v6989_v51 = vld [vmem:[%s9201_s1 + $0x1e0] sm:$0xff]  }
  0x10   :  { %6243 = vmatpush3.bf16.msra.mxu0 %v6954_v14  ;;  %4406 = vmatprep.mubr.bf16.mxu0 %v5661_v35  ;;  %v6983_v45 = vld [vmem:[%s9201_s1 + $0x1b0] sm:$0xff]   ;;  %v6986_v48 = vld [vmem:[%s9201_s1 + $0x128] sm:$0xff]   ;;  %v6990_v52 = vld [vmem:[%s9201_s1 + $0x120] sm:$0xff]  }
  0x11   :  { %6265 = vmatpush3.bf16.msra.mxu1 %v6955_v15  ;;  %6244 = vmatprep.subr.bf16.mxu0 %v6956_v16  ;;  %v6987_v49 = vld [vmem:[%s9201_s1 + $0x1a8] sm:$0xff]   ;;  %v6991_v53 = vld [vmem:[%s9201_s1 + $0x1a0] sm:$0xff]   ;;  %v6992_v54 = vld [vmem:[%s9201_s1 + $0x158] sm:$0xff]  }
  0x12   :  { %6266 = vmatprep.subr.bf16.mxu1 %v6957_v17  ;;  %4446 = vmatprep.mubr.bf16.mxu1 %v5663_v37  ;;  %v6993_v55 = vld [vmem:[%s9201_s1 + $0x1d8] sm:$0xff]   ;;  %v6996_v58 = vld [vmem:[%s9201_s1 + $0x150] sm:$0xff]   ;;  %v7000_v62 = vld [vmem:[%s9201_s1 + $0x148] sm:$0xff]  }
  0x13   :  { %v6994_v56 = vld [vmem:[%s9201_s1 + $0x118] sm:$0xff]   ;;  %v6997_v59 = vld [vmem:[%s9201_s1 + $0x1d0] sm:$0xff]   ;;  %v7001_v63 = vld [vmem:[%s9201_s1 + $0x1c8] sm:$0xff]  }
  0x14   :  { %6245 = vmatpush3.bf16.msra.mxu0 %v6958_v18  ;;  %v6995_v57 = vld [vmem:[%s9201_s1 + $0x198] sm:$0xff]   ;;  %v6998_v60 = vld [vmem:[%s9201_s1 + $0x110] sm:$0xff]   ;;  %v7002_v0 = vld [vmem:[%s9201_s1 + $0x108] sm:$0xff]  }
  0x15   :  { %6267 = vmatpush3.bf16.msra.mxu1 %v6959_v19  ;;  %6246 = vmatprep.subr.bf16.mxu0 %v6960_v20  ;;  %v6999_v61 = vld [vmem:[%s9201_s1 + $0x190] sm:$0xff]   ;;  %v7003_v1 = vld [vmem:[%s9201_s1 + $0x188] sm:$0xff]   ;;  %v7004_v2 = vld [vmem:[%s9201_s1 + $0x140] sm:$0xff]  }
  0x16   :  { %6268 = vmatprep.subr.bf16.mxu1 %v6961_v21  ;;  %v7005_v3 = vld [vmem:[%s9201_s1 + $0x1c0] sm:$0xff]   ;;  %v17_v6 = vld [vmem:[%s9202_s0 + $0x10] sm:$0xff]  ;;  %v18_v9 = vld [vmem:[%s9202_s0 + $0x18] sm:$0xff] }
  0x17   :  { %v7006_v4 = vld [vmem:[%s9201_s1 + $0x100] sm:$0xff]   ;;  %v5664_v7 = vcombine.low %v17_v6, %v17_v6  ;;  %v5665_v8 = vcombine.high %v17_v6, %v17_v6  ;;  %v5666_v10 = vcombine.low %v18_v9, %v18_v9  ;;  %v5667_v11 = vcombine.high %v18_v9, %v18_v9  ;;  %v7012_v12 = vld [vmem:[%s9201_s1 + $0x278] sm:$0xff]   ;;  %v7016_v16 = vld [vmem:[%s9201_s1 + $0x270] sm:$0xff]  }
  0x18   :  { %6247 = vmatpush3.bf16.msra.mxu0 %v6962_v22  ;;  %v7007_v5 = vld [vmem:[%s9201_s1 + $0x180] sm:$0xff]   ;;  %v7013_v13 = vld [vmem:[%s9201_s1 + $0x2f8] sm:$0xff]   ;;  %v7017_v17 = vld [vmem:[%s9201_s1 + $0x2f0] sm:$0xff]  }
  0x19   :  { %6269 = vmatpush3.bf16.msra.mxu1 %v6963_v23  ;;  %6248 = vmatprep.subr.bf16.mxu0 %v6964_v24  ;;  %v7014_v14 = vld [vmem:[%s9201_s1 + $0x238] sm:$0xff]   ;;  %v7018_v18 = vld [vmem:[%s9201_s1 + $0x230] sm:$0xff]   ;;  %v7020_v20 = vld [vmem:[%s9201_s1 + $0x268] sm:$0xff]  }
  0x1a   :  { %6270 = vmatprep.subr.bf16.mxu1 %v6965_v25  ;;  %v7015_v15 = vld [vmem:[%s9201_s1 + $0x2b8] sm:$0xff]   ;;  %v7019_v19 = vld [vmem:[%s9201_s1 + $0x2b0] sm:$0xff]   ;;  %v7021_v21 = vld [vmem:[%s9201_s1 + $0x2e8] sm:$0xff]  }
  0x1b   :  { %v7022_v22 = vld [vmem:[%s9201_s1 + $0x228] sm:$0xff]   ;;  %v7024_v24 = vld [vmem:[%s9201_s1 + $0x260] sm:$0xff]   ;;  %v7032_v32 = vld [vmem:[%s9201_s1 + $0x250] sm:$0xff]  }
  0x1c   :  { %6249 = vmatpush3.bf16.msra.mxu0 %v6966_v26  ;;  %v7023_v23 = vld [vmem:[%s9201_s1 + $0x2a8] sm:$0xff]   ;;  %v7025_v25 = vld [vmem:[%s9201_s1 + $0x2e0] sm:$0xff]   ;;  %v7033_v33 = vld [vmem:[%s9201_s1 + $0x2d0] sm:$0xff]  }
  0x1d   :  { %6271 = vmatpush3.bf16.msra.mxu1 %v6967_v27  ;;  %6250 = vmatprep.subr.bf16.mxu0 %v6968_v28  ;;  %v7026_v26 = vld [vmem:[%s9201_s1 + $0x220] sm:$0xff]   ;;  %v7028_v28 = vld [vmem:[%s9201_s1 + $0x258] sm:$0xff]   ;;  %v7035_v35 = vld [vmem:[%s9201_s1 + $0x290] sm:$0xff]  }
  0x1e   :  { %6272 = vmatprep.subr.bf16.mxu1 %v6969_v29  ;;  %v7027_v27 = vld [vmem:[%s9201_s1 + $0x2a0] sm:$0xff]   ;;  %v7029_v29 = vld [vmem:[%s9201_s1 + $0x2d8] sm:$0xff]   ;;  %v7037_v37 = vld [vmem:[%s9201_s1 + $0x2c8] sm:$0xff]  }
  0x1f   :  { %v7068_v6 = vld [vmem:[%s9201_s1 + $0x350] sm:$0xff]  }
  0x20   :  { %6251 = vmatpush3.bf16.msra.mxu0 %v6970_v30  ;;  %v7030_v30 = vld [vmem:[%s9201_s1 + $0x218] sm:$0xff]   ;;  %v7071_v9 = vld [vmem:[%s9201_s1 + $0x390] sm:$0xff]  }
  0x21   :  { %6273 = vmatpush3.bf16.msra.mxu1 %v6971_v31  ;;  %6280 = vmatprep.subr.bf16.mxu0 %v6976_v38  ;;  %v7031_v31 = vld [vmem:[%s9201_s1 + $0x298] sm:$0xff]   ;;  %v7038_v38 = vld [vmem:[%s9201_s1 + $0x208] sm:$0xff]  }
  0x22   :  { %6302 = vmatprep.subr.bf16.mxu1 %v6977_v39  ;;  %v7039_v39 = vld [vmem:[%s9201_s1 + $0x288] sm:$0xff]  }
  0x23   :  { %4407 = vmatmul.mubr.bf16.vlgmr.msra.gmra.mxu0 %v5660_v34  ;;  %v7034_v34 = vld [vmem:[%s9201_s1 + $0x210] sm:$0xff]  }
  0x24   :  { %4447 = vmatmul.mubr.bf16.vlgmr.msra.gmra.mxu1 %v5662_v36  ;;  %6281 = vmatpush3.bf16.msra.mxu0 %v6978_v40  ;;  %v7036_v36 = vld [vmem:[%s9201_s1 + $0x248] sm:$0xff]   ;;  %v7040_v40 = vld [vmem:[%s9201_s1 + $0x240] sm:$0xff]  }
  0x25   :  { %6303 = vmatpush3.bf16.msra.mxu1 %v6979_v41  ;;  %6282 = vmatprep.subr.bf16.mxu0 %v6980_v42  ;;  %v7041_v41 = vld [vmem:[%s9201_s1 + $0x2c0] sm:$0xff]  }
  0x26   :  { %6304 = vmatprep.subr.bf16.mxu1 %v6981_v43  ;;  %4486 = vmatprep.mubr.bf16.mxu0 %v5665_v8  ;;  %v7042_v42 = vld [vmem:[%s9201_s1 + $0x200] sm:$0xff]   ;;  %v7070_v8 = vld [vmem:[%s9201_s1 + $0x310] sm:$0xff]  }
  0x27   :  { %4526 = vmatprep.mubr.bf16.mxu1 %v5667_v11  ;;  %v7043_v43 = vld [vmem:[%s9201_s1 + $0x280] sm:$0xff]   ;;  %v7073_v11 = vld [vmem:[%s9201_s1 + $0x3c8] sm:$0xff]  }
  0x28   :  { %6283 = vmatpush3.bf16.msra.mxu0 %v6982_v44  ;;  %v19_v44 = vld [vmem:[%s9202_s0 + $0x20] sm:$0xff] }
  0x29   :  { %6305 = vmatpush3.bf16.msra.mxu1 %v6983_v45  ;;  %6284 = vmatprep.subr.bf16.mxu0 %v6984_v46  ;;  %v20_v45 = vld [vmem:[%s9202_s0 + $0x28] sm:$0xff]  ;;  %v5668_v46 = vcombine.low %v19_v44, %v19_v44 }
  0x2a   :  { %6306 = vmatprep.subr.bf16.mxu1 %v6985_v47  ;;  %v5669_v47 = vcombine.high %v19_v44, %v19_v44  ;;  %v7104_v44 = vld [vmem:[%s9201_s1 + $0x450] sm:$0xff]  }
  0x2c   :  { %6285 = vmatpush3.bf16.msra.mxu0 %v6986_v48  ;;  %v5670_v48 = vcombine.low %v20_v45, %v20_v45 }
  0x2d   :  { %6307 = vmatpush3.bf16.msra.mxu1 %v6987_v49  ;;  %6286 = vmatprep.subr.bf16.mxu0 %v6988_v50  ;;  %v5671_v49 = vcombine.high %v20_v45, %v20_v45  ;;  %v7048_v50 = vld [vmem:[%s9201_s1 + $0x378] sm:$0xff]   ;;  %v7105_v45 = vld [vmem:[%s9201_s1 + $0x4d0] sm:$0xff]  }
  0x2e   :  { %6308 = vmatprep.subr.bf16.mxu1 %v6989_v51  ;;  %v7049_v51 = vld [vmem:[%s9201_s1 + $0x3f8] sm:$0xff]  }
  0x30   :  { %6287 = vmatpush3.bf16.msra.mxu0 %v6990_v52  ;;  %v7050_v52 = vld [vmem:[%s9201_s1 + $0x338] sm:$0xff]  }
  0x31   :  { %6309 = vmatpush3.bf16.msra.mxu1 %v6991_v53  ;;  %6288 = vmatprep.subr.bf16.mxu0 %v6992_v54  ;;  %v7051_v53 = vld [vmem:[%s9201_s1 + $0x3b8] sm:$0xff]   ;;  %v7052_v54 = vld [vmem:[%s9201_s1 + $0x370] sm:$0xff]  }
  0x32   :  { %6310 = vmatprep.subr.bf16.mxu1 %v6993_v55  ;;  %v7053_v55 = vld [vmem:[%s9201_s1 + $0x3f0] sm:$0xff]  }
  0x34   :  { %6289 = vmatpush3.bf16.msra.mxu0 %v6994_v56  ;;  %v7054_v56 = vld [vmem:[%s9201_s1 + $0x330] sm:$0xff]  }
  0x35   :  { %6311 = vmatpush3.bf16.msra.mxu1 %v6995_v57  ;;  %6290 = vmatprep.subr.bf16.mxu0 %v6996_v58  ;;  %v7055_v57 = vld [vmem:[%s9201_s1 + $0x3b0] sm:$0xff]   ;;  %v7056_v58 = vld [vmem:[%s9201_s1 + $0x368] sm:$0xff]  }
  0x36   :  { %6312 = vmatprep.subr.bf16.mxu1 %v6997_v59  ;;  %v7057_v59 = vld [vmem:[%s9201_s1 + $0x3e8] sm:$0xff]  }
  0x38   :  { %6291 = vmatpush3.bf16.msra.mxu0 %v6998_v60  ;;  %v7058_v60 = vld [vmem:[%s9201_s1 + $0x328] sm:$0xff]  }
  0x39   :  { %6313 = vmatpush3.bf16.msra.mxu1 %v6999_v61  ;;  %6292 = vmatprep.subr.bf16.mxu0 %v7000_v62  ;;  %v7059_v61 = vld [vmem:[%s9201_s1 + $0x3a8] sm:$0xff]   ;;  %v7060_v62 = vld [vmem:[%s9201_s1 + $0x360] sm:$0xff]  }
  0x3a   :  { %6314 = vmatprep.subr.bf16.mxu1 %v7001_v63  ;;  %v7061_v63 = vld [vmem:[%s9201_s1 + $0x3e0] sm:$0xff]  }
  0x3c   :  { %6293 = vmatpush3.bf16.msra.mxu0 %v7002_v0  ;;  %v7062_v0 = vld [vmem:[%s9201_s1 + $0x320] sm:$0xff]  }
  0x3d   :  { %6315 = vmatpush3.bf16.msra.mxu1 %v7003_v1  ;;  %6294 = vmatprep.subr.bf16.mxu0 %v7004_v2  ;;  %v7063_v1 = vld [vmem:[%s9201_s1 + $0x3a0] sm:$0xff]   ;;  %v7064_v2 = vld [vmem:[%s9201_s1 + $0x358] sm:$0xff]  }
  0x3e   :  { %6316 = vmatprep.subr.bf16.mxu1 %v7005_v3  ;;  %v7065_v3 = vld [vmem:[%s9201_s1 + $0x3d8] sm:$0xff]  }
  0x40   :  { %6295 = vmatpush3.bf16.msra.mxu0 %v7006_v4  ;;  %v7066_v4 = vld [vmem:[%s9201_s1 + $0x318] sm:$0xff]  }
  0x41   :  { %6317 = vmatpush3.bf16.msra.mxu1 %v7007_v5  ;;  %6324 = vmatprep.subr.bf16.mxu0 %v7012_v12  ;;  %v7067_v5 = vld [vmem:[%s9201_s1 + $0x398] sm:$0xff]   ;;  %v7074_v12 = vld [vmem:[%s9201_s1 + $0x308] sm:$0xff]  }
  0x42   :  { %6346 = vmatprep.subr.bf16.mxu1 %v7013_v13  ;;  %v7075_v13 = vld [vmem:[%s9201_s1 + $0x388] sm:$0xff]  }
  0x43   :  { %4487 = vmatmul.mubr.bf16.vlgmr.msra.gmra.mxu0 %v5664_v7  ;;  %v7069_v7 = vld [vmem:[%s9201_s1 + $0x3d0] sm:$0xff]  }
  0x44   :  { %4527 = vmatmul.mubr.bf16.vlgmr.msra.gmra.mxu1 %v5666_v10  ;;  %6325 = vmatpush3.bf16.msra.mxu0 %v7014_v14  ;;  %v7072_v10 = vld [vmem:[%s9201_s1 + $0x348] sm:$0xff]   ;;  %v7076_v14 = vld [vmem:[%s9201_s1 + $0x340] sm:$0xff]  }
  0x45   :  { %6347 = vmatpush3.bf16.msra.mxu1 %v7015_v15  ;;  %6326 = vmatprep.subr.bf16.mxu0 %v7016_v16  ;;  %v7077_v15 = vld [vmem:[%s9201_s1 + $0x3c0] sm:$0xff]  }
  0x46   :  { %6348 = vmatprep.subr.bf16.mxu1 %v7017_v17  ;;  %4566 = vmatprep.mubr.bf16.mxu0 %v5669_v47  ;;  %v7078_v16 = vld [vmem:[%s9201_s1 + $0x300] sm:$0xff]   ;;  %v7107_v47 = vld [vmem:[%s9201_s1 + $0x490] sm:$0xff]  }
  0x47   :  { %4606 = vmatprep.mubr.bf16.mxu1 %v5671_v49  ;;  %v7079_v17 = vld [vmem:[%s9201_s1 + $0x380] sm:$0xff]   ;;  %v7109_v49 = vld [vmem:[%s9201_s1 + $0x4c8] sm:$0xff]  }
  0x48   :  { %6327 = vmatpush3.bf16.msra.mxu0 %v7018_v18  ;;  %v21_v18 = vld [vmem:[%s9202_s0 + $0x30] sm:$0xff] }
  0x49   :  { %6349 = vmatpush3.bf16.msra.mxu1 %v7019_v19  ;;  %6328 = vmatprep.subr.bf16.mxu0 %v7020_v20  ;;  %v22_v19 = vld [vmem:[%s9202_s0 + $0x38] sm:$0xff]  ;;  %v5672_v20 = vcombine.low %v21_v18, %v21_v18 }
  0x4a   :  { %6350 = vmatprep.subr.bf16.mxu1 %v7021_v21  ;;  %v5673_v21 = vcombine.high %v21_v18, %v21_v18  ;;  %v7140_v18 = vld [vmem:[%s9201_s1 + $0x550] sm:$0xff]  }
  0x4c   :  { %6329 = vmatpush3.bf16.msra.mxu0 %v7022_v22  ;;  %v5674_v22 = vcombine.low %v22_v19, %v22_v19 }
  0x4d   :  { %6351 = vmatpush3.bf16.msra.mxu1 %v7023_v23  ;;  %6330 = vmatprep.subr.bf16.mxu0 %v7024_v24  ;;  %v7084_v23 = vld [vmem:[%s9201_s1 + $0x478] sm:$0xff]   ;;  %v5675_v24 = vcombine.high %v22_v19, %v22_v19  ;;  %v7141_v19 = vld [vmem:[%s9201_s1 + $0x5d0] sm:$0xff]  }
  0x4e   :  { %6352 = vmatprep.subr.bf16.mxu1 %v7025_v25  ;;  %v7085_v25 = vld [vmem:[%s9201_s1 + $0x4f8] sm:$0xff]  }
  0x50   :  { %6331 = vmatpush3.bf16.msra.mxu0 %v7026_v26  ;;  %v7086_v26 = vld [vmem:[%s9201_s1 + $0x438] sm:$0xff]  }
  0x51   :  { %6353 = vmatpush3.bf16.msra.mxu1 %v7027_v27  ;;  %6332 = vmatprep.subr.bf16.mxu0 %v7028_v28  ;;  %v7087_v27 = vld [vmem:[%s9201_s1 + $0x4b8] sm:$0xff]   ;;  %v7088_v28 = vld [vmem:[%s9201_s1 + $0x470] sm:$0xff]  }
  0x52   :  { %6354 = vmatprep.subr.bf16.mxu1 %v7029_v29  ;;  %v7089_v29 = vld [vmem:[%s9201_s1 + $0x4f0] sm:$0xff]  }
  0x54   :  { %6333 = vmatpush3.bf16.msra.mxu0 %v7030_v30  ;;  %v7090_v30 = vld [vmem:[%s9201_s1 + $0x430] sm:$0xff]  }
  0x55   :  { %6355 = vmatpush3.bf16.msra.mxu1 %v7031_v31  ;;  %6334 = vmatprep.subr.bf16.mxu0 %v7032_v32  ;;  %v7091_v31 = vld [vmem:[%s9201_s1 + $0x4b0] sm:$0xff]   ;;  %v7092_v32 = vld [vmem:[%s9201_s1 + $0x468] sm:$0xff]  }
  0x56   :  { %6356 = vmatprep.subr.bf16.mxu1 %v7033_v33  ;;  %v7093_v33 = vld [vmem:[%s9201_s1 + $0x4e8] sm:$0xff]  }
  0x58   :  { %6335 = vmatpush3.bf16.msra.mxu0 %v7034_v34  ;;  %v7094_v34 = vld [vmem:[%s9201_s1 + $0x428] sm:$0xff]  }
  0x59   :  { %6357 = vmatpush3.bf16.msra.mxu1 %v7035_v35  ;;  %6336 = vmatprep.subr.bf16.mxu0 %v7036_v36  ;;  %v7095_v35 = vld [vmem:[%s9201_s1 + $0x4a8] sm:$0xff]   ;;  %v7096_v36 = vld [vmem:[%s9201_s1 + $0x460] sm:$0xff]  }
  0x5a   :  { %6358 = vmatprep.subr.bf16.mxu1 %v7037_v37  ;;  %v7097_v37 = vld [vmem:[%s9201_s1 + $0x4e0] sm:$0xff]  }
  0x5c   :  { %6337 = vmatpush3.bf16.msra.mxu0 %v7038_v38  ;;  %v7098_v38 = vld [vmem:[%s9201_s1 + $0x420] sm:$0xff]  }
  0x5d   :  { %6359 = vmatpush3.bf16.msra.mxu1 %v7039_v39  ;;  %6338 = vmatprep.subr.bf16.mxu0 %v7040_v40  ;;  %v7099_v39 = vld [vmem:[%s9201_s1 + $0x4a0] sm:$0xff]   ;;  %v7100_v40 = vld [vmem:[%s9201_s1 + $0x458] sm:$0xff]  }
  0x5e   :  { %6360 = vmatprep.subr.bf16.mxu1 %v7041_v41  ;;  %v7101_v41 = vld [vmem:[%s9201_s1 + $0x4d8] sm:$0xff]  }
  0x60   :  { %6339 = vmatpush3.bf16.msra.mxu0 %v7042_v42  ;;  %v7102_v42 = vld [vmem:[%s9201_s1 + $0x418] sm:$0xff]  }
  0x61   :  { %6361 = vmatpush3.bf16.msra.mxu1 %v7043_v43  ;;  %6368 = vmatprep.subr.bf16.mxu0 %v7048_v50  ;;  %v7103_v43 = vld [vmem:[%s9201_s1 + $0x498] sm:$0xff]   ;;  %v7110_v50 = vld [vmem:[%s9201_s1 + $0x408] sm:$0xff]  }
  0x62   :  { %6390 = vmatprep.subr.bf16.mxu1 %v7049_v51  ;;  %v7111_v51 = vld [vmem:[%s9201_s1 + $0x488] sm:$0xff]  }
  0x63   :  { %4567 = vmatmul.mubr.bf16.vlgmr.msra.gmra.mxu0 %v5668_v46  ;;  %v7106_v46 = vld [vmem:[%s9201_s1 + $0x410] sm:$0xff]  }
  0x64   :  { %4607 = vmatmul.mubr.bf16.vlgmr.msra.gmra.mxu1 %v5670_v48  ;;  %6369 = vmatpush3.bf16.msra.mxu0 %v7050_v52  ;;  %v7108_v48 = vld [vmem:[%s9201_s1 + $0x448] sm:$0xff]   ;;  %v7112_v52 = vld [vmem:[%s9201_s1 + $0x440] sm:$0xff]  }
  0x65   :  { %6391 = vmatpush3.bf16.msra.mxu1 %v7051_v53  ;;  %6370 = vmatprep.subr.bf16.mxu0 %v7052_v54  ;;  %v7113_v53 = vld [vmem:[%s9201_s1 + $0x4c0] sm:$0xff]  }
  0x66   :  { %6392 = vmatprep.subr.bf16.mxu1 %v7053_v55  ;;  %4646 = vmatprep.mubr.bf16.mxu0 %v5673_v21  ;;  %v7114_v54 = vld [vmem:[%s9201_s1 + $0x400] sm:$0xff]   ;;  %v7143_v21 = vld [vmem:[%s9201_s1 + $0x590] sm:$0xff]  }
  0x67   :  { %4686 = vmatprep.mubr.bf16.mxu1 %v5675_v24  ;;  %v7115_v55 = vld [vmem:[%s9201_s1 + $0x480] sm:$0xff]   ;;  %v7146_v24 = vld [vmem:[%s9201_s1 + $0x508] sm:$0xff]  }
  0x68   :  { %6371 = vmatpush3.bf16.msra.mxu0 %v7054_v56  ;;  %v23_v56 = vld [vmem:[%s9202_s0 + $0x40] sm:$0xff] }
  0x69   :  { %6393 = vmatpush3.bf16.msra.mxu1 %v7055_v57  ;;  %6372 = vmatprep.subr.bf16.mxu0 %v7056_v58  ;;  %v5676_v57 = vcombine.low %v23_v56, %v23_v56  ;;  %v5677_v58 = vcombine.high %v23_v56, %v23_v56  ;;  %v7176_v56 = vld [vmem:[%s9201_s1 + $0x650] sm:$0xff]  }
  0x6a   :  { %6394 = vmatprep.subr.bf16.mxu1 %v7057_v59  ;;  %v24_v59 = vld [vmem:[%s9202_s0 + $0x48] sm:$0xff] }
  0x6c   :  { %6373 = vmatpush3.bf16.msra.mxu0 %v7058_v60  ;;  %v5678_v60 = vcombine.low %v24_v59, %v24_v59 }
  0x6d   :  { %6395 = vmatpush3.bf16.msra.mxu1 %v7059_v61  ;;  %6374 = vmatprep.subr.bf16.mxu0 %v7060_v62  ;;  %v5679_v61 = vcombine.high %v24_v59, %v24_v59  ;;  %v7120_v62 = vld [vmem:[%s9201_s1 + $0x578] sm:$0xff]   ;;  %v7179_v59 = vld [vmem:[%s9201_s1 + $0x690] sm:$0xff]  }
  0x6e   :  { %6396 = vmatprep.subr.bf16.mxu1 %v7061_v63  ;;  %v7121_v63 = vld [vmem:[%s9201_s1 + $0x5f8] sm:$0xff]  }
  0x70   :  { %6375 = vmatpush3.bf16.msra.mxu0 %v7062_v0  ;;  %v7122_v0 = vld [vmem:[%s9201_s1 + $0x538] sm:$0xff]  }
  0x71   :  { %6397 = vmatpush3.bf16.msra.mxu1 %v7063_v1  ;;  %6376 = vmatprep.subr.bf16.mxu0 %v7064_v2  ;;  %v7123_v1 = vld [vmem:[%s9201_s1 + $0x5b8] sm:$0xff]   ;;  %v7124_v2 = vld [vmem:[%s9201_s1 + $0x570] sm:$0xff]  }
  0x72   :  { %6398 = vmatprep.subr.bf16.mxu1 %v7065_v3  ;;  %v7125_v3 = vld [vmem:[%s9201_s1 + $0x5f0] sm:$0xff]  }
  0x74   :  { %6377 = vmatpush3.bf16.msra.mxu0 %v7066_v4  ;;  %v7126_v4 = vld [vmem:[%s9201_s1 + $0x530] sm:$0xff]  }
  0x75   :  { %6399 = vmatpush3.bf16.msra.mxu1 %v7067_v5  ;;  %6378 = vmatprep.subr.bf16.mxu0 %v7068_v6  ;;  %v7127_v5 = vld [vmem:[%s9201_s1 + $0x5b0] sm:$0xff]   ;;  %v7128_v6 = vld [vmem:[%s9201_s1 + $0x568] sm:$0xff]  }
  0x76   :  { %6400 = vmatprep.subr.bf16.mxu1 %v7069_v7  ;;  %v7129_v7 = vld [vmem:[%s9201_s1 + $0x5e8] sm:$0xff]  }
  0x78   :  { %6379 = vmatpush3.bf16.msra.mxu0 %v7070_v8  ;;  %v7130_v8 = vld [vmem:[%s9201_s1 + $0x528] sm:$0xff]  }
  0x79   :  { %6401 = vmatpush3.bf16.msra.mxu1 %v7071_v9  ;;  %6380 = vmatprep.subr.bf16.mxu0 %v7072_v10  ;;  %v7131_v9 = vld [vmem:[%s9201_s1 + $0x5a8] sm:$0xff]   ;;  %v7132_v10 = vld [vmem:[%s9201_s1 + $0x560] sm:$0xff]  }
  0x7a   :  { %6402 = vmatprep.subr.bf16.mxu1 %v7073_v11  ;;  %v7133_v11 = vld [vmem:[%s9201_s1 + $0x5e0] sm:$0xff]  }
  0x7c   :  { %6381 = vmatpush3.bf16.msra.mxu0 %v7074_v12  ;;  %v7134_v12 = vld [vmem:[%s9201_s1 + $0x520] sm:$0xff]  }
  0x7d   :  { %6403 = vmatpush3.bf16.msra.mxu1 %v7075_v13  ;;  %6382 = vmatprep.subr.bf16.mxu0 %v7076_v14  ;;  %v7135_v13 = vld [vmem:[%s9201_s1 + $0x5a0] sm:$0xff]   ;;  %v7136_v14 = vld [vmem:[%s9201_s1 + $0x558] sm:$0xff]  }
  0x7e   :  { %6404 = vmatprep.subr.bf16.mxu1 %v7077_v15  ;;  %v7137_v15 = vld [vmem:[%s9201_s1 + $0x5d8] sm:$0xff]  }
  0x80   :  { %6383 = vmatpush3.bf16.msra.mxu0 %v7078_v16  ;;  %v7138_v16 = vld [vmem:[%s9201_s1 + $0x518] sm:$0xff]  }
  0x81   :  { %6405 = vmatpush3.bf16.msra.mxu1 %v7079_v17  ;;  %6412 = vmatprep.subr.bf16.mxu0 %v7084_v23  ;;  %v7139_v17 = vld [vmem:[%s9201_s1 + $0x598] sm:$0xff]   ;;  %v7145_v23 = vld [vmem:[%s9201_s1 + $0x5c8] sm:$0xff]  }
  0x82   :  { %6434 = vmatprep.subr.bf16.mxu1 %v7085_v25  ;;  %v7147_v25 = vld [vmem:[%s9201_s1 + $0x588] sm:$0xff]  }
  0x83   :  { %4647 = vmatmul.mubr.bf16.vlgmr.msra.gmra.mxu0 %v5672_v20  ;;  %v7142_v20 = vld [vmem:[%s9201_s1 + $0x510] sm:$0xff]  }
  0x84   :  { %4687 = vmatmul.mubr.bf16.vlgmr.msra.gmra.mxu1 %v5674_v22  ;;  %6413 = vmatpush3.bf16.msra.mxu0 %v7086_v26  ;;  %v7144_v22 = vld [vmem:[%s9201_s1 + $0x548] sm:$0xff]   ;;  %v7148_v26 = vld [vmem:[%s9201_s1 + $0x540] sm:$0xff]  }
  0x85   :  { %6435 = vmatpush3.bf16.msra.mxu1 %v7087_v27  ;;  %6414 = vmatprep.subr.bf16.mxu0 %v7088_v28  ;;  %v7149_v27 = vld [vmem:[%s9201_s1 + $0x5c0] sm:$0xff]  }
  0x86   :  { %6436 = vmatprep.subr.bf16.mxu1 %v7089_v29  ;;  %4726 = vmatprep.mubr.bf16.mxu0 %v5677_v58  ;;  %v7150_v28 = vld [vmem:[%s9201_s1 + $0x500] sm:$0xff]   ;;  %v7178_v58 = vld [vmem:[%s9201_s1 + $0x610] sm:$0xff]  }
  0x87   :  { %4766 = vmatprep.mubr.bf16.mxu1 %v5679_v61  ;;  %v7151_v29 = vld [vmem:[%s9201_s1 + $0x580] sm:$0xff]   ;;  %v7181_v61 = vld [vmem:[%s9201_s1 + $0x6c8] sm:$0xff]  }
  0x88   :  { %6415 = vmatpush3.bf16.msra.mxu0 %v7090_v30  ;;  %v25_v30 = vld [vmem:[%s9202_s0 + $0x50] sm:$0xff] }
  0x89   :  { %6437 = vmatpush3.bf16.msra.mxu1 %v7091_v31  ;;  %6416 = vmatprep.subr.bf16.mxu0 %v7092_v32  ;;  %v26_v31 = vld [vmem:[%s9202_s0 + $0x58] sm:$0xff]  ;;  %v5680_v32 = vcombine.low %v25_v30, %v25_v30 }
  0x8a   :  { %6438 = vmatprep.subr.bf16.mxu1 %v7093_v33  ;;  %v5681_v33 = vcombine.high %v25_v30, %v25_v30  ;;  %v7199_v30 = vld [vmem:[%s9201_s1 + $0x7b0] sm:$0xff]  }
  0x8c   :  { %6417 = vmatpush3.bf16.msra.mxu0 %v7094_v34  ;;  %v5682_v34 = vcombine.low %v26_v31, %v26_v31 }
  0x8d   :  { %6439 = vmatpush3.bf16.msra.mxu1 %v7095_v35  ;;  %6418 = vmatprep.subr.bf16.mxu0 %v7096_v36  ;;  %v5683_v35 = vcombine.high %v26_v31, %v26_v31  ;;  %v7156_v36 = vld [vmem:[%s9201_s1 + $0x678] sm:$0xff]   ;;  %v7200_v31 = vld [vmem:[%s9201_s1 + $0x768] sm:$0xff]  }
  0x8e   :  { %6440 = vmatprep.subr.bf16.mxu1 %v7097_v37  ;;  %v7157_v37 = vld [vmem:[%s9201_s1 + $0x6f8] sm:$0xff]  }
  0x90   :  { %6419 = vmatpush3.bf16.msra.mxu0 %v7098_v38  ;;  %v7158_v38 = vld [vmem:[%s9201_s1 + $0x638] sm:$0xff]  }
  0x91   :  { %6441 = vmatpush3.bf16.msra.mxu1 %v7099_v39  ;;  %6420 = vmatprep.subr.bf16.mxu0 %v7100_v40  ;;  %v7159_v39 = vld [vmem:[%s9201_s1 + $0x6b8] sm:$0xff]   ;;  %v7160_v40 = vld [vmem:[%s9201_s1 + $0x670] sm:$0xff]  }
  0x92   :  { %6442 = vmatprep.subr.bf16.mxu1 %v7101_v41  ;;  %v7161_v41 = vld [vmem:[%s9201_s1 + $0x6f0] sm:$0xff]  }
  0x94   :  { %6421 = vmatpush3.bf16.msra.mxu0 %v7102_v42  ;;  %v7162_v42 = vld [vmem:[%s9201_s1 + $0x630] sm:$0xff]  }
  0x95   :  { %6443 = vmatpush3.bf16.msra.mxu1 %v7103_v43  ;;  %6422 = vmatprep.subr.bf16.mxu0 %v7104_v44  ;;  %v7163_v43 = vld [vmem:[%s9201_s1 + $0x6b0] sm:$0xff]   ;;  %v7164_v44 = vld [vmem:[%s9201_s1 + $0x668] sm:$0xff]  }
  0x96   :  { %6444 = vmatprep.subr.bf16.mxu1 %v7105_v45  ;;  %v7165_v45 = vld [vmem:[%s9201_s1 + $0x6e8] sm:$0xff]  }
  0x98   :  { %6423 = vmatpush3.bf16.msra.mxu0 %v7106_v46  ;;  %v7166_v46 = vld [vmem:[%s9201_s1 + $0x628] sm:$0xff]  }
  0x99   :  { %6445 = vmatpush3.bf16.msra.mxu1 %v7107_v47  ;;  %6424 = vmatprep.subr.bf16.mxu0 %v7108_v48  ;;  %v7167_v47 = vld [vmem:[%s9201_s1 + $0x6a8] sm:$0xff]   ;;  %v7168_v48 = vld [vmem:[%s9201_s1 + $0x660] sm:$0xff]  }
  0x9a   :  { %6446 = vmatprep.subr.bf16.mxu1 %v7109_v49  ;;  %v7169_v49 = vld [vmem:[%s9201_s1 + $0x6e0] sm:$0xff]  }
  0x9c   :  { %6425 = vmatpush3.bf16.msra.mxu0 %v7110_v50  ;;  %v7170_v50 = vld [vmem:[%s9201_s1 + $0x620] sm:$0xff]  }
  0x9d   :  { %6447 = vmatpush3.bf16.msra.mxu1 %v7111_v51  ;;  %6426 = vmatprep.subr.bf16.mxu0 %v7112_v52  ;;  %v7171_v51 = vld [vmem:[%s9201_s1 + $0x6a0] sm:$0xff]   ;;  %v7172_v52 = vld [vmem:[%s9201_s1 + $0x658] sm:$0xff]  }
  0x9e   :  { %6448 = vmatprep.subr.bf16.mxu1 %v7113_v53  ;;  %v7173_v53 = vld [vmem:[%s9201_s1 + $0x6d8] sm:$0xff]  }
  0xa0   :  { %6427 = vmatpush3.bf16.msra.mxu0 %v7114_v54  ;;  %v7174_v54 = vld [vmem:[%s9201_s1 + $0x618] sm:$0xff]  }
  0xa1   :  { %6449 = vmatpush3.bf16.msra.mxu1 %v7115_v55  ;;  %6456 = vmatprep.subr.bf16.mxu0 %v7120_v62  ;;  %v7175_v55 = vld [vmem:[%s9201_s1 + $0x698] sm:$0xff]   ;;  %v7182_v62 = vld [vmem:[%s9201_s1 + $0x608] sm:$0xff]  }
  0xa2   :  { %6478 = vmatprep.subr.bf16.mxu1 %v7121_v63  ;;  %v7183_v63 = vld [vmem:[%s9201_s1 + $0x688] sm:$0xff]  }
  0xa3   :  { %4727 = vmatmul.mubr.bf16.vlgmr.msra.gmra.mxu0 %v5676_v57  ;;  %v7177_v57 = vld [vmem:[%s9201_s1 + $0x6d0] sm:$0xff]  }
  0xa4   :  { %4767 = vmatmul.mubr.bf16.vlgmr.msra.gmra.mxu1 %v5678_v60  ;;  %6457 = vmatpush3.bf16.msra.mxu0 %v7122_v0  ;;  %v7180_v60 = vld [vmem:[%s9201_s1 + $0x648] sm:$0xff]   ;;  %v7184_v0 = vld [vmem:[%s9201_s1 + $0x640] sm:$0xff]  }
  0xa5   :  { %6479 = vmatpush3.bf16.msra.mxu1 %v7123_v1  ;;  %6458 = vmatprep.subr.bf16.mxu0 %v7124_v2  ;;  %v7185_v1 = vld [vmem:[%s9201_s1 + $0x6c0] sm:$0xff]  }
  0xa6   :  { %6480 = vmatprep.subr.bf16.mxu1 %v7125_v3  ;;  %4806 = vmatprep.mubr.bf16.mxu0 %v5681_v33  ;;  %v7186_v2 = vld [vmem:[%s9201_s1 + $0x600] sm:$0xff]   ;;  %v7202_v33 = vld [vmem:[%s9201_s1 + $0x728] sm:$0xff]  }
  0xa7   :  { %4846 = vmatprep.mubr.bf16.mxu1 %v5683_v35  ;;  %v7187_v3 = vld [vmem:[%s9201_s1 + $0x680] sm:$0xff]  }
  0xa8   :  { %6459 = vmatpush3.bf16.msra.mxu0 %v7126_v4  ;;  %v27_v4 = vld [vmem:[%s9202_s0 + $0x60] sm:$0xff] }
  0xa9   :  { %6481 = vmatpush3.bf16.msra.mxu1 %v7127_v5  ;;  %6460 = vmatprep.subr.bf16.mxu0 %v7128_v6  ;;  %v28_v5 = vld [vmem:[%s9202_s0 + $0x68] sm:$0xff]  ;;  %v7204_v35 = vld [vmem:[%s9201_s1 + $0x760] sm:$0xff]  }
  0xaa   :  { %6482 = vmatprep.subr.bf16.mxu1 %v7129_v7 }
  0xac   :  { %6461 = vmatpush3.bf16.msra.mxu0 %v7130_v8  ;;  %v5684_v8 = vcombine.low %v27_v4, %v27_v4 }
  0xad   :  { %6483 = vmatpush3.bf16.msra.mxu1 %v7131_v9  ;;  %6462 = vmatprep.subr.bf16.mxu0 %v7132_v10  ;;  %v5685_v9 = vcombine.high %v27_v4, %v27_v4  ;;  %v5686_v10 = vcombine.low %v28_v5, %v28_v5 }
  0xae   :  { %6484 = vmatprep.subr.bf16.mxu1 %v7133_v11  ;;  %v7192_v11 = vld [vmem:[%s9201_s1 + $0x778] sm:$0xff]  }
  0xb0   :  { %6463 = vmatpush3.bf16.msra.mxu0 %v7134_v12  ;;  %v5687_v12 = vcombine.high %v28_v5, %v28_v5 }
  0xb1   :  { %6485 = vmatpush3.bf16.msra.mxu1 %v7135_v13  ;;  %6464 = vmatprep.subr.bf16.mxu0 %v7136_v14  ;;  %v7193_v13 = vld [vmem:[%s9201_s1 + $0x7f8] sm:$0xff]  }
  0xb2   :  { %6486 = vmatprep.subr.bf16.mxu1 %v7137_v15 }
  0xb4   :  { %6465 = vmatpush3.bf16.msra.mxu0 %v7138_v16  ;;  %v7194_v16 = vld [vmem:[%s9201_s1 + $0x738] sm:$0xff]  }
  0xb5   :  { %6487 = vmatpush3.bf16.msra.mxu1 %v7139_v17  ;;  %6466 = vmatprep.subr.bf16.mxu0 %v7140_v18 }
  0xb6   :  { %6488 = vmatprep.subr.bf16.mxu1 %v7141_v19  ;;  %v7195_v19 = vld [vmem:[%s9201_s1 + $0x7b8] sm:$0xff]  }
  0xb8   :  { %6467 = vmatpush3.bf16.msra.mxu0 %v7142_v20  ;;  %v5659_v20 = vld [vmem:[%s9203_s2] ss:$0 sm:$0xff] }
  0xb9   :  { %6489 = vmatpush3.bf16.msra.mxu1 %v7143_v21  ;;  %6468 = vmatprep.subr.bf16.mxu0 %v7144_v22 }
  0xba   :  { %6490 = vmatprep.subr.bf16.mxu1 %v7145_v23 }
  0xbc   :  { %6469 = vmatpush3.bf16.msra.mxu0 %v7146_v24  ;;  %v7196_v24 = vld [vmem:[%s9201_s1 + $0x770] sm:$0xff]  }
  0xbd   :  { %6491 = vmatpush3.bf16.msra.mxu1 %v7147_v25  ;;  %6470 = vmatprep.subr.bf16.mxu0 %v7148_v26  ;;  %v7197_v25 = vld [vmem:[%s9201_s1 + $0x7f0] sm:$0xff]  }
  0xbe   :  { %6492 = vmatprep.subr.bf16.mxu1 %v7149_v27 }
  0xc0   :  { %6471 = vmatpush3.bf16.msra.mxu0 %v7150_v28 }
  0xc1   :  { %6493 = vmatpush3.bf16.msra.mxu1 %v7151_v29  ;;  %6500 = vmatprep.subr.bf16.mxu0 %v7156_v36  ;;  %v7198_v29 = vld [vmem:[%s9201_s1 + $0x730] sm:$0xff]   ;;  %v7205_v36 = vld [vmem:[%s9201_s1 + $0x7e0] sm:$0xff]  }
  0xc2   :  { %6522 = vmatprep.subr.bf16.mxu1 %v7157_v37  ;;  %v7206_v37 = vld [vmem:[%s9201_s1 + $0x720] sm:$0xff]  }
  0xc3   :  { %4807 = vmatmul.mubr.bf16.vlgmr.msra.gmra.mxu0 %v5680_v32  ;;  %v7201_v32 = vld [vmem:[%s9201_s1 + $0x7e8] sm:$0xff]  }
  0xc4   :  { %4847 = vmatmul.mubr.bf16.vlgmr.msra.gmra.mxu1 %v5682_v34  ;;  %6501 = vmatpush3.bf16.msra.mxu0 %v7158_v38  ;;  %v7203_v34 = vld [vmem:[%s9201_s1 + $0x7a8] sm:$0xff]   ;;  %v7207_v38 = vld [vmem:[%s9201_s1 + $0x7a0] sm:$0xff]  }
  0xc5   :  { %6523 = vmatpush3.bf16.msra.mxu1 %v7159_v39  ;;  %6502 = vmatprep.subr.bf16.mxu0 %v7160_v40  ;;  %v7208_v39 = vld [vmem:[%s9201_s1 + $0x758] sm:$0xff]  }
  0xc6   :  { %6524 = vmatprep.subr.bf16.mxu1 %v7161_v41  ;;  %4886 = vmatprep.mubr.bf16.mxu0 %v5685_v9  ;;  %v7209_v40 = vld [vmem:[%s9201_s1 + $0x7d8] sm:$0xff]  }
  0xc7   :  { %4926 = vmatprep.mubr.bf16.mxu1 %v5687_v12  ;;  %v7210_v41 = vld [vmem:[%s9201_s1 + $0x718] sm:$0xff]  }
  0xc8   :  { %6503 = vmatpush3.bf16.msra.mxu0 %v7162_v42  ;;  %v7211_v42 = vld [vmem:[%s9201_s1 + $0x798] sm:$0xff]  }
  0xc9   :  { %6525 = vmatpush3.bf16.msra.mxu1 %v7163_v43  ;;  %6504 = vmatprep.subr.bf16.mxu0 %v7164_v44  ;;  %v7212_v43 = vld [vmem:[%s9201_s1 + $0x750] sm:$0xff]  }
  0xca   :  { %6526 = vmatprep.subr.bf16.mxu1 %v7165_v45  ;;  %v7213_v44 = vld [vmem:[%s9201_s1 + $0x7d0] sm:$0xff]  }
  0xcb   :  { %v7214_v45 = vld [vmem:[%s9201_s1 + $0x710] sm:$0xff]  }
  0xcc   :  { %6505 = vmatpush3.bf16.msra.mxu0 %v7166_v46  ;;  %v7215_v46 = vld [vmem:[%s9201_s1 + $0x790] sm:$0xff]  }
  0xcd   :  { %6527 = vmatpush3.bf16.msra.mxu1 %v7167_v47  ;;  %6506 = vmatprep.subr.bf16.mxu0 %v7168_v48  ;;  %v7216_v47 = vld [vmem:[%s9201_s1 + $0x748] sm:$0xff]  }
  0xce   :  { %6528 = vmatprep.subr.bf16.mxu1 %v7169_v49  ;;  %v7217_v48 = vld [vmem:[%s9201_s1 + $0x7c8] sm:$0xff]  }
  0xcf   :  { %v7218_v49 = vld [vmem:[%s9201_s1 + $0x708] sm:$0xff]  }
  0xd0   :  { %6507 = vmatpush3.bf16.msra.mxu0 %v7170_v50  ;;  %v7219_v50 = vld [vmem:[%s9201_s1 + $0x788] sm:$0xff]  }
  0xd1   :  { %6529 = vmatpush3.bf16.msra.mxu1 %v7171_v51  ;;  %6508 = vmatprep.subr.bf16.mxu0 %v7172_v52  ;;  %v7220_v51 = vld [vmem:[%s9201_s1 + $0x740] sm:$0xff]  }
  0xd2   :  { %6530 = vmatprep.subr.bf16.mxu1 %v7173_v53  ;;  %v7221_v52 = vld [vmem:[%s9201_s1 + $0x7c0] sm:$0xff]  }
  0xd3   :  { %v7222_v53 = vld [vmem:[%s9201_s1 + $0x700] sm:$0xff]  }
  0xd4   :  { %6509 = vmatpush3.bf16.msra.mxu0 %v7174_v54  ;;  %v7223_v54 = vld [vmem:[%s9201_s1 + $0x780] sm:$0xff]  }
  0xd5   :  { %6531 = vmatpush3.bf16.msra.mxu1 %v7175_v55  ;;  %6510 = vmatprep.subr.bf16.mxu0 %v7176_v56  ;;  %v29_v55 = vld [vmem:[%s9202_s0 + $0x70] sm:$0xff]  ;;  %v30_v56 = vld [vmem:[%s9202_s0 + $0x78] sm:$0xff] }
  0xd6   :  { %6532 = vmatprep.subr.bf16.mxu1 %v7177_v57 }
  0xd8   :  { %6511 = vmatpush3.bf16.msra.mxu0 %v7178_v58 }
  0xd9   :  { %6533 = vmatpush3.bf16.msra.mxu1 %v7179_v59  ;;  %6512 = vmatprep.subr.bf16.mxu0 %v7180_v60  ;;  %v5688_v59 = vcombine.low %v29_v55, %v29_v55  ;;  %v5689_v60 = vcombine.high %v29_v55, %v29_v55 }
  0xda   :  { %6534 = vmatprep.subr.bf16.mxu1 %v7181_v61  ;;  %v5690_v61 = vcombine.low %v30_v56, %v30_v56 }
  0xdc   :  { %6513 = vmatpush3.bf16.msra.mxu0 %v7182_v62  ;;  %v7228_v62 = vld [vmem:[%s9201_s1 + $0x878] sm:$0xff]  }
  0xdd   :  { %6535 = vmatpush3.bf16.msra.mxu1 %v7183_v63  ;;  %6514 = vmatprep.subr.bf16.mxu0 %v7184_v0  ;;  %v5691_v63 = vcombine.high %v30_v56, %v30_v56  ;;  %v7229_v0 = vld [vmem:[%s9201_s1 + $0x8f8] sm:$0xff]  }
  0xde   :  { %6536 = vmatprep.subr.bf16.mxu1 %v7185_v1 }
  0xe0   :  { %6515 = vmatpush3.bf16.msra.mxu0 %v7186_v2 }
  0xe1   :  { %6537 = vmatpush3.bf16.msra.mxu1 %v7187_v3  ;;  %6544 = vmatprep.subr.bf16.mxu0 %v7192_v11  ;;  %v7230_v3 = vld [vmem:[%s9201_s1 + $0x838] sm:$0xff]   ;;  %v7233_v11 = vld [vmem:[%s9201_s1 + $0x8f0] sm:$0xff]  }
  0xe2   :  { %6566 = vmatprep.subr.bf16.mxu1 %v7193_v13 }
  0xe3   :  { %v6252_v6 = vpop.f32.mrf.mxu0  ;;  %4887 = vmatmul.mubr.bf16.vlgmr.msra.gmra.mxu0 %v5684_v8 }
  0xe4   :  { %v6274_v7 = vpop.f32.mrf.mxu1  ;;  %4927 = vmatmul.mubr.bf16.vlgmr.msra.gmra.mxu1 %v5686_v10  ;;  %6545 = vmatpush3.bf16.msra.mxu0 %v7194_v16  ;;  %v7232_v10 = vld [vmem:[%s9201_s1 + $0x870] sm:$0xff]  }
  0xe5   :  { %v6253_v14 = vpop.f32.mrf.mxu0  ;;  %6567 = vmatpush3.bf16.msra.mxu1 %v7195_v19  ;;  %6546 = vmatprep.subr.bf16.mxu0 %v7196_v24  ;;  %v7235_v16 = vld [vmem:[%s9201_s1 + $0x8b0] sm:$0xff]   ;;  %v7238_v19 = vld [vmem:[%s9201_s1 + $0x828] sm:$0xff]   ;;  %v7243_v24 = vld [vmem:[%s9201_s1 + $0x8a0] sm:$0xff]  }
  0xe6   :  { %v6275_v15 = vpop.f32.mrf.mxu1  ;;  %v6254_v17 = vadd.f32 %v6253_v14, %v6252_v6  ;;  %6568 = vmatprep.subr.bf16.mxu1 %v7197_v25  ;;  %4966 = vmatprep.mubr.bf16.mxu0 %v5689_v60  ;;  %v7231_v6 = vld [vmem:[%s9201_s1 + $0x8b8] sm:$0xff]   ;;  %v7268_v60 = vld [vmem:[%s9201_s1 + $0x970] sm:$0xff]  }
  0xe7   :  { %v6276_v18 = vadd.f32 %v6275_v15, %v6274_v7  ;;  %v6255_v21 = vpop.f32.mrf.mxu0  ;;  %5006 = vmatprep.mubr.bf16.mxu1 %v5691_v63  ;;  %v7234_v15 = vld [vmem:[%s9201_s1 + $0x830] sm:$0xff]   ;;  %v7244_v25 = vld [vmem:[%s9201_s1 + $0x858] sm:$0xff]  }
  0xe8   :  { %v6277_v22 = vpop.f32.mrf.mxu1  ;;  %v4409_v23 = vadd.f32 %v6254_v17, %v5659_v20  ;;  %6547 = vmatpush3.bf16.msra.mxu0 %v7198_v29  ;;  %v7236_v17 = vld [vmem:[%s9201_s1 + $0x868] sm:$0xff]   ;;  %v7240_v21 = vld [vmem:[%s9201_s1 + $0x860] sm:$0xff]   ;;  %v7248_v29 = vld [vmem:[%s9201_s1 + $0x850] sm:$0xff]  }
  0xe9   :  { %v6256_v26 = vpop.f32.mrf.mxu0  ;;  %6569 = vmatpush3.bf16.msra.mxu1 %v7199_v30  ;;  %6548 = vmatprep.subr.bf16.mxu0 %v7200_v31  ;;  %v7239_v20 = vld [vmem:[%s9201_s1 + $0x8a8] sm:$0xff]   ;;  %v7241_v22 = vld [vmem:[%s9201_s1 + $0x8e0] sm:$0xff]   ;;  %v7249_v30 = vld [vmem:[%s9201_s1 + $0x8d0] sm:$0xff]  }
  0xea   :  { %v6278_v27 = vpop.f32.mrf.mxu1  ;;  %v8271_v28 = vadd.f32 %v6276_v18, %v4409_v23  ;;  %6570 = vmatprep.subr.bf16.mxu1 %v7201_v32  ;;  %v7237_v18 = vld [vmem:[%s9201_s1 + $0x8e8] sm:$0xff]   ;;  %v7242_v23 = vld [vmem:[%s9201_s1 + $0x820] sm:$0xff]   ;;  %v7245_v26 = vld [vmem:[%s9201_s1 + $0x8d8] sm:$0xff]  }
  0xeb   :  { %v7246_v27 = vld [vmem:[%s9201_s1 + $0x818] sm:$0xff]   ;;  %v7250_v31 = vld [vmem:[%s9201_s1 + $0x810] sm:$0xff]  }
  0xec   :  { %6549 = vmatpush3.bf16.msra.mxu0 %v7202_v33  ;;  %v7251_v32 = vld [vmem:[%s9201_s1 + $0x890] sm:$0xff]   ;;  %v7252_v33 = vld [vmem:[%s9201_s1 + $0x848] sm:$0xff]  }
  0xed   :  { %6571 = vmatpush3.bf16.msra.mxu1 %v7203_v34  ;;  %6550 = vmatprep.subr.bf16.mxu0 %v7204_v35  ;;  %v7253_v34 = vld [vmem:[%s9201_s1 + $0x8c8] sm:$0xff]   ;;  %v7269_v63 = vld [vmem:[%s9201_s1 + $0x9f0] sm:$0xff]  }
  0xee   :  { %6572 = vmatprep.subr.bf16.mxu1 %v7205_v36  ;;  %v7254_v35 = vld [vmem:[%s9201_s1 + $0x808] sm:$0xff]  }
  0xef   :  { %v7255_v36 = vld [vmem:[%s9201_s1 + $0x888] sm:$0xff]  }
  0xf0   :  { %6551 = vmatpush3.bf16.msra.mxu0 %v7206_v37  ;;  %v7256_v37 = vld [vmem:[%s9201_s1 + $0x840] sm:$0xff]  }
  0xf1   :  { %6573 = vmatpush3.bf16.msra.mxu1 %v7207_v38  ;;  %6552 = vmatprep.subr.bf16.mxu0 %v7208_v39  ;;  %v7257_v38 = vld [vmem:[%s9201_s1 + $0x8c0] sm:$0xff]  }
  0xf2   :  { %6574 = vmatprep.subr.bf16.mxu1 %v7209_v40  ;;  %v7258_v39 = vld [vmem:[%s9201_s1 + $0x800] sm:$0xff]  }
  0xf3   :  { %v7259_v40 = vld [vmem:[%s9201_s1 + $0x880] sm:$0xff]  }
  0xf4   :  { %6553 = vmatpush3.bf16.msra.mxu0 %v7210_v41  ;;  %v31_v41 = vld [vmem:[%s9202_s0 + $0x80] sm:$0xff] }
  0xf5   :  { %6575 = vmatpush3.bf16.msra.mxu1 %v7211_v42  ;;  %6554 = vmatprep.subr.bf16.mxu0 %v7212_v43  ;;  %v5692_v43 = vcombine.low %v31_v41, %v31_v41 }
  0xf6   :  { %6576 = vmatprep.subr.bf16.mxu1 %v7213_v44  ;;  %v5693_v44 = vcombine.high %v31_v41, %v31_v41  ;;  %v7303_v41 = vld [vmem:[%s9201_s1 + $0xab8] sm:$0xff]  }
  0xf8   :  { %6555 = vmatpush3.bf16.msra.mxu0 %v7214_v45  ;;  %v32_v45 = vld [vmem:[%s9202_s0 + $0x88] sm:$0xff] }
  0xf9   :  { %6577 = vmatpush3.bf16.msra.mxu1 %v7215_v46  ;;  %6556 = vmatprep.subr.bf16.mxu0 %v7216_v47  ;;  %v5694_v47 = vcombine.low %v32_v45, %v32_v45 }
  0xfa   :  { %6578 = vmatprep.subr.bf16.mxu1 %v7217_v48  ;;  %v5695_v48 = vcombine.high %v32_v45, %v32_v45 }
  0xfc   :  { %6557 = vmatpush3.bf16.msra.mxu0 %v7218_v49  ;;  %v7264_v49 = vld [vmem:[%s9201_s1 + $0x978] sm:$0xff]  }
  0xfd   :  { %6579 = vmatpush3.bf16.msra.mxu1 %v7219_v50  ;;  %6558 = vmatprep.subr.bf16.mxu0 %v7220_v51  ;;  %v7265_v51 = vld [vmem:[%s9201_s1 + $0x9f8] sm:$0xff]  }
  0xfe   :  { %6580 = vmatprep.subr.bf16.mxu1 %v7221_v52 }
 0x100   :  { %6559 = vmatpush3.bf16.msra.mxu0 %v7222_v53 }
 0x101   :  { %6581 = vmatpush3.bf16.msra.mxu1 %v7223_v54  ;;  %6588 = vmatprep.subr.bf16.mxu0 %v7228_v62  ;;  %v7266_v54 = vld [vmem:[%s9201_s1 + $0x938] sm:$0xff]  }
 0x102   :  { %6610 = vmatprep.subr.bf16.mxu1 %v7229_v0 }
 0x103   :  { %v6296_v57 = vpop.f32.mrf.mxu0  ;;  %4967 = vmatmul.mubr.bf16.vlgmr.msra.gmra.mxu0 %v5688_v59 }
 0x104   :  { %v6318_v58 = vpop.f32.mrf.mxu1  ;;  %5007 = vmatmul.mubr.bf16.vlgmr.msra.gmra.mxu1 %v5690_v61  ;;  %6589 = vmatpush3.bf16.msra.mxu0 %v7230_v3  ;;  %v7272_v3 = vld [vmem:[%s9201_s1 + $0x968] sm:$0xff]  }
 0x105   :  { %v6297_v1 = vpop.f32.mrf.mxu0  ;;  %6611 = vmatpush3.bf16.msra.mxu1 %v7231_v6  ;;  %6590 = vmatprep.subr.bf16.mxu0 %v7232_v10  ;;  %v7275_v6 = vld [vmem:[%s9201_s1 + $0x9a8] sm:$0xff]   ;;  %v7279_v10 = vld [vmem:[%s9201_s1 + $0x9a0] sm:$0xff]  }
 0x106   :  { %v6319_v2 = vpop.f32.mrf.mxu1  ;;  %v6298_v4 = vadd.f32 %v6297_v1, %v6296_v57  ;;  %6612 = vmatprep.subr.bf16.mxu1 %v7233_v11  ;;  %5046 = vmatprep.mubr.bf16.mxu0 %v5693_v44  ;;  %v7267_v57 = vld [vmem:[%s9201_s1 + $0x9b8] sm:$0xff]   ;;  %v7270_v1 = vld [vmem:[%s9201_s1 + $0x930] sm:$0xff]  }
 0x107   :  { %v6320_v5 = vadd.f32 %v6319_v2, %v6318_v58  ;;  %v6299_v7 = vpop.f32.mrf.mxu0  ;;  %5086 = vmatprep.mubr.bf16.mxu1 %v5695_v48  ;;  %v7271_v2 = vld [vmem:[%s9201_s1 + $0x9b0] sm:$0xff]   ;;  %v7280_v11 = vld [vmem:[%s9201_s1 + $0x958] sm:$0xff]  }
 0x108   :  { %v6321_v8 = vpop.f32.mrf.mxu1  ;;  %v4489_v9 = vadd.f32 %v6298_v4, %v8271_v28  ;;  %6591 = vmatpush3.bf16.msra.mxu0 %v7234_v15  ;;  %v7247_v28 = vld [vmem:[%s9201_s1 + $0x898] sm:$0xff]   ;;  %v7273_v4 = vld [vmem:[%s9201_s1 + $0x9e8] sm:$0xff]   ;;  %v7276_v7 = vld [vmem:[%s9201_s1 + $0x960] sm:$0xff]  }
 0x109   :  { %v6300_v12 = vpop.f32.mrf.mxu0  ;;  %6613 = vmatpush3.bf16.msra.mxu1 %v7235_v16  ;;  %6592 = vmatprep.subr.bf16.mxu0 %v7236_v17  ;;  %v7277_v8 = vld [vmem:[%s9201_s1 + $0x9e0] sm:$0xff]   ;;  %v7284_v15 = vld [vmem:[%s9201_s1 + $0x950] sm:$0xff]  }
 0x10a   :  { %v6322_v13 = vpop.f32.mrf.mxu1  ;;  %v8376_v14 = vadd.f32 %v6320_v5, %v4489_v9  ;;  %6614 = vmatprep.subr.bf16.mxu1 %v7237_v18  ;;  %v7274_v5 = vld [vmem:[%s9201_s1 + $0x928] sm:$0xff]   ;;  %v7278_v9 = vld [vmem:[%s9201_s1 + $0x920] sm:$0xff]   ;;  %v7281_v12 = vld [vmem:[%s9201_s1 + $0x9d8] sm:$0xff]  }
 0x10b   :  { %v7282_v13 = vld [vmem:[%s9201_s1 + $0x918] sm:$0xff]   ;;  %v7285_v16 = vld [vmem:[%s9201_s1 + $0x9d0] sm:$0xff]  }
 0x10c   :  { %6593 = vmatpush3.bf16.msra.mxu0 %v7238_v19  ;;  %v7286_v17 = vld [vmem:[%s9201_s1 + $0x910] sm:$0xff]   ;;  %v7288_v19 = vld [vmem:[%s9201_s1 + $0x948] sm:$0xff]  }
 0x10d   :  { %6615 = vmatpush3.bf16.msra.mxu1 %v7239_v20  ;;  %6594 = vmatprep.subr.bf16.mxu0 %v7240_v21  ;;  %v7287_v18 = vld [vmem:[%s9201_s1 + $0x990] sm:$0xff]   ;;  %v7289_v20 = vld [vmem:[%s9201_s1 + $0x9c8] sm:$0xff]  }
 0x10e   :  { %6616 = vmatprep.subr.bf16.mxu1 %v7241_v22  ;;  %v7290_v21 = vld [vmem:[%s9201_s1 + $0x908] sm:$0xff]  }
 0x10f   :  { %v7291_v22 = vld [vmem:[%s9201_s1 + $0x988] sm:$0xff]  }
 0x110   :  { %6595 = vmatpush3.bf16.msra.mxu0 %v7242_v23  ;;  %v7292_v23 = vld [vmem:[%s9201_s1 + $0x940] sm:$0xff]  }
 0x111   :  { %6617 = vmatpush3.bf16.msra.mxu1 %v7243_v24  ;;  %6596 = vmatprep.subr.bf16.mxu0 %v7244_v25  ;;  %v7293_v24 = vld [vmem:[%s9201_s1 + $0x9c0] sm:$0xff]  }
 0x112   :  { %6618 = vmatprep.subr.bf16.mxu1 %v7245_v26  ;;  %v7294_v25 = vld [vmem:[%s9201_s1 + $0x900] sm:$0xff]  }
 0x113   :  { %v7295_v26 = vld [vmem:[%s9201_s1 + $0x980] sm:$0xff]  }
 0x114   :  { %6597 = vmatpush3.bf16.msra.mxu0 %v7246_v27  ;;  %v33_v27 = vld [vmem:[%s9202_s0 + $0x90] sm:$0xff] }
 0x115   :  { %6619 = vmatpush3.bf16.msra.mxu1 %v7247_v28  ;;  %6598 = vmatprep.subr.bf16.mxu0 %v7248_v29  ;;  %v34_v28 = vld [vmem:[%s9202_s0 + $0x98] sm:$0xff] }
 0x116   :  { %6620 = vmatprep.subr.bf16.mxu1 %v7249_v30  ;;  %v5696_v30 = vcombine.low %v33_v27, %v33_v27 }
 0x118   :  { %6599 = vmatpush3.bf16.msra.mxu0 %v7250_v31  ;;  %v5697_v31 = vcombine.high %v33_v27, %v33_v27 }
 0x119   :  { %6621 = vmatpush3.bf16.msra.mxu1 %v7251_v32  ;;  %6600 = vmatprep.subr.bf16.mxu0 %v7252_v33  ;;  %v5698_v32 = vcombine.low %v34_v28, %v34_v28  ;;  %v5699_v33 = vcombine.high %v34_v28, %v34_v28  ;;  %v7339_v28 = vld [vmem:[%s9201_s1 + $0xbb8] sm:$0xff]  }
 0x11a   :  { %6622 = vmatprep.subr.bf16.mxu1 %v7253_v34 }
 0x11c   :  { %6601 = vmatpush3.bf16.msra.mxu0 %v7254_v35  ;;  %v7300_v35 = vld [vmem:[%s9201_s1 + $0xa78] sm:$0xff]  }
 0x11d   :  { %6623 = vmatpush3.bf16.msra.mxu1 %v7255_v36  ;;  %6602 = vmatprep.subr.bf16.mxu0 %v7256_v37  ;;  %v7301_v36 = vld [vmem:[%s9201_s1 + $0xaf8] sm:$0xff]  }
 0x11e   :  { %6624 = vmatprep.subr.bf16.mxu1 %v7257_v38  ;;  %v7302_v38 = vld [vmem:[%s9201_s1 + $0xa38] sm:$0xff]  }
 0x120   :  { %6603 = vmatpush3.bf16.msra.mxu0 %v7258_v39 }
 0x121   :  { %6625 = vmatpush3.bf16.msra.mxu1 %v7259_v40  ;;  %6632 = vmatprep.subr.bf16.mxu0 %v7264_v49 }
 0x122   :  { %6654 = vmatprep.subr.bf16.mxu1 %v7265_v51 }
 0x123   :  { %v6340_v42 = vpop.f32.mrf.mxu0  ;;  %5047 = vmatmul.mubr.bf16.vlgmr.msra.gmra.mxu0 %v5692_v43 }
 0x124   :  { %v6362_v46 = vpop.f32.mrf.mxu1  ;;  %5087 = vmatmul.mubr.bf16.vlgmr.msra.gmra.mxu1 %v5694_v47  ;;  %6633 = vmatpush3.bf16.msra.mxu0 %v7266_v54  ;;  %v7305_v47 = vld [vmem:[%s9201_s1 + $0xaf0] sm:$0xff]   ;;  %v7309_v54 = vld [vmem:[%s9201_s1 + $0xae8] sm:$0xff]  }
 0x125   :  { %v6341_v50 = vpop.f32.mrf.mxu0  ;;  %6655 = vmatpush3.bf16.msra.mxu1 %v7267_v57  ;;  %6634 = vmatprep.subr.bf16.mxu0 %v7268_v60  ;;  %v7312_v57 = vld [vmem:[%s9201_s1 + $0xa60] sm:$0xff]  }
 0x126   :  { %v6342_v52 = vadd.f32 %v6341_v50, %v6340_v42  ;;  %v6363_v53 = vpop.f32.mrf.mxu1  ;;  %6656 = vmatprep.subr.bf16.mxu1 %v7269_v63  ;;  %5126 = vmatprep.mubr.bf16.mxu0 %v5697_v31  ;;  %v7306_v50 = vld [vmem:[%s9201_s1 + $0xa30] sm:$0xff]   ;;  %v7315_v60 = vld [vmem:[%s9201_s1 + $0xaa0] sm:$0xff]   ;;  %v7318_v63 = vld [vmem:[%s9201_s1 + $0xa18] sm:$0xff]  }
 0x127   :  { %v6364_v55 = vadd.f32 %v6363_v53, %v6362_v46  ;;  %v6343_v56 = vpop.f32.mrf.mxu0  ;;  %5166 = vmatprep.mubr.bf16.mxu1 %v5699_v33  ;;  %v7304_v46 = vld [vmem:[%s9201_s1 + $0xa70] sm:$0xff]   ;;  %v7308_v53 = vld [vmem:[%s9201_s1 + $0xa68] sm:$0xff]  }
 0x128   :  { %v4569_v58 = vadd.f32 %v6342_v52, %v8376_v14  ;;  %v6365_v59 = vpop.f32.mrf.mxu1  ;;  %6635 = vmatpush3.bf16.msra.mxu0 %v7270_v1  ;;  %v7283_v14 = vld [vmem:[%s9201_s1 + $0x998] sm:$0xff]   ;;  %v7307_v52 = vld [vmem:[%s9201_s1 + $0xab0] sm:$0xff]   ;;  %v7311_v56 = vld [vmem:[%s9201_s1 + $0xaa8] sm:$0xff]  }
 0x129   :  { %v6344_v61 = vpop.f32.mrf.mxu0  ;;  %6657 = vmatpush3.bf16.msra.mxu1 %v7271_v2  ;;  %6636 = vmatprep.subr.bf16.mxu0 %v7272_v3  ;;  %v7314_v59 = vld [vmem:[%s9201_s1 + $0xa20] sm:$0xff]   ;;  %v7320_v1 = vld [vmem:[%s9201_s1 + $0xa50] sm:$0xff]  }
 0x12a   :  { %v8478_v62 = vadd.f32 %v6364_v55, %v4569_v58  ;;  %v6366_v0 = vpop.f32.mrf.mxu1  ;;  %6658 = vmatprep.subr.bf16.mxu1 %v7273_v4  ;;  %v7310_v55 = vld [vmem:[%s9201_s1 + $0xa28] sm:$0xff]   ;;  %v7313_v58 = vld [vmem:[%s9201_s1 + $0xae0] sm:$0xff]   ;;  %v7316_v61 = vld [vmem:[%s9201_s1 + $0xa58] sm:$0xff]  }
 0x12b   :  { %v7319_v0 = vld [vmem:[%s9201_s1 + $0xa98] sm:$0xff]   ;;  %v7321_v2 = vld [vmem:[%s9201_s1 + $0xad0] sm:$0xff]  }
 0x12c   :  { %6637 = vmatpush3.bf16.msra.mxu0 %v7274_v5  ;;  %v7322_v3 = vld [vmem:[%s9201_s1 + $0xa10] sm:$0xff]   ;;  %v7324_v5 = vld [vmem:[%s9201_s1 + $0xa48] sm:$0xff]  }
 0x12d   :  { %6659 = vmatpush3.bf16.msra.mxu1 %v7275_v6  ;;  %6638 = vmatprep.subr.bf16.mxu0 %v7276_v7  ;;  %v7323_v4 = vld [vmem:[%s9201_s1 + $0xa90] sm:$0xff]   ;;  %v7325_v6 = vld [vmem:[%s9201_s1 + $0xac8] sm:$0xff]  }
 0x12e   :  { %6660 = vmatprep.subr.bf16.mxu1 %v7277_v8  ;;  %v7326_v7 = vld [vmem:[%s9201_s1 + $0xa08] sm:$0xff]   ;;  %v7341_v33 = vld [vmem:[%s9201_s1 + $0xbf0] sm:$0xff]  }
 0x12f   :  { %v7327_v8 = vld [vmem:[%s9201_s1 + $0xa88] sm:$0xff]  }
 0x130   :  { %6639 = vmatpush3.bf16.msra.mxu0 %v7278_v9  ;;  %v7328_v9 = vld [vmem:[%s9201_s1 + $0xa40] sm:$0xff]  }
 0x131   :  { %6661 = vmatpush3.bf16.msra.mxu1 %v7279_v10  ;;  %6640 = vmatprep.subr.bf16.mxu0 %v7280_v11  ;;  %v7329_v10 = vld [vmem:[%s9201_s1 + $0xac0] sm:$0xff]  }
 0x132   :  { %6662 = vmatprep.subr.bf16.mxu1 %v7281_v12  ;;  %v7330_v11 = vld [vmem:[%s9201_s1 + $0xa00] sm:$0xff]  }
 0x133   :  { %v7331_v12 = vld [vmem:[%s9201_s1 + $0xa80] sm:$0xff]  }
 0x134   :  { %6641 = vmatpush3.bf16.msra.mxu0 %v7282_v13  ;;  %v35_v13 = vld [vmem:[%s9202_s0 + $0xa0] sm:$0xff] }
 0x135   :  { %6663 = vmatpush3.bf16.msra.mxu1 %v7283_v14  ;;  %6642 = vmatprep.subr.bf16.mxu0 %v7284_v15  ;;  %v36_v14 = vld [vmem:[%s9202_s0 + $0xa8] sm:$0xff] }
 0x136   :  { %6664 = vmatprep.subr.bf16.mxu1 %v7285_v16 }
 0x138   :  { %6643 = vmatpush3.bf16.msra.mxu0 %v7286_v17  ;;  %v5700_v17 = vcombine.low %v35_v13, %v35_v13 }
 0x139   :  { %6665 = vmatpush3.bf16.msra.mxu1 %v7287_v18  ;;  %6644 = vmatprep.subr.bf16.mxu0 %v7288_v19  ;;  %v5701_v18 = vcombine.high %v35_v13, %v35_v13  ;;  %v5702_v19 = vcombine.low %v36_v14, %v36_v14 }
 0x13a   :  { %6666 = vmatprep.subr.bf16.mxu1 %v7289_v20  ;;  %v7336_v20 = vld [vmem:[%s9201_s1 + $0xb78] sm:$0xff]  }
 0x13c   :  { %6645 = vmatpush3.bf16.msra.mxu0 %v7290_v21  ;;  %v5703_v21 = vcombine.high %v36_v14, %v36_v14 }
 0x13d   :  { %6667 = vmatpush3.bf16.msra.mxu1 %v7291_v22  ;;  %6646 = vmatprep.subr.bf16.mxu0 %v7292_v23  ;;  %v7337_v22 = vld [vmem:[%s9201_s1 + $0xbf8] sm:$0xff]  }
 0x13e   :  { %6668 = vmatprep.subr.bf16.mxu1 %v7293_v24 }
 0x140   :  { %6647 = vmatpush3.bf16.msra.mxu0 %v7294_v25  ;;  %v7338_v25 = vld [vmem:[%s9201_s1 + $0xb38] sm:$0xff]  }
 0x141   :  { %6669 = vmatpush3.bf16.msra.mxu1 %v7295_v26  ;;  %6676 = vmatprep.subr.bf16.mxu0 %v7300_v35 }
 0x142   :  { %6698 = vmatprep.subr.bf16.mxu1 %v7301_v36 }
 0x143   :  { %v6384_v29 = vpop.f32.mrf.mxu0  ;;  %5127 = vmatmul.mubr.bf16.vlgmr.msra.gmra.mxu0 %v5696_v30 }
 0x144   :  { %v6406_v34 = vpop.f32.mrf.mxu1  ;;  %5167 = vmatmul.mubr.bf16.vlgmr.msra.gmra.mxu1 %v5698_v32  ;;  %6677 = vmatpush3.bf16.msra.mxu0 %v7302_v38  ;;  %v7340_v32 = vld [vmem:[%s9201_s1 + $0xb70] sm:$0xff]  }
 0x145   :  { %v6385_v37 = vpop.f32.mrf.mxu0  ;;  %6699 = vmatpush3.bf16.msra.mxu1 %v7303_v41  ;;  %6678 = vmatprep.subr.bf16.mxu0 %v7304_v46  ;;  %v7343_v38 = vld [vmem:[%s9201_s1 + $0xbb0] sm:$0xff]   ;;  %v7346_v41 = vld [vmem:[%s9201_s1 + $0xb28] sm:$0xff]   ;;  %v7351_v46 = vld [vmem:[%s9201_s1 + $0xba0] sm:$0xff]  }
 0x146   :  { %v6386_v39 = vadd.f32 %v6385_v37, %v6384_v29  ;;  %v6407_v40 = vpop.f32.mrf.mxu1  ;;  %6700 = vmatprep.subr.bf16.mxu1 %v7305_v47  ;;  %5206 = vmatprep.mubr.bf16.mxu0 %v5701_v18  ;;  %v7342_v37 = vld [vmem:[%s9201_s1 + $0xb30] sm:$0xff]   ;;  %v7352_v47 = vld [vmem:[%s9201_s1 + $0xb58] sm:$0xff]  }
 0x147   :  { %v6408_v42 = vadd.f32 %v6407_v40, %v6406_v34  ;;  %v6387_v43 = vpop.f32.mrf.mxu0  ;;  %5246 = vmatprep.mubr.bf16.mxu1 %v5703_v21  ;;  %v7345_v40 = vld [vmem:[%s9201_s1 + $0xbe8] sm:$0xff]   ;;  %v7376_v18 = vld [vmem:[%s9201_s1 + $0xc70] sm:$0xff]  }
 0x148   :  { %v4649_v44 = vadd.f32 %v6386_v39, %v8478_v62  ;;  %v6409_v45 = vpop.f32.mrf.mxu1  ;;  %6679 = vmatpush3.bf16.msra.mxu0 %v7306_v50  ;;  %v7317_v62 = vld [vmem:[%s9201_s1 + $0xad8] sm:$0xff]   ;;  %v7344_v39 = vld [vmem:[%s9201_s1 + $0xb68] sm:$0xff]   ;;  %v7348_v43 = vld [vmem:[%s9201_s1 + $0xb60] sm:$0xff]  }
 0x149   :  { %v6388_v48 = vpop.f32.mrf.mxu0  ;;  %6701 = vmatpush3.bf16.msra.mxu1 %v7307_v52  ;;  %6680 = vmatprep.subr.bf16.mxu0 %v7308_v53  ;;  %v7350_v45 = vld [vmem:[%s9201_s1 + $0xb20] sm:$0xff]   ;;  %v7355_v50 = vld [vmem:[%s9201_s1 + $0xb98] sm:$0xff]   ;;  %v7357_v52 = vld [vmem:[%s9201_s1 + $0xbd0] sm:$0xff]  }
 0x14a   :  { %v8586_v49 = vadd.f32 %v6408_v42, %v4649_v44  ;;  %v6410_v51 = vpop.f32.mrf.mxu1  ;;  %6702 = vmatprep.subr.bf16.mxu1 %v7309_v54  ;;  %v7347_v42 = vld [vmem:[%s9201_s1 + $0xba8] sm:$0xff]   ;;  %v7349_v44 = vld [vmem:[%s9201_s1 + $0xbe0] sm:$0xff]   ;;  %v7353_v48 = vld [vmem:[%s9201_s1 + $0xbd8] sm:$0xff]  }
 0x14b   :  { %v7356_v51 = vld [vmem:[%s9201_s1 + $0xb50] sm:$0xff]  }
 0x14c   :  { %6681 = vmatpush3.bf16.msra.mxu0 %v7310_v55  ;;  %v7358_v53 = vld [vmem:[%s9201_s1 + $0xb10] sm:$0xff]   ;;  %v7360_v55 = vld [vmem:[%s9201_s1 + $0xb48] sm:$0xff]  }
 0x14d   :  { %6703 = vmatpush3.bf16.msra.mxu1 %v7311_v56  ;;  %6682 = vmatprep.subr.bf16.mxu0 %v7312_v57  ;;  %v7359_v54 = vld [vmem:[%s9201_s1 + $0xb90] sm:$0xff]   ;;  %v7361_v56 = vld [vmem:[%s9201_s1 + $0xbc8] sm:$0xff]  }
 0x14e   :  { %6704 = vmatprep.subr.bf16.mxu1 %v7313_v58  ;;  %v7362_v57 = vld [vmem:[%s9201_s1 + $0xb08] sm:$0xff]   ;;  %v7377_v21 = vld [vmem:[%s9201_s1 + $0xcf0] sm:$0xff]  }
 0x14f   :  { %v7363_v58 = vld [vmem:[%s9201_s1 + $0xb88] sm:$0xff]  }
 0x150   :  { %6683 = vmatpush3.bf16.msra.mxu0 %v7314_v59  ;;  %v7364_v59 = vld [vmem:[%s9201_s1 + $0xb40] sm:$0xff]  }
 0x151   :  { %6705 = vmatpush3.bf16.msra.mxu1 %v7315_v60  ;;  %6684 = vmatprep.subr.bf16.mxu0 %v7316_v61  ;;  %v7365_v60 = vld [vmem:[%s9201_s1 + $0xbc0] sm:$0xff]  }
 0x152   :  { %6706 = vmatprep.subr.bf16.mxu1 %v7317_v62  ;;  %v7366_v61 = vld [vmem:[%s9201_s1 + $0xb00] sm:$0xff]  }
 0x153   :  { %v7367_v62 = vld [vmem:[%s9201_s1 + $0xb80] sm:$0xff]  }
 0x154   :  { %6685 = vmatpush3.bf16.msra.mxu0 %v7318_v63  ;;  %v37_v63 = vld [vmem:[%s9202_s0 + $0xb0] sm:$0xff] }
 0x155   :  { %6707 = vmatpush3.bf16.msra.mxu1 %v7319_v0  ;;  %6686 = vmatprep.subr.bf16.mxu0 %v7320_v1  ;;  %v5704_v1 = vcombine.low %v37_v63, %v37_v63 }
 0x156   :  { %6708 = vmatprep.subr.bf16.mxu1 %v7321_v2  ;;  %v5705_v2 = vcombine.high %v37_v63, %v37_v63  ;;  %v7411_v63 = vld [vmem:[%s9201_s1 + $0xdb8] sm:$0xff]  }
 0x158   :  { %6687 = vmatpush3.bf16.msra.mxu0 %v7322_v3  ;;  %v38_v3 = vld [vmem:[%s9202_s0 + $0xb8] sm:$0xff] }
 0x159   :  { %6709 = vmatpush3.bf16.msra.mxu1 %v7323_v4  ;;  %6688 = vmatprep.subr.bf16.mxu0 %v7324_v5  ;;  %v5706_v5 = vcombine.low %v38_v3, %v38_v3 }
 0x15a   :  { %6710 = vmatprep.subr.bf16.mxu1 %v7325_v6  ;;  %v5707_v6 = vcombine.high %v38_v3, %v38_v3 }
 0x15c   :  { %6689 = vmatpush3.bf16.msra.mxu0 %v7326_v7  ;;  %v7372_v7 = vld [vmem:[%s9201_s1 + $0xc78] sm:$0xff]  }
 0x15d   :  { %6711 = vmatpush3.bf16.msra.mxu1 %v7327_v8  ;;  %6690 = vmatprep.subr.bf16.mxu0 %v7328_v9  ;;  %v7373_v9 = vld [vmem:[%s9201_s1 + $0xcf8] sm:$0xff]  }
 0x15e   :  { %6712 = vmatprep.subr.bf16.mxu1 %v7329_v10 }
 0x160   :  { %6691 = vmatpush3.bf16.msra.mxu0 %v7330_v11 }
 0x161   :  { %6713 = vmatpush3.bf16.msra.mxu1 %v7331_v12  ;;  %6720 = vmatprep.subr.bf16.mxu0 %v7336_v20  ;;  %v7374_v12 = vld [vmem:[%s9201_s1 + $0xc38] sm:$0xff]  }
 0x162   :  { %6742 = vmatprep.subr.bf16.mxu1 %v7337_v22 }
 0x163   :  { %v6428_v15 = vpop.f32.mrf.mxu0  ;;  %5207 = vmatmul.mubr.bf16.vlgmr.msra.gmra.mxu0 %v5700_v17 }
 0x164   :  { %v6450_v16 = vpop.f32.mrf.mxu1  ;;  %5247 = vmatmul.mubr.bf16.vlgmr.msra.gmra.mxu1 %v5702_v19  ;;  %6721 = vmatpush3.bf16.msra.mxu0 %v7338_v25  ;;  %v7380_v25 = vld [vmem:[%s9201_s1 + $0xc68] sm:$0xff]  }
 0x165   :  { %v6429_v23 = vpop.f32.mrf.mxu0  ;;  %6743 = vmatpush3.bf16.msra.mxu1 %v7339_v28  ;;  %6722 = vmatprep.subr.bf16.mxu0 %v7340_v32  ;;  %v7383_v28 = vld [vmem:[%s9201_s1 + $0xca8] sm:$0xff]   ;;  %v7387_v32 = vld [vmem:[%s9201_s1 + $0xca0] sm:$0xff]  }
 0x166   :  { %v6451_v24 = vpop.f32.mrf.mxu1  ;;  %v6430_v26 = vadd.f32 %v6429_v23, %v6428_v15  ;;  %6744 = vmatprep.subr.bf16.mxu1 %v7341_v33  ;;  %5286 = vmatprep.mubr.bf16.mxu0 %v5705_v2  ;;  %v7375_v15 = vld [vmem:[%s9201_s1 + $0xcb8] sm:$0xff]   ;;  %v7378_v23 = vld [vmem:[%s9201_s1 + $0xc30] sm:$0xff]  }
 0x167   :  { %v6452_v27 = vadd.f32 %v6451_v24, %v6450_v16  ;;  %v6431_v29 = vpop.f32.mrf.mxu0  ;;  %5326 = vmatprep.mubr.bf16.mxu1 %v5707_v6  ;;  %v7379_v24 = vld [vmem:[%s9201_s1 + $0xcb0] sm:$0xff]   ;;  %v7388_v33 = vld [vmem:[%s9201_s1 + $0xc58] sm:$0xff]  }
 0x168   :  { %v6453_v30 = vpop.f32.mrf.mxu1  ;;  %v4729_v31 = vadd.f32 %v6430_v26, %v8586_v49  ;;  %6723 = vmatpush3.bf16.msra.mxu0 %v7342_v37  ;;  %v7354_v49 = vld [vmem:[%s9201_s1 + $0xb18] sm:$0xff]   ;;  %v7381_v26 = vld [vmem:[%s9201_s1 + $0xce8] sm:$0xff]   ;;  %v7384_v29 = vld [vmem:[%s9201_s1 + $0xc60] sm:$0xff]  }
 0x169   :  { %v6432_v34 = vpop.f32.mrf.mxu0  ;;  %6745 = vmatpush3.bf16.msra.mxu1 %v7343_v38  ;;  %6724 = vmatprep.subr.bf16.mxu0 %v7344_v39  ;;  %v7385_v30 = vld [vmem:[%s9201_s1 + $0xce0] sm:$0xff]   ;;  %v7392_v37 = vld [vmem:[%s9201_s1 + $0xc50] sm:$0xff]  }
 0x16a   :  { %v6454_v35 = vpop.f32.mrf.mxu1  ;;  %v8691_v36 = vadd.f32 %v6452_v27, %v4729_v31  ;;  %6746 = vmatprep.subr.bf16.mxu1 %v7345_v40  ;;  %v7382_v27 = vld [vmem:[%s9201_s1 + $0xc28] sm:$0xff]   ;;  %v7386_v31 = vld [vmem:[%s9201_s1 + $0xc20] sm:$0xff]   ;;  %v7389_v34 = vld [vmem:[%s9201_s1 + $0xcd8] sm:$0xff]  }
 0x16b   :  { %v7390_v35 = vld [vmem:[%s9201_s1 + $0xc18] sm:$0xff]   ;;  %v7393_v38 = vld [vmem:[%s9201_s1 + $0xcd0] sm:$0xff]  }
 0x16c   :  { %6725 = vmatpush3.bf16.msra.mxu0 %v7346_v41  ;;  %v7394_v39 = vld [vmem:[%s9201_s1 + $0xc10] sm:$0xff]   ;;  %v7396_v41 = vld [vmem:[%s9201_s1 + $0xc48] sm:$0xff]  }
 0x16d   :  { %6747 = vmatpush3.bf16.msra.mxu1 %v7347_v42  ;;  %6726 = vmatprep.subr.bf16.mxu0 %v7348_v43  ;;  %v7395_v40 = vld [vmem:[%s9201_s1 + $0xc90] sm:$0xff]   ;;  %v7397_v42 = vld [vmem:[%s9201_s1 + $0xcc8] sm:$0xff]  }
 0x16e   :  { %6748 = vmatprep.subr.bf16.mxu1 %v7349_v44  ;;  %v7398_v43 = vld [vmem:[%s9201_s1 + $0xc08] sm:$0xff]  }
 0x16f   :  { %v7399_v44 = vld [vmem:[%s9201_s1 + $0xc88] sm:$0xff]  }
 0x170   :  { %6727 = vmatpush3.bf16.msra.mxu0 %v7350_v45  ;;  %v7400_v45 = vld [vmem:[%s9201_s1 + $0xc40] sm:$0xff]  }
 0x171   :  { %6749 = vmatpush3.bf16.msra.mxu1 %v7351_v46  ;;  %6728 = vmatprep.subr.bf16.mxu0 %v7352_v47  ;;  %v7401_v46 = vld [vmem:[%s9201_s1 + $0xcc0] sm:$0xff]  }
 0x172   :  { %6750 = vmatprep.subr.bf16.mxu1 %v7353_v48  ;;  %v7402_v47 = vld [vmem:[%s9201_s1 + $0xc00] sm:$0xff]  }
 0x173   :  { %v7403_v48 = vld [vmem:[%s9201_s1 + $0xc80] sm:$0xff]  }
 0x174   :  { %6729 = vmatpush3.bf16.msra.mxu0 %v7354_v49  ;;  %v39_v49 = vld [vmem:[%s9202_s0 + $0xc0] sm:$0xff] }
 0x175   :  { %6751 = vmatpush3.bf16.msra.mxu1 %v7355_v50  ;;  %6730 = vmatprep.subr.bf16.mxu0 %v7356_v51  ;;  %v40_v50 = vld [vmem:[%s9202_s0 + $0xc8] sm:$0xff] }
 0x176   :  { %6752 = vmatprep.subr.bf16.mxu1 %v7357_v52  ;;  %v5708_v52 = vcombine.low %v39_v49, %v39_v49 }
 0x178   :  { %6731 = vmatpush3.bf16.msra.mxu0 %v7358_v53  ;;  %v5709_v53 = vcombine.high %v39_v49, %v39_v49  ;;  %v7447_v49 = vld [vmem:[%s9201_s1 + $0xeb8] sm:$0xff]  }
 0x179   :  { %6753 = vmatpush3.bf16.msra.mxu1 %v7359_v54  ;;  %6732 = vmatprep.subr.bf16.mxu0 %v7360_v55  ;;  %v5710_v54 = vcombine.low %v40_v50, %v40_v50  ;;  %v5711_v55 = vcombine.high %v40_v50, %v40_v50 }
 0x17a   :  { %6754 = vmatprep.subr.bf16.mxu1 %v7361_v56 }
 0x17c   :  { %6733 = vmatpush3.bf16.msra.mxu0 %v7362_v57  ;;  %v7408_v57 = vld [vmem:[%s9201_s1 + $0xd78] sm:$0xff]  }
 0x17d   :  { %6755 = vmatpush3.bf16.msra.mxu1 %v7363_v58  ;;  %6734 = vmatprep.subr.bf16.mxu0 %v7364_v59  ;;  %v7409_v58 = vld [vmem:[%s9201_s1 + $0xdf8] sm:$0xff]  }
 0x17e   :  { %6756 = vmatprep.subr.bf16.mxu1 %v7365_v60  ;;  %v7410_v60 = vld [vmem:[%s9201_s1 + $0xd38] sm:$0xff]  }
 0x180   :  { %6735 = vmatpush3.bf16.msra.mxu0 %v7366_v61 }
 0x181   :  { %6757 = vmatpush3.bf16.msra.mxu1 %v7367_v62  ;;  %6764 = vmatprep.subr.bf16.mxu0 %v7372_v7 }
 0x182   :  { %6786 = vmatprep.subr.bf16.mxu1 %v7373_v9 }
 0x183   :  { %v6472_v0 = vpop.f32.mrf.mxu0  ;;  %5287 = vmatmul.mubr.bf16.vlgmr.msra.gmra.mxu0 %v5704_v1 }
 0x184   :  { %v6494_v4 = vpop.f32.mrf.mxu1  ;;  %5327 = vmatmul.mubr.bf16.vlgmr.msra.gmra.mxu1 %v5706_v5  ;;  %6765 = vmatpush3.bf16.msra.mxu0 %v7374_v12  ;;  %v7413_v5 = vld [vmem:[%s9201_s1 + $0xdf0] sm:$0xff]   ;;  %v7417_v12 = vld [vmem:[%s9201_s1 + $0xde8] sm:$0xff]  }
 0x185   :  { %v6473_v8 = vpop.f32.mrf.mxu0  ;;  %6787 = vmatpush3.bf16.msra.mxu1 %v7375_v15  ;;  %6766 = vmatprep.subr.bf16.mxu0 %v7376_v18  ;;  %v7420_v15 = vld [vmem:[%s9201_s1 + $0xd60] sm:$0xff]  }
 0x186   :  { %v6474_v10 = vadd.f32 %v6473_v8, %v6472_v0  ;;  %v6495_v11 = vpop.f32.mrf.mxu1  ;;  %6788 = vmatprep.subr.bf16.mxu1 %v7377_v21  ;;  %5366 = vmatprep.mubr.bf16.mxu0 %v5709_v53  ;;  %v7414_v8 = vld [vmem:[%s9201_s1 + $0xd30] sm:$0xff]   ;;  %v7423_v18 = vld [vmem:[%s9201_s1 + $0xda0] sm:$0xff]   ;;  %v7426_v21 = vld [vmem:[%s9201_s1 + $0xd18] sm:$0xff]  }
 0x187   :  { %v6496_v13 = vadd.f32 %v6495_v11, %v6494_v4  ;;  %v6475_v14 = vpop.f32.mrf.mxu0  ;;  %5406 = vmatprep.mubr.bf16.mxu1 %v5711_v55  ;;  %v7412_v4 = vld [vmem:[%s9201_s1 + $0xd70] sm:$0xff]   ;;  %v7416_v11 = vld [vmem:[%s9201_s1 + $0xd68] sm:$0xff]  }
 0x188   :  { %v4809_v16 = vadd.f32 %v6474_v10, %v8691_v36  ;;  %v6497_v17 = vpop.f32.mrf.mxu1  ;;  %6767 = vmatpush3.bf16.msra.mxu0 %v7378_v23  ;;  %v7391_v36 = vld [vmem:[%s9201_s1 + $0xc98] sm:$0xff]   ;;  %v7415_v10 = vld [vmem:[%s9201_s1 + $0xdb0] sm:$0xff]   ;;  %v7419_v14 = vld [vmem:[%s9201_s1 + $0xda8] sm:$0xff]  }
 0x189   :  { %v6476_v19 = vpop.f32.mrf.mxu0  ;;  %6789 = vmatpush3.bf16.msra.mxu1 %v7379_v24  ;;  %6768 = vmatprep.subr.bf16.mxu0 %v7380_v25  ;;  %v7422_v17 = vld [vmem:[%s9201_s1 + $0xd20] sm:$0xff]   ;;  %v7428_v23 = vld [vmem:[%s9201_s1 + $0xd50] sm:$0xff]  }
 0x18a   :  { %v8793_v20 = vadd.f32 %v6496_v13, %v4809_v16  ;;  %v6498_v22 = vpop.f32.mrf.mxu1  ;;  %6790 = vmatprep.subr.bf16.mxu1 %v7381_v26  ;;  %v7418_v13 = vld [vmem:[%s9201_s1 + $0xd28] sm:$0xff]   ;;  %v7421_v16 = vld [vmem:[%s9201_s1 + $0xde0] sm:$0xff]   ;;  %v7424_v19 = vld [vmem:[%s9201_s1 + $0xd58] sm:$0xff]  }
 0x18b   :  { %v7427_v22 = vld [vmem:[%s9201_s1 + $0xd98] sm:$0xff]   ;;  %v7429_v24 = vld [vmem:[%s9201_s1 + $0xdd0] sm:$0xff]  }
 0x18c   :  { %6769 = vmatpush3.bf16.msra.mxu0 %v7382_v27  ;;  %v7430_v25 = vld [vmem:[%s9201_s1 + $0xd10] sm:$0xff]   ;;  %v7432_v27 = vld [vmem:[%s9201_s1 + $0xd48] sm:$0xff]  }
 0x18d   :  { %6791 = vmatpush3.bf16.msra.mxu1 %v7383_v28  ;;  %6770 = vmatprep.subr.bf16.mxu0 %v7384_v29  ;;  %v7431_v26 = vld [vmem:[%s9201_s1 + $0xd90] sm:$0xff]   ;;  %v7433_v28 = vld [vmem:[%s9201_s1 + $0xdc8] sm:$0xff]  }
 0x18e   :  { %6792 = vmatprep.subr.bf16.mxu1 %v7385_v30  ;;  %v7434_v29 = vld [vmem:[%s9201_s1 + $0xd08] sm:$0xff]   ;;  %v7449_v55 = vld [vmem:[%s9201_s1 + $0xef0] sm:$0xff]  }
 0x18f   :  { %v7435_v30 = vld [vmem:[%s9201_s1 + $0xd88] sm:$0xff]  }
 0x190   :  { %6771 = vmatpush3.bf16.msra.mxu0 %v7386_v31  ;;  %v7436_v31 = vld [vmem:[%s9201_s1 + $0xd40] sm:$0xff]  }
 0x191   :  { %6793 = vmatpush3.bf16.msra.mxu1 %v7387_v32  ;;  %6772 = vmatprep.subr.bf16.mxu0 %v7388_v33  ;;  %v7437_v32 = vld [vmem:[%s9201_s1 + $0xdc0] sm:$0xff]  }
 0x192   :  { %6794 = vmatprep.subr.bf16.mxu1 %v7389_v34  ;;  %v7438_v33 = vld [vmem:[%s9201_s1 + $0xd00] sm:$0xff]  }
 0x193   :  { %v7439_v34 = vld [vmem:[%s9201_s1 + $0xd80] sm:$0xff]  }
 0x194   :  { %6773 = vmatpush3.bf16.msra.mxu0 %v7390_v35  ;;  %v41_v35 = vld [vmem:[%s9202_s0 + $0xd0] sm:$0xff] }
 0x195   :  { %6795 = vmatpush3.bf16.msra.mxu1 %v7391_v36  ;;  %6774 = vmatprep.subr.bf16.mxu0 %v7392_v37  ;;  %v42_v36 = vld [vmem:[%s9202_s0 + $0xd8] sm:$0xff] }
 0x196   :  { %6796 = vmatprep.subr.bf16.mxu1 %v7393_v38  ;;  %v5712_v38 = vcombine.low %v41_v35, %v41_v35 }
 0x198   :  { %6775 = vmatpush3.bf16.msra.mxu0 %v7394_v39  ;;  %v5713_v39 = vcombine.high %v41_v35, %v41_v35 }
 0x199   :  { %6797 = vmatpush3.bf16.msra.mxu1 %v7395_v40  ;;  %6776 = vmatprep.subr.bf16.mxu0 %v7396_v41  ;;  %v5714_v40 = vcombine.low %v42_v36, %v42_v36 }
 0x19a   :  { %6798 = vmatprep.subr.bf16.mxu1 %v7397_v42  ;;  %v7444_v42 = vld [vmem:[%s9201_s1 + $0xe78] sm:$0xff]  }
 0x19c   :  { %6777 = vmatpush3.bf16.msra.mxu0 %v7398_v43  ;;  %v5715_v43 = vcombine.high %v42_v36, %v42_v36  ;;  %v7483_v36 = vld [vmem:[%s9201_s1 + $0xfb8] sm:$0xff]  }
 0x19d   :  { %6799 = vmatpush3.bf16.msra.mxu1 %v7399_v44  ;;  %6778 = vmatprep.subr.bf16.mxu0 %v7400_v45  ;;  %v7445_v44 = vld [vmem:[%s9201_s1 + $0xef8] sm:$0xff]  }
 0x19e   :  { %6800 = vmatprep.subr.bf16.mxu1 %v7401_v46  ;;  %v7446_v46 = vld [vmem:[%s9201_s1 + $0xe38] sm:$0xff]  }
 0x1a0   :  { %6779 = vmatpush3.bf16.msra.mxu0 %v7402_v47 }
 0x1a1   :  { %6801 = vmatpush3.bf16.msra.mxu1 %v7403_v48  ;;  %6808 = vmatprep.subr.bf16.mxu0 %v7408_v57 }
 0x1a2   :  { %6830 = vmatprep.subr.bf16.mxu1 %v7409_v58  ;;  %v7450_v58 = vld [vmem:[%s9201_s1 + $0xe30] sm:$0xff]  }
 0x1a3   :  { %v6516_v51 = vpop.f32.mrf.mxu0  ;;  %5367 = vmatmul.mubr.bf16.vlgmr.msra.gmra.mxu0 %v5708_v52 }
 0x1a4   :  { %v6538_v56 = vpop.f32.mrf.mxu1  ;;  %5407 = vmatmul.mubr.bf16.vlgmr.msra.gmra.mxu1 %v5710_v54  ;;  %6809 = vmatpush3.bf16.msra.mxu0 %v7410_v60  ;;  %v7448_v54 = vld [vmem:[%s9201_s1 + $0xe70] sm:$0xff]  }
 0x1a5   :  { %v6517_v59 = vpop.f32.mrf.mxu0  ;;  %6831 = vmatpush3.bf16.msra.mxu1 %v7411_v63  ;;  %6810 = vmatprep.subr.bf16.mxu0 %v7412_v4  ;;  %v7451_v60 = vld [vmem:[%s9201_s1 + $0xeb0] sm:$0xff]   ;;  %v7454_v63 = vld [vmem:[%s9201_s1 + $0xe28] sm:$0xff]   ;;  %v7459_v4 = vld [vmem:[%s9201_s1 + $0xea0] sm:$0xff]  }
 0x1a6   :  { %v6518_v61 = vadd.f32 %v6517_v59, %v6516_v51  ;;  %v6539_v62 = vpop.f32.mrf.mxu1  ;;  %6832 = vmatprep.subr.bf16.mxu1 %v7413_v5  ;;  %5446 = vmatprep.mubr.bf16.mxu0 %v5713_v39  ;;  %v7460_v5 = vld [vmem:[%s9201_s1 + $0xe58] sm:$0xff]  }
 0x1a7   :  { %v6540_v0 = vadd.f32 %v6539_v62, %v6538_v56  ;;  %v6519_v1 = vpop.f32.mrf.mxu0  ;;  %5486 = vmatprep.mubr.bf16.mxu1 %v5715_v43  ;;  %v7453_v62 = vld [vmem:[%s9201_s1 + $0xee8] sm:$0xff]  }
 0x1a8   :  { %v4889_v2 = vadd.f32 %v6518_v61, %v8793_v20  ;;  %v6541_v3 = vpop.f32.mrf.mxu1  ;;  %6811 = vmatpush3.bf16.msra.mxu0 %v7414_v8  ;;  %v7425_v20 = vld [vmem:[%s9201_s1 + $0xdd8] sm:$0xff]   ;;  %v7452_v61 = vld [vmem:[%s9201_s1 + $0xe68] sm:$0xff]   ;;  %v7456_v1 = vld [vmem:[%s9201_s1 + $0xe60] sm:$0xff]  }
 0x1a9   :  { %v6520_v6 = vpop.f32.mrf.mxu0  ;;  %6833 = vmatpush3.bf16.msra.mxu1 %v7415_v10  ;;  %6812 = vmatprep.subr.bf16.mxu0 %v7416_v11  ;;  %v7458_v3 = vld [vmem:[%s9201_s1 + $0xe20] sm:$0xff]   ;;  %v7463_v8 = vld [vmem:[%s9201_s1 + $0xe98] sm:$0xff]   ;;  %v7465_v10 = vld [vmem:[%s9201_s1 + $0xed0] sm:$0xff]  }
 0x1aa   :  { %v8901_v7 = vadd.f32 %v6540_v0, %v4889_v2  ;;  %v6542_v9 = vpop.f32.mrf.mxu1  ;;  %6834 = vmatprep.subr.bf16.mxu1 %v7417_v12  ;;  %v7455_v0 = vld [vmem:[%s9201_s1 + $0xea8] sm:$0xff]   ;;  %v7457_v2 = vld [vmem:[%s9201_s1 + $0xee0] sm:$0xff]   ;;  %v7461_v6 = vld [vmem:[%s9201_s1 + $0xed8] sm:$0xff]  }
 0x1ab   :  { %v7464_v9 = vld [vmem:[%s9201_s1 + $0xe50] sm:$0xff]  }
 0x1ac   :  { %6813 = vmatpush3.bf16.msra.mxu0 %v7418_v13  ;;  %v7466_v11 = vld [vmem:[%s9201_s1 + $0xe10] sm:$0xff]   ;;  %v7468_v13 = vld [vmem:[%s9201_s1 + $0xe48] sm:$0xff]  }
 0x1ad   :  { %6835 = vmatpush3.bf16.msra.mxu1 %v7419_v14  ;;  %6814 = vmatprep.subr.bf16.mxu0 %v7420_v15  ;;  %v7467_v12 = vld [vmem:[%s9201_s1 + $0xe90] sm:$0xff]   ;;  %v7469_v14 = vld [vmem:[%s9201_s1 + $0xec8] sm:$0xff]  }
 0x1ae   :  { %6836 = vmatprep.subr.bf16.mxu1 %v7421_v16  ;;  %v7470_v15 = vld [vmem:[%s9201_s1 + $0xe08] sm:$0xff]  }
 0x1af   :  { %v7471_v16 = vld [vmem:[%s9201_s1 + $0xe88] sm:$0xff]  }
 0x1b0   :  { %6815 = vmatpush3.bf16.msra.mxu0 %v7422_v17  ;;  %v7472_v17 = vld [vmem:[%s9201_s1 + $0xe40] sm:$0xff]  }
 0x1b1   :  { %6837 = vmatpush3.bf16.msra.mxu1 %v7423_v18  ;;  %6816 = vmatprep.subr.bf16.mxu0 %v7424_v19  ;;  %v7473_v18 = vld [vmem:[%s9201_s1 + $0xec0] sm:$0xff]  }
 0x1b2   :  { %6838 = vmatprep.subr.bf16.mxu1 %v7425_v20  ;;  %v7474_v19 = vld [vmem:[%s9201_s1 + $0xe00] sm:$0xff]  }
 0x1b3   :  { %v7475_v20 = vld [vmem:[%s9201_s1 + $0xe80] sm:$0xff]  }
 0x1b4   :  { %6817 = vmatpush3.bf16.msra.mxu0 %v7426_v21  ;;  %v43_v21 = vld [vmem:[%s9202_s0 + $0xe0] sm:$0xff] }
 0x1b5   :  { %6839 = vmatpush3.bf16.msra.mxu1 %v7427_v22  ;;  %6818 = vmatprep.subr.bf16.mxu0 %v7428_v23  ;;  %v5716_v22 = vcombine.low %v43_v21, %v43_v21  ;;  %v5717_v23 = vcombine.high %v43_v21, %v43_v21 }
 0x1b6   :  { %6840 = vmatprep.subr.bf16.mxu1 %v7429_v24  ;;  %v44_v24 = vld [vmem:[%s9202_s0 + $0xe8] sm:$0xff] }
 0x1b8   :  { %6819 = vmatpush3.bf16.msra.mxu0 %v7430_v25 }
 0x1b9   :  { %6841 = vmatpush3.bf16.msra.mxu1 %v7431_v26  ;;  %6820 = vmatprep.subr.bf16.mxu0 %v7432_v27  ;;  %v5718_v27 = vcombine.low %v44_v24, %v44_v24 }
 0x1ba   :  { %6842 = vmatprep.subr.bf16.mxu1 %v7433_v28  ;;  %v5719_v28 = vcombine.high %v44_v24, %v44_v24 }
 0x1bc   :  { %6821 = vmatpush3.bf16.msra.mxu0 %v7434_v29  ;;  %v7480_v29 = vld [vmem:[%s9201_s1 + $0xf78] sm:$0xff]  }
 0x1bd   :  { %6843 = vmatpush3.bf16.msra.mxu1 %v7435_v30  ;;  %6822 = vmatprep.subr.bf16.mxu0 %v7436_v31  ;;  %v7481_v30 = vld [vmem:[%s9201_s1 + $0xff8] sm:$0xff]  }
 0x1be   :  { %6844 = vmatprep.subr.bf16.mxu1 %v7437_v32 }
 0x1c0   :  { %6823 = vmatpush3.bf16.msra.mxu0 %v7438_v33  ;;  %v7482_v33 = vld [vmem:[%s9201_s1 + $0xf38] sm:$0xff]  }
 0x1c1   :  { %6845 = vmatpush3.bf16.msra.mxu1 %v7439_v34  ;;  %6852 = vmatprep.subr.bf16.mxu0 %v7444_v42 }
 0x1c2   :  { %6874 = vmatprep.subr.bf16.mxu1 %v7445_v44 }
 0x1c3   :  { %v6560_v37 = vpop.f32.mrf.mxu0  ;;  %5447 = vmatmul.mubr.bf16.vlgmr.msra.gmra.mxu0 %v5712_v38 }
 0x1c4   :  { %v6582_v41 = vpop.f32.mrf.mxu1  ;;  %5487 = vmatmul.mubr.bf16.vlgmr.msra.gmra.mxu1 %v5714_v40  ;;  %6853 = vmatpush3.bf16.msra.mxu0 %v7446_v46  ;;  %v7484_v40 = vld [vmem:[%s9201_s1 + $0xf70] sm:$0xff]  }
 0x1c5   :  { %v6561_v45 = vpop.f32.mrf.mxu0  ;;  %6875 = vmatpush3.bf16.msra.mxu1 %v7447_v49  ;;  %6854 = vmatprep.subr.bf16.mxu0 %v7448_v54  ;;  %v7487_v46 = vld [vmem:[%s9201_s1 + $0xfb0] sm:$0xff]   ;;  %v7490_v49 = vld [vmem:[%s9201_s1 + $0xf28] sm:$0xff]   ;;  %v7495_v54 = vld [vmem:[%s9201_s1 + $0xfa0] sm:$0xff]  }
 0x1c6   :  { %v6562_v47 = vadd.f32 %v6561_v45, %v6560_v37  ;;  %v6583_v48 = vpop.f32.mrf.mxu1  ;;  %6876 = vmatprep.subr.bf16.mxu1 %v7449_v55  ;;  %5526 = vmatprep.mubr.bf16.mxu0 %v5717_v23  ;;  %v7486_v45 = vld [vmem:[%s9201_s1 + $0xf30] sm:$0xff]   ;;  %v7496_v55 = vld [vmem:[%s9201_s1 + $0xf58] sm:$0xff]  }
 0x1c7   :  { %v6584_v50 = vadd.f32 %v6583_v48, %v6582_v41  ;;  %v6563_v51 = vpop.f32.mrf.mxu0  ;;  %5566 = vmatprep.mubr.bf16.mxu1 %v5719_v28  ;;  %v7485_v41 = vld [vmem:[%s9201_s1 + $0xff0] sm:$0xff]   ;;  %v7489_v48 = vld [vmem:[%s9201_s1 + $0xfe8] sm:$0xff]  }
 0x1c8   :  { %v4969_v52 = vadd.f32 %v6562_v47, %v8901_v7  ;;  %v6585_v53 = vpop.f32.mrf.mxu1  ;;  %6855 = vmatpush3.bf16.msra.mxu0 %v7450_v58  ;;  %v7462_v7 = vld [vmem:[%s9201_s1 + $0xe18] sm:$0xff]   ;;  %v7488_v47 = vld [vmem:[%s9201_s1 + $0xf68] sm:$0xff]   ;;  %v7492_v51 = vld [vmem:[%s9201_s1 + $0xf60] sm:$0xff]  }
 0x1c9   :  { %v6564_v56 = vpop.f32.mrf.mxu0  ;;  %6877 = vmatpush3.bf16.msra.mxu1 %v7451_v60  ;;  %6856 = vmatprep.subr.bf16.mxu0 %v7452_v61  ;;  %v7494_v53 = vld [vmem:[%s9201_s1 + $0xf20] sm:$0xff]   ;;  %v7499_v58 = vld [vmem:[%s9201_s1 + $0xf98] sm:$0xff]   ;;  %v7501_v60 = vld [vmem:[%s9201_s1 + $0xfd0] sm:$0xff]  }
 0x1ca   :  { %v9006_v57 = vadd.f32 %v6584_v50, %v4969_v52  ;;  %v6586_v59 = vpop.f32.mrf.mxu1  ;;  %6878 = vmatprep.subr.bf16.mxu1 %v7453_v62  ;;  %v7491_v50 = vld [vmem:[%s9201_s1 + $0xfa8] sm:$0xff]   ;;  %v7493_v52 = vld [vmem:[%s9201_s1 + $0xfe0] sm:$0xff]   ;;  %v7497_v56 = vld [vmem:[%s9201_s1 + $0xfd8] sm:$0xff]  }
 0x1cb   :  { %v7500_v59 = vld [vmem:[%s9201_s1 + $0xf50] sm:$0xff]  }
 0x1cc   :  { %6857 = vmatpush3.bf16.msra.mxu0 %v7454_v63  ;;  %v7502_v61 = vld [vmem:[%s9201_s1 + $0xf10] sm:$0xff]   ;;  %v7504_v63 = vld [vmem:[%s9201_s1 + $0xf48] sm:$0xff]  }
 0x1cd   :  { %6879 = vmatpush3.bf16.msra.mxu1 %v7455_v0  ;;  %6858 = vmatprep.subr.bf16.mxu0 %v7456_v1  ;;  %v7503_v62 = vld [vmem:[%s9201_s1 + $0xf90] sm:$0xff]   ;;  %v7505_v0 = vld [vmem:[%s9201_s1 + $0xfc8] sm:$0xff]  }
 0x1ce   :  { %6880 = vmatprep.subr.bf16.mxu1 %v7457_v2  ;;  %v7506_v1 = vld [vmem:[%s9201_s1 + $0xf08] sm:$0xff]  }
 0x1cf   :  { %v7507_v2 = vld [vmem:[%s9201_s1 + $0xf88] sm:$0xff]  }
 0x1d0   :  { %6859 = vmatpush3.bf16.msra.mxu0 %v7458_v3  ;;  %v7508_v3 = vld [vmem:[%s9201_s1 + $0xf40] sm:$0xff]  }
 0x1d1   :  { %6881 = vmatpush3.bf16.msra.mxu1 %v7459_v4  ;;  %6860 = vmatprep.subr.bf16.mxu0 %v7460_v5  ;;  %v7509_v4 = vld [vmem:[%s9201_s1 + $0xfc0] sm:$0xff]  }
 0x1d2   :  { %6882 = vmatprep.subr.bf16.mxu1 %v7461_v6  ;;  %v7510_v5 = vld [vmem:[%s9201_s1 + $0xf00] sm:$0xff]  }
 0x1d3   :  { %v7511_v6 = vld [vmem:[%s9201_s1 + $0xf80] sm:$0xff]  }
 0x1d4   :  { %6861 = vmatpush3.bf16.msra.mxu0 %v7462_v7  ;;  %v45_v7 = vld [vmem:[%s9202_s0 + $0xf0] sm:$0xff] }
 0x1d5   :  { %6883 = vmatpush3.bf16.msra.mxu1 %v7463_v8  ;;  %6862 = vmatprep.subr.bf16.mxu0 %v7464_v9  ;;  %v46_v8 = vld [vmem:[%s9202_s0 + $0xf8] sm:$0xff] }
 0x1d6   :  { %6884 = vmatprep.subr.bf16.mxu1 %v7465_v10  ;;  %v5720_v10 = vcombine.low %v45_v7, %v45_v7 }
 0x1d8   :  { %6863 = vmatpush3.bf16.msra.mxu0 %v7466_v11  ;;  %v5721_v11 = vcombine.high %v45_v7, %v45_v7 }
 0x1d9   :  { %6885 = vmatpush3.bf16.msra.mxu1 %v7467_v12  ;;  %6864 = vmatprep.subr.bf16.mxu0 %v7468_v13  ;;  %v5722_v12 = vcombine.low %v46_v8, %v46_v8  ;;  %v5723_v13 = vcombine.high %v46_v8, %v46_v8 }
 0x1da   :  { %6886 = vmatprep.subr.bf16.mxu1 %v7469_v14 }
 0x1dc   :  { %6865 = vmatpush3.bf16.msra.mxu0 %v7470_v15 }
 0x1dd   :  { %6887 = vmatpush3.bf16.msra.mxu1 %v7471_v16  ;;  %6866 = vmatprep.subr.bf16.mxu0 %v7472_v17 }
 0x1de   :  { %6888 = vmatprep.subr.bf16.mxu1 %v7473_v18 }
 0x1e0   :  { %6867 = vmatpush3.bf16.msra.mxu0 %v7474_v19 }
 0x1e1   :  { %6889 = vmatpush3.bf16.msra.mxu1 %v7475_v20  ;;  %6896 = vmatprep.subr.bf16.mxu0 %v7480_v29 }
 0x1e2   :  { %6918 = vmatprep.subr.bf16.mxu1 %v7481_v30 }
 0x1e3   :  { %v6604_v25 = vpop.f32.mrf.mxu0  ;;  %5527 = vmatmul.mubr.bf16.vlgmr.msra.gmra.mxu0 %v5716_v22 }
 0x1e4   :  { %v6626_v26 = vpop.f32.mrf.mxu1  ;;  %5567 = vmatmul.mubr.bf16.vlgmr.msra.gmra.mxu1 %v5718_v27  ;;  %6897 = vmatpush3.bf16.msra.mxu0 %v7482_v33 }
 0x1e5   :  { %v6605_v31 = vpop.f32.mrf.mxu0  ;;  %6919 = vmatpush3.bf16.msra.mxu1 %v7483_v36  ;;  %6898 = vmatprep.subr.bf16.mxu0 %v7484_v40 }
 0x1e6   :  { %v6627_v32 = vpop.f32.mrf.mxu1  ;;  %v6606_v34 = vadd.f32 %v6605_v31, %v6604_v25  ;;  %6920 = vmatprep.subr.bf16.mxu1 %v7485_v41  ;;  %5606 = vmatprep.mubr.bf16.mxu0 %v5721_v11 }
 0x1e7   :  { %v6628_v35 = vadd.f32 %v6627_v32, %v6626_v26  ;;  %v6607_v37 = vpop.f32.mrf.mxu0  ;;  %5646 = vmatprep.mubr.bf16.mxu1 %v5723_v13 }
 0x1e8   :  { %v6629_v38 = vpop.f32.mrf.mxu1  ;;  %v5049_v39 = vadd.f32 %v6606_v34, %v9006_v57  ;;  %6899 = vmatpush3.bf16.msra.mxu0 %v7486_v45  ;;  %v7498_v57 = vld [vmem:[%s9201_s1 + $0xf18] sm:$0xff]  }
 0x1e9   :  { %v6608_v42 = vpop.f32.mrf.mxu0  ;;  %6921 = vmatpush3.bf16.msra.mxu1 %v7487_v46  ;;  %6900 = vmatprep.subr.bf16.mxu0 %v7488_v47 }
 0x1ea   :  { %v6630_v43 = vpop.f32.mrf.mxu1  ;;  %v9111_v44 = vadd.f32 %v6628_v35, %v5049_v39  ;;  %6922 = vmatprep.subr.bf16.mxu1 %v7489_v48 }
 0x1ec   :  { %6901 = vmatpush3.bf16.msra.mxu0 %v7490_v49 }
 0x1ed   :  { %6923 = vmatpush3.bf16.msra.mxu1 %v7491_v50  ;;  %6902 = vmatprep.subr.bf16.mxu0 %v7492_v51 }
 0x1ee   :  { %6924 = vmatprep.subr.bf16.mxu1 %v7493_v52 }
 0x1f0   :  { %6903 = vmatpush3.bf16.msra.mxu0 %v7494_v53 }
 0x1f1   :  { %6925 = vmatpush3.bf16.msra.mxu1 %v7495_v54  ;;  %6904 = vmatprep.subr.bf16.mxu0 %v7496_v55 }
 0x1f2   :  { %6926 = vmatprep.subr.bf16.mxu1 %v7497_v56 }
 0x1f4   :  { %6905 = vmatpush3.bf16.msra.mxu0 %v7498_v57 }
 0x1f5   :  { %6927 = vmatpush3.bf16.msra.mxu1 %v7499_v58  ;;  %6906 = vmatprep.subr.bf16.mxu0 %v7500_v59 }
 0x1f6   :  { %6928 = vmatprep.subr.bf16.mxu1 %v7501_v60 }
 0x1f8   :  { %6907 = vmatpush3.bf16.msra.mxu0 %v7502_v61 }
 0x1f9   :  { %6929 = vmatpush3.bf16.msra.mxu1 %v7503_v62  ;;  %6908 = vmatprep.subr.bf16.mxu0 %v7504_v63 }
 0x1fa   :  { %6930 = vmatprep.subr.bf16.mxu1 %v7505_v0 }
 0x1fc   :  { %6909 = vmatpush3.bf16.msra.mxu0 %v7506_v1 }
 0x1fd   :  { %6931 = vmatpush3.bf16.msra.mxu1 %v7507_v2  ;;  %6910 = vmatprep.subr.bf16.mxu0 %v7508_v3 }
 0x1fe   :  { %6932 = vmatprep.subr.bf16.mxu1 %v7509_v4 }
 0x200   :  { %6911 = vmatpush3.bf16.msra.mxu0 %v7510_v5 }
 0x201   :  { %6933 = vmatpush3.bf16.msra.mxu1 %v7511_v6 }
 0x203   :  { %v6648_v9 = vpop.f32.mrf.mxu0  ;;  %5607 = vmatmul.mubr.bf16.vlgmr.msra.gmra.mxu0 %v5720_v10 }
 0x204   :  { %v6670_v14 = vpop.f32.mrf.mxu1  ;;  %5647 = vmatmul.mubr.bf16.vlgmr.msra.gmra.mxu1 %v5722_v12 }
 0x205   :  { %v6649_v15 = vpop.f32.mrf.mxu0 }
 0x206   :  { %v6650_v16 = vadd.f32 %v6649_v15, %v6648_v9  ;;  %v6671_v17 = vpop.f32.mrf.mxu1 }
 0x207   :  { %v6672_v18 = vadd.f32 %v6671_v17, %v6670_v14  ;;  %v6651_v19 = vpop.f32.mrf.mxu0 }
 0x208   :  { %v5129_v20 = vadd.f32 %v6650_v16, %v9111_v44  ;;  %v6673_v21 = vpop.f32.mrf.mxu1 }
 0x209   :  { %v6652_v22 = vpop.f32.mrf.mxu0 }
 0x20a   :  { %v5169_v23 = vadd.f32 %v6672_v18, %v5129_v20  ;;  %v6674_v24 = vpop.f32.mrf.mxu1 }
 0x223   :  { %v6692_v25 = vpop.f32.mrf.mxu0 }
 0x224   :  { %v6714_v26 = vpop.f32.mrf.mxu1 }
 0x225   :  { %v6693_v27 = vpop.f32.mrf.mxu0 }
 0x226   :  { %v6694_v28 = vadd.f32 %v6693_v27, %v6692_v25  ;;  %v6715_v29 = vpop.f32.mrf.mxu1 }
 0x227   :  { %v6716_v30 = vadd.f32 %v6715_v29, %v6714_v26  ;;  %v6695_v31 = vpop.f32.mrf.mxu0 }
 0x228   :  { %v5209_v32 = vadd.f32 %v6694_v28, %v5169_v23  ;;  %v6717_v33 = vpop.f32.mrf.mxu1 }
 0x229   :  { %v6696_v34 = vpop.f32.mrf.mxu0 }
 0x22a   :  { %v5249_v35 = vadd.f32 %v6716_v30, %v5209_v32  ;;  %v6718_v36 = vpop.f32.mrf.mxu1 }
 0x243   :  { %v6736_v37 = vpop.f32.mrf.mxu0 }
 0x244   :  { %v6758_v38 = vpop.f32.mrf.mxu1 }
 0x245   :  { %v6737_v39 = vpop.f32.mrf.mxu0 }
 0x246   :  { %v6759_v40 = vpop.f32.mrf.mxu1  ;;  %v6738_v41 = vadd.f32 %v6737_v39, %v6736_v37 }
 0x247   :  { %v6760_v42 = vadd.f32 %v6759_v40, %v6758_v38  ;;  %v6739_v43 = vpop.f32.mrf.mxu0 }
 0x248   :  { %v6761_v44 = vpop.f32.mrf.mxu1  ;;  %v5289_v45 = vadd.f32 %v6738_v41, %v5249_v35 }
 0x249   :  { %v6740_v46 = vpop.f32.mrf.mxu0 }
 0x24a   :  { %v6762_v47 = vpop.f32.mrf.mxu1  ;;  %v5329_v48 = vadd.f32 %v6760_v42, %v5289_v45 }
 0x263   :  { %v6780_v49 = vpop.f32.mrf.mxu0 }
 0x264   :  { %v6802_v50 = vpop.f32.mrf.mxu1 }
 0x265   :  { %v6781_v51 = vpop.f32.mrf.mxu0 }
 0x266   :  { %v6782_v52 = vadd.f32 %v6781_v51, %v6780_v49  ;;  %v6803_v53 = vpop.f32.mrf.mxu1 }
 0x267   :  { %v6804_v54 = vadd.f32 %v6803_v53, %v6802_v50  ;;  %v6783_v55 = vpop.f32.mrf.mxu0 }
 0x268   :  { %v5369_v56 = vadd.f32 %v6782_v52, %v5329_v48  ;;  %v6805_v57 = vpop.f32.mrf.mxu1 }
 0x269   :  { %v6784_v58 = vpop.f32.mrf.mxu0 }
 0x26a   :  { %v5409_v59 = vadd.f32 %v6804_v54, %v5369_v56  ;;  %v6806_v60 = vpop.f32.mrf.mxu1 }
 0x283   :  { %v6824_v61 = vpop.f32.mrf.mxu0 }
 0x284   :  { %v6846_v62 = vpop.f32.mrf.mxu1 }
 0x285   :  { %v6825_v63 = vpop.f32.mrf.mxu0 }
 0x286   :  { %v6847_v0 = vpop.f32.mrf.mxu1  ;;  %v6826_v13 = vadd.f32 %v6825_v63, %v6824_v61 }
 0x287   :  { %v6827_v1 = vpop.f32.mrf.mxu0  ;;  %v6848_v15 = vadd.f32 %v6847_v0, %v6846_v62 }
 0x288   :  { %v6849_v2 = vpop.f32.mrf.mxu1  ;;  %v5449_v14 = vadd.f32 %v6826_v13, %v5409_v59 }
 0x289   :  { %v6828_v3 = vpop.f32.mrf.mxu0 }
 0x28a   :  { %v6850_v4 = vpop.f32.mrf.mxu1  ;;  %v5489_v17 = vadd.f32 %v6848_v15, %v5449_v14 }
 0x2a3   :  { %v6868_v5 = vpop.f32.mrf.mxu0 }
 0x2a4   :  { %v6890_v6 = vpop.f32.mrf.mxu1 }
 0x2a5   :  { %v6869_v7 = vpop.f32.mrf.mxu0 }
 0x2a6   :  { %v6891_v8 = vpop.f32.mrf.mxu1  ;;  %v6870_v16 = vadd.f32 %v6869_v7, %v6868_v5 }
 0x2a7   :  { %v6871_v9 = vpop.f32.mrf.mxu0  ;;  %v6892_v19 = vadd.f32 %v6891_v8, %v6890_v6 }
 0x2a8   :  { %v6893_v10 = vpop.f32.mrf.mxu1  ;;  %v5529_v18 = vadd.f32 %v6870_v16, %v5489_v17 }
 0x2a9   :  { %v6872_v11 = vpop.f32.mrf.mxu0 }
 0x2aa   :  { %v6894_v12 = vpop.f32.mrf.mxu1  ;;  %v5569_v23 = vadd.f32 %v6892_v19, %v5529_v18 }
 0x2c3   :  { %v6912_v20 = vpop.f32.mrf.mxu0 }
 0x2c4   :  { %v6934_v21 = vpop.f32.mrf.mxu1 }
 0x2c5   :  { %v6913_v22 = vpop.f32.mrf.mxu0 }
 0x2c6   :  { %v6914_v24 = vadd.f32 %v6913_v22, %v6912_v20  ;;  %v6935_v25 = vpop.f32.mrf.mxu1 }
 0x2c7   :  { %v6915_v26 = vpop.f32.mrf.mxu0  ;;  %v6936_v28 = vadd.f32 %v6935_v25, %v6934_v21 }
 0x2c8   :  { %v5609_v27 = vadd.f32 %v6914_v24, %v5569_v23  ;;  %v6937_v29 = vpop.f32.mrf.mxu1 }
 0x2c9   :  { %v6916_v30 = vpop.f32.mrf.mxu0 }
 0x2ca   :  { %v5649_v31 = vadd.f32 %v6936_v28, %v5609_v27  ;;  %v6938_v32 = vpop.f32.mrf.mxu1 }
 0x2cc   :  { %5654 = vst [vmem:[%s9204_s3] sm:$0xff] %v5649_v31 }

</bundles_post_ra>
